<compile_context>
chip_gen: v6e
topology: v6e:2x2x1
jax: 0.10.0
libtpu: 0.0.40
codegen_flags: <defaults>
</compile_context>

<pallas_src>
import jax
import jax.numpy as jnp
import numpy as np
from jax.experimental import pallas as pl
from jax.experimental.pallas import tpu as pltpu

BN_EPS = 1e-5


def _round_up(x, m):
    return pl.cdiv(x, m) * m


# ---------------------------------------------------------------------------
# Synthetic backbone: 1x1 conv (C -> F) + ReLU + global average pool.
# ---------------------------------------------------------------------------
def _backbone_kernel(x_ref, wconv_t_ref, feat_ref, acc_ref):
    """One (batch-block, feat-tile, HW-chunk) grid step.

    x_ref:       [TB, C, THW]  input chunk (HW chunk on the lane axis -> dense loads)
    wconv_t_ref: [TF, C]       1x1 conv weight tile (transposed, 1/HW pre-folded)
    feat_ref:    [TB, TF]      mean-pooled features (written at the last HW chunk,
                               already in the fc matmul dtype)
    acc_ref:     [TB, TF]      f32 VMEM scratch accumulator across HW chunks
    """
    h = pl.program_id(2)

    @pl.when(h == 0)
    def _():
        acc_ref[...] = jnp.zeros_like(acc_ref)

    x = x_ref[...]                               # [TB, C, THW]  float32
    w = wconv_t_ref[...]                         # [TF, C]       float32
    n_chan = x_ref.shape[1]
    # 1x1 conv as C broadcast-FMA passes on the VPU (K = C is tiny: skip the MXU).
    t = x[:, 0:1, :] * w[:, 0:1][None]           # [TB, TF, THW]
    for c in range(1, n_chan):
        t = t + x[:, c:c + 1, :] * w[:, c:c + 1][None]
    t = jnp.maximum(t, 0.0)                      # ReLU
    acc_ref[...] += jnp.sum(t, axis=-1)          # XLU lane-reduce over the HW chunk

    @pl.when(h == pl.num_programs(2) - 1)
    def _():
        feat_ref[...] = acc_ref[...].astype(feat_ref.dtype)   # single cast to bf16/f32


# ---------------------------------------------------------------------------
# Head: bnneck (folded) + eval-dropout (no-op) + bias-free fc, as one matmul.
# ---------------------------------------------------------------------------
def _fc_head_kernel(feat_ref, wfc_ref, bias_ref, la_ref):
    """One (class-tile, batch-block) grid step: la = feat @ wfc_eff + bias_eff.

    feat_ref: [TB, Fp]  pooled features (matmul dtype)
    wfc_ref:  [Fp, TN]  fc weight tile with eval-BN folded in (matmul dtype)
    bias_ref: [1, TN]   folded BN bias projected through the fc weight (f32)
    la_ref:   [TB, TN]  logits tile (lane-dense: NC padded to a multiple of 128)
    """
    la = jnp.dot(feat_ref[...], wfc_ref[...], preferred_element_type=jnp.float32)
    la_ref[...] = (la + bias_ref[...]).astype(la_ref.dtype)


def cls_network_forward(x_nchw, params, *, block_b=None, block_nc=None,
                        matmul_dtype=jnp.bfloat16):
    """x_nchw: [B, C, H, W] float32 -> logits [B, num_classes] float32 (eval mode)."""
    B, C, H, W = x_nchw.shape
    HW = H * W
    wconv = params["wconv"]                       # [C, F]
    F = wconv.shape[1]
    wfc_t = params["wfc_t"]                       # [F, NC]
    NC = wfc_t.shape[1]

    # ---- Pad feat_dim / batch to TPU-friendly sizes --------------------------------
    Fp = _round_up(max(F, 128), 128)              # lane-dense K and feat stores
    Bp = _round_up(max(B, 16), 16)                # bf16 sublane packing
    TB = block_b if block_b is not None else min(Bp, 256)
    assert TB % 8 == 0
    Bp = _round_up(Bp, TB)

    # ---- Class tiling: big lane-dense tiles, minimal zero padding -------------------
    NCP = _round_up(NC, 128)
    if block_nc is not None:
        TN = block_nc
        assert TN % 128 == 0
        NCP = _round_up(NCP, TN)
    elif NCP <= 2048:
        TN = NCP                                  # whole (padded) class dim in one tile
    else:
        best = None                               # TN in [1024, 2048]; minimize padding
        for tb in range(16, 7, -1):
            cand_tn = tb * 128
            cand_ncp = _round_up(NCP, cand_tn)
            if best is None or cand_ncp < best[1]:
                best = (cand_tn, cand_ncp)
        TN, NCP = best

    # ---- Fold eval-mode BatchNorm1d into the fc weight / bias -----------------------
    #   bn(feat) = (feat - mean) * gamma * rsqrt(var + eps) + beta   (running stats)
    #   la = bn(feat) @ Wfc  ==  feat @ (scale * Wfc)  +  shift @ Wfc
    inv_std = jax.lax.rsqrt(params["bn_var"].astype(jnp.float32) + BN_EPS)      # [1, F]
    scale = (params["bn_gamma"] * inv_std).reshape(F)                           # [F]
    shift = (params["bn_beta"]
             - params["bn_mean"] * params["bn_gamma"] * inv_std).reshape(F)     # [F]
    wfc_eff = scale[:, None] * wfc_t                                            # [F, NC]
    bias_eff = shift @ wfc_t                                                    # [NC]
    wfc_eff = jnp.pad(wfc_eff, ((0, Fp - F), (0, NCP - NC))).astype(matmul_dtype)
    bias_eff = jnp.pad(bias_eff, (0, NCP - NC)).reshape(1, NCP).astype(jnp.float32)

    # ---- Synthetic backbone inputs: x [Bp, C, HW] (HW on the lane axis), ------------
    # conv weight^T [Fp, C] with the 1/HW pool scale folded in (ReLU commutes with a
    # positive scale), so the kernel's accumulated sum is already the mean pool.
    x = x_nchw.astype(jnp.float32).reshape(B, C, HW)
    if Bp != B:
        x = jnp.pad(x, ((0, Bp - B), (0, 0), (0, 0)))
    wconv_t = jnp.pad((wconv.astype(jnp.float32) / HW).T, ((0, Fp - F), (0, 0)))  # [Fp,C]

    TB_BB = min(Bp, 16)                           # small blocks: pre-ReLU chunk stays
    TF = 128                                      # at ~TB_BB*TF*THW*4 B (a couple MiB)
    if HW % 256 == 0:
        THW = min(HW, 256)
    elif HW % 128 == 0:
        THW = 128
    else:
        THW = HW

    feat = pl.pallas_call(
        _backbone_kernel,
        out_shape=jax.ShapeDtypeStruct((Bp, Fp), matmul_dtype),
        grid_spec=pltpu.PrefetchScalarGridSpec(
            num_scalar_prefetch=0,
            grid=(Bp // TB_BB, Fp // TF, HW // THW),
            in_specs=[
                pl.BlockSpec((TB_BB, C, THW), lambda b, f, h: (b, 0, h)),   # x chunk
                pl.BlockSpec((TF, C),         lambda b, f, h: (f, 0)),      # conv w^T
            ],
            out_specs=pl.BlockSpec((TB_BB, TF), lambda b, f, h: (b, f)),
            scratch_shapes=[pltpu.VMEM((TB_BB, TF), jnp.float32)],
        ),
        compiler_params=pltpu.CompilerParams(
            dimension_semantics=("parallel", "parallel", "arbitrary"),
            vmem_limit_bytes=48 * 1024 * 1024),
    )(x, wconv_t)

    # ---- Head: class axis OUTER so each fc-weight tile is streamed from HBM exactly
    # once; feat / bias blocks have n-independent index maps and are not re-DMA'd across
    # the inner batch axis. Both axes independent -> both "parallel" (megacore).
    la = pl.pallas_call(
        _fc_head_kernel,
        out_shape=jax.ShapeDtypeStruct((Bp, NCP), jnp.float32),
        grid_spec=pltpu.PrefetchScalarGridSpec(
            num_scalar_prefetch=0,
            grid=(NCP // TN, Bp // TB),
            in_specs=[
                pl.BlockSpec((TB, Fp), lambda n, b: (b, 0)),   # pooled features
                pl.BlockSpec((Fp, TN), lambda n, b: (0, n)),   # folded fc weight tile
                pl.BlockSpec((1, TN),  lambda n, b: (0, n)),   # folded fc bias tile
            ],
            out_specs=pl.BlockSpec((TB, TN), lambda n, b: (b, n)),
        ),
        compiler_params=pltpu.CompilerParams(
            dimension_semantics=("parallel", "parallel"),
            vmem_limit_bytes=48 * 1024 * 1024),
    )(feat, wfc_eff, bias_eff)

    return la[:B, :NC]


def init_params(key, C, feat_dim, num_classes):
    k_conv, k_fc, k_mean, k_var = jax.random.split(key, 4)
    # Conv: kaiming_normal fan_in (a=0) -> std = sqrt(2 / fan_in), fan_in = C*1*1.
    wconv = jax.random.normal(k_conv, (C, feat_dim), jnp.float32) * np.sqrt(2.0 / C)
    # bnneck: weights_init_kaiming -> gamma = 1, beta = 0 (bias frozen).
    bn_gamma = jnp.ones((1, feat_dim), jnp.float32)
    bn_beta = jnp.zeros((1, feat_dim), jnp.float32)
    # Running stats as a trained model would have them (fresh-init 0/1 would make
    # eval-mode BN a near-no-op and hide BN-folding bugs in the check below).
    bn_mean = 0.5 * jax.random.normal(k_mean, (1, feat_dim), jnp.float32)
    bn_var = jax.random.uniform(k_var, (1, feat_dim), jnp.float32, 0.5, 1.5)
    # fc: weights_init_classifier -> normal std=0.001, bias-free (bnneck branch).
    # torch Linear weight is [num_classes, feat_dim]; store transposed [F, NC].
    wfc = jax.random.normal(k_fc, (num_classes, feat_dim), jnp.float32) * 0.001
    return {
        "wconv": wconv,
        "bn_gamma": bn_gamma,
        "bn_beta": bn_beta,
        "bn_mean": bn_mean,
        "bn_var": bn_var,
        "wfc_t": wfc.T,
    }


def reference_forward(x_nchw, params):
    """Unfused float64 numpy reference of the PyTorch eval-mode forward."""
    x = np.asarray(x_nchw, np.float64)
    B, C, H, W = x.shape
    wconv = np.asarray(params["wconv"], np.float64)
    h = np.maximum(np.einsum("bcp,cf->bpf", x.reshape(B, C, H * W), wconv), 0.0)
    feat = h.mean(axis=1)                                         # [B, F]
    gamma = np.asarray(params["bn_gamma"], np.float64)
    beta = np.asarray(params["bn_beta"], np.float64)
    mean = np.asarray(params["bn_mean"], np.float64)
    var = np.asarray(params["bn_var"], np.float64)
    feat_bn = (feat - mean) / np.sqrt(var + BN_EPS) * gamma + beta
    return feat_bn @ np.asarray(params["wfc_t"], np.float64)      # [B, NC]


if __name__ == "__main__":
    B, C, H, W = 2, 4, 16, 16
    feat_dim, num_classes = 32, 16

    key = jax.random.PRNGKey(0)
    k_x, k_p = jax.random.split(key)
    x = jax.random.normal(k_x, (B, C, H, W), jnp.float32)
    params = init_params(k_p, C, feat_dim, num_classes)

    la_ref = reference_forward(x, params)

    # Default (bf16 fc operands on all generations, f32 accumulation): looser check.
    la_bf16 = jax.block_until_ready(cls_network_forward(x, params))
    np.testing.assert_allclose(np.asarray(la_bf16), la_ref, rtol=2e-2, atol=2e-3)

    # float32 fc operands: tight check of kernel structure / BN + pool folding.
    la_f32 = jax.block_until_ready(
        cls_network_forward(x, params, matmul_dtype=jnp.float32))
    np.testing.assert_allclose(np.asarray(la_f32), la_ref, rtol=1e-3, atol=2e-4)

    print("KERNEL_OK")
</pallas_src>

<mosaic_0001>
module attributes {stable_mosaic.version = 11 : i64} {
  func.func @_backbone_kernel(%arg0: i32, %arg1: i32, %arg2: i32, %arg3: memref<16x4x256xf32, #tpu.memory_space<vmem>>, %arg4: memref<128x4xf32, #tpu.memory_space<vmem>>, %arg5: memref<16x128xbf16, #tpu.memory_space<vmem>>, %arg6: memref<16x128xf32, #tpu.memory_space<vmem>>) attributes {dimension_semantics = [#tpu.dimension_semantics<parallel>, #tpu.dimension_semantics<parallel>, #tpu.dimension_semantics<arbitrary>], iteration_bounds = array<i64: 1, 1, 1>, scalar_prefetch = 0 : i64, scratch_operands = 1 : i64, tpu.core_type = #tpu.core_type<tc>, window_params = [{transform_indices = @transform_0, window_bounds = array<i64: 16, 4, 256>}, {transform_indices = @transform_1, window_bounds = array<i64: 128, 4>}, {transform_indices = @transform_2, window_bounds = array<i64: 16, 128>}]} {
    %c0_i32 = arith.constant 0 : i32
    %0 = arith.cmpi eq, %arg2, %c0_i32 : i32
    %1 = arith.extui %0 : i1 to i32
    %c0_i32_0 = arith.constant 0 : i32
    %2 = arith.cmpi ne, %1, %c0_i32_0 : i32
    scf.if %2 {
      %cst_12 = arith.constant 0.000000e+00 : f32
      %41 = vector.broadcast %cst_12 : f32 to vector<16x128xf32>
      %c0_13 = arith.constant 0 : index
      %c0_14 = arith.constant 0 : index
      %42 = vector.load %arg6[%c0_13, %c0_14] : memref<16x128xf32, #tpu.memory_space<vmem>>, vector<16x128xf32>
      tpu.vector_store %arg6[%c0_13, %c0_14], %41 {strides = array<i32>} : memref<16x128xf32, #tpu.memory_space<vmem>>, vector<16x128xf32>,
    } else {
    }
    %c0 = arith.constant 0 : index
    %c0_1 = arith.constant 0 : index
    %c0_2 = arith.constant 0 : index
    %3 = vector.load %arg3[%c0, %c0_1, %c0_2] : memref<16x4x256xf32, #tpu.memory_space<vmem>>, vector<16x4x256xf32>
    %c0_3 = arith.constant 0 : index
    %c0_4 = arith.constant 0 : index
    %4 = vector.load %arg4[%c0_3, %c0_4] : memref<128x4xf32, #tpu.memory_space<vmem>>, vector<128x4xf32>
    %5 = vector.extract_strided_slice %3 {offsets = [0, 0, 0], sizes = [16, 1, 256], strides = [1, 1, 1]} : vector<16x4x256xf32> to vector<16x1x256xf32>
    %6 = vector.extract_strided_slice %4 {offsets = [0, 0], sizes = [128, 1], strides = [1, 1]} : vector<128x4xf32> to vector<128x1xf32>
    %7 = vector.shape_cast %6 : vector<128x1xf32> to vector<1x128x1xf32>
    %8 = vector.broadcast %5 : vector<16x1x256xf32> to vector<16x128x256xf32>
    %9 = vector.broadcast %7 : vector<1x128x1xf32> to vector<16x128x256xf32>
    %10 = arith.mulf %8, %9 : vector<16x128x256xf32>
    %11 = vector.extract_strided_slice %3 {offsets = [0, 1, 0], sizes = [16, 1, 256], strides = [1, 1, 1]} : vector<16x4x256xf32> to vector<16x1x256xf32>
    %12 = vector.extract_strided_slice %4 {offsets = [0, 1], sizes = [128, 1], strides = [1, 1]} : vector<128x4xf32> to vector<128x1xf32>
    %13 = vector.shape_cast %12 : vector<128x1xf32> to vector<1x128x1xf32>
    %14 = vector.broadcast %11 : vector<16x1x256xf32> to vector<16x128x256xf32>
    %15 = vector.broadcast %13 : vector<1x128x1xf32> to vector<16x128x256xf32>
    %16 = arith.mulf %14, %15 : vector<16x128x256xf32>
    %17 = arith.addf %10, %16 : vector<16x128x256xf32>
    %18 = vector.extract_strided_slice %3 {offsets = [0, 2, 0], sizes = [16, 1, 256], strides = [1, 1, 1]} : vector<16x4x256xf32> to vector<16x1x256xf32>
    %19 = vector.extract_strided_slice %4 {offsets = [0, 2], sizes = [128, 1], strides = [1, 1]} : vector<128x4xf32> to vector<128x1xf32>
    %20 = vector.shape_cast %19 : vector<128x1xf32> to vector<1x128x1xf32>
    %21 = vector.broadcast %18 : vector<16x1x256xf32> to vector<16x128x256xf32>
    %22 = vector.broadcast %20 : vector<1x128x1xf32> to vector<16x128x256xf32>
    %23 = arith.mulf %21, %22 : vector<16x128x256xf32>
    %24 = arith.addf %17, %23 : vector<16x128x256xf32>
    %25 = vector.extract_strided_slice %3 {offsets = [0, 3, 0], sizes = [16, 1, 256], strides = [1, 1, 1]} : vector<16x4x256xf32> to vector<16x1x256xf32>
    %26 = vector.extract_strided_slice %4 {offsets = [0, 3], sizes = [128, 1], strides = [1, 1]} : vector<128x4xf32> to vector<128x1xf32>
    %27 = vector.shape_cast %26 : vector<128x1xf32> to vector<1x128x1xf32>
    %28 = vector.broadcast %25 : vector<16x1x256xf32> to vector<16x128x256xf32>
    %29 = vector.broadcast %27 : vector<1x128x1xf32> to vector<16x128x256xf32>
    %30 = arith.mulf %28, %29 : vector<16x128x256xf32>
    %31 = arith.addf %24, %30 : vector<16x128x256xf32>
    %cst = arith.constant 0.000000e+00 : f32
    %32 = vector.broadcast %cst : f32 to vector<16x128x256xf32>
    %33 = arith.maximumf %31, %32 : vector<16x128x256xf32>
    %c0_5 = arith.constant 0 : index
    %c0_6 = arith.constant 0 : index
    %34 = vector.load %arg6[%c0_5, %c0_6] : memref<16x128xf32, #tpu.memory_space<vmem>>, vector<16x128xf32>
    %cst_7 = arith.constant dense<0.000000e+00> : vector<16x128xf32>
    %35 = vector.multi_reduction <add>, %33, %cst_7 [2] : vector<16x128x256xf32> to vector<16x128xf32>
    %36 = arith.addf %34, %35 : vector<16x128xf32>
    %c0_8 = arith.constant 0 : index
    %c0_9 = arith.constant 0 : index
    %37 = vector.load %arg6[%c0_8, %c0_9] : memref<16x128xf32, #tpu.memory_space<vmem>>, vector<16x128xf32>
    tpu.vector_store %arg6[%c0_8, %c0_9], %36 {strides = array<i32>} : memref<16x128xf32, #tpu.memory_space<vmem>>, vector<16x128xf32>,
    %c0_i32_10 = arith.constant 0 : i32
    %38 = arith.cmpi eq, %arg2, %c0_i32_10 : i32
    %39 = arith.extui %38 : i1 to i32
    %c0_i32_11 = arith.constant 0 : i32
    %40 = arith.cmpi ne, %39, %c0_i32_11 : i32
    scf.if %40 {
      %c0_12 = arith.constant 0 : index
      %c0_13 = arith.constant 0 : index
      %41 = vector.load %arg6[%c0_12, %c0_13] : memref<16x128xf32, #tpu.memory_space<vmem>>, vector<16x128xf32>
      %42 = arith.truncf %41 : vector<16x128xf32> to vector<16x128xbf16>
      %c0_14 = arith.constant 0 : index
      %c0_15 = arith.constant 0 : index
      %43 = vector.load %arg5[%c0_14, %c0_15] : memref<16x128xbf16, #tpu.memory_space<vmem>>, vector<16x128xbf16>
      tpu.vector_store %arg5[%c0_14, %c0_15], %42 {strides = array<i32>} : memref<16x128xbf16, #tpu.memory_space<vmem>>, vector<16x128xbf16>,
    } else {
    }
    return
  }
  func.func @transform_0(%arg0: i32, %arg1: i32, %arg2: i32) -> (i32, i32, i32) {
    %c0_i32 = arith.constant 0 : i32
    %c0_i32_0 = arith.constant 0 : i32
    return %arg0, %c0_i32, %arg2 : i32, i32, i32
  }
  func.func @transform_1(%arg0: i32, %arg1: i32, %arg2: i32) -> (i32, i32) {
    %c0_i32 = arith.constant 0 : i32
    %c0_i32_0 = arith.constant 0 : i32
    return %arg1, %c0_i32 : i32, i32
  }
  func.func @transform_2(%arg0: i32, %arg1: i32, %arg2: i32) -> (i32, i32) {
    %c0_i32 = arith.constant 0 : i32
    return %arg0, %arg1 : i32, i32
  }
}

</mosaic_0001>

<bundles_post_ra>
// kernel: tpu_custom_call.1
= control target key start
LH: loop header
LB: loop body
LE: loop exit
PB: predicated region body
PF: predicated region fallthrough
CT: control target
= control target key end

     0   :  { %v8012_v2 = vmov 0   ;;  %s15057_s0 = inlined_call_operand.vmem [shape: f32[16,4,256], index: 0, kind: input, shape index: {}]   ;;  %s15058_s1 = inlined_call_operand.vmem [shape: f32[128,4], index: 1, kind: input, shape index: {}]   ;;  %s15059_s2 = inlined_call_operand.hbm [shape: bf16[16,128], index: 2, kind: output, shape index: {}]  }
   0x1   :  { %v8037_v0 = vld [vmem:[%s15058_s1 + $0x10] sm:$0xff]  ;;  %v8042_v1 = vld [vmem:[%s15058_s1] sm:$0xff]  ;;  %7983 = vset.pattern.permute.xlu1 %v8012_v2  ;;  %7982 = vset.pattern.permute.xlu0 %v8012_v2  ;;  %v8049_v3 = vld [vmem:[%s15058_s1 + $0x18] sm:$0xff] }
   0x2   :  { %366 = vperm.xlu1 %7983, %v8037_v0   ;;  %356 = vperm.xlu0 %7982, %v8042_v1   ;;  %v8054_v4 = vld [vmem:[%s15058_s1 + $0x8] sm:$0xff] }
   0x6   :  { %371 = vperm.xlu1 %7983, %v8049_v3   ;;  %361 = vperm.xlu0 %7982, %v8054_v4  }
   0x7   :  { %7 = vsyncpa [#allocation4], 0  ;;  %v8061_v5 = vld [vmem:[%s15058_s1 + $0x28] sm:$0xff]  ;;  %v8066_v6 = vld [vmem:[%s15058_s1 + $0x20] sm:$0xff]  ;;  %v8013_v17 = vmov 1   ;;  %v8014_v18 = vmov 2   ;;  %v15060_v20 = vlaneseq }
   0x8   :  { %v8073_v7 = vld [vmem:[%s15058_s1 + $0x38] sm:$0xff]  ;;  %v8078_v8 = vld [vmem:[%s15058_s1 + $0x30] sm:$0xff]  ;;  %v8085_v9 = vld [vmem:[%s15058_s1 + $0x48] sm:$0xff]  ;;  %v8015_v19 = vmov 3   ;;  %vm6623_vm0 = vcmask 130112   ;;  %vm6630_vm1 = vcmask 195712  }
   0x9   :  { %v8090_v10 = vld [vmem:[%s15058_s1 + $0x40] sm:$0xff]  ;;  %v8097_v11 = vld [vmem:[%s15058_s1 + $0x58] sm:$0xff]  ;;  %v8102_v12 = vld [vmem:[%s15058_s1 + $0x50] sm:$0xff]  ;;  %v8171_v21 = vshrl.u32 %v15060_v20, 7  ;;  %vm6637_vm2 = vcmask 261312   ;;  %vm6644_vm3 = vcmask 326912  }
   0xa   :  { %381 = vperm.xlu1 %7983, %v8061_v5   ;;  %376 = vperm.xlu0 %7982, %v8066_v6   ;;  %v8109_v13 = vld [vmem:[%s15058_s1 + $0x68] sm:$0xff]  ;;  %v8114_v14 = vld [vmem:[%s15058_s1 + $0x60] sm:$0xff]  ;;  %v8121_v15 = vld [vmem:[%s15058_s1 + $0x78] sm:$0xff]  ;;  %vm6651_vm4 = vcmask 392512   ;;  %vm6658_vm5 = vcmask 458112   ;;  %vm15648_vm6 = vcmask 523712  }
   0xb   :  { %v8126_v16 = vld [vmem:[%s15058_s1 + $0x70] sm:$0xff]  ;;  %15651 = vst [vmem:[#allocation6_spill] sm:$0xff] %v8171_v21  ;;  %v8176_v22 = vsub.s32 0, %v8171_v21  ;;  %v8179_v23 = vsub.s32 4, %v8171_v21  ;;  %v18_v24 = vld [vmem:[%s15057_s0] sm:$0xff]  ;;  %v8185_v25 = vsub.s32 1, %v8171_v21 }
   0xc   :  { %v8188_v26 = vsub.s32 5, %v8171_v21  ;;  %v19_v27 = vld [vmem:[%s15057_s0 + $0x8] sm:$0xff]  ;;  %v8208_v36 = vsub.s32 2, %v8171_v21  ;;  %v8211_v37 = vsub.s32 6, %v8171_v21  ;;  %v8222_v40 = vld [vmem:[%s15057_s0 + $0x10] sm:$0xff]  ;;  %v8225_v41 = vsub.s32 3, %v8171_v21 }
   0xd   :  { %15652 = vst [vmem:[#allocation7_spill] sm:$0xff] %v8176_v22  ;;  %15653 = vst [vmem:[#allocation8_spill] sm:$0xff] %v8179_v23  ;;  %v69_v28 = vrot.slane %v18_v24, %v8176_v22  ;;  %v73_v29 = vrot.slane %v18_v24, %v8179_v23  ;;  %v77_v30 = vrot.slane %v19_v27, %v8176_v22  ;;  %v8228_v42 = vsub.s32 7, %v8171_v21 }
   0xe   :  { %391 = vperm.xlu1 %7983, %v8073_v7   ;;  %386 = vperm.xlu0 %7982, %v8078_v8   ;;  %15654 = vst [vmem:[#allocation9_spill] sm:$0xff] %v8185_v25  ;;  %15655 = vst [vmem:[#allocation10_spill] sm:$0xff] %v8188_v26  ;;  %v81_v31 = vrot.slane %v19_v27, %v8179_v23  ;;  %v949_v32 = vrot.slane %v18_v24, %v8185_v25  ;;  %vm15649_vm7 = vcmask 589312   ;;  %vm15650_vm8 = vcmask 654912  }
   0xf   :  { %v953_v33 = vrot.slane %v18_v24, %v8188_v26  ;;  %15658 = vst [vmem:[#allocation13_spill] sm:$0xff] %v8208_v36  ;;  %15659 = vst [vmem:[#allocation14_spill] sm:$0xff] %v8211_v37  ;;  %v8214_v38 = vrot.slane %v69_v28, %v8176_v22  ;;  %v8217_v39 = vrot.slane %v73_v29, %v8176_v22  ;;  %vm6686_vm9 = vcmask 720512  }
  0x10   :  { %15660 = vst [vmem:[#allocation15_spill] sm:$0xff] %v8225_v41  ;;  %15661 = vst [vmem:[#allocation16_spill] sm:$0xff] %v8228_v42  ;;  %v8231_v43 = vrot.slane %v77_v30, %v8176_v22  ;;  %v8234_v44 = vrot.slane %v81_v31, %v8176_v22  ;;  %v8237_v45 = vrot.slane %v949_v32, %v8185_v25  ;;  %vm6693_vm10 = vcmask 786112  }
  0x11   :  { %v8240_v46 = vrot.slane %v953_v33, %v8185_v25  ;;  %v957_v47 = vrot.slane %v19_v27, %v8185_v25  ;;  %v961_v48 = vrot.slane %v19_v27, %v8188_v26  ;;  %v2325_v51 = vrot.slane %v18_v24, %v8208_v36 }
  0x12   :  { %401 = vperm.xlu1 %7983, %v8085_v9   ;;  %396 = vperm.xlu0 %7982, %v8090_v10   ;;  %v2329_v52 = vrot.slane %v18_v24, %v8211_v37  ;;  %v85_v53 = vrot.slane %v8222_v40, %v8176_v22  ;;  %v89_v54 = vrot.slane %v8222_v40, %v8179_v23  ;;  %vm6700_vm11 = vcmask 851712  }
  0x13   :  { %v2333_v55 = vrot.slane %v19_v27, %v8208_v36  ;;  %v2337_v56 = vrot.slane %v19_v27, %v8211_v37  ;;  %v965_v57 = vrot.slane %v8222_v40, %v8185_v25  ;;  %v969_v58 = vrot.slane %v8222_v40, %v8188_v26 }
  0x14   :  { %v3701_v59 = vrot.slane %v18_v24, %v8225_v41  ;;  %v3705_v60 = vrot.slane %v18_v24, %v8228_v42  ;;  %v3709_v61 = vrot.slane %v19_v27, %v8225_v41  ;;  %v3713_v62 = vrot.slane %v19_v27, %v8228_v42 }
  0x15   :  { %v8266_v63 = vrot.slane %v957_v47, %v8185_v25  ;;  %v2345_v2 = vrot.slane %v8222_v40, %v8211_v37  ;;  %vm6707_vm12 = vcmask 917312   ;;  %vm6714_vm13 = vcmask 982912  }
  0x16   :  { %411 = vperm.xlu1 %7983, %v8097_v11   ;;  %406 = vperm.xlu0 %7982, %v8102_v12   ;;  %vm6721_vm14 = vcmask 1048512   ;;  %vm7908_vm15 = vcmask 1041409  }
  0x17   :  { %v8328_v24 = vrot.slane %v2345_v2, %v8208_v36 }
  0x19   :  { %15679 = vst [vmem:[#allocation34_spill] sm:$0xff] %v8328_v24 }
  0x1a   :  { %421 = vperm.xlu1 %7983, %v8109_v13   ;;  %416 = vperm.xlu0 %7982, %v8114_v14  }
  0x1e   :  { %431 = vperm.xlu1 %7983, %v8121_v15   ;;  %426 = vperm.xlu0 %7982, %v8126_v16  }
  0x22   :  { %7985 = vset.pattern.permute.xlu1 %v8013_v17  ;;  %7984 = vset.pattern.permute.xlu0 %v8013_v17 }
  0x23   :  { %1239 = vperm.xlu1 %7985, %v8054_v4   ;;  %1235 = vperm.xlu0 %7984, %v8042_v1  }
  0x27   :  { %1243 = vperm.xlu1 %7985, %v8037_v0   ;;  %1247 = vperm.xlu0 %7984, %v8049_v3  }
  0x2b   :  { %1251 = vperm.xlu1 %7985, %v8066_v6   ;;  %1255 = vperm.xlu0 %7984, %v8061_v5  }
  0x2f   :  { %1259 = vperm.xlu1 %7985, %v8078_v8   ;;  %1263 = vperm.xlu0 %7984, %v8073_v7  }
  0x33   :  { %1267 = vperm.xlu1 %7985, %v8090_v10   ;;  %1271 = vperm.xlu0 %7984, %v8085_v9  }
  0x37   :  { %1275 = vperm.xlu1 %7985, %v8102_v12   ;;  %1279 = vperm.xlu0 %7984, %v8097_v11  }
  0x3b   :  { %1283 = vperm.xlu1 %7985, %v8114_v14   ;;  %1287 = vperm.xlu0 %7984, %v8109_v13  }
  0x3f   :  { %1291 = vperm.xlu1 %7985, %v8126_v16   ;;  %1295 = vperm.xlu0 %7984, %v8121_v15  }
  0x43   :  { %7986 = vset.pattern.permute.xlu1 %v8014_v18  ;;  %7987 = vset.pattern.permute.xlu0 %v8014_v18 }
  0x44   :  { %2611 = vperm.xlu1 %7986, %v8042_v1   ;;  %2615 = vperm.xlu0 %7987, %v8054_v4  }
  0x48   :  { %2619 = vperm.xlu1 %7986, %v8037_v0   ;;  %2627 = vperm.xlu0 %7987, %v8066_v6  }
  0x4c   :  { %2623 = vperm.xlu1 %7986, %v8049_v3   ;;  %2635 = vperm.xlu0 %7987, %v8078_v8  }
  0x50   :  { %2631 = vperm.xlu1 %7986, %v8061_v5   ;;  %2643 = vperm.xlu0 %7987, %v8090_v10  }
  0x54   :  { %2639 = vperm.xlu1 %7986, %v8073_v7   ;;  %2651 = vperm.xlu0 %7987, %v8102_v12  }
  0x58   :  { %2647 = vperm.xlu1 %7986, %v8085_v9   ;;  %2659 = vperm.xlu0 %7987, %v8114_v14  }
  0x5c   :  { %2655 = vperm.xlu1 %7986, %v8097_v11   ;;  %2667 = vperm.xlu0 %7987, %v8126_v16  }
  0x60   :  { %2663 = vperm.xlu1 %7986, %v8109_v13   ;;  %7988 = vset.pattern.permute.xlu0 %v8015_v19 }
  0x61   :  { %3987 = vperm.xlu0 %7988, %v8042_v1   ;;  %v2341_v1 = vrot.slane %v8222_v40, %v8208_v36 }
  0x64   :  { %2671 = vperm.xlu1 %7986, %v8121_v15  }
  0x65   :  { %3999 = vperm.xlu0 %7988, %v8049_v3  }
  0x68   :  { %7989 = vset.pattern.permute.xlu1 %v8015_v19  ;;  %v8325_v19 = vrot.slane %v2341_v1, %v8208_v36 }
  0x69   :  { %3991 = vperm.xlu1 %7989, %v8054_v4   ;;  %4007 = vperm.xlu0 %7988, %v8061_v5   ;;  %v8281_v5 = vrot.slane %v2325_v51, %v8208_v36 }
  0x6a   :  { %15678 = vst [vmem:[#allocation33_spill] sm:$0xff] %v8325_v19 }
  0x6b   :  { %15666 = vst [vmem:[#allocation21_spill] sm:$0xff] %v8281_v5 }
  0x6d   :  { %3995 = vperm.xlu1 %7989, %v8037_v0   ;;  %4015 = vperm.xlu0 %7988, %v8073_v7   ;;  %v8269_v0 = vrot.slane %v961_v48, %v8185_v25  ;;  %v8287_v7 = vrot.slane %v85_v53, %v8176_v22 }
  0x6f   :  { %15668 = vst [vmem:[#allocation23_spill] sm:$0xff] %v8287_v7 }
  0x71   :  { %4003 = vperm.xlu1 %7989, %v8066_v6   ;;  %4023 = vperm.xlu0 %7988, %v8085_v9   ;;  %v8284_v6 = vrot.slane %v2329_v52, %v8208_v36  ;;  %v8293_v9 = vrot.slane %v2333_v55, %v8208_v36 }
  0x73   :  { %15667 = vst [vmem:[#allocation22_spill] sm:$0xff] %v8284_v6  ;;  %15670 = vst [vmem:[#allocation25_spill] sm:$0xff] %v8293_v9 }
  0x75   :  { %4011 = vperm.xlu1 %7989, %v8078_v8   ;;  %4031 = vperm.xlu0 %7988, %v8097_v11   ;;  %v8290_v8 = vrot.slane %v89_v54, %v8176_v22  ;;  %v8299_v11 = vrot.slane %v965_v57, %v8185_v25  ;;  %v3717_v22 = vrot.slane %v8222_v40, %v8225_v41 }
  0x77   :  { %15669 = vst [vmem:[#allocation24_spill] sm:$0xff] %v8290_v8  ;;  %15672 = vst [vmem:[#allocation27_spill] sm:$0xff] %v8299_v11 }
  0x79   :  { %4019 = vperm.xlu1 %7989, %v8090_v10   ;;  %4039 = vperm.xlu0 %7988, %v8109_v13   ;;  %v8296_v10 = vrot.slane %v2337_v56, %v8208_v36  ;;  %v8305_v13 = vrot.slane %v3701_v59, %v8225_v41 }
  0x7b   :  { %15671 = vst [vmem:[#allocation26_spill] sm:$0xff] %v8296_v10  ;;  %15674 = vst [vmem:[#allocation29_spill] sm:$0xff] %v8305_v13 }
  0x7d   :  { %v8201_v34 = vpop.permute.xlu1 %366  ;;  %4027 = vperm.xlu1 %7989, %v8102_v12   ;;  %4047 = vperm.xlu0 %7988, %v8121_v15   ;;  %v8205_v35 = vpop.permute.xlu0 %356  ;;  %v8302_v12 = vrot.slane %v969_v58, %v8185_v25  ;;  %v8311_v15 = vrot.slane %v3709_v61, %v8225_v41 }
  0x7e   :  { %15656 = vst [vmem:[#allocation11_spill] sm:$0xff] %v8201_v34  ;;  %15657 = vst [vmem:[#allocation12_spill] sm:$0xff] %v8205_v35  ;;  %v8318_v17 = vmul.f32 %v8205_v35, %v8214_v38  ;;  %v8322_v18 = vmul.f32 %v8205_v35, %v8217_v39  ;;  %v8336_v29 = vmul.f32 %v8201_v34, %v8214_v38 }
  0x7f   :  { %15673 = vst [vmem:[#allocation28_spill] sm:$0xff] %v8302_v12  ;;  %15676 = vst [vmem:[#allocation31_spill] sm:$0xff] %v8311_v15  ;;  %v8340_v30 = vmul.f32 %v8201_v34, %v8217_v39  ;;  %v8344_v31 = vmul.f32 %v8205_v35, %v8231_v43  ;;  %v8348_v32 = vmul.f32 %v8205_v35, %v8234_v44 }
  0x80   :  { %v8352_v33 = vmul.f32 %v8201_v34, %v8231_v43  ;;  %v8356_v47 = vmul.f32 %v8201_v34, %v8234_v44  ;;  %v8360_v48 = vmul.f32 %v8205_v35, %v8287_v7  ;;  %v8364_v51 = vmul.f32 %v8205_v35, %v8290_v8 }
  0x81   :  { %v8244_v49 = vpop.permute.xlu1 %371  ;;  %4035 = vperm.xlu1 %7989, %v8114_v14   ;;  %v8247_v50 = vpop.permute.xlu0 %361  ;;  %v8308_v14 = vrot.slane %v3705_v60, %v8225_v41  ;;  %v8376_v54 = vmul.f32 %v8201_v34, %v8287_v7  ;;  %v8380_v55 = vmul.f32 %v8201_v34, %v8290_v8  ;;  %v8515_v15 = vrot.slane %v3717_v22, %v8225_v41 }
  0x82   :  { %15662 = vst [vmem:[#allocation17_spill] sm:$0xff] %v8244_v49  ;;  %15663 = vst [vmem:[#allocation18_spill] sm:$0xff] %v8247_v50  ;;  %v8368_v52 = vmul.f32 %v8244_v49, %v8214_v38  ;;  %v8372_v53 = vmul.f32 %v8244_v49, %v8217_v39  ;;  %v8384_v56 = vmul.f32 %v8247_v50, %v8214_v38 }
  0x83   :  { %15675 = vst [vmem:[#allocation30_spill] sm:$0xff] %v8308_v14  ;;  %15682 = vst [vmem:[#allocation37_spill] sm:$0xff] %v8360_v48  ;;  %v8388_v57 = vmul.f32 %v8247_v50, %v8217_v39  ;;  %v8392_v58 = vmul.f32 %v8247_v50, %v8231_v43  ;;  %v8396_v59 = vmul.f32 %v8247_v50, %v8234_v44 }
  0x84   :  { %15683 = vst [vmem:[#allocation38_spill] sm:$0xff] %v8364_v51  ;;  %15684 = vst [vmem:[#allocation39_spill] sm:$0xff] %v8376_v54  ;;  %v8408_v1 = vmul.f32 %v8244_v49, %v8234_v44  ;;  %v8412_v2 = vmul.f32 %v8247_v50, %v8287_v7  ;;  %v8416_v20 = vmul.f32 %v8247_v50, %v8290_v8 }
  0x85   :  { %v8275_v3 = vpop.permute.xlu1 %381  ;;  %4043 = vperm.xlu1 %7989, %v8126_v16   ;;  %v8278_v4 = vpop.permute.xlu0 %376  ;;  %v8314_v16 = vrot.slane %v3713_v62, %v8225_v41  ;;  %15685 = vst [vmem:[#allocation40_spill] sm:$0xff] %v8380_v55  ;;  %v8404_v62 = vmul.f32 %v8244_v49, %v8231_v43  ;;  %v8428_v35 = vmul.f32 %v8244_v49, %v8287_v7  ;;  %15698 = vst [vmem:[#allocation53_spill] sm:$0xff] %v8515_v15 }
  0x86   :  { %15664 = vst [vmem:[#allocation19_spill] sm:$0xff] %v8275_v3  ;;  %15665 = vst [vmem:[#allocation20_spill] sm:$0xff] %v8278_v4  ;;  %v8420_v21 = vmul.f32 %v8275_v3, %v8214_v38  ;;  %v8424_v34 = vmul.f32 %v8275_v3, %v8217_v39  ;;  %v8432_v37 = vmul.f32 %v8244_v49, %v8290_v8 }
  0x87   :  { %15677 = vst [vmem:[#allocation32_spill] sm:$0xff] %v8314_v16  ;;  %15688 = vst [vmem:[#allocation43_spill] sm:$0xff] %v8412_v2  ;;  %v8436_v50 = vmul.f32 %v8278_v4, %v8214_v38  ;;  %v8440_v36 = vmul.f32 %v8278_v4, %v8217_v39  ;;  %v8444_v26 = vmul.f32 %v8275_v3, %v8231_v43 }
  0x88   :  { %15689 = vst [vmem:[#allocation44_spill] sm:$0xff] %v8416_v20  ;;  %15690 = vst [vmem:[#allocation45_spill] sm:$0xff] %v8428_v35  ;;  %v8448_v25 = vmul.f32 %v8275_v3, %v8234_v44  ;;  %v8452_v49 = vmul.f32 %v8278_v4, %v8231_v43  ;;  %v8456_v23 = vmul.f32 %v8278_v4, %v8234_v44 }
  0x89   :  { %v8330_v27 = vpop.permute.xlu1 %391  ;;  %v8332_v28 = vpop.permute.xlu0 %386  ;;  %15691 = vst [vmem:[#allocation46_spill] sm:$0xff] %v8432_v37  ;;  %v3721_v55 = vrot.slane %v8222_v40, %v8228_v42  ;;  %v8468_v48 = vmul.f32 %v8275_v3, %v8287_v7  ;;  %v8472_v37 = vmul.f32 %v8275_v3, %v8290_v8  ;;  %v8476_v35 = vmul.f32 %v8278_v4, %v8287_v7 }
  0x8a   :  { %15680 = vst [vmem:[#allocation35_spill] sm:$0xff] %v8330_v27  ;;  %15681 = vst [vmem:[#allocation36_spill] sm:$0xff] %v8332_v28  ;;  %v8480_v16 = vmul.f32 %v8278_v4, %v8290_v8  ;;  %v8484_v40 = vmul.f32 %v8330_v27, %v8214_v38  ;;  %v8488_v42 = vmul.f32 %v8330_v27, %v8217_v39 }
  0x8b   :  { %15694 = vst [vmem:[#allocation49_spill] sm:$0xff] %v8468_v48  ;;  %15695 = vst [vmem:[#allocation50_spill] sm:$0xff] %v8472_v37  ;;  %v8492_v3 = vmul.f32 %v8332_v28, %v8214_v38  ;;  %v8496_v37 = vmul.f32 %v8332_v28, %v8217_v39  ;;  %v8500_v4 = vmul.f32 %v8330_v27, %v8231_v43 }
  0x8c   :  { %15696 = vst [vmem:[#allocation51_spill] sm:$0xff] %v8476_v35  ;;  %15697 = vst [vmem:[#allocation52_spill] sm:$0xff] %v8480_v16  ;;  %v8504_v16 = vmul.f32 %v8330_v27, %v8234_v44  ;;  %v8508_v35 = vmul.f32 %v8332_v28, %v8231_v43  ;;  %v8512_v48 = vmul.f32 %v8332_v28, %v8234_v44 }
  0x8d   :  { %v8398_v60 = vpop.permute.xlu1 %401  ;;  %v8400_v61 = vpop.permute.xlu0 %396  ;;  %v8518_v14 = vrot.slane %v3721_v55, %v8225_v41  ;;  %v8522_v13 = vmul.f32 %v8330_v27, %v8287_v7  ;;  %v8526_v24 = vmul.f32 %v8330_v27, %v8290_v8  ;;  %v8574_v5 = vmul.f32 %v8332_v28, %v8287_v7 }
  0x8e   :  { %15686 = vst [vmem:[#allocation41_spill] sm:$0xff] %v8398_v60  ;;  %15687 = vst [vmem:[#allocation42_spill] sm:$0xff] %v8400_v61  ;;  %v8534_v9 = vmul.f32 %v8398_v60, %v8214_v38  ;;  %v8538_v22 = vmul.f32 %v8398_v60, %v8217_v39  ;;  %v8542_v55 = vmul.f32 %v8400_v61, %v8214_v38 }
  0x8f   :  { %15699 = vst [vmem:[#allocation54_spill] sm:$0xff] %v8518_v14  ;;  %15700 = vst [vmem:[#allocation55_spill] sm:$0xff] %v8522_v13  ;;  %v8546_v27 = vmul.f32 %v8400_v61, %v8217_v39  ;;  %v8550_v41 = vmul.f32 %v8398_v60, %v8231_v43  ;;  %v8558_v13 = vmul.f32 %v8400_v61, %v8231_v43 }
  0x90   :  { %15701 = vst [vmem:[#allocation56_spill] sm:$0xff] %v8526_v24  ;;  %v8554_v24 = vmul.f32 %v8398_v60, %v8234_v44  ;;  %v8562_v14 = vmul.f32 %v8400_v61, %v8234_v44  ;;  %15706 = vst [vmem:[#allocation61_spill] sm:$0xff] %v8574_v5  ;;  %v8578_v20 = vmul.f32 %v8332_v28, %v8290_v8 }
  0x91   :  { %v8462_v54 = vpop.permute.xlu1 %411  ;;  %v8464_v51 = vpop.permute.xlu0 %406 }
  0x92   :  { %15692 = vst [vmem:[#allocation47_spill] sm:$0xff] %v8462_v54  ;;  %15693 = vst [vmem:[#allocation48_spill] sm:$0xff] %v8464_v51  ;;  %v8566_v15 = vmul.f32 %v8462_v54, %v8214_v38  ;;  %v8570_v6 = vmul.f32 %v8462_v54, %v8217_v39  ;;  %v8582_v2 = vmul.f32 %v8464_v51, %v8214_v38 }
  0x93   :  { %15707 = vst [vmem:[#allocation62_spill] sm:$0xff] %v8578_v20  ;;  %v8586_v12 = vmul.f32 %v8464_v51, %v8217_v39  ;;  %v8590_v11 = vmul.f32 %v8462_v54, %v8231_v43  ;;  %v8602_v20 = vmul.f32 %v8464_v51, %v8231_v43 }
  0x94   :  { %15704 = vst [vmem:[#allocation59_spill] sm:$0xff] %v8566_v15  ;;  %15705 = vst [vmem:[#allocation60_spill] sm:$0xff] %v8570_v6  ;;  %v8594_v6 = vmul.f32 %v8462_v54, %v8234_v44 }
  0x95   :  { %v8528_v19 = vpop.permute.xlu1 %421  ;;  %v8530_v10 = vpop.permute.xlu0 %416  ;;  %15708 = vst [vmem:[#allocation63_spill] sm:$0xff] %v8582_v2  ;;  %15709 = vst [vmem:[#allocation64_spill] sm:$0xff] %v8586_v12  ;;  %v8606_v2 = vmul.f32 %v8464_v51, %v8234_v44  ;;  %v8610_v12 = vmul.f32 %v8398_v60, %v8287_v7 }
  0x96   :  { %15702 = vst [vmem:[#allocation57_spill] sm:$0xff] %v8528_v19  ;;  %15703 = vst [vmem:[#allocation58_spill] sm:$0xff] %v8530_v10  ;;  %v8622_v15 = vmul.f32 %v8528_v19, %v8217_v39  ;;  %v8626_v51 = vmul.f32 %v8530_v10, %v8214_v38 }
  0x97   :  { %15710 = vst [vmem:[#allocation65_spill] sm:$0xff] %v8590_v11  ;;  %15711 = vst [vmem:[#allocation66_spill] sm:$0xff] %v8594_v6  ;;  %v8614_v11 = vmul.f32 %v8398_v60, %v8290_v8  ;;  %v8618_v6 = vmul.f32 %v8528_v19, %v8214_v38  ;;  %v8634_v60 = vmul.f32 %v8528_v19, %v8231_v43 }
  0x98   :  { %15714 = vst [vmem:[#allocation69_spill] sm:$0xff] %v8606_v2  ;;  %15715 = vst [vmem:[#allocation70_spill] sm:$0xff] %v8610_v12  ;;  %v8630_v2 = vmul.f32 %v8530_v10, %v8217_v39  ;;  %v8642_v12 = vmul.f32 %v8530_v10, %v8231_v43 }
  0x99   :  { %v8596_v5 = vpop.permute.xlu1 %431  ;;  %v8598_v28 = vpop.permute.xlu0 %426  ;;  %15716 = vst [vmem:[#allocation71_spill] sm:$0xff] %v8614_v11  ;;  %15717 = vst [vmem:[#allocation72_spill] sm:$0xff] %v8622_v15  ;;  %v8638_v11 = vmul.f32 %v8528_v19, %v8234_v44  ;;  %v8646_v15 = vmul.f32 %v8530_v10, %v8234_v44  ;;  %v8658_v19 = vmul.f32 %v8400_v61, %v8287_v7 }
  0x9a   :  { %15712 = vst [vmem:[#allocation67_spill] sm:$0xff] %v8596_v5  ;;  %15713 = vst [vmem:[#allocation68_spill] sm:$0xff] %v8598_v28  ;;  %v8666_v10 = vmul.f32 %v8598_v28, %v8214_v38 }
  0x9b   :  { %15718 = vst [vmem:[#allocation73_spill] sm:$0xff] %v8626_v51  ;;  %15719 = vst [vmem:[#allocation74_spill] sm:$0xff] %v8630_v2  ;;  %v8650_v51 = vmul.f32 %v8596_v5, %v8214_v38  ;;  %v8654_v2 = vmul.f32 %v8596_v5, %v8217_v39  ;;  %v8686_v38 = vmul.f32 %v8598_v28, %v8231_v43 }
  0x9c   :  { %15720 = vst [vmem:[#allocation75_spill] sm:$0xff] %v8638_v11  ;;  %15721 = vst [vmem:[#allocation76_spill] sm:$0xff] %v8646_v15  ;;  %v8662_v11 = vmul.f32 %v8400_v61, %v8290_v8  ;;  %v8670_v15 = vmul.f32 %v8598_v28, %v8217_v39  ;;  %v8690_v39 = vmul.f32 %v8598_v28, %v8234_v44 }
  0x9d   :  { %15722 = vst [vmem:[#allocation77_spill] sm:$0xff] %v8650_v51  ;;  %15723 = vst [vmem:[#allocation78_spill] sm:$0xff] %v8654_v2  ;;  %v8674_v51 = vmul.f32 %v8596_v5, %v8231_v43  ;;  %v8678_v2 = vmul.f32 %v8596_v5, %v8234_v44  ;;  %v8698_v5 = vmul.f32 %v8462_v54, %v8290_v8 }
  0x9e   :  { %15724 = vst [vmem:[#allocation79_spill] sm:$0xff] %v8658_v19  ;;  %15725 = vst [vmem:[#allocation80_spill] sm:$0xff] %v8662_v11  ;;  %v8680_v19 = vpop.permute.xlu1 %1239  ;;  %v8682_v61 = vpop.permute.xlu0 %1235  ;;  %v8694_v11 = vmul.f32 %v8462_v54, %v8287_v7 }
  0x9f   :  { %15726 = vst [vmem:[#allocation81_spill] sm:$0xff] %v8666_v10  ;;  %15727 = vst [vmem:[#allocation82_spill] sm:$0xff] %v8670_v15  ;;  %v1300_v43 = vmul.f32 %v8680_v19, %v8237_v45  ;;  %v1301_v44 = vmul.f32 %v8680_v19, %v8240_v46  ;;  %v1332_v28 = vmul.f32 %v8680_v19, %v8266_v63 }
  0xa0   :  { %15728 = vst [vmem:[#allocation83_spill] sm:$0xff] %v8674_v51  ;;  %15729 = vst [vmem:[#allocation84_spill] sm:$0xff] %v8678_v2  ;;  %v1298_v2 = vmul.f32 %v8682_v61, %v8237_v45  ;;  %v1299_v51 = vmul.f32 %v8682_v61, %v8240_v46  ;;  %v1333_v7 = vmul.f32 %v8680_v19, %v8269_v0 }
  0xa1   :  { %15730 = vst [vmem:[#allocation85_spill] sm:$0xff] %v8680_v19  ;;  %15731 = vst [vmem:[#allocation86_spill] sm:$0xff] %v8682_v61  ;;  %v1330_v54 = vmul.f32 %v8682_v61, %v8266_v63  ;;  %v1331_v8 = vmul.f32 %v8682_v61, %v8269_v0  ;;  %v8733_v19 = vadd.f32 %v1332_v28, %v8392_v58 }
  0xa2   :  { %15732 = vst [vmem:[#allocation87_spill] sm:$0xff] %v8686_v38  ;;  %15733 = vst [vmem:[#allocation88_spill] sm:$0xff] %v8690_v39  ;;  %v8723_v39 = vadd.f32 %v1300_v43, %v8384_v56  ;;  %v8726_v38 = vadd.f32 %v1301_v44, %v8388_v57  ;;  %v8728_v15 = vpop.permute.xlu1 %1243  ;;  %v8730_v10 = vpop.permute.xlu0 %1247  ;;  %v8736_v61 = vadd.f32 %v1333_v7, %v8396_v59 }
  0xa3   :  { %15734 = vst [vmem:[#allocation89_spill] sm:$0xff] %v8694_v11  ;;  %15735 = vst [vmem:[#allocation90_spill] sm:$0xff] %v8698_v5  ;;  %v8717_v5 = vadd.f32 %v1298_v2, %v8318_v17  ;;  %v8720_v11 = vadd.f32 %v1299_v51, %v8322_v18  ;;  %v8739_v17 = vadd.f32 %v1330_v54, %v8344_v31 }
  0xa4   :  { %15736 = vst [vmem:[#allocation91_spill] sm:$0xff] %v8728_v15  ;;  %15737 = vst [vmem:[#allocation92_spill] sm:$0xff] %v8730_v10  ;;  %v8742_v18 = vadd.f32 %v1331_v8, %v8348_v32  ;;  %v1304_v51 = vmul.f32 %v8730_v10, %v8237_v45  ;;  %v1305_v56 = vmul.f32 %v8730_v10, %v8240_v46 }
  0xa5   :  { %v1302_v57 = vmul.f32 %v8728_v15, %v8237_v45  ;;  %v1303_v28 = vmul.f32 %v8728_v15, %v8240_v46  ;;  %v1336_v7 = vmul.f32 %v8730_v10, %v8266_v63  ;;  %v1337_v31 = vmul.f32 %v8730_v10, %v8269_v0 }
  0xa6   :  { %15738 = vst [vmem:[#allocation93_spill] sm:$0xff] %v8742_v18  ;;  %v1334_v8 = vmul.f32 %v8728_v15, %v8266_v63  ;;  %v1335_v32 = vmul.f32 %v8728_v15, %v8269_v0  ;;  %v8761_v54 = vadd.f32 %v1304_v51, %v8368_v52  ;;  %v8764_v58 = vadd.f32 %v1305_v56, %v8372_v53  ;;  %v8772_v43 = vpop.permute.xlu1 %1251  ;;  %v8774_v44 = vpop.permute.xlu0 %1255 }
  0xa7   :  { %v8767_v59 = vadd.f32 %v1302_v57, %v8336_v29  ;;  %v8770_v2 = vadd.f32 %v1303_v28, %v8340_v30  ;;  %15739 = vst [vmem:[#allocation94_spill] sm:$0xff] %v8772_v43  ;;  %15740 = vst [vmem:[#allocation95_spill] sm:$0xff] %v8774_v44  ;;  %v8777_v18 = vadd.f32 %v1336_v7, %v8404_v62 }
  0xa8   :  { %v8780_v15 = vadd.f32 %v1337_v31, %v8408_v1  ;;  %v8783_v52 = vadd.f32 %v1334_v8, %v8352_v33  ;;  %v8786_v53 = vadd.f32 %v1335_v32, %v8356_v47  ;;  %v1308_v29 = vmul.f32 %v8774_v44, %v8237_v45 }
  0xa9   :  { %v1309_v30 = vmul.f32 %v8774_v44, %v8240_v46  ;;  %v1306_v51 = vmul.f32 %v8772_v43, %v8237_v45  ;;  %v1307_v62 = vmul.f32 %v8772_v43, %v8240_v46  ;;  %v1340_v1 = vmul.f32 %v8774_v44, %v8266_v63 }
  0xaa   :  { %v1341_v33 = vmul.f32 %v8774_v44, %v8269_v0  ;;  %v1338_v47 = vmul.f32 %v8772_v43, %v8266_v63  ;;  %v1339_v56 = vmul.f32 %v8772_v43, %v8269_v0  ;;  %v8805_v57 = vadd.f32 %v1308_v29, %v8420_v21  ;;  %v8816_v8 = vpop.permute.xlu1 %1259  ;;  %v8818_v32 = vpop.permute.xlu0 %1263 }
  0xab   :  { %v8808_v28 = vadd.f32 %v1309_v30, %v8424_v34  ;;  %v8811_v7 = vadd.f32 %v1306_v51, %v8436_v50  ;;  %v8814_v31 = vadd.f32 %v1307_v62, %v8440_v36  ;;  %15741 = vst [vmem:[#allocation96_spill] sm:$0xff] %v8816_v8  ;;  %15742 = vst [vmem:[#allocation97_spill] sm:$0xff] %v8818_v32 }
  0xac   :  { %v8821_v44 = vadd.f32 %v1340_v1, %v8444_v26  ;;  %v8824_v43 = vadd.f32 %v1341_v33, %v8448_v25  ;;  %v8827_v21 = vadd.f32 %v1338_v47, %v8452_v49  ;;  %v8830_v34 = vadd.f32 %v1339_v56, %v8456_v23 }
  0xad   :  { %v1312_v36 = vmul.f32 %v8818_v32, %v8237_v45  ;;  %v1313_v50 = vmul.f32 %v8818_v32, %v8240_v46  ;;  %v1310_v29 = vmul.f32 %v8816_v8, %v8237_v45  ;;  %v1311_v26 = vmul.f32 %v8816_v8, %v8240_v46 }
  0xae   :  { %v1344_v25 = vmul.f32 %v8818_v32, %v8266_v63  ;;  %v1345_v49 = vmul.f32 %v8818_v32, %v8269_v0  ;;  %v1342_v23 = vmul.f32 %v8816_v8, %v8266_v63  ;;  %v1343_v30 = vmul.f32 %v8816_v8, %v8269_v0  ;;  %v8860_v47 = vpop.permute.xlu1 %1267  ;;  %v8862_v56 = vpop.permute.xlu0 %1271 }
  0xaf   :  { %v8849_v51 = vadd.f32 %v1312_v36, %v8484_v40  ;;  %v8852_v62 = vadd.f32 %v1313_v50, %v8488_v42  ;;  %v8855_v1 = vadd.f32 %v1310_v29, %v8492_v3  ;;  %v8858_v33 = vadd.f32 %v1311_v26, %v8496_v37  ;;  %15743 = vst [vmem:[#allocation98_spill] sm:$0xff] %v8860_v47 }
  0xb0   :  { %15744 = vst [vmem:[#allocation99_spill] sm:$0xff] %v8862_v56  ;;  %v8865_v32 = vadd.f32 %v1344_v25, %v8500_v4  ;;  %v8868_v8 = vadd.f32 %v1345_v49, %v8504_v16  ;;  %v8871_v40 = vadd.f32 %v1342_v23, %v8508_v35  ;;  %v8874_v42 = vadd.f32 %v1343_v30, %v8512_v48 }
  0xb1   :  { %v1316_v37 = vmul.f32 %v8862_v56, %v8237_v45  ;;  %v1317_v3 = vmul.f32 %v8862_v56, %v8240_v46  ;;  %v1314_v36 = vmul.f32 %v8860_v47, %v8237_v45  ;;  %v1315_v4 = vmul.f32 %v8860_v47, %v8240_v46 }
  0xb2   :  { %15745 = vst [vmem:[#allocation100_spill] sm:$0xff] %v8865_v32  ;;  %15746 = vst [vmem:[#allocation101_spill] sm:$0xff] %v8868_v8  ;;  %v1348_v16 = vmul.f32 %v8862_v56, %v8266_v63  ;;  %v1349_v35 = vmul.f32 %v8862_v56, %v8269_v0  ;;  %v1346_v48 = vmul.f32 %v8860_v47, %v8266_v63  ;;  %v8904_v23 = vpop.permute.xlu1 %1275  ;;  %v8906_v30 = vpop.permute.xlu0 %1279 }
  0xb3   :  { %v1347_v50 = vmul.f32 %v8860_v47, %v8269_v0  ;;  %v8893_v29 = vadd.f32 %v1316_v37, %v8534_v9  ;;  %v8896_v26 = vadd.f32 %v1317_v3, %v8538_v22  ;;  %v8899_v25 = vadd.f32 %v1314_v36, %v8542_v55  ;;  %15749 = vst [vmem:[#allocation104_spill] sm:$0xff] %v8904_v23  ;;  %v15753_v36 = vld [vmem:[#allocation59_spill] sm:$0xff] }
  0xb4   :  { %v8902_v49 = vadd.f32 %v1315_v4, %v8546_v27  ;;  %15750 = vst [vmem:[#allocation105_spill] sm:$0xff] %v8906_v30  ;;  %v8909_v56 = vadd.f32 %v1348_v16, %v8550_v41  ;;  %v8912_v47 = vadd.f32 %v1349_v35, %v8554_v24  ;;  %v8915_v9 = vadd.f32 %v1346_v48, %v8558_v13  ;;  %v15755_v16 = vld [vmem:[#allocation60_spill] sm:$0xff]  ;;  %v15757_v48 = vld [vmem:[#allocation63_spill] sm:$0xff] }
  0xb5   :  { %15747 = vst [vmem:[#allocation102_spill] sm:$0xff] %v8893_v29  ;;  %15748 = vst [vmem:[#allocation103_spill] sm:$0xff] %v8896_v26  ;;  %v8918_v22 = vadd.f32 %v1347_v50, %v8562_v14  ;;  %v1320_v27 = vmul.f32 %v8906_v30, %v8237_v45  ;;  %v1321_v55 = vmul.f32 %v8906_v30, %v8240_v46  ;;  %v15761_v29 = vld [vmem:[#allocation65_spill] sm:$0xff] }
  0xb6   :  { %15751 = vst [vmem:[#allocation106_spill] sm:$0xff] %v8909_v56  ;;  %15752 = vst [vmem:[#allocation107_spill] sm:$0xff] %v8912_v47  ;;  %v1318_v37 = vmul.f32 %v8904_v23, %v8237_v45  ;;  %v1319_v41 = vmul.f32 %v8904_v23, %v8240_v46  ;;  %v1352_v24 = vmul.f32 %v8906_v30, %v8266_v63  ;;  %v15758_v47 = vld [vmem:[#allocation64_spill] sm:$0xff]  ;;  %v8948_v26 = vpop.permute.xlu1 %1283 }
  0xb7   :  { %v1353_v13 = vmul.f32 %v8906_v30, %v8269_v0  ;;  %v1350_v14 = vmul.f32 %v8904_v23, %v8266_v63  ;;  %v1351_v3 = vmul.f32 %v8904_v23, %v8269_v0  ;;  %v8937_v4 = vadd.f32 %v1320_v27, %v15753_v36  ;;  %15759 = vst [vmem:[#allocation63_spill] sm:$0xff] %v8948_v26  ;;  %v8950_v30 = vpop.permute.xlu0 %1287  ;;  %v15763_v23 = vld [vmem:[#allocation66_spill] sm:$0xff] }
  0xb8   :  { %v8940_v35 = vadd.f32 %v1321_v55, %v15755_v16  ;;  %v8943_v50 = vadd.f32 %v1318_v37, %v15757_v48  ;;  %v8946_v56 = vadd.f32 %v1319_v41, %v15758_v47  ;;  %15760 = vst [vmem:[#allocation64_spill] sm:$0xff] %v8950_v30  ;;  %v8953_v8 = vadd.f32 %v1352_v24, %v15761_v29  ;;  %v15765_v55 = vld [vmem:[#allocation69_spill] sm:$0xff] }
  0xb9   :  { %15754 = vst [vmem:[#allocation59_spill] sm:$0xff] %v8937_v4  ;;  %v8956_v32 = vadd.f32 %v1353_v13, %v15763_v23  ;;  %v8959_v27 = vadd.f32 %v1350_v14, %v8602_v20  ;;  %v8962_v36 = vadd.f32 %v1351_v3, %v15765_v55  ;;  %v1324_v47 = vmul.f32 %v8950_v30, %v8237_v45  ;;  %v15768_v3 = vld [vmem:[#allocation72_spill] sm:$0xff]  ;;  %v15770_v48 = vld [vmem:[#allocation73_spill] sm:$0xff] }
  0xba   :  { %15756 = vst [vmem:[#allocation60_spill] sm:$0xff] %v8940_v35  ;;  %15762 = vst [vmem:[#allocation65_spill] sm:$0xff] %v8953_v8  ;;  %v1325_v37 = vmul.f32 %v8950_v30, %v8240_v46  ;;  %v1322_v41 = vmul.f32 %v8948_v26, %v8237_v45  ;;  %v1323_v29 = vmul.f32 %v8948_v26, %v8240_v46  ;;  %v8992_v35 = vpop.permute.xlu1 %1291 }
  0xbb   :  { %15764 = vst [vmem:[#allocation66_spill] sm:$0xff] %v8956_v32  ;;  %15766 = vst [vmem:[#allocation69_spill] sm:$0xff] %v8962_v36  ;;  %v1356_v23 = vmul.f32 %v8950_v30, %v8266_v63  ;;  %v1357_v20 = vmul.f32 %v8950_v30, %v8269_v0  ;;  %v1354_v24 = vmul.f32 %v8948_v26, %v8266_v63  ;;  %v15772_v32 = vld [vmem:[#allocation74_spill] sm:$0xff]  ;;  %v8994_v30 = vpop.permute.xlu0 %1295 }
  0xbc   :  { %v1355_v13 = vmul.f32 %v8948_v26, %v8269_v0  ;;  %v8981_v14 = vadd.f32 %v1324_v47, %v8618_v6  ;;  %v8984_v16 = vadd.f32 %v1325_v37, %v15768_v3  ;;  %v8987_v55 = vadd.f32 %v1322_v41, %v15770_v48  ;;  %15774 = vst [vmem:[#allocation109_spill] sm:$0xff] %v8992_v35  ;;  %v15777_v26 = vld [vmem:[#allocation75_spill] sm:$0xff]  ;;  %v15780_v47 = vld [vmem:[#allocation76_spill] sm:$0xff]  ;;  %v15785_v48 = vld [vmem:[#allocation77_spill] sm:$0xff] }
  0xbd   :  { %v8990_v8 = vadd.f32 %v1323_v29, %v15772_v32  ;;  %15775 = vst [vmem:[#allocation110_spill] sm:$0xff] %v8994_v30  ;;  %v8997_v4 = vadd.f32 %v1356_v23, %v8634_v60  ;;  %v9000_v36 = vadd.f32 %v1357_v20, %v15777_v26  ;;  %v9003_v6 = vadd.f32 %v1354_v24, %v8642_v12  ;;  %v15782_v23 = vld [vmem:[#allocation27_spill] sm:$0xff]  ;;  %v15783_v20 = vld [vmem:[#allocation85_spill] sm:$0xff] }
  0xbe   :  { %15767 = vst [vmem:[#allocation108_spill] sm:$0xff] %v8981_v14  ;;  %15769 = vst [vmem:[#allocation72_spill] sm:$0xff] %v8984_v16  ;;  %v9006_v37 = vadd.f32 %v1355_v13, %v15780_v47  ;;  %v1328_v32 = vmul.f32 %v8994_v30, %v8237_v45  ;;  %v1329_v41 = vmul.f32 %v8994_v30, %v8240_v46  ;;  %v15784_v13 = vld [vmem:[#allocation28_spill] sm:$0xff]  ;;  %v15788_v16 = vld [vmem:[#allocation82_spill] sm:$0xff] }
  0xbf   :  { %15771 = vst [vmem:[#allocation73_spill] sm:$0xff] %v8987_v55  ;;  %15773 = vst [vmem:[#allocation74_spill] sm:$0xff] %v8990_v8  ;;  %v1326_v29 = vmul.f32 %v8992_v35, %v8237_v45  ;;  %v1327_v60 = vmul.f32 %v8992_v35, %v8240_v46  ;;  %v1360_v26 = vmul.f32 %v8994_v30, %v8266_v63  ;;  %v15792_v55 = vld [vmem:[#allocation43_spill] sm:$0xff] }
  0xc0   :  { %15776 = vst [vmem:[#allocation111_spill] sm:$0xff] %v8997_v4  ;;  %15778 = vst [vmem:[#allocation75_spill] sm:$0xff] %v9000_v36  ;;  %v1361_v12 = vmul.f32 %v8994_v30, %v8269_v0  ;;  %v1364_v24 = vmul.f32 %v15783_v20, %v15782_v23  ;;  %v1365_v3 = vmul.f32 %v15783_v20, %v15784_v13  ;;  %v15786_v36 = vld [vmem:[#allocation78_spill] sm:$0xff]  ;;  %v15787_v4 = vld [vmem:[#allocation81_spill] sm:$0xff] }
  0xc1   :  { %15779 = vst [vmem:[#allocation112_spill] sm:$0xff] %v9003_v6  ;;  %15781 = vst [vmem:[#allocation76_spill] sm:$0xff] %v9006_v37  ;;  %v9025_v47 = vadd.f32 %v1328_v32, %v15785_v48  ;;  %v9028_v45 = vadd.f32 %v1329_v41, %v15786_v36  ;;  %v9031_v46 = vadd.f32 %v1326_v29, %v15787_v4  ;;  %v15789_v37 = vld [vmem:[#allocation83_spill] sm:$0xff]  ;;  %v15790_v6 = vld [vmem:[#allocation84_spill] sm:$0xff]  ;;  %v9048_v36 = vpop.permute.xlu1 %2611  ;;  %v9050_v41 = vpop.permute.xlu0 %2615 }
  0xc2   :  { %v9034_v14 = vadd.f32 %v1327_v60, %v15788_v16  ;;  %v9037_v30 = vadd.f32 %v1360_v26, %v15789_v37  ;;  %v9040_v8 = vadd.f32 %v1361_v12, %v15790_v6  ;;  %v9043_v20 = vadd.f32 %v1364_v24, %v15792_v55  ;;  %v15793_v32 = vld [vmem:[#allocation44_spill] sm:$0xff]  ;;  %15794 = vst [vmem:[#allocation78_spill] sm:$0xff] %v9048_v36  ;;  %v15800_v37 = vld [vmem:[#allocation21_spill] sm:$0xff]  ;;  %v15801_v60 = vld [vmem:[#allocation22_spill] sm:$0xff] }
  0xc3   :  { %v9046_v48 = vadd.f32 %v1365_v3, %v15793_v32  ;;  %15795 = vst [vmem:[#allocation81_spill] sm:$0xff] %v9050_v41  ;;  %v9054_v4 = vmul.f32 %v8992_v35, %v8266_v63  ;;  %v9058_v16 = vmul.f32 %v8992_v35, %v8269_v0  ;;  %v9062_v6 = vmul.f32 %v8730_v10, %v15782_v23  ;;  %v15802_v12 = vld [vmem:[#allocation25_spill] sm:$0xff]  ;;  %v15803_v3 = vld [vmem:[#allocation26_spill] sm:$0xff] }
  0xc4   :  { %15791 = vst [vmem:[#allocation77_spill] sm:$0xff] %v9040_v8  ;;  %v9066_v55 = vmul.f32 %v8730_v10, %v15784_v13  ;;  %v2674_v29 = vmul.f32 %v9048_v36, %v15800_v37  ;;  %v2675_v26 = vmul.f32 %v9048_v36, %v15801_v60  ;;  %v2676_v63 = vmul.f32 %v9050_v41, %v15800_v37 }
  0xc5   :  { %15796 = vst [vmem:[#allocation82_spill] sm:$0xff] %v9054_v4  ;;  %15797 = vst [vmem:[#allocation83_spill] sm:$0xff] %v9058_v16  ;;  %v2677_v0 = vmul.f32 %v9050_v41, %v15801_v60  ;;  %v2708_v24 = vmul.f32 %v9050_v41, %v15802_v12  ;;  %v2709_v32 = vmul.f32 %v9050_v41, %v15803_v3  ;;  %v9096_v16 = vpop.permute.xlu1 %2619  ;;  %v9098_v4 = vpop.permute.xlu0 %2627 }
  0xc6   :  { %15798 = vst [vmem:[#allocation84_spill] sm:$0xff] %v9062_v6  ;;  %15799 = vst [vmem:[#allocation43_spill] sm:$0xff] %v9066_v55  ;;  %v2706_v10 = vmul.f32 %v9048_v36, %v15802_v12  ;;  %v2707_v35 = vmul.f32 %v9048_v36, %v15803_v3  ;;  %v9085_v13 = vadd.f32 %v2674_v29, %v8717_v5 }
  0xc7   :  { %v9088_v23 = vadd.f32 %v2675_v26, %v8720_v11  ;;  %v9091_v55 = vadd.f32 %v2676_v63, %v8723_v39  ;;  %v9094_v6 = vadd.f32 %v2677_v0, %v8726_v38  ;;  %15804 = vst [vmem:[#allocation44_spill] sm:$0xff] %v9096_v16  ;;  %15805 = vst [vmem:[#allocation21_spill] sm:$0xff] %v9098_v4  ;;  %v15807_v11 = vld [vmem:[#allocation93_spill] sm:$0xff] }
  0xc8   :  { %v9101_v8 = vadd.f32 %v2708_v24, %v8733_v19  ;;  %v9104_v36 = vadd.f32 %v2709_v32, %v8736_v61  ;;  %v9107_v5 = vadd.f32 %v2706_v10, %v8739_v17  ;;  %v9110_v29 = vadd.f32 %v2707_v35, %v15807_v11 }
  0xc9   :  { %v2678_v38 = vmul.f32 %v9096_v16, %v15800_v37  ;;  %v2679_v39 = vmul.f32 %v9096_v16, %v15801_v60  ;;  %v2682_v26 = vmul.f32 %v9098_v4, %v15800_v37  ;;  %v2683_v19 = vmul.f32 %v9098_v4, %v15801_v60  ;;  %v9140_v11 = vpop.permute.xlu1 %2623 }
  0xca   :  { %15806 = vst [vmem:[#allocation22_spill] sm:$0xff] %v9104_v36  ;;  %v2710_v61 = vmul.f32 %v9096_v16, %v15802_v12  ;;  %v2711_v10 = vmul.f32 %v9096_v16, %v15803_v3  ;;  %v2714_v17 = vmul.f32 %v9098_v4, %v15802_v12  ;;  %v2715_v35 = vmul.f32 %v9098_v4, %v15803_v3  ;;  %v9142_v16 = vpop.permute.xlu0 %2635 }
  0xcb   :  { %v9129_v63 = vadd.f32 %v2678_v38, %v8767_v59  ;;  %v9132_v0 = vadd.f32 %v2679_v39, %v8770_v2  ;;  %v9135_v24 = vadd.f32 %v2682_v26, %v8811_v7  ;;  %v9138_v32 = vadd.f32 %v2683_v19, %v8814_v31  ;;  %15808 = vst [vmem:[#allocation25_spill] sm:$0xff] %v9140_v11 }
  0xcc   :  { %15809 = vst [vmem:[#allocation26_spill] sm:$0xff] %v9142_v16  ;;  %v9145_v36 = vadd.f32 %v2710_v61, %v8783_v52  ;;  %v9148_v4 = vadd.f32 %v2711_v10, %v8786_v53  ;;  %v9151_v59 = vadd.f32 %v2714_v17, %v8827_v21  ;;  %v9154_v2 = vadd.f32 %v2715_v35, %v8830_v34 }
  0xcd   :  { %v2680_v7 = vmul.f32 %v9140_v11, %v15800_v37  ;;  %v2681_v31 = vmul.f32 %v9140_v11, %v15801_v60  ;;  %v2686_v38 = vmul.f32 %v9142_v16, %v15800_v37  ;;  %v2687_v52 = vmul.f32 %v9142_v16, %v15801_v60  ;;  %v9184_v17 = vpop.permute.xlu1 %2631 }
  0xce   :  { %15810 = vst [vmem:[#allocation93_spill] sm:$0xff] %v9145_v36  ;;  %15811 = vst [vmem:[#allocation113_spill] sm:$0xff] %v9148_v4  ;;  %v2712_v53 = vmul.f32 %v9140_v11, %v15802_v12  ;;  %v2713_v21 = vmul.f32 %v9140_v11, %v15803_v3  ;;  %v2718_v34 = vmul.f32 %v9142_v16, %v15802_v12  ;;  %v9186_v35 = vpop.permute.xlu0 %2643 }
  0xcf   :  { %15812 = vst [vmem:[#allocation114_spill] sm:$0xff] %v9151_v59  ;;  %15813 = vst [vmem:[#allocation115_spill] sm:$0xff] %v9154_v2  ;;  %v2719_v39 = vmul.f32 %v9142_v16, %v15803_v3  ;;  %v9173_v26 = vadd.f32 %v2680_v7, %v8761_v54  ;;  %v9176_v19 = vadd.f32 %v2681_v31, %v8764_v58  ;;  %v15837_v2 = vld [vmem:[#allocation106_spill] sm:$0xff] }
  0xd0   :  { %v9179_v61 = vadd.f32 %v2686_v38, %v8855_v1  ;;  %v9182_v10 = vadd.f32 %v2687_v52, %v8858_v33  ;;  %15814 = vst [vmem:[#allocation116_spill] sm:$0xff] %v9184_v17  ;;  %15815 = vst [vmem:[#allocation117_spill] sm:$0xff] %v9186_v35  ;;  %v9189_v11 = vadd.f32 %v2712_v53, %v8777_v18 }
  0xd1   :  { %v9192_v16 = vadd.f32 %v2713_v21, %v8780_v15  ;;  %v9195_v54 = vadd.f32 %v2718_v34, %v8871_v40  ;;  %v9198_v58 = vadd.f32 %v2719_v39, %v8874_v42  ;;  %v2684_v1 = vmul.f32 %v9184_v17, %v15800_v37  ;;  %v9228_v34 = vpop.permute.xlu1 %2639 }
  0xd2   :  { %v2685_v33 = vmul.f32 %v9184_v17, %v15801_v60  ;;  %v2690_v7 = vmul.f32 %v9186_v35, %v15800_v37  ;;  %v2691_v18 = vmul.f32 %v9186_v35, %v15801_v60  ;;  %v2716_v15 = vmul.f32 %v9184_v17, %v15802_v12  ;;  %15818 = vst [vmem:[#allocation120_spill] sm:$0xff] %v9228_v34  ;;  %v9230_v39 = vpop.permute.xlu0 %2651 }
  0xd3   :  { %15816 = vst [vmem:[#allocation118_spill] sm:$0xff] %v9195_v54  ;;  %15817 = vst [vmem:[#allocation119_spill] sm:$0xff] %v9198_v58  ;;  %v2717_v40 = vmul.f32 %v9184_v17, %v15803_v3  ;;  %v2722_v42 = vmul.f32 %v9186_v35, %v15802_v12  ;;  %v2723_v31 = vmul.f32 %v9186_v35, %v15803_v3 }
  0xd4   :  { %v9217_v38 = vadd.f32 %v2684_v1, %v8805_v57  ;;  %v9220_v52 = vadd.f32 %v2685_v33, %v8808_v28  ;;  %v9223_v53 = vadd.f32 %v2690_v7, %v8899_v25  ;;  %v9226_v21 = vadd.f32 %v2691_v18, %v8902_v49  ;;  %15819 = vst [vmem:[#allocation121_spill] sm:$0xff] %v9230_v39 }
  0xd5   :  { %v9233_v17 = vadd.f32 %v2716_v15, %v8821_v44  ;;  %v9236_v35 = vadd.f32 %v2717_v40, %v8824_v43  ;;  %v9239_v57 = vadd.f32 %v2722_v42, %v8915_v9  ;;  %v9242_v28 = vadd.f32 %v2723_v31, %v8918_v22  ;;  %v9272_v42 = vpop.permute.xlu1 %2647 }
  0xd6   :  { %v2688_v25 = vmul.f32 %v9228_v34, %v15800_v37  ;;  %v2689_v49 = vmul.f32 %v9228_v34, %v15801_v60  ;;  %v2694_v1 = vmul.f32 %v9230_v39, %v15800_v37  ;;  %v2695_v44 = vmul.f32 %v9230_v39, %v15801_v60  ;;  %15822 = vst [vmem:[#allocation124_spill] sm:$0xff] %v9272_v42  ;;  %v9274_v31 = vpop.permute.xlu0 %2659 }
  0xd7   :  { %15820 = vst [vmem:[#allocation122_spill] sm:$0xff] %v9239_v57  ;;  %15821 = vst [vmem:[#allocation123_spill] sm:$0xff] %v9242_v28  ;;  %v2720_v43 = vmul.f32 %v9228_v34, %v15802_v12  ;;  %v2721_v9 = vmul.f32 %v9228_v34, %v15803_v3  ;;  %v2726_v22 = vmul.f32 %v9230_v39, %v15802_v12  ;;  %v15824_v34 = vld [vmem:[#allocation100_spill] sm:$0xff] }
  0xd8   :  { %v2727_v33 = vmul.f32 %v9230_v39, %v15803_v3  ;;  %v9261_v7 = vadd.f32 %v2688_v25, %v8849_v51  ;;  %v9264_v18 = vadd.f32 %v2689_v49, %v8852_v62  ;;  %v9267_v15 = vadd.f32 %v2694_v1, %v8943_v50  ;;  %15823 = vst [vmem:[#allocation125_spill] sm:$0xff] %v9274_v31  ;;  %v15826_v39 = vld [vmem:[#allocation101_spill] sm:$0xff] }
  0xd9   :  { %v9270_v40 = vadd.f32 %v2695_v44, %v8946_v56  ;;  %v9277_v28 = vadd.f32 %v2720_v43, %v15824_v34  ;;  %v9280_v57 = vadd.f32 %v2721_v9, %v15826_v39  ;;  %v9283_v51 = vadd.f32 %v2726_v22, %v8959_v27  ;;  %v15829_v62 = vld [vmem:[#allocation69_spill] sm:$0xff]  ;;  %v15831_v43 = vld [vmem:[#allocation102_spill] sm:$0xff]  ;;  %v15832_v22 = vld [vmem:[#allocation103_spill] sm:$0xff]  ;;  %v9316_v54 = vpop.permute.xlu1 %2655 }
  0xda   :  { %v9286_v25 = vadd.f32 %v2727_v33, %v15829_v62  ;;  %v2692_v56 = vmul.f32 %v9272_v42, %v15800_v37  ;;  %v2693_v50 = vmul.f32 %v9272_v42, %v15801_v60  ;;  %v2698_v49 = vmul.f32 %v9274_v31, %v15800_v37  ;;  %v15833_v62 = vld [vmem:[#allocation73_spill] sm:$0xff]  ;;  %15835 = vst [vmem:[#allocation102_spill] sm:$0xff] %v9316_v54 }
  0xdb   :  { %15825 = vst [vmem:[#allocation100_spill] sm:$0xff] %v9277_v28  ;;  %15827 = vst [vmem:[#allocation101_spill] sm:$0xff] %v9280_v57  ;;  %v2699_v34 = vmul.f32 %v9274_v31, %v15801_v60  ;;  %v2724_v39 = vmul.f32 %v9272_v42, %v15802_v12  ;;  %v2725_v27 = vmul.f32 %v9272_v42, %v15803_v3  ;;  %v9318_v42 = vpop.permute.xlu0 %2667 }
  0xdc   :  { %15828 = vst [vmem:[#allocation126_spill] sm:$0xff] %v9283_v51  ;;  %15830 = vst [vmem:[#allocation69_spill] sm:$0xff] %v9286_v25  ;;  %v2730_v1 = vmul.f32 %v9274_v31, %v15802_v12  ;;  %v2731_v44 = vmul.f32 %v9274_v31, %v15803_v3  ;;  %v9305_v9 = vadd.f32 %v2692_v56, %v15831_v43  ;;  %v15834_v51 = vld [vmem:[#allocation74_spill] sm:$0xff]  ;;  %v15839_v31 = vld [vmem:[#allocation107_spill] sm:$0xff] }
  0xdd   :  { %v9308_v33 = vadd.f32 %v2693_v50, %v15832_v22  ;;  %v9311_v25 = vadd.f32 %v2698_v49, %v15833_v62  ;;  %v9314_v58 = vadd.f32 %v2699_v34, %v15834_v51  ;;  %15836 = vst [vmem:[#allocation103_spill] sm:$0xff] %v9318_v42  ;;  %v9321_v59 = vadd.f32 %v2724_v39, %v15837_v2  ;;  %v15841_v56 = vld [vmem:[#allocation112_spill] sm:$0xff] }
  0xde   :  { %v9324_v57 = vadd.f32 %v2725_v27, %v15839_v31  ;;  %v9327_v43 = vadd.f32 %v2730_v1, %v15841_v56  ;;  %v15843_v50 = vld [vmem:[#allocation76_spill] sm:$0xff]  ;;  %v2696_v51 = vmul.f32 %v9316_v54, %v15800_v37  ;;  %v2697_v49 = vmul.f32 %v9316_v54, %v15801_v60  ;;  %v15845_v27 = vld [vmem:[#allocation33_spill] sm:$0xff]  ;;  %v15847_v56 = vld [vmem:[#allocation59_spill] sm:$0xff] }
  0xdf   :  { %15838 = vst [vmem:[#allocation73_spill] sm:$0xff] %v9321_v59  ;;  %v9330_v22 = vadd.f32 %v2731_v44, %v15843_v50  ;;  %v2702_v34 = vmul.f32 %v9318_v42, %v15800_v37  ;;  %v2703_v2 = vmul.f32 %v9318_v42, %v15801_v60  ;;  %v2728_v31 = vmul.f32 %v9316_v54, %v15802_v12  ;;  %v15846_v44 = vld [vmem:[#allocation34_spill] sm:$0xff]  ;;  %v9360_v59 = vpop.permute.xlu1 %2663 }
  0xe0   :  { %15840 = vst [vmem:[#allocation74_spill] sm:$0xff] %v9324_v57  ;;  %15842 = vst [vmem:[#allocation106_spill] sm:$0xff] %v9327_v43  ;;  %v2729_v39 = vmul.f32 %v9316_v54, %v15803_v3  ;;  %v2740_v1 = vmul.f32 %v9050_v41, %v15845_v27  ;;  %v2741_v62 = vmul.f32 %v9050_v41, %v15846_v44  ;;  %v15852_v54 = vld [vmem:[#allocation65_spill] sm:$0xff]  ;;  %v15854_v27 = vld [vmem:[#allocation66_spill] sm:$0xff] }
  0xe1   :  { %15844 = vst [vmem:[#allocation107_spill] sm:$0xff] %v9330_v22  ;;  %v9349_v50 = vadd.f32 %v2696_v51, %v15847_v56  ;;  %v15848_v22 = vld [vmem:[#allocation60_spill] sm:$0xff]  ;;  %v9355_v42 = vadd.f32 %v2702_v34, %v9031_v46  ;;  %v9358_v57 = vadd.f32 %v2703_v2, %v9034_v14  ;;  %15851 = vst [vmem:[#allocation59_spill] sm:$0xff] %v9360_v59  ;;  %v15859_v2 = vld [vmem:[#allocation29_spill] sm:$0xff] }
  0xe2   :  { %v9352_v43 = vadd.f32 %v2697_v49, %v15848_v22  ;;  %v9363_v28 = vadd.f32 %v2728_v31, %v15852_v54  ;;  %v9366_v4 = vadd.f32 %v2729_v39, %v15854_v27  ;;  %v9369_v51 = vadd.f32 %v2740_v1, %v9043_v20  ;;  %v9374_v49 = vpop.permute.xlu0 %3987  ;;  %v15860_v31 = vld [vmem:[#allocation30_spill] sm:$0xff]  ;;  %v15861_v39 = vld [vmem:[#allocation31_spill] sm:$0xff]  ;;  %v15862_v1 = vld [vmem:[#allocation32_spill] sm:$0xff] }
  0xe3   :  { %15849 = vst [vmem:[#allocation112_spill] sm:$0xff] %v9355_v42  ;;  %15850 = vst [vmem:[#allocation76_spill] sm:$0xff] %v9358_v57  ;;  %v9372_v22 = vadd.f32 %v2741_v62, %v9046_v48  ;;  %v2700_v14 = vmul.f32 %v9360_v59, %v15800_v37  ;;  %v2701_v46 = vmul.f32 %v9360_v59, %v15801_v60  ;;  %v15863_v56 = vld [vmem:[#allocation108_spill] sm:$0xff]  ;;  %v9404_v57 = vpop.permute.xlu1 %2671 }
  0xe4   :  { %15853 = vst [vmem:[#allocation60_spill] sm:$0xff] %v9363_v28  ;;  %15855 = vst [vmem:[#allocation65_spill] sm:$0xff] %v9366_v4  ;;  %v2732_v54 = vmul.f32 %v9360_v59, %v15802_v12  ;;  %v2733_v34 = vmul.f32 %v9360_v59, %v15803_v3  ;;  %v4050_v20 = vmul.f32 %v9374_v49, %v15859_v2  ;;  %v15864_v44 = vld [vmem:[#allocation72_spill] sm:$0xff]  ;;  %v15866_v4 = vld [vmem:[#allocation75_spill] sm:$0xff] }
  0xe5   :  { %15856 = vst [vmem:[#allocation66_spill] sm:$0xff] %v9369_v51  ;;  %15857 = vst [vmem:[#allocation127_spill] sm:$0xff] %v9372_v22  ;;  %v4051_v48 = vmul.f32 %v9374_v49, %v15860_v31  ;;  %v4082_v27 = vmul.f32 %v9374_v49, %v15861_v39  ;;  %v4083_v62 = vmul.f32 %v9374_v49, %v15862_v1  ;;  %v15865_v51 = vld [vmem:[#allocation111_spill] sm:$0xff] }
  0xe6   :  { %15858 = vst [vmem:[#allocation128_spill] sm:$0xff] %v9374_v49  ;;  %v9393_v41 = vadd.f32 %v2700_v14, %v15863_v56  ;;  %v9396_v22 = vadd.f32 %v2701_v46, %v15864_v44  ;;  %v9399_v59 = vadd.f32 %v2732_v54, %v15865_v51  ;;  %v9402_v28 = vadd.f32 %v2733_v34, %v15866_v4  ;;  %v9414_v44 = vpop.permute.xlu0 %3999 }
  0xe7   :  { %15867 = vst [vmem:[#allocation29_spill] sm:$0xff] %v9404_v57  ;;  %v4562_v42 = vadd.f32 %v4050_v20, %v9085_v13  ;;  %v4563_v36 = vadd.f32 %v4051_v48, %v9088_v23  ;;  %v9409_v49 = vadd.f32 %v4082_v27, %v9107_v5  ;;  %v9412_v14 = vadd.f32 %v4083_v62, %v9110_v29  ;;  %v9443_v62 = vpop.permute.xlu1 %3991 }
  0xe8   :  { %15868 = vst [vmem:[#allocation30_spill] sm:$0xff] %v9414_v44  ;;  %v2704_v51 = vmul.f32 %v9404_v57, %v15800_v37  ;;  %v2705_v4 = vmul.f32 %v9404_v57, %v15801_v60  ;;  %v2736_v46 = vmul.f32 %v9404_v57, %v15802_v12  ;;  %v9424_v23 = vmul.f32 %v9404_v57, %v15803_v3  ;;  %v15873_v57 = vld [vmem:[#allocation22_spill] sm:$0xff] }
  0xe9   :  { %v5074_v13 = vmax.f32 %v4562_v42, 0.0  ;;  %v5075_v5 = vmax.f32 %v4563_v36, 0.0  ;;  %v4056_v29 = vmul.f32 %v9414_v44, %v15859_v2  ;;  %v4057_v54 = vmul.f32 %v9414_v44, %v15860_v31  ;;  %15869 = vst [vmem:[#allocation31_spill] sm:$0xff] %v9443_v62 }
  0xea   :  { %v9431_v37 = vadd.f32 %v2704_v51, %v9025_v47  ;;  %v9434_v60 = vadd.f32 %v2705_v4, %v9028_v45  ;;  %v4088_v34 = vmul.f32 %v9414_v44, %v15861_v39  ;;  %v4089_v20 = vmul.f32 %v9414_v44, %v15862_v1  ;;  %v9445_v47 = vpop.permute.xlu0 %4007 }
  0xeb   :  { %v5588_v42 = vadd.f32 %v5075_v5, %v5074_v13  ;;  %v4568_v36 = vadd.f32 %v4056_v29, %v9173_v26  ;;  %v4569_v48 = vadd.f32 %v4057_v54, %v9176_v19  ;;  %15870 = vst [vmem:[#allocation32_spill] sm:$0xff] %v9445_v47  ;;  %v9455_v4 = vadd.f32 %v2736_v46, %v9037_v30 }
  0xec   :  { %v9448_v45 = vadd.f32 %v4088_v34, %v9189_v11  ;;  %v9451_v56 = vadd.f32 %v4089_v20, %v9192_v16  ;;  %v4052_v13 = vmul.f32 %v9443_v62, %v15859_v2  ;;  %v4053_v5 = vmul.f32 %v9443_v62, %v15860_v31 }
  0xed   :  { %5589 = vadd.xlane.f32.xlu1 %v5588_v42  ;;  %v5080_v26 = vmax.f32 %v4568_v36, 0.0  ;;  %v5081_v19 = vmax.f32 %v4569_v48, 0.0  ;;  %v4060_v11 = vmul.f32 %v9445_v47, %v15859_v2  ;;  %v4061_v16 = vmul.f32 %v9445_v47, %v15860_v31  ;;  %v9472_v42 = vpop.permute.xlu1 %3995 }
  0xee   :  { %v4084_v29 = vmul.f32 %v9443_v62, %v15861_v39  ;;  %v4085_v30 = vmul.f32 %v9443_v62, %v15862_v1  ;;  %v4564_v54 = vadd.f32 %v4052_v13, %v9091_v55  ;;  %v4565_v34 = vadd.f32 %v4053_v5, %v9094_v6  ;;  %15871 = vst [vmem:[#allocation108_spill] sm:$0xff] %v9472_v42  ;;  %v9474_v36 = vpop.permute.xlu0 %4015 }
  0xef   :  { %v5597_v46 = vadd.f32 %v5081_v19, %v5080_v26  ;;  %v5112_v20 = vmax.f32 %v9448_v45, 0.0  ;;  %15872 = vst [vmem:[#allocation72_spill] sm:$0xff] %v9474_v36  ;;  %v4572_v48 = vadd.f32 %v4060_v11, %v9217_v38  ;;  %v4573_v51 = vadd.f32 %v4061_v16, %v9220_v52 }
  0xf0   :  { %v4596_v27 = vadd.f32 %v4084_v29, %v9101_v8  ;;  %v4597_v44 = vadd.f32 %v4085_v30, %v15873_v57  ;;  %v5076_v26 = vmax.f32 %v4564_v54, 0.0  ;;  %v5077_v19 = vmax.f32 %v4565_v34, 0.0 }
  0xf1   :  { %5598 = vadd.xlane.f32.xlu1 %v5597_v46  ;;  %v4054_v6 = vmul.f32 %v9472_v42, %v15859_v2  ;;  %v4055_v55 = vmul.f32 %v9472_v42, %v15860_v31  ;;  %v5084_v45 = vmax.f32 %v4572_v48, 0.0  ;;  %v5085_v13 = vmax.f32 %v4573_v51, 0.0  ;;  %v9490_v16 = vpop.permute.xlu1 %4003 }
  0xf2   :  { %v4064_v38 = vmul.f32 %v9474_v36, %v15859_v2  ;;  %v4065_v52 = vmul.f32 %v9474_v36, %v15860_v31  ;;  %v5591_v8 = vadd.f32 %v5077_v19, %v5076_v26  ;;  %v5108_v11 = vmax.f32 %v4596_v27, 0.0  ;;  %15874 = vst [vmem:[#allocation111_spill] sm:$0xff] %v9490_v16  ;;  %v9492_v29 = vpop.permute.xlu0 %4023 }
  0xf3   :  { %v4566_v57 = vadd.f32 %v4054_v6, %v9129_v63  ;;  %v4567_v5 = vadd.f32 %v4055_v55, %v9132_v0  ;;  %15875 = vst [vmem:[#allocation75_spill] sm:$0xff] %v9492_v29  ;;  %v5603_v30 = vadd.f32 %v5085_v13, %v5084_v45  ;;  %v5109_v54 = vmax.f32 %v4597_v44, 0.0 }
  0xf4   :  { %v4576_v46 = vadd.f32 %v4064_v38, %v9261_v7  ;;  %v4577_v51 = vadd.f32 %v4065_v52, %v9264_v18  ;;  %5592 = vadd.xlane.f32.xlu0 %v5591_v8  ;;  %v4058_v26 = vmul.f32 %v9490_v16, %v15859_v2  ;;  %v4059_v63 = vmul.f32 %v9490_v16, %v15860_v31 }
  0xf5   :  { %v5078_v34 = vmax.f32 %v4566_v57, 0.0  ;;  %v5079_v48 = vmax.f32 %v4567_v5, 0.0  ;;  %5604 = vadd.xlane.f32.xlu1 %v5603_v30  ;;  %v4068_v19 = vmul.f32 %v9492_v29, %v15859_v2  ;;  %v4069_v7 = vmul.f32 %v9492_v29, %v15860_v31  ;;  %v9508_v45 = vpop.permute.xlu1 %4011 }
  0xf6   :  { %v5088_v0 = vmax.f32 %v4576_v46, 0.0  ;;  %v5089_v27 = vmax.f32 %v4577_v51, 0.0  ;;  %v4570_v44 = vadd.f32 %v4058_v26, %v9135_v24  ;;  %v4571_v6 = vadd.f32 %v4059_v63, %v9138_v32  ;;  %15876 = vst [vmem:[#allocation22_spill] sm:$0xff] %v9508_v45  ;;  %v9510_v13 = vpop.permute.xlu0 %4031 }
  0xf7   :  { %v5594_v18 = vadd.f32 %v5079_v48, %v5078_v34  ;;  %v9506_v55 = vadd.f32 %v5109_v54, %v5108_v11  ;;  %15877 = vst [vmem:[#allocation129_spill] sm:$0xff] %v9510_v13  ;;  %v4580_v52 = vadd.f32 %v4068_v19, %v9305_v9  ;;  %v4581_v8 = vadd.f32 %v4069_v7, %v9308_v33 }
  0xf8   :  { %v5609_v38 = vadd.f32 %v5089_v27, %v5088_v0  ;;  %v5113_v57 = vmax.f32 %v9451_v56, 0.0  ;;  %v5082_v5 = vmax.f32 %v4570_v44, 0.0  ;;  %v5083_v30 = vmax.f32 %v4571_v6, 0.0 }
  0xf9   :  { %5595 = vadd.xlane.f32.xlu0 %v5594_v18  ;;  %v4062_v24 = vmul.f32 %v9508_v45, %v15859_v2  ;;  %v4063_v32 = vmul.f32 %v9508_v45, %v15860_v31  ;;  %v5092_v11 = vmax.f32 %v4580_v52, 0.0  ;;  %v5093_v46 = vmax.f32 %v4581_v8, 0.0  ;;  %v9527_v48 = vpop.permute.xlu1 %4019 }
  0xfa   :  { %5610 = vadd.xlane.f32.xlu1 %v5609_v38  ;;  %v4072_v51 = vmul.f32 %v9510_v13, %v15859_v2  ;;  %v4073_v9 = vmul.f32 %v9510_v13, %v15860_v31  ;;  %v5600_v33 = vadd.f32 %v5083_v30, %v5082_v5  ;;  %v9525_v34 = vadd.f32 %v5113_v57, %v5112_v20  ;;  %v9529_v26 = vpop.permute.xlu0 %4039 }
  0xfb   :  { %v4574_v56 = vadd.f32 %v4062_v24, %v9179_v61  ;;  %v4575_v54 = vadd.f32 %v4063_v32, %v9182_v10  ;;  %15878 = vst [vmem:[#allocation130_spill] sm:$0xff] %v9527_v48  ;;  %15879 = vst [vmem:[#allocation131_spill] sm:$0xff] %v9529_v26  ;;  %v5615_v63 = vadd.f32 %v5093_v46, %v5092_v11  ;;  %v15880_v19 = vmax.f32 %v9409_v49, 0.0 }
  0xfc   :  { %v4584_v0 = vadd.f32 %v4072_v51, %v9349_v50  ;;  %v4585_v27 = vadd.f32 %v4073_v9, %v9352_v43  ;;  %v15881_v7 = vmax.f32 %v9412_v14, 0.0  ;;  %v4066_v20 = vmul.f32 %v9527_v48, %v15859_v2 }
  0xfd   :  { %5601 = vadd.xlane.f32.xlu0 %v5600_v33  ;;  %v5086_v61 = vmax.f32 %v4574_v56, 0.0  ;;  %v5087_v10 = vmax.f32 %v4575_v54, 0.0  ;;  %v4067_v44 = vmul.f32 %v9527_v48, %v15860_v31  ;;  %v4076_v43 = vmul.f32 %v9529_v26, %v15859_v2  ;;  %v9551_v57 = vpop.permute.xlu1 %4027 }
  0xfe   :  { %v9537_v18 = vadd.f32 %v15881_v7, %v15880_v19  ;;  %5616 = vadd.xlane.f32.xlu1 %v5615_v63  ;;  %v5096_v6 = vmax.f32 %v4584_v0, 0.0  ;;  %v5097_v50 = vmax.f32 %v4585_v27, 0.0  ;;  %v4077_v49 = vmul.f32 %v9529_v26, %v15860_v31  ;;  %15882 = vst [vmem:[#allocation132_spill] sm:$0xff] %v9551_v57  ;;  %v9553_v5 = vpop.permute.xlu0 %4047 }
  0xff   :  { %v5606_v14 = vadd.f32 %v5087_v10, %v5086_v61  ;;  %v4578_v38 = vadd.f32 %v4066_v20, %v9223_v53  ;;  %v4579_v52 = vadd.f32 %v4067_v44, %v9226_v21  ;;  %v4092_v8 = vmul.f32 %v9445_v47, %v15861_v39  ;;  %15883 = vst [vmem:[#allocation133_spill] sm:$0xff] %v9553_v5 }
 0x100   :  { %v5621_v30 = vadd.f32 %v5097_v50, %v5096_v6  ;;  %v4588_v24 = vadd.f32 %v4076_v43, %v9393_v41  ;;  %v4589_v32 = vadd.f32 %v4077_v49, %v9396_v22  ;;  %v4093_v11 = vmul.f32 %v9445_v47, %v15862_v1 }
 0x101   :  { %5607 = vadd.xlane.f32.xlu0 %v5606_v14  ;;  %v5090_v46 = vmax.f32 %v4578_v38, 0.0  ;;  %v5091_v53 = vmax.f32 %v4579_v52, 0.0  ;;  %v4070_v21 = vmul.f32 %v9551_v57, %v15859_v2  ;;  %v4071_v51 = vmul.f32 %v9551_v57, %v15860_v31  ;;  %v9570_v27 = vpop.permute.xlu1 %4035 }
 0x102   :  { %5622 = vadd.xlane.f32.xlu1 %v5621_v30  ;;  %v5100_v9 = vmax.f32 %v4588_v24, 0.0  ;;  %v5101_v33 = vmax.f32 %v4589_v32, 0.0  ;;  %v4080_v41 = vmul.f32 %v9553_v5, %v15859_v2  ;;  %v4081_v22 = vmul.f32 %v9553_v5, %v15860_v31  ;;  %15884 = vst [vmem:[#allocation134_spill] sm:$0xff] %v9570_v27 }
 0x103   :  { %v5612_v56 = vadd.f32 %v5091_v53, %v5090_v46  ;;  %v4582_v54 = vadd.f32 %v4070_v21, %v9267_v15  ;;  %v4583_v63 = vadd.f32 %v4071_v51, %v9270_v40  ;;  %v4604_v0 = vadd.f32 %v4092_v8, %v9233_v17  ;;  %v15887_v53 = vld [vmem:[#allocation113_spill] sm:$0xff] }
 0x104   :  { %v5627_v19 = vadd.f32 %v5101_v33, %v5100_v9  ;;  %v4592_v7 = vadd.f32 %v4080_v41, %v9431_v37  ;;  %v4593_v61 = vadd.f32 %v4081_v22, %v9434_v60  ;;  %v4605_v10 = vadd.f32 %v4093_v11, %v9236_v35  ;;  %v15886_v11 = vld [vmem:[#allocation93_spill] sm:$0xff]  ;;  %v15888_v9 = vld [vmem:[#allocation100_spill] sm:$0xff] }
 0x105   :  { %5613 = vadd.xlane.f32.xlu0 %v5612_v56  ;;  %v5094_v20 = vmax.f32 %v4582_v54, 0.0  ;;  %v5095_v44 = vmax.f32 %v4583_v63, 0.0  ;;  %v4074_v6 = vmul.f32 %v9570_v27, %v15859_v2  ;;  %v4075_v15 = vmul.f32 %v9570_v27, %v15860_v31  ;;  %v9583_v14 = vpop.permute.xlu1 %4043  ;;  %v15889_v22 = vld [vmem:[#allocation112_spill] sm:$0xff] }
 0x106   :  { %5628 = vadd.xlane.f32.xlu1 %v5627_v19  ;;  %v5104_v17 = vmax.f32 %v4592_v7, 0.0  ;;  %v5105_v40 = vmax.f32 %v4593_v61, 0.0  ;;  %v5116_v50 = vmax.f32 %v4604_v0, 0.0  ;;  %v5117_v43 = vmax.f32 %v4605_v10, 0.0  ;;  %15885 = vst [vmem:[#allocation135_spill] sm:$0xff] %v9583_v14  ;;  %v15890_v54 = vld [vmem:[#allocation76_spill] sm:$0xff] }
 0x107   :  { %v5618_v49 = vadd.f32 %v5095_v44, %v5094_v20  ;;  %v4586_v37 = vadd.f32 %v4074_v6, %v9311_v25  ;;  %v4587_v60 = vadd.f32 %v4075_v15, %v9314_v58  ;;  %v4086_v35 = vmul.f32 %v9472_v42, %v15861_v39  ;;  %v15891_v19 = vld [vmem:[#allocation101_spill] sm:$0xff]  ;;  %v15892_v6 = vld [vmem:[#allocation114_spill] sm:$0xff] }
 0x108   :  { %v5633_v38 = vadd.f32 %v5105_v40, %v5104_v17  ;;  %v5651_v52 = vadd.f32 %v5117_v43, %v5116_v50  ;;  %v4087_v8 = vmul.f32 %v9472_v42, %v15862_v1  ;;  %v4096_v30 = vmul.f32 %v9474_v36, %v15861_v39 }
 0x109   :  { %5619 = vadd.xlane.f32.xlu0 %v5618_v49  ;;  %v5098_v24 = vmax.f32 %v4586_v37, 0.0  ;;  %v5099_v32 = vmax.f32 %v4587_v60, 0.0  ;;  %v4078_v25 = vmul.f32 %v9583_v14, %v15859_v2  ;;  %v4079_v58 = vmul.f32 %v9583_v14, %v15860_v31  ;;  %v15893_v37 = vld [vmem:[#allocation115_spill] sm:$0xff] }
 0x10a   :  { %5634 = vadd.xlane.f32.xlu1 %v5633_v38  ;;  %v4598_v46 = vadd.f32 %v4086_v35, %v15886_v11  ;;  %v4599_v21 = vadd.f32 %v4087_v8, %v15887_v53  ;;  %v4097_v51 = vmul.f32 %v9474_v36, %v15862_v1  ;;  %v4608_v33 = vadd.f32 %v4096_v30, %v15888_v9  ;;  %v15894_v30 = vld [vmem:[#allocation73_spill] sm:$0xff]  ;;  %v15896_v11 = vld [vmem:[#allocation118_spill] sm:$0xff] }
 0x10b   :  { %v5624_v41 = vadd.f32 %v5099_v32, %v5098_v24  ;;  %v4590_v56 = vadd.f32 %v4078_v25, %v15889_v22  ;;  %v4591_v63 = vadd.f32 %v4079_v58, %v15890_v54  ;;  %v4090_v2 = vmul.f32 %v9490_v16, %v15861_v39  ;;  %v15895_v32 = vld [vmem:[#allocation74_spill] sm:$0xff] }
 0x10c   :  { %v5110_v0 = vmax.f32 %v4598_v46, 0.0  ;;  %v5111_v31 = vmax.f32 %v4599_v21, 0.0  ;;  %v4609_v7 = vadd.f32 %v4097_v51, %v15891_v19  ;;  %v5120_v61 = vmax.f32 %v4608_v33, 0.0  ;;  %v15897_v33 = vld [vmem:[#allocation119_spill] sm:$0xff] }
 0x10d   :  { %5625 = vadd.xlane.f32.xlu0 %v5624_v41  ;;  %v5102_v10 = vmax.f32 %v4590_v56, 0.0  ;;  %v5103_v20 = vmax.f32 %v4591_v63, 0.0  ;;  %v4091_v44 = vmul.f32 %v9490_v16, %v15862_v1  ;;  %v4602_v15 = vadd.f32 %v4090_v2, %v15892_v6  ;;  %v15898_v63 = vld [vmem:[#allocation60_spill] sm:$0xff] }
 0x10e   :  { %5640 = vadd.xlane.f32.xlu1 %v9506_v55  ;;  %v5642_v17 = vadd.f32 %v5111_v31, %v5110_v0  ;;  %v5121_v40 = vmax.f32 %v4609_v7, 0.0  ;;  %v4100_v50 = vmul.f32 %v9492_v29, %v15861_v39  ;;  %v4101_v43 = vmul.f32 %v9492_v29, %v15862_v1  ;;  %v15899_v0 = vld [vmem:[#allocation65_spill] sm:$0xff] }
 0x10f   :  { %v5630_v49 = vadd.f32 %v5103_v20, %v5102_v10  ;;  %v4603_v60 = vadd.f32 %v4091_v44, %v15893_v37  ;;  %v5114_v35 = vmax.f32 %v4602_v15, 0.0  ;;  %v4094_v38 = vmul.f32 %v9508_v45, %v15861_v39  ;;  %v15900_v10 = vld [vmem:[#allocation122_spill] sm:$0xff] }
 0x110   :  { %v5657_v8 = vadd.f32 %v5121_v40, %v5120_v61  ;;  %v4612_v24 = vadd.f32 %v4100_v50, %v15894_v30  ;;  %v4613_v55 = vadd.f32 %v4101_v43, %v15895_v32  ;;  %v4095_v25 = vmul.f32 %v9508_v45, %v15862_v1  ;;  %v15901_v50 = vld [vmem:[#allocation123_spill] sm:$0xff] }
 0x111   :  { %5631 = vadd.xlane.f32.xlu0 %v5630_v49  ;;  %v5115_v58 = vmax.f32 %v4603_v60, 0.0  ;;  %v4606_v46 = vadd.f32 %v4094_v38, %v15896_v11  ;;  %v4104_v53 = vmul.f32 %v9510_v13, %v15861_v39  ;;  %v4105_v21 = vmul.f32 %v9510_v13, %v15862_v1 }
 0x112   :  { %5646 = vadd.xlane.f32.xlu1 %v9525_v34  ;;  %v5124_v51 = vmax.f32 %v4612_v24, 0.0  ;;  %v5125_v9 = vmax.f32 %v4613_v55, 0.0  ;;  %v4607_v41 = vadd.f32 %v4095_v25, %v15897_v33  ;;  %v4098_v22 = vmul.f32 %v9527_v48, %v15861_v39  ;;  %v15902_v24 = vld [vmem:[#allocation126_spill] sm:$0xff]  ;;  %v15903_v55 = vld [vmem:[#allocation77_spill] sm:$0xff] }
 0x113   :  { %v5648_v56 = vadd.f32 %v5115_v58, %v5114_v35  ;;  %v5118_v54 = vmax.f32 %v4606_v46, 0.0  ;;  %v4616_v2 = vadd.f32 %v4104_v53, %v15898_v63  ;;  %v4617_v31 = vadd.f32 %v4105_v21, %v15899_v0  ;;  %v15904_v46 = vld [vmem:[#allocation69_spill] sm:$0xff] }
 0x114   :  { %v5663_v19 = vadd.f32 %v5125_v9, %v5124_v51  ;;  %v5119_v7 = vmax.f32 %v4607_v41, 0.0  ;;  %v4099_v61 = vmul.f32 %v9527_v48, %v15862_v1  ;;  %v4610_v34 = vadd.f32 %v4098_v22, %v15900_v10 }
 0x115   :  { %5637 = vadd.xlane.f32.xlu0 %v9537_v18  ;;  %v5128_v20 = vmax.f32 %v4616_v2, 0.0  ;;  %v5129_v44 = vmax.f32 %v4617_v31, 0.0  ;;  %v4108_v6 = vmul.f32 %v9529_v26, %v15861_v39  ;;  %v4109_v15 = vmul.f32 %v9529_v26, %v15862_v1  ;;  %v15906_v2 = vld [vmem:[#allocation53_spill] sm:$0xff] }
 0x116   :  { %5652 = vadd.xlane.f32.xlu1 %v5651_v52  ;;  %v5654_v40 = vadd.f32 %v5119_v7, %v5118_v54  ;;  %v4611_v43 = vadd.f32 %v4099_v61, %v15901_v50  ;;  %v5122_v49 = vmax.f32 %v4610_v34, 0.0  ;;  %v4102_v37 = vmul.f32 %v9551_v57, %v15861_v39  ;;  %v15905_v54 = vld [vmem:[#allocation106_spill] sm:$0xff]  ;;  %v15908_v61 = vld [vmem:[#allocation107_spill] sm:$0xff] }
 0x117   :  { %v5669_v60 = vadd.f32 %v5129_v44, %v5128_v20  ;;  %v4620_v35 = vadd.f32 %v4108_v6, %v9399_v59  ;;  %v4621_v18 = vadd.f32 %v4109_v15, %v9402_v28  ;;  %v4103_v38 = vmul.f32 %v9551_v57, %v15862_v1  ;;  %v15909_v34 = vld [vmem:[#allocation87_spill] sm:$0xff]  ;;  %v15910_v20 = vld [vmem:[#allocation82_spill] sm:$0xff] }
 0x118   :  { %v5123_v30 = vmax.f32 %v4611_v43, 0.0  ;;  %v4614_v32 = vadd.f32 %v4102_v37, %v15902_v24  ;;  %v3249_v52 = vadd.f32 %v9424_v23, %v15903_v55  ;;  %v4112_v25 = vmul.f32 %v9553_v5, %v15861_v39  ;;  %v15911_v15 = vld [vmem:[#allocation66_spill] sm:$0xff]  ;;  %v15912_v43 = vld [vmem:[#allocation127_spill] sm:$0xff]  ;;  %v15913_v37 = vld [vmem:[#allocation88_spill] sm:$0xff] }
 0x119   :  { %5643 = vadd.xlane.f32.xlu0 %v5642_v17  ;;  %v5132_v58 = vmax.f32 %v4620_v35, 0.0  ;;  %v5133_v11 = vmax.f32 %v4621_v18, 0.0  ;;  %v4615_v53 = vadd.f32 %v4103_v38, %v15904_v46  ;;  %v4113_v59 = vmul.f32 %v9553_v5, %v15862_v1  ;;  %v15914_v35 = vld [vmem:[#allocation83_spill] sm:$0xff] }
 0x11a   :  { %5658 = vadd.xlane.f32.xlu1 %v5657_v8  ;;  %v5660_v28 = vadd.f32 %v5123_v30, %v5122_v49  ;;  %v5126_v21 = vmax.f32 %v4614_v32, 0.0  ;;  %v4624_v51 = vadd.f32 %v4112_v25, %v9455_v4  ;;  %v4106_v9 = vmul.f32 %v9570_v27, %v15861_v39  ;;  %v15907_v8 = vld [vmem:[#allocation54_spill] sm:$0xff] }
 0x11b   :  { %v5675_v23 = vadd.f32 %v5133_v11, %v5132_v58  ;;  %v5127_v33 = vmax.f32 %v4615_v53, 0.0  ;;  %v4625_v41 = vadd.f32 %v4113_v59, %v3249_v52  ;;  %v4107_v17 = vmul.f32 %v9570_v27, %v15862_v1  ;;  %v15916_v53 = vld [vmem:[#allocation45_spill] sm:$0xff]  ;;  %v15917_v59 = vld [vmem:[#allocation84_spill] sm:$0xff] }
 0x11c   :  { %v5136_v22 = vmax.f32 %v4624_v51, 0.0  ;;  %v4618_v63 = vadd.f32 %v4106_v9, %v15905_v54  ;;  %v4116_v0 = vmul.f32 %v9443_v62, %v15906_v2  ;;  %v4117_v31 = vmul.f32 %v9443_v62, %v15907_v8  ;;  %v15918_v51 = vld [vmem:[#allocation46_spill] sm:$0xff]  ;;  %v15919_v9 = vld [vmem:[#allocation43_spill] sm:$0xff] }
 0x11d   :  { %5649 = vadd.xlane.f32.xlu0 %v5648_v56  ;;  %v5666_v4 = vadd.f32 %v5127_v33, %v5126_v21  ;;  %v5137_v7 = vmax.f32 %v4625_v41, 0.0  ;;  %v4619_v10 = vadd.f32 %v4107_v17, %v15908_v61  ;;  %v1870_v44 = vadd.f32 %v15910_v20, %v15909_v34  ;;  %v15915_v56 = vld [vmem:[#allocation103_spill] sm:$0xff]  ;;  %v15920_v33 = vld [vmem:[#allocation33_spill] sm:$0xff]  ;;  %v15925_v61 = vld [vmem:[#allocation86_spill] sm:$0xff] }
 0x11e   :  { %5664 = vadd.xlane.f32.xlu1 %v5663_v19  ;;  %v5130_v6 = vmax.f32 %v4618_v63, 0.0  ;;  %v4628_v50 = vadd.f32 %v4116_v0, %v15911_v15  ;;  %v4629_v49 = vadd.f32 %v4117_v31, %v15912_v43  ;;  %v1871_v18 = vadd.f32 %v15914_v35, %v15913_v37  ;;  %v15921_v41 = vld [vmem:[#allocation25_spill] sm:$0xff]  ;;  %v15926_v34 = vld [vmem:[#allocation28_spill] sm:$0xff]  ;;  %v15927_v15 = vld [vmem:[#allocation78_spill] sm:$0xff] }
 0x11f   :  { %v5681_v38 = vadd.f32 %v5137_v7, %v5136_v22  ;;  %v5131_v30 = vmax.f32 %v4619_v10, 0.0  ;;  %v2734_v24 = vmul.f32 %v15915_v56, %v15802_v12  ;;  %v2735_v32 = vmul.f32 %v15915_v56, %v15803_v3  ;;  %v15922_v22 = vld [vmem:[#allocation34_spill] sm:$0xff]  ;;  %v15924_v7 = vld [vmem:[#allocation27_spill] sm:$0xff]  ;;  %v15928_v35 = vld [vmem:[#allocation37_spill] sm:$0xff] }
 0x120   :  { %v5140_v55 = vmax.f32 %v4628_v50, 0.0  ;;  %v5141_v52 = vmax.f32 %v4629_v49, 0.0  ;;  %v4110_v19 = vmul.f32 %v9583_v14, %v15861_v39  ;;  %v4111_v25 = vmul.f32 %v9583_v14, %v15862_v1 }
 0x121   :  { %5655 = vadd.xlane.f32.xlu0 %v5654_v40  ;;  %v5672_v58 = vadd.f32 %v5131_v30, %v5130_v6  ;;  %v3246_v11 = vadd.f32 %v2734_v24, %v1870_v44  ;;  %v3247_v46 = vadd.f32 %v2735_v32, %v1871_v18  ;;  %v1880_v21 = vadd.f32 %v15917_v59, %v15916_v53  ;;  %v15923_v40 = vld [vmem:[#allocation30_spill] sm:$0xff] }
 0x122   :  { %5670 = vadd.xlane.f32.xlu1 %v5669_v60  ;;  %v5687_v12 = vadd.f32 %v5141_v52, %v5140_v55  ;;  %v1881_v3 = vadd.f32 %v15919_v9, %v15918_v51  ;;  %v2744_v17 = vmul.f32 %v15921_v41, %v15920_v33  ;;  %v2745_v39 = vmul.f32 %v15921_v41, %v15922_v22  ;;  %v15929_v30 = vld [vmem:[#allocation38_spill] sm:$0xff]  ;;  %v15930_v55 = vld [vmem:[#allocation128_spill] sm:$0xff] }
 0x123   :  { %v4622_v54 = vadd.f32 %v4110_v19, %v3246_v11  ;;  %v4623_v1 = vadd.f32 %v4111_v25, %v3247_v46  ;;  %v4120_v63 = vmul.f32 %v15923_v40, %v15906_v2  ;;  %v4121_v0 = vmul.f32 %v15923_v40, %v15907_v8  ;;  %v15931_v19 = vld [vmem:[#allocation95_spill] sm:$0xff]  ;;  %v15933_v9 = vld [vmem:[#allocation116_spill] sm:$0xff] }
 0x124   :  { %v3256_v31 = vadd.f32 %v2744_v17, %v1880_v21  ;;  %v3257_v60 = vadd.f32 %v2745_v39, %v1881_v3  ;;  %v1362_v10 = vmul.f32 %v15925_v61, %v15924_v7  ;;  %v1363_v20 = vmul.f32 %v15925_v61, %v15926_v34  ;;  %v15932_v21 = vld [vmem:[#allocation49_spill] sm:$0xff] }
 0x125   :  { %5661 = vadd.xlane.f32.xlu0 %v5660_v28  ;;  %v5134_v44 = vmax.f32 %v4622_v54, 0.0  ;;  %v5135_v6 = vmax.f32 %v4623_v1, 0.0  ;;  %v2738_v50 = vmul.f32 %v15927_v15, %v15920_v33  ;;  %v2739_v43 = vmul.f32 %v15927_v15, %v15922_v22 }
 0x126   :  { %5676 = vadd.xlane.f32.xlu1 %v5675_v23  ;;  %v4632_v49 = vadd.f32 %v4120_v63, %v3256_v31  ;;  %v4633_v37 = vadd.f32 %v4121_v0, %v3257_v60  ;;  %v1874_v18 = vadd.f32 %v1362_v10, %v15928_v35  ;;  %v1875_v24 = vadd.f32 %v1363_v20, %v15929_v30  ;;  %v15934_v0 = vld [vmem:[#allocation50_spill] sm:$0xff]  ;;  %v15935_v10 = vld [vmem:[#allocation91_spill] sm:$0xff] }
 0x127   :  { %v5678_v32 = vadd.f32 %v5135_v6, %v5134_v44  ;;  %v4114_v52 = vmul.f32 %v15930_v55, %v15906_v2  ;;  %v4115_v28 = vmul.f32 %v15930_v55, %v15907_v8  ;;  %v1372_v25 = vmul.f32 %v15931_v19, %v15924_v7  ;;  %v15937_v35 = vld [vmem:[#allocation39_spill] sm:$0xff] }
 0x128   :  { %v5144_v11 = vmax.f32 %v4632_v49, 0.0  ;;  %v5145_v46 = vmax.f32 %v4633_v37, 0.0  ;;  %v3250_v53 = vadd.f32 %v2738_v50, %v1874_v18  ;;  %v3251_v23 = vadd.f32 %v2739_v43, %v1875_v24  ;;  %v15936_v50 = vld [vmem:[#allocation44_spill] sm:$0xff] }
 0x129   :  { %5667 = vadd.xlane.f32.xlu0 %v5666_v4  ;;  %v1373_v59 = vmul.f32 %v15931_v19, %v15926_v34  ;;  %v1884_v51 = vadd.f32 %v1372_v25, %v15932_v21  ;;  %v2748_v3 = vmul.f32 %v15933_v9, %v15920_v33  ;;  %v2749_v17 = vmul.f32 %v15933_v9, %v15922_v22 }
 0x12a   :  { %5682 = vadd.xlane.f32.xlu1 %v5681_v38  ;;  %v5693_v39 = vadd.f32 %v5145_v46, %v5144_v11  ;;  %v4626_v54 = vadd.f32 %v4114_v52, %v3250_v53  ;;  %v4627_v1 = vadd.f32 %v4115_v28, %v3251_v23  ;;  %v4124_v63 = vmul.f32 %v9445_v47, %v15906_v2  ;;  %v15938_v52 = vld [vmem:[#allocation40_spill] sm:$0xff]  ;;  %v15939_v23 = vld [vmem:[#allocation97_spill] sm:$0xff] }
 0x12b   :  { %v1885_v4 = vadd.f32 %v1373_v59, %v15934_v0  ;;  %v3260_v31 = vadd.f32 %v2748_v3, %v1884_v51  ;;  %v4125_v60 = vmul.f32 %v9445_v47, %v15907_v8  ;;  %v1366_v20 = vmul.f32 %v15935_v10, %v15924_v7 }
 0x12c   :  { %v5138_v44 = vmax.f32 %v4626_v54, 0.0  ;;  %v5139_v6 = vmax.f32 %v4627_v1, 0.0  ;;  %v1367_v38 = vmul.f32 %v15935_v10, %v15926_v34  ;;  %v2742_v43 = vmul.f32 %v15936_v50, %v15920_v33 }
 0x12d   :  { %5673 = vadd.xlane.f32.xlu0 %v5672_v58  ;;  %v3261_v49 = vadd.f32 %v2749_v17, %v1885_v4  ;;  %v4636_v37 = vadd.f32 %v4124_v63, %v3260_v31  ;;  %v1878_v18 = vadd.f32 %v1366_v20, %v15937_v35  ;;  %v2743_v30 = vmul.f32 %v15936_v50, %v15922_v22  ;;  %v15941_v63 = vld [vmem:[#allocation55_spill] sm:$0xff] }
 0x12e   :  { %5688 = vadd.xlane.f32.xlu1 %v5687_v12  ;;  %v5684_v24 = vadd.f32 %v5139_v6, %v5138_v44  ;;  %v1879_v28 = vadd.f32 %v1367_v38, %v15938_v52  ;;  %v4118_v25 = vmul.f32 %v9472_v42, %v15906_v2  ;;  %v4119_v11 = vmul.f32 %v9472_v42, %v15907_v8  ;;  %v15940_v12 = vld [vmem:[#allocation120_spill] sm:$0xff]  ;;  %v15943_v6 = vld [vmem:[#allocation94_spill] sm:$0xff] }
 0x12f   :  { %v4637_v46 = vadd.f32 %v4125_v60, %v3261_v49  ;;  %v5148_v53 = vmax.f32 %v4636_v37, 0.0  ;;  %v3254_v58 = vadd.f32 %v2742_v43, %v1878_v18  ;;  %v1376_v59 = vmul.f32 %v15939_v23, %v15924_v7  ;;  %v15942_v60 = vld [vmem:[#allocation56_spill] sm:$0xff] }
 0x130   :  { %v3255_v21 = vadd.f32 %v2743_v30, %v1879_v28  ;;  %v1377_v51 = vmul.f32 %v15939_v23, %v15926_v34  ;;  %v2752_v3 = vmul.f32 %v15940_v12, %v15920_v33  ;;  %v2753_v17 = vmul.f32 %v15940_v12, %v15922_v22  ;;  %v15944_v30 = vld [vmem:[#allocation51_spill] sm:$0xff] }
 0x131   :  { %5679 = vadd.xlane.f32.xlu0 %v5678_v32  ;;  %v5149_v54 = vmax.f32 %v4637_v46, 0.0  ;;  %v4630_v1 = vadd.f32 %v4118_v25, %v3254_v58  ;;  %v1888_v0 = vadd.f32 %v1376_v59, %v15941_v63  ;;  %v4128_v4 = vmul.f32 %v9474_v36, %v15906_v2 }
 0x132   :  { %5694 = vadd.xlane.f32.xlu1 %v5693_v39  ;;  %v4631_v31 = vadd.f32 %v4119_v11, %v3255_v21  ;;  %v1889_v20 = vadd.f32 %v1377_v51, %v15942_v60  ;;  %v4129_v44 = vmul.f32 %v9474_v36, %v15907_v8  ;;  %v1370_v38 = vmul.f32 %v15943_v6, %v15924_v7  ;;  %v15945_v39 = vld [vmem:[#allocation21_spill] sm:$0xff]  ;;  %v15946_v11 = vld [vmem:[#allocation52_spill] sm:$0xff] }
 0x133   :  { %v5699_v43 = vadd.f32 %v5149_v54, %v5148_v53  ;;  %v5142_v49 = vmax.f32 %v4630_v1, 0.0  ;;  %v3264_v32 = vadd.f32 %v2752_v3, %v1888_v0  ;;  %v1371_v37 = vmul.f32 %v15943_v6, %v15926_v34 }
 0x134   :  { %v5143_v35 = vmax.f32 %v4631_v31, 0.0  ;;  %v3265_v18 = vadd.f32 %v2753_v17, %v1889_v20  ;;  %v1882_v52 = vadd.f32 %v1370_v38, %v15944_v30  ;;  %v2746_v28 = vmul.f32 %v15945_v39, %v15920_v33  ;;  %v15948_v31 = vld [vmem:[#allocation124_spill] sm:$0xff]  ;;  %v15949_v38 = vld [vmem:[#allocation70_spill] sm:$0xff] }
 0x135   :  { %5685 = vadd.xlane.f32.xlu0 %v5684_v24  ;;  %v4640_v25 = vadd.f32 %v4128_v4, %v3264_v32  ;;  %v1883_v46 = vadd.f32 %v1371_v37, %v15946_v11  ;;  %v2747_v58 = vmul.f32 %v15945_v39, %v15922_v22  ;;  %v4122_v53 = vmul.f32 %v9490_v16, %v15906_v2  ;;  %v15947_v24 = vld [vmem:[#allocation99_spill] sm:$0xff] }
 0x136   :  { %5700 = vadd.xlane.f32.xlu1 %v5699_v43  ;;  %v5690_v59 = vadd.f32 %v5143_v35, %v5142_v49  ;;  %v4641_v21 = vadd.f32 %v4129_v44, %v3265_v18  ;;  %v3258_v51 = vadd.f32 %v2746_v28, %v1882_v52  ;;  %v4123_v3 = vmul.f32 %v9490_v16, %v15907_v8  ;;  %v15950_v49 = vld [vmem:[#allocation71_spill] sm:$0xff]  ;;  %v15951_v52 = vld [vmem:[#allocation96_spill] sm:$0xff] }
 0x137   :  { %v5152_v17 = vmax.f32 %v4640_v25, 0.0  ;;  %v3259_v54 = vadd.f32 %v2747_v58, %v1883_v46  ;;  %v1380_v1 = vmul.f32 %v15947_v24, %v15924_v7  ;;  %v1381_v63 = vmul.f32 %v15947_v24, %v15926_v34 }
 0x138   :  { %v5153_v0 = vmax.f32 %v4641_v21, 0.0  ;;  %v4634_v4 = vadd.f32 %v4122_v53, %v3258_v51  ;;  %v2756_v60 = vmul.f32 %v15948_v31, %v15920_v33  ;;  %v2757_v20 = vmul.f32 %v15948_v31, %v15922_v22  ;;  %v15952_v53 = vld [vmem:[#allocation61_spill] sm:$0xff]  ;;  %v15953_v21 = vld [vmem:[#allocation26_spill] sm:$0xff] }
 0x139   :  { %5691 = vadd.xlane.f32.xlu0 %v5690_v59  ;;  %v4635_v44 = vadd.f32 %v4123_v3, %v3259_v54  ;;  %v1892_v43 = vadd.f32 %v1380_v1, %v15949_v38  ;;  %v1893_v32 = vadd.f32 %v1381_v63, %v15950_v49  ;;  %v4132_v37 = vmul.f32 %v9492_v29, %v15906_v2 }
 0x13a   :  { %v5705_v35 = vadd.f32 %v5153_v0, %v5152_v17  ;;  %v5146_v18 = vmax.f32 %v4634_v4, 0.0  ;;  %v4133_v30 = vmul.f32 %v9492_v29, %v15907_v8  ;;  %v1374_v28 = vmul.f32 %v15951_v52, %v15924_v7  ;;  %v15954_v0 = vld [vmem:[#allocation62_spill] sm:$0xff] }
 0x13b   :  { %v5147_v25 = vmax.f32 %v4635_v44, 0.0  ;;  %v3268_v11 = vadd.f32 %v2756_v60, %v1892_v43  ;;  %v3269_v46 = vadd.f32 %v2757_v20, %v1893_v32  ;;  %v1375_v58 = vmul.f32 %v15951_v52, %v15926_v34  ;;  %v15955_v44 = vld [vmem:[#allocation105_spill] sm:$0xff] }
 0x13c   :  { %5706 = vadd.xlane.f32.xlu1 %v5705_v35  ;;  %v1886_v59 = vadd.f32 %v1374_v28, %v15952_v53  ;;  %v2750_v51 = vmul.f32 %v15953_v21, %v15920_v33  ;;  %v2751_v3 = vmul.f32 %v15953_v21, %v15922_v22  ;;  %v4126_v17 = vmul.f32 %v9508_v45, %v15906_v2  ;;  %v15957_v28 = vld [vmem:[#allocation89_spill] sm:$0xff] }
 0x13d   :  { %v5696_v54 = vadd.f32 %v5147_v25, %v5146_v18  ;;  %v4644_v1 = vadd.f32 %v4132_v37, %v3268_v11  ;;  %v4645_v63 = vadd.f32 %v4133_v30, %v3269_v46  ;;  %v1887_v4 = vadd.f32 %v1375_v58, %v15954_v0  ;;  %v15956_v18 = vld [vmem:[#allocation102_spill] sm:$0xff] }
 0x13e   :  { %v3262_v60 = vadd.f32 %v2750_v51, %v1886_v59  ;;  %v4127_v20 = vmul.f32 %v9508_v45, %v15907_v8  ;;  %v1384_v38 = vmul.f32 %v15955_v44, %v15924_v7  ;;  %v1385_v43 = vmul.f32 %v15955_v44, %v15926_v34  ;;  %v15958_v11 = vld [vmem:[#allocation90_spill] sm:$0xff] }
 0x13f   :  { %5697 = vadd.xlane.f32.xlu0 %v5696_v54  ;;  %v5156_v49 = vmax.f32 %v4644_v1, 0.0  ;;  %v5157_v32 = vmax.f32 %v4645_v63, 0.0  ;;  %v3263_v35 = vadd.f32 %v2751_v3, %v1887_v4  ;;  %v2760_v37 = vmul.f32 %v15956_v18, %v15920_v33 }
 0x140   :  { %v4638_v30 = vadd.f32 %v4126_v17, %v3262_v60  ;;  %v1896_v25 = vadd.f32 %v1384_v38, %v15957_v28  ;;  %v1897_v46 = vadd.f32 %v1385_v43, %v15958_v11  ;;  %v2761_v58 = vmul.f32 %v15956_v18, %v15922_v22  ;;  %v15959_v17 = vld [vmem:[#allocation98_spill] sm:$0xff]  ;;  %v15960_v38 = vld [vmem:[#allocation117_spill] sm:$0xff] }
 0x141   :  { %v5711_v53 = vadd.f32 %v5157_v32, %v5156_v49  ;;  %v4639_v59 = vadd.f32 %v4127_v20, %v3263_v35  ;;  %v4136_v51 = vmul.f32 %v9510_v13, %v15906_v2  ;;  %v4137_v54 = vmul.f32 %v9510_v13, %v15907_v8  ;;  %v15961_v35 = vld [vmem:[#allocation79_spill] sm:$0xff] }
 0x142   :  { %v5150_v3 = vmax.f32 %v4638_v30, 0.0  ;;  %v3272_v1 = vadd.f32 %v2760_v37, %v1896_v25  ;;  %v3273_v63 = vadd.f32 %v2761_v58, %v1897_v46  ;;  %v1378_v0 = vmul.f32 %v15959_v17, %v15924_v7  ;;  %v15962_v25 = vld [vmem:[#allocation80_spill] sm:$0xff]  ;;  %v15963_v58 = vld [vmem:[#allocation23_spill] sm:$0xff] }
 0x143   :  { %5712 = vadd.xlane.f32.xlu1 %v5711_v53  ;;  %v5151_v4 = vmax.f32 %v4639_v59, 0.0  ;;  %v1379_v60 = vmul.f32 %v15959_v17, %v15926_v34  ;;  %v2754_v20 = vmul.f32 %v15960_v38, %v15920_v33  ;;  %v2755_v43 = vmul.f32 %v15960_v38, %v15922_v22  ;;  %v15964_v53 = vld [vmem:[#allocation57_spill] sm:$0xff]  ;;  %v15965_v38 = vld [vmem:[#allocation24_spill] sm:$0xff] }
 0x144   :  { %v4648_v49 = vadd.f32 %v4136_v51, %v3272_v1  ;;  %v4649_v32 = vadd.f32 %v4137_v54, %v3273_v63  ;;  %v1890_v30 = vadd.f32 %v1378_v0, %v15961_v35  ;;  %v4130_v37 = vmul.f32 %v9527_v48, %v15906_v2  ;;  %v15966_v1 = vld [vmem:[#allocation64_spill] sm:$0xff]  ;;  %v15967_v0 = vld [vmem:[#allocation59_spill] sm:$0xff] }
 0x145   :  { %v5702_v28 = vadd.f32 %v5151_v4, %v5150_v3  ;;  %v1891_v11 = vadd.f32 %v1379_v60, %v15962_v25  ;;  %v4131_v46 = vmul.f32 %v9527_v48, %v15907_v8  ;;  %v524_v59 = vmul.f32 %v15964_v53, %v15963_v58  ;;  %v15979_v48 = vld [vmem:[#allocation9_spill] sm:$0xff] }
 0x146   :  { %v5160_v17 = vmax.f32 %v4648_v49, 0.0  ;;  %v5161_v13 = vmax.f32 %v4649_v32, 0.0  ;;  %v3266_v18 = vadd.f32 %v2754_v20, %v1890_v30  ;;  %v525_v51 = vmul.f32 %v15964_v53, %v15965_v38 }
 0x147   :  { %5703 = vadd.xlane.f32.xlu0 %v5702_v28  ;;  %v3267_v54 = vadd.f32 %v2755_v43, %v1891_v11  ;;  %v1388_v63 = vmul.f32 %v15966_v1, %v15924_v7  ;;  %v1389_v3 = vmul.f32 %v15966_v1, %v15926_v34  ;;  %v2764_v4 = vmul.f32 %v15967_v0, %v15920_v33  ;;  %v15968_v11 = vld [vmem:[#allocation48_spill] sm:$0xff] }
 0x148   :  { %v5717_v60 = vadd.f32 %v5161_v13, %v5160_v17  ;;  %v4642_v35 = vadd.f32 %v4130_v37, %v3266_v18  ;;  %v2765_v49 = vmul.f32 %v15967_v0, %v15922_v22  ;;  %v4140_v20 = vmul.f32 %v9529_v26, %v15906_v2  ;;  %v15969_v18 = vld [vmem:[#allocation104_spill] sm:$0xff] }
 0x149   :  { %v4643_v32 = vadd.f32 %v4131_v46, %v3267_v54  ;;  %v1900_v30 = vadd.f32 %v1388_v63, %v524_v59  ;;  %v1901_v43 = vadd.f32 %v1389_v3, %v525_v51  ;;  %v4141_v28 = vmul.f32 %v9529_v26, %v15907_v8  ;;  %v15970_v51 = vld [vmem:[#allocation121_spill] sm:$0xff] }
 0x14a   :  { %5718 = vadd.xlane.f32.xlu1 %v5717_v60  ;;  %v5154_v25 = vmax.f32 %v4642_v35, 0.0  ;;  %v518_v1 = vmul.f32 %v15968_v11, %v15963_v58  ;;  %v519_v13 = vmul.f32 %v15968_v11, %v15965_v38  ;;  %v1382_v17 = vmul.f32 %v15969_v18, %v15924_v7 }
 0x14b   :  { %v5155_v37 = vmax.f32 %v4643_v32, 0.0  ;;  %v3276_v0 = vadd.f32 %v2764_v4, %v1900_v30  ;;  %v3277_v53 = vadd.f32 %v2765_v49, %v1901_v43  ;;  %v1383_v46 = vmul.f32 %v15969_v18, %v15926_v34  ;;  %v15971_v49 = vld [vmem:[#allocation67_spill] sm:$0xff]  ;;  %v15972_v18 = vld [vmem:[#allocation110_spill] sm:$0xff] }
 0x14c   :  { %v1894_v59 = vadd.f32 %v1382_v17, %v518_v1  ;;  %v2758_v54 = vmul.f32 %v15970_v51, %v15920_v33  ;;  %v2759_v63 = vmul.f32 %v15970_v51, %v15922_v22  ;;  %v4134_v3 = vmul.f32 %v9551_v57, %v15906_v2 }
 0x14d   :  { %v5708_v60 = vadd.f32 %v5155_v37, %v5154_v25  ;;  %v4652_v35 = vadd.f32 %v4140_v20, %v3276_v0  ;;  %v4653_v11 = vadd.f32 %v4141_v28, %v3277_v53  ;;  %v1895_v26 = vadd.f32 %v1383_v46, %v519_v13  ;;  %v15973_v20 = vld [vmem:[#allocation29_spill] sm:$0xff] }
 0x14e   :  { %v3270_v32 = vadd.f32 %v2758_v54, %v1894_v59  ;;  %v4135_v4 = vmul.f32 %v9551_v57, %v15907_v8  ;;  %v528_v1 = vmul.f32 %v15971_v49, %v15963_v58  ;;  %v529_v30 = vmul.f32 %v15971_v49, %v15965_v38  ;;  %v15978_v49 = vld [vmem:[#allocation8_spill] sm:$0xff] }
 0x14f   :  { %5709 = vadd.xlane.f32.xlu0 %v5708_v60  ;;  %v5164_v43 = vmax.f32 %v4652_v35, 0.0  ;;  %v5165_v17 = vmax.f32 %v4653_v11, 0.0  ;;  %v3271_v51 = vadd.f32 %v2759_v63, %v1895_v26  ;;  %v1392_v25 = vmul.f32 %v15972_v18, %v15924_v7 }
 0x150   :  { %v4646_v0 = vadd.f32 %v4134_v3, %v3270_v32  ;;  %v1393_v53 = vmul.f32 %v15972_v18, %v15926_v34  ;;  %v2768_v28 = vmul.f32 %v15973_v20, %v15920_v33  ;;  %v2769_v13 = vmul.f32 %v15973_v20, %v15922_v22  ;;  %v15974_v3 = vld [vmem:[#allocation58_spill] sm:$0xff] }
 0x151   :  { %v5723_v37 = vadd.f32 %v5165_v17, %v5164_v43  ;;  %v4647_v46 = vadd.f32 %v4135_v4, %v3271_v51  ;;  %v1904_v59 = vadd.f32 %v1392_v25, %v528_v1  ;;  %v4144_v11 = vmul.f32 %v9553_v5, %v15906_v2  ;;  %v15975_v51 = vld [vmem:[#allocation63_spill] sm:$0xff]  ;;  %v21_v1 = vld [vmem:[%s15057_s0 + $0x18] sm:$0xff]  ;;  %v15976_v17 = vld [vmem:[#allocation125_spill] sm:$0xff] }
 0x152   :  { %v5158_v26 = vmax.f32 %v4646_v0, 0.0  ;;  %v1905_v54 = vadd.f32 %v1393_v53, %v529_v30  ;;  %v4145_v63 = vmul.f32 %v9553_v5, %v15907_v8  ;;  %v522_v60 = vmul.f32 %v15974_v3, %v15963_v58 }
 0x153   :  { %5724 = vadd.xlane.f32.xlu1 %v5723_v37  ;;  %v5159_v35 = vmax.f32 %v4647_v46, 0.0  ;;  %v3280_v32 = vadd.f32 %v2768_v28, %v1904_v59  ;;  %v523_v20 = vmul.f32 %v15974_v3, %v15965_v38  ;;  %v1386_v4 = vmul.f32 %v15975_v51, %v15924_v7 }
 0x154   :  { %v3281_v30 = vadd.f32 %v2769_v13, %v1905_v54  ;;  %v1387_v43 = vmul.f32 %v15975_v51, %v15926_v34  ;;  %v2762_v25 = vmul.f32 %v15976_v17, %v15920_v33  ;;  %v2763_v0 = vmul.f32 %v15976_v17, %v15922_v22  ;;  %v15977_v54 = vld [vmem:[#allocation7_spill] sm:$0xff] }
 0x155   :  { %v5714_v53 = vadd.f32 %v5159_v35, %v5158_v26  ;;  %v4656_v28 = vadd.f32 %v4144_v11, %v3280_v32  ;;  %v1898_v37 = vadd.f32 %v1386_v4, %v522_v60  ;;  %v4138_v46 = vmul.f32 %v9570_v27, %v15906_v2  ;;  %v15980_v35 = vld [vmem:[#allocation10_spill] sm:$0xff] }
 0x156   :  { %v4657_v59 = vadd.f32 %v4145_v63, %v3281_v30  ;;  %v1899_v3 = vadd.f32 %v1387_v43, %v523_v20  ;;  %v4139_v13 = vmul.f32 %v9570_v27, %v15907_v8  ;;  %v93_v5 = vrot.slane %v21_v1, %v15977_v54  ;;  %v15981_v30 = vld [vmem:[#allocation13_spill] sm:$0xff] }
 0x157   :  { %5715 = vadd.xlane.f32.xlu0 %v5714_v53  ;;  %v5168_v51 = vmax.f32 %v4656_v28, 0.0  ;;  %v3274_v18 = vadd.f32 %v2762_v25, %v1898_v37  ;;  %v97_v57 = vrot.slane %v21_v1, %v15978_v49  ;;  %v973_v17 = vrot.slane %v21_v1, %v15979_v48  ;;  %v15982_v28 = vld [vmem:[#allocation18_spill] sm:$0xff] }
 0x158   :  { %v5169_v26 = vmax.f32 %v4657_v59, 0.0  ;;  %v3275_v11 = vadd.f32 %v2763_v0, %v1899_v3  ;;  %v9886_v60 = vrot.slane %v93_v5, %v15977_v54  ;;  %v977_v63 = vrot.slane %v21_v1, %v15980_v35 }
 0x159   :  { %v4650_v20 = vadd.f32 %v4138_v46, %v3274_v18  ;;  %v9890_v32 = vrot.slane %v97_v57, %v15977_v54  ;;  %v9893_v4 = vrot.slane %v973_v17, %v15979_v48  ;;  %v2349_v43 = vrot.slane %v21_v1, %v15981_v30  ;;  %v15983_v57 = vld [vmem:[#allocation85_spill] sm:$0xff]  ;;  %v15984_v46 = vld [vmem:[#allocation14_spill] sm:$0xff] }
 0x15a   :  { %v5729_v25 = vadd.f32 %v5169_v26, %v5168_v51  ;;  %v4651_v53 = vadd.f32 %v4139_v13, %v3275_v11  ;;  %v532_v37 = vmul.f32 %v15982_v28, %v9886_v60  ;;  %v9899_v3 = vrot.slane %v977_v63, %v15979_v48  ;;  %v15985_v26 = vld [vmem:[#allocation15_spill] sm:$0xff]  ;;  %v15987_v48 = vld [vmem:[#allocation68_spill] sm:$0xff] }
 0x15b   :  { %v5162_v5 = vmax.f32 %v4650_v20, 0.0  ;;  %v533_v18 = vmul.f32 %v15982_v28, %v9890_v32  ;;  %v1396_v0 = vmul.f32 %v15983_v57, %v9893_v4  ;;  %v2353_v17 = vrot.slane %v21_v1, %v15984_v46  ;;  %v15986_v28 = vld [vmem:[#allocation16_spill] sm:$0xff] }
 0x15c   :  { %5730 = vadd.xlane.f32.xlu1 %v5729_v25  ;;  %v5163_v59 = vmax.f32 %v4651_v53, 0.0  ;;  %v1397_v51 = vmul.f32 %v15983_v57, %v9899_v3  ;;  %v9909_v13 = vrot.slane %v2349_v43, %v15981_v30  ;;  %v3725_v11 = vrot.slane %v21_v1, %v15985_v26  ;;  %v15988_v53 = vld [vmem:[#allocation81_spill] sm:$0xff] }
 0x15d   :  { %v1908_v63 = vadd.f32 %v1396_v0, %v532_v37  ;;  %v9913_v20 = vrot.slane %v2353_v17, %v15981_v30  ;;  %v3729_v35 = vrot.slane %v21_v1, %v15986_v28  ;;  %v526_v49 = vmul.f32 %v15987_v48, %v15963_v58  ;;  %v15989_v0 = vld [vmem:[#allocation109_spill] sm:$0xff] }
 0x15e   :  { %v5720_v46 = vadd.f32 %v5163_v59, %v5162_v5  ;;  %v1909_v25 = vadd.f32 %v1397_v51, %v533_v18  ;;  %v2772_v54 = vmul.f32 %v15988_v53, %v9909_v13  ;;  %v9921_v57 = vrot.slane %v3725_v11, %v15985_v26 }
 0x15f   :  { %v2773_v43 = vmul.f32 %v15988_v53, %v9913_v20  ;;  %v9926_v37 = vrot.slane %v3729_v35, %v15985_v26  ;;  %v527_v1 = vmul.f32 %v15987_v48, %v15965_v38  ;;  %v1390_v58 = vmul.f32 %v15989_v0, %v15924_v7 }
 0x160   :  { %5721 = vadd.xlane.f32.xlu0 %v5720_v46  ;;  %v3284_v5 = vadd.f32 %v2772_v54, %v1908_v63  ;;  %v4148_v18 = vmul.f32 %v9443_v62, %v9921_v57  ;;  %v1391_v17 = vmul.f32 %v15989_v0, %v15926_v34  ;;  %v2766_v59 = vmul.f32 %v15915_v56, %v15920_v33  ;;  %v15990_v33 = vld [vmem:[#allocation17_spill] sm:$0xff] }
 0x161   :  { %v3285_v51 = vadd.f32 %v2773_v43, %v1909_v25  ;;  %v4149_v35 = vmul.f32 %v9443_v62, %v9926_v37  ;;  %v1902_v11 = vadd.f32 %v1390_v58, %v526_v49  ;;  %v2767_v38 = vmul.f32 %v15915_v56, %v15922_v22  ;;  %v15991_v22 = vld [vmem:[#allocation92_spill] sm:$0xff] }
 0x162   :  { %v4660_v7 = vadd.f32 %v4148_v18, %v3284_v5  ;;  %v1903_v46 = vadd.f32 %v1391_v17, %v527_v1  ;;  %v4142_v54 = vmul.f32 %v9583_v14, %v15906_v2  ;;  %v4143_v63 = vmul.f32 %v9583_v14, %v15907_v8 }
 0x163   :  { %v4661_v34 = vadd.f32 %v4149_v35, %v3285_v51  ;;  %v3278_v0 = vadd.f32 %v2766_v59, %v1902_v11  ;;  %v536_v25 = vmul.f32 %v15990_v33, %v9886_v60  ;;  %v537_v43 = vmul.f32 %v15990_v33, %v9890_v32 }
 0x164   :  { %v5172_v49 = vmax.f32 %v4660_v7, 0.0  ;;  %v3279_v58 = vadd.f32 %v2767_v38, %v1903_v46  ;;  %v1400_v5 = vmul.f32 %v15991_v22, %v9893_v4  ;;  %v1401_v1 = vmul.f32 %v15991_v22, %v9899_v3 }
 0x165   :  { %v5173_v2 = vmax.f32 %v4661_v34, 0.0  ;;  %v4654_v18 = vadd.f32 %v4142_v54, %v3278_v0  ;;  %v2776_v8 = vmul.f32 %v15921_v41, %v9909_v13  ;;  %v2777_v17 = vmul.f32 %v15921_v41, %v9913_v20  ;;  %v15992_v34 = vld [vmem:[#allocation12_spill] sm:$0xff] }
 0x166   :  { %v4655_v59 = vadd.f32 %v4143_v63, %v3279_v58  ;;  %v1912_v51 = vadd.f32 %v1400_v5, %v536_v25  ;;  %v1913_v35 = vadd.f32 %v1401_v1, %v537_v43  ;;  %v4152_v11 = vmul.f32 %v15923_v40, %v9921_v57 }
 0x167   :  { %v5735_v38 = vadd.f32 %v5173_v2, %v5172_v49  ;;  %v5166_v7 = vmax.f32 %v4654_v18, 0.0  ;;  %v4153_v46 = vmul.f32 %v15923_v40, %v9926_v37  ;;  %v530_v0 = vmul.f32 %v15992_v34, %v9886_v60 }
 0x168   :  { %v5167_v54 = vmax.f32 %v4655_v59, 0.0  ;;  %v3288_v22 = vadd.f32 %v2776_v8, %v1912_v51  ;;  %v3289_v33 = vadd.f32 %v2777_v17, %v1913_v35  ;;  %v531_v41 = vmul.f32 %v15992_v34, %v9890_v32  ;;  %v15993_v59 = vld [vmem:[#allocation19_spill] sm:$0xff] }
 0x169   :  { %5736 = vadd.xlane.f32.xlu1 %v5735_v38  ;;  %v1394_v63 = vmul.f32 %v15925_v61, %v9893_v4  ;;  %v1395_v25 = vmul.f32 %v15925_v61, %v9899_v3  ;;  %v2770_v43 = vmul.f32 %v15927_v15, %v9909_v13  ;;  %v2771_v49 = vmul.f32 %v15927_v15, %v9913_v20 }
 0x16a   :  { %v5726_v58 = vadd.f32 %v5167_v54, %v5166_v7  ;;  %v4664_v5 = vadd.f32 %v4152_v11, %v3288_v22  ;;  %v4665_v1 = vadd.f32 %v4153_v46, %v3289_v33  ;;  %v4146_v2 = vmul.f32 %v15930_v55, %v9921_v57 }
 0x16b   :  { %v1906_v18 = vadd.f32 %v1394_v63, %v530_v0  ;;  %v1907_v8 = vadd.f32 %v1395_v25, %v531_v41  ;;  %v4147_v17 = vmul.f32 %v15930_v55, %v9926_v37  ;;  %v540_v51 = vmul.f32 %v15993_v59, %v9886_v60 }
 0x16c   :  { %5727 = vadd.xlane.f32.xlu0 %v5726_v58  ;;  %v5176_v35 = vmax.f32 %v4664_v5, 0.0  ;;  %v5177_v38 = vmax.f32 %v4665_v1, 0.0  ;;  %v541_v15 = vmul.f32 %v15993_v59, %v9890_v32  ;;  %v1404_v33 = vmul.f32 %v15931_v19, %v9893_v4  ;;  %v15994_v1 = vld [vmem:[#allocation11_spill] sm:$0xff] }
 0x16d   :  { %v3282_v22 = vadd.f32 %v2770_v43, %v1906_v18  ;;  %v3283_v11 = vadd.f32 %v2771_v49, %v1907_v8  ;;  %v1405_v41 = vmul.f32 %v15931_v19, %v9899_v3  ;;  %v2780_v7 = vmul.f32 %v15933_v9, %v9909_v13 }
 0x16e   :  { %v5741_v46 = vadd.f32 %v5177_v38, %v5176_v35  ;;  %v1916_v0 = vadd.f32 %v1404_v33, %v540_v51  ;;  %v2781_v54 = vmul.f32 %v15933_v9, %v9913_v20  ;;  %v4156_v63 = vmul.f32 %v9445_v47, %v9921_v57 }
 0x16f   :  { %v4658_v25 = vadd.f32 %v4146_v2, %v3282_v22  ;;  %v4659_v58 = vadd.f32 %v4147_v17, %v3283_v11  ;;  %v1917_v5 = vadd.f32 %v1405_v41, %v541_v15  ;;  %v4157_v43 = vmul.f32 %v9445_v47, %v9926_v37 }
 0x170   :  { %5742 = vadd.xlane.f32.xlu1 %v5741_v46  ;;  %v3292_v49 = vadd.f32 %v2780_v7, %v1916_v0  ;;  %v534_v18 = vmul.f32 %v15994_v1, %v9886_v60  ;;  %v535_v8 = vmul.f32 %v15994_v1, %v9890_v32  ;;  %v1398_v51 = vmul.f32 %v15935_v10, %v9893_v4 }
 0x171   :  { %v5170_v35 = vmax.f32 %v4658_v25, 0.0  ;;  %v5171_v38 = vmax.f32 %v4659_v58, 0.0  ;;  %v3293_v33 = vadd.f32 %v2781_v54, %v1917_v5  ;;  %v1399_v15 = vmul.f32 %v15935_v10, %v9899_v3 }
 0x172   :  { %v4668_v2 = vadd.f32 %v4156_v63, %v3292_v49  ;;  %v1910_v17 = vadd.f32 %v1398_v51, %v534_v18  ;;  %v2774_v22 = vmul.f32 %v15936_v50, %v9909_v13  ;;  %v2775_v11 = vmul.f32 %v15936_v50, %v9913_v20  ;;  %v15995_v63 = vld [vmem:[#allocation35_spill] sm:$0xff] }
 0x173   :  { %v5732_v41 = vadd.f32 %v5171_v38, %v5170_v35  ;;  %v4669_v7 = vadd.f32 %v4157_v43, %v3293_v33  ;;  %v1911_v46 = vadd.f32 %v1399_v15, %v535_v8  ;;  %v4150_v0 = vmul.f32 %v9472_v42, %v9921_v57 }
 0x174   :  { %v5180_v25 = vmax.f32 %v4668_v2, 0.0  ;;  %v3286_v58 = vadd.f32 %v2774_v22, %v1910_v17  ;;  %v4151_v54 = vmul.f32 %v9472_v42, %v9926_v37  ;;  %v544_v5 = vmul.f32 %v15995_v63, %v9886_v60 }
 0x175   :  { %5733 = vadd.xlane.f32.xlu0 %v5732_v41  ;;  %v5181_v49 = vmax.f32 %v4669_v7, 0.0  ;;  %v3287_v18 = vadd.f32 %v2775_v11, %v1911_v46  ;;  %v545_v51 = vmul.f32 %v15995_v63, %v9890_v32  ;;  %v1408_v43 = vmul.f32 %v15939_v23, %v9893_v4  ;;  %v15996_v46 = vld [vmem:[#allocation20_spill] sm:$0xff] }
 0x176   :  { %v4662_v8 = vadd.f32 %v4150_v0, %v3286_v58  ;;  %v1409_v35 = vmul.f32 %v15939_v23, %v9899_v3  ;;  %v2784_v38 = vmul.f32 %v15940_v12, %v9909_v13  ;;  %v2785_v33 = vmul.f32 %v15940_v12, %v9913_v20 }
 0x177   :  { %v5747_v15 = vadd.f32 %v5181_v49, %v5180_v25  ;;  %v4663_v2 = vadd.f32 %v4151_v54, %v3287_v18  ;;  %v1920_v17 = vadd.f32 %v1408_v43, %v544_v5  ;;  %v4160_v22 = vmul.f32 %v9474_v36, %v9921_v57 }
 0x178   :  { %v5174_v11 = vmax.f32 %v4662_v8, 0.0  ;;  %v1921_v41 = vadd.f32 %v1409_v35, %v545_v51  ;;  %v4161_v7 = vmul.f32 %v9474_v36, %v9926_v37  ;;  %v538_v0 = vmul.f32 %v15996_v46, %v9886_v60 }
 0x179   :  { %5748 = vadd.xlane.f32.xlu1 %v5747_v15  ;;  %v5175_v58 = vmax.f32 %v4663_v2, 0.0  ;;  %v3296_v23 = vadd.f32 %v2784_v38, %v1920_v17  ;;  %v539_v12 = vmul.f32 %v15996_v46, %v9890_v32  ;;  %v1402_v25 = vmul.f32 %v15943_v6, %v9893_v4  ;;  %v15997_v2 = vld [vmem:[#allocation41_spill] sm:$0xff] }
 0x17a   :  { %v3297_v54 = vadd.f32 %v2785_v33, %v1921_v41  ;;  %v1403_v5 = vmul.f32 %v15943_v6, %v9899_v3  ;;  %v2778_v49 = vmul.f32 %v15945_v39, %v9909_v13  ;;  %v2779_v18 = vmul.f32 %v15945_v39, %v9913_v20 }
 0x17b   :  { %v5738_v51 = vadd.f32 %v5175_v58, %v5174_v11  ;;  %v4672_v43 = vadd.f32 %v4160_v22, %v3296_v23  ;;  %v1914_v8 = vadd.f32 %v1402_v25, %v538_v0  ;;  %v4154_v35 = vmul.f32 %v9490_v16, %v9921_v57 }
 0x17c   :  { %v4673_v38 = vadd.f32 %v4161_v7, %v3297_v54  ;;  %v1915_v15 = vadd.f32 %v1403_v5, %v539_v12  ;;  %v4155_v33 = vmul.f32 %v9490_v16, %v9926_v37  ;;  %v548_v17 = vmul.f32 %v15997_v2, %v9886_v60 }
 0x17d   :  { %5739 = vadd.xlane.f32.xlu0 %v5738_v51  ;;  %v5184_v41 = vmax.f32 %v4672_v43, 0.0  ;;  %v3290_v6 = vadd.f32 %v2778_v49, %v1914_v8  ;;  %v549_v39 = vmul.f32 %v15997_v2, %v9890_v32  ;;  %v1412_v23 = vmul.f32 %v15947_v24, %v9893_v4 }
 0x17e   :  { %v5185_v22 = vmax.f32 %v4673_v38, 0.0  ;;  %v3291_v11 = vadd.f32 %v2779_v18, %v1915_v15  ;;  %v1413_v12 = vmul.f32 %v15947_v24, %v9899_v3  ;;  %v2788_v7 = vmul.f32 %v15948_v31, %v9909_v13  ;;  %v15998_v38 = vld [vmem:[#allocation36_spill] sm:$0xff] }
 0x17f   :  { %v4666_v0 = vadd.f32 %v4154_v35, %v3290_v6  ;;  %v1924_v58 = vadd.f32 %v1412_v23, %v548_v17  ;;  %v2789_v25 = vmul.f32 %v15948_v31, %v9913_v20  ;;  %v4164_v54 = vmul.f32 %v9492_v29, %v9921_v57 }
 0x180   :  { %v5753_v5 = vadd.f32 %v5185_v22, %v5184_v41  ;;  %v4667_v49 = vadd.f32 %v4155_v33, %v3291_v11  ;;  %v1925_v51 = vadd.f32 %v1413_v12, %v549_v39  ;;  %v4165_v18 = vmul.f32 %v9492_v29, %v9926_v37  ;;  %v16023_v29 = vld [vmem:[#allocation9_spill] sm:$0xff] }
 0x181   :  { %v5178_v43 = vmax.f32 %v4666_v0, 0.0  ;;  %v3300_v8 = vadd.f32 %v2788_v7, %v1924_v58  ;;  %v542_v15 = vmul.f32 %v15998_v38, %v9886_v60  ;;  %v543_v6 = vmul.f32 %v15998_v38, %v9890_v32  ;;  %v16003_v38 = vld [vmem:[#allocation98_spill] sm:$0xff] }
 0x182   :  { %5754 = vadd.xlane.f32.xlu1 %v5753_v5  ;;  %v5179_v35 = vmax.f32 %v4667_v49, 0.0  ;;  %v3301_v17 = vadd.f32 %v2789_v25, %v1925_v51  ;;  %v1406_v23 = vmul.f32 %v15951_v52, %v9893_v4  ;;  %v1407_v39 = vmul.f32 %v15951_v52, %v9899_v3  ;;  %v15999_v49 = vld [vmem:[#allocation47_spill] sm:$0xff] }
 0x183   :  { %v4676_v33 = vadd.f32 %v4164_v54, %v3300_v8  ;;  %v2782_v41 = vmul.f32 %v15953_v21, %v9909_v13  ;;  %v2783_v22 = vmul.f32 %v15953_v21, %v9913_v20  ;;  %v4158_v11 = vmul.f32 %v9508_v45, %v9921_v57 }
 0x184   :  { %v5744_v12 = vadd.f32 %v5179_v35, %v5178_v43  ;;  %v4677_v7 = vadd.f32 %v4165_v18, %v3301_v17  ;;  %v1918_v0 = vadd.f32 %v1406_v23, %v542_v15  ;;  %v1919_v58 = vadd.f32 %v1407_v39, %v543_v6  ;;  %v16000_v15 = vld [vmem:[#allocation102_spill] sm:$0xff]  ;;  %v16001_v17 = vld [vmem:[#allocation129_spill] sm:$0xff] }
 0x185   :  { %v5188_v25 = vmax.f32 %v4676_v33, 0.0  ;;  %v4159_v5 = vmul.f32 %v9508_v45, %v9926_v37  ;;  %v552_v54 = vmul.f32 %v15999_v49, %v9886_v60  ;;  %v553_v51 = vmul.f32 %v15999_v49, %v9890_v32 }
 0x186   :  { %5745 = vadd.xlane.f32.xlu0 %v5744_v12  ;;  %v5189_v8 = vmax.f32 %v4677_v7, 0.0  ;;  %v3294_v21 = vadd.f32 %v2782_v41, %v1918_v0  ;;  %v3295_v52 = vadd.f32 %v2783_v22, %v1919_v58  ;;  %v1416_v43 = vmul.f32 %v15955_v44, %v9893_v4  ;;  %v16002_v0 = vld [vmem:[#allocation42_spill] sm:$0xff] }
 0x187   :  { %v1417_v18 = vmul.f32 %v15955_v44, %v9899_v3  ;;  %v2792_v6 = vmul.f32 %v16000_v15, %v9909_v13  ;;  %v2793_v35 = vmul.f32 %v16000_v15, %v9913_v20  ;;  %v4168_v23 = vmul.f32 %v16001_v17, %v9921_v57 }
 0x188   :  { %v5759_v39 = vadd.f32 %v5189_v8, %v5188_v25  ;;  %v4670_v33 = vadd.f32 %v4158_v11, %v3294_v21  ;;  %v4671_v12 = vadd.f32 %v4159_v5, %v3295_v52  ;;  %v1928_v41 = vadd.f32 %v1416_v43, %v552_v54  ;;  %v16004_v11 = vld [vmem:[#allocation117_spill] sm:$0xff] }
 0x189   :  { %v1929_v22 = vadd.f32 %v1417_v18, %v553_v51  ;;  %v4169_v7 = vmul.f32 %v16001_v17, %v9926_v37  ;;  %v546_v58 = vmul.f32 %v16002_v0, %v9886_v60  ;;  %v547_v44 = vmul.f32 %v16002_v0, %v9890_v32  ;;  %v16005_v18 = vld [vmem:[#allocation130_spill] sm:$0xff]  ;;  %v16019_v17 = vld [vmem:[#allocation63_spill] sm:$0xff] }
 0x18a   :  { %5760 = vadd.xlane.f32.xlu1 %v5759_v39  ;;  %v5182_v49 = vmax.f32 %v4670_v33, 0.0  ;;  %v5183_v15 = vmax.f32 %v4671_v12, 0.0  ;;  %v3304_v45 = vadd.f32 %v2792_v6, %v1928_v41  ;;  %v1410_v25 = vmul.f32 %v16003_v38, %v9893_v4  ;;  %v16006_v12 = vld [vmem:[#allocation57_spill] sm:$0xff]  ;;  %v16015_v0 = vld [vmem:[#allocation110_spill] sm:$0xff] }
 0x18b   :  { %v3305_v21 = vadd.f32 %v2793_v35, %v1929_v22  ;;  %v1411_v52 = vmul.f32 %v16003_v38, %v9899_v3  ;;  %v2786_v5 = vmul.f32 %v16004_v11, %v9909_v13  ;;  %v2787_v54 = vmul.f32 %v16004_v11, %v9913_v20 }
 0x18c   :  { %v5750_v51 = vadd.f32 %v5183_v15, %v5182_v49  ;;  %v4680_v8 = vadd.f32 %v4168_v23, %v3304_v45  ;;  %v1922_v43 = vadd.f32 %v1410_v25, %v546_v58  ;;  %v4162_v39 = vmul.f32 %v16005_v18, %v9921_v57  ;;  %v16007_v45 = vld [vmem:[#allocation64_spill] sm:$0xff] }
 0x18d   :  { %v4681_v6 = vadd.f32 %v4169_v7, %v3305_v21  ;;  %v1923_v33 = vadd.f32 %v1411_v52, %v547_v44  ;;  %v4163_v35 = vmul.f32 %v16005_v18, %v9926_v37  ;;  %v556_v41 = vmul.f32 %v16006_v12, %v9886_v60  ;;  %v16008_v7 = vld [vmem:[#allocation59_spill] sm:$0xff] }
 0x18e   :  { %5751 = vadd.xlane.f32.xlu0 %v5750_v51  ;;  %v5192_v22 = vmax.f32 %v4680_v8, 0.0  ;;  %v3298_v38 = vadd.f32 %v2786_v5, %v1922_v43  ;;  %v557_v11 = vmul.f32 %v16006_v12, %v9890_v32  ;;  %v1420_v49 = vmul.f32 %v16007_v45, %v9893_v4  ;;  %v16009_v5 = vld [vmem:[#allocation131_spill] sm:$0xff] }
 0x18f   :  { %v5193_v15 = vmax.f32 %v4681_v6, 0.0  ;;  %v3299_v23 = vadd.f32 %v2787_v54, %v1923_v33  ;;  %v1421_v44 = vmul.f32 %v16007_v45, %v9899_v3  ;;  %v2796_v58 = vmul.f32 %v16008_v7, %v9909_v13  ;;  %v16010_v45 = vld [vmem:[#allocation48_spill] sm:$0xff] }
 0x190   :  { %v4674_v25 = vadd.f32 %v4162_v39, %v3298_v38  ;;  %v1932_v21 = vadd.f32 %v1420_v49, %v556_v41  ;;  %v2797_v52 = vmul.f32 %v16008_v7, %v9913_v20  ;;  %v4172_v51 = vmul.f32 %v16009_v5, %v9921_v57  ;;  %v16011_v49 = vld [vmem:[#allocation104_spill] sm:$0xff] }
 0x191   :  { %v5765_v8 = vadd.f32 %v5193_v15, %v5192_v22  ;;  %v4675_v43 = vadd.f32 %v4163_v35, %v3299_v23  ;;  %v1933_v12 = vadd.f32 %v1421_v44, %v557_v11  ;;  %v4173_v54 = vmul.f32 %v16009_v5, %v9926_v37  ;;  %v16012_v22 = vld [vmem:[#allocation121_spill] sm:$0xff]  ;;  %v16013_v44 = vld [vmem:[#allocation132_spill] sm:$0xff] }
 0x192   :  { %v5186_v6 = vmax.f32 %v4674_v25, 0.0  ;;  %v3308_v33 = vadd.f32 %v2796_v58, %v1932_v21  ;;  %v550_v18 = vmul.f32 %v16010_v45, %v9886_v60  ;;  %v551_v38 = vmul.f32 %v16010_v45, %v9890_v32 }
 0x193   :  { %5766 = vadd.xlane.f32.xlu1 %v5765_v8  ;;  %v5187_v39 = vmax.f32 %v4675_v43, 0.0  ;;  %v3309_v41 = vadd.f32 %v2797_v52, %v1933_v12  ;;  %v1414_v7 = vmul.f32 %v16011_v49, %v9893_v4  ;;  %v1415_v11 = vmul.f32 %v16011_v49, %v9899_v3  ;;  %v16014_v49 = vld [vmem:[#allocation67_spill] sm:$0xff] }
 0x194   :  { %v4684_v35 = vadd.f32 %v4172_v51, %v3308_v33  ;;  %v2790_v15 = vmul.f32 %v16012_v22, %v9909_v13  ;;  %v2791_v23 = vmul.f32 %v16012_v22, %v9913_v20  ;;  %v4166_v58 = vmul.f32 %v16013_v44, %v9921_v57 }
 0x195   :  { %v5756_v25 = vadd.f32 %v5187_v39, %v5186_v6  ;;  %v4685_v21 = vadd.f32 %v4173_v54, %v3309_v41  ;;  %v1926_v8 = vadd.f32 %v1414_v7, %v550_v18  ;;  %v1927_v12 = vadd.f32 %v1415_v11, %v551_v38  ;;  %v16016_v7 = vld [vmem:[#allocation29_spill] sm:$0xff] }
 0x196   :  { %v5196_v52 = vmax.f32 %v4684_v35, 0.0  ;;  %v4167_v43 = vmul.f32 %v16013_v44, %v9926_v37  ;;  %v560_v51 = vmul.f32 %v16014_v49, %v9886_v60  ;;  %v561_v33 = vmul.f32 %v16014_v49, %v9890_v32  ;;  %v16017_v39 = vld [vmem:[#allocation133_spill] sm:$0xff] }
 0x197   :  { %5757 = vadd.xlane.f32.xlu0 %v5756_v25  ;;  %v5197_v45 = vmax.f32 %v4685_v21, 0.0  ;;  %v3302_v22 = vadd.f32 %v2790_v15, %v1926_v8  ;;  %v3303_v5 = vadd.f32 %v2791_v23, %v1927_v12  ;;  %v1424_v6 = vmul.f32 %v16015_v0, %v9893_v4  ;;  %v16018_v8 = vld [vmem:[#allocation58_spill] sm:$0xff] }
 0x198   :  { %v1425_v18 = vmul.f32 %v16015_v0, %v9899_v3  ;;  %v2800_v54 = vmul.f32 %v16016_v7, %v9909_v13  ;;  %v2801_v38 = vmul.f32 %v16016_v7, %v9913_v20  ;;  %v4176_v41 = vmul.f32 %v16017_v39, %v9921_v57 }
 0x199   :  { %v5771_v11 = vadd.f32 %v5197_v45, %v5196_v52  ;;  %v4678_v35 = vadd.f32 %v4166_v58, %v3302_v22  ;;  %v4679_v25 = vadd.f32 %v4167_v43, %v3303_v5  ;;  %v1936_v15 = vadd.f32 %v1424_v6, %v560_v51  ;;  %v22_v5 = vld [vmem:[%s15057_s0 + $0x20] sm:$0xff] }
 0x19a   :  { %v1937_v23 = vadd.f32 %v1425_v18, %v561_v33  ;;  %v4177_v21 = vmul.f32 %v16017_v39, %v9926_v37  ;;  %v554_v12 = vmul.f32 %v16018_v8, %v9886_v60  ;;  %v555_v0 = vmul.f32 %v16018_v8, %v9890_v32  ;;  %v16020_v52 = vld [vmem:[#allocation125_spill] sm:$0xff]  ;;  %v16022_v8 = vld [vmem:[#allocation8_spill] sm:$0xff] }
 0x19b   :  { %5772 = vadd.xlane.f32.xlu1 %v5771_v11  ;;  %v5190_v49 = vmax.f32 %v4678_v35, 0.0  ;;  %v5191_v7 = vmax.f32 %v4679_v25, 0.0  ;;  %v3312_v44 = vadd.f32 %v2800_v54, %v1936_v15  ;;  %v1418_v45 = vmul.f32 %v16019_v17, %v9893_v4  ;;  %v16021_v25 = vld [vmem:[#allocation7_spill] sm:$0xff] }
 0x19c   :  { %v3313_v22 = vadd.f32 %v2801_v38, %v1937_v23  ;;  %v1419_v58 = vmul.f32 %v16019_v17, %v9899_v3  ;;  %v2794_v43 = vmul.f32 %v16020_v52, %v9909_v13  ;;  %v2795_v51 = vmul.f32 %v16020_v52, %v9913_v20 }
 0x19d   :  { %v5762_v33 = vadd.f32 %v5191_v7, %v5190_v49  ;;  %v4688_v6 = vadd.f32 %v4176_v41, %v3312_v44  ;;  %v1930_v18 = vadd.f32 %v1418_v45, %v554_v12  ;;  %v4170_v54 = vmul.f32 %v9570_v27, %v9921_v57  ;;  %v16024_v41 = vld [vmem:[#allocation10_spill] sm:$0xff] }
 0x19e   :  { %v4689_v11 = vadd.f32 %v4177_v21, %v3313_v22  ;;  %v1931_v35 = vadd.f32 %v1419_v58, %v555_v0  ;;  %v4171_v38 = vmul.f32 %v9570_v27, %v9926_v37  ;;  %v101_v15 = vrot.slane %v22_v5, %v16021_v25 }
 0x19f   :  { %5763 = vadd.xlane.f32.xlu0 %v5762_v33  ;;  %v5200_v23 = vmax.f32 %v4688_v6, 0.0  ;;  %v3306_v17 = vadd.f32 %v2794_v43, %v1930_v18  ;;  %v105_v39 = vrot.slane %v22_v5, %v16022_v8  ;;  %v981_v52 = vrot.slane %v22_v5, %v16023_v29  ;;  %v16025_v33 = vld [vmem:[#allocation18_spill] sm:$0xff] }
 0x1a0   :  { %v5201_v49 = vmax.f32 %v4689_v11, 0.0  ;;  %v3307_v44 = vadd.f32 %v2795_v51, %v1931_v35  ;;  %v10177_v7 = vrot.slane %v101_v15, %v16021_v25  ;;  %v985_v21 = vrot.slane %v22_v5, %v16024_v41  ;;  %v16027_v11 = vld [vmem:[#allocation14_spill] sm:$0xff] }
 0x1a1   :  { %v4682_v0 = vadd.f32 %v4170_v54, %v3306_v17  ;;  %v10181_v12 = vrot.slane %v105_v39, %v16021_v25  ;;  %v10184_v45 = vrot.slane %v981_v52, %v16023_v29  ;;  %v2357_v22 = vrot.slane %v22_v5, %v15981_v30  ;;  %v16026_v39 = vld [vmem:[#allocation85_spill] sm:$0xff] }
 0x1a2   :  { %v5777_v58 = vadd.f32 %v5201_v49, %v5200_v23  ;;  %v4683_v43 = vadd.f32 %v4171_v38, %v3307_v44  ;;  %v564_v6 = vmul.f32 %v16025_v33, %v10177_v7  ;;  %v10190_v51 = vrot.slane %v985_v21, %v16023_v29 }
 0x1a3   :  { %v5194_v18 = vmax.f32 %v4682_v0, 0.0  ;;  %v565_v17 = vmul.f32 %v16025_v33, %v10181_v12  ;;  %v1428_v54 = vmul.f32 %v16026_v39, %v10184_v45  ;;  %v2361_v52 = vrot.slane %v22_v5, %v16027_v11 }
 0x1a4   :  { %5778 = vadd.xlane.f32.xlu1 %v5777_v58  ;;  %v5195_v35 = vmax.f32 %v4683_v43, 0.0  ;;  %v1429_v38 = vmul.f32 %v16026_v39, %v10190_v51  ;;  %v10200_v15 = vrot.slane %v2357_v22, %v15981_v30  ;;  %v3733_v23 = vrot.slane %v22_v5, %v15985_v26 }
 0x1a5   :  { %v1940_v49 = vadd.f32 %v1428_v54, %v564_v6  ;;  %v10204_v44 = vrot.slane %v2361_v52, %v15981_v30  ;;  %v3737_v21 = vrot.slane %v22_v5, %v15986_v28  ;;  %v558_v0 = vmul.f32 %v15987_v48, %v9886_v60  ;;  %v16028_v54 = vld [vmem:[#allocation109_spill] sm:$0xff] }
 0x1a6   :  { %v5768_v33 = vadd.f32 %v5195_v35, %v5194_v18  ;;  %v1941_v58 = vadd.f32 %v1429_v38, %v565_v17  ;;  %v2804_v43 = vmul.f32 %v15988_v53, %v10200_v15  ;;  %v10212_v39 = vrot.slane %v3733_v23, %v15985_v26 }
 0x1a7   :  { %v2805_v22 = vmul.f32 %v15988_v53, %v10204_v44  ;;  %v10217_v6 = vrot.slane %v3737_v21, %v15985_v26  ;;  %v559_v5 = vmul.f32 %v15987_v48, %v9890_v32  ;;  %v1422_v60 = vmul.f32 %v16028_v54, %v9893_v4 }
 0x1a8   :  { %5769 = vadd.xlane.f32.xlu0 %v5768_v33  ;;  %v3316_v18 = vadd.f32 %v2804_v43, %v1940_v49  ;;  %v4180_v17 = vmul.f32 %v9443_v62, %v10212_v39  ;;  %v1423_v52 = vmul.f32 %v16028_v54, %v9899_v3  ;;  %v2798_v35 = vmul.f32 %v15915_v56, %v9909_v13  ;;  %v16029_v13 = vld [vmem:[#allocation17_spill] sm:$0xff] }
 0x1a9   :  { %v3317_v38 = vadd.f32 %v2805_v22, %v1941_v58  ;;  %v4181_v23 = vmul.f32 %v9443_v62, %v10217_v6  ;;  %v1934_v21 = vadd.f32 %v1422_v60, %v558_v0  ;;  %v2799_v32 = vmul.f32 %v15915_v56, %v9913_v20  ;;  %v16030_v20 = vld [vmem:[#allocation92_spill] sm:$0xff] }
 0x1aa   :  { %v4692_v4 = vadd.f32 %v4180_v17, %v3316_v18  ;;  %v1935_v33 = vadd.f32 %v1423_v52, %v559_v5  ;;  %v4174_v49 = vmul.f32 %v9583_v14, %v9921_v57  ;;  %v4175_v43 = vmul.f32 %v9583_v14, %v9926_v37  ;;  %v16031_v37 = vld [vmem:[#allocation25_spill] sm:$0xff] }
 0x1ab   :  { %v4693_v3 = vadd.f32 %v4181_v23, %v3317_v38  ;;  %v3310_v54 = vadd.f32 %v2798_v35, %v1934_v21  ;;  %v568_v58 = vmul.f32 %v16029_v13, %v10177_v7  ;;  %v569_v22 = vmul.f32 %v16029_v13, %v10181_v12 }
 0x1ac   :  { %v5204_v0 = vmax.f32 %v4692_v4, 0.0  ;;  %v3311_v60 = vadd.f32 %v2799_v32, %v1935_v33  ;;  %v1432_v18 = vmul.f32 %v16030_v20, %v10184_v45  ;;  %v1433_v5 = vmul.f32 %v16030_v20, %v10190_v51 }
 0x1ad   :  { %v5205_v57 = vmax.f32 %v4693_v3, 0.0  ;;  %v4686_v17 = vadd.f32 %v4174_v49, %v3310_v54  ;;  %v2808_v52 = vmul.f32 %v16031_v37, %v10200_v15  ;;  %v2809_v35 = vmul.f32 %v16031_v37, %v10204_v44 }
 0x1ae   :  { %v4687_v38 = vadd.f32 %v4175_v43, %v3311_v60  ;;  %v1944_v23 = vadd.f32 %v1432_v18, %v568_v58  ;;  %v1945_v21 = vadd.f32 %v1433_v5, %v569_v22  ;;  %v4184_v32 = vmul.f32 %v15923_v40, %v10212_v39  ;;  %v16032_v22 = vld [vmem:[#allocation78_spill] sm:$0xff] }
 0x1af   :  { %v5783_v4 = vadd.f32 %v5205_v57, %v5204_v0  ;;  %v5198_v33 = vmax.f32 %v4686_v17, 0.0  ;;  %v4185_v13 = vmul.f32 %v15923_v40, %v10217_v6  ;;  %v562_v54 = vmul.f32 %v15992_v34, %v10177_v7 }
 0x1b0   :  { %v5199_v49 = vmax.f32 %v4687_v38, 0.0  ;;  %v3320_v3 = vadd.f32 %v2808_v52, %v1944_v23  ;;  %v3321_v20 = vadd.f32 %v2809_v35, %v1945_v21  ;;  %v563_v37 = vmul.f32 %v15992_v34, %v10181_v12 }
 0x1b1   :  { %5784 = vadd.xlane.f32.xlu1 %v5783_v4  ;;  %v1426_v43 = vmul.f32 %v15925_v61, %v10184_v45  ;;  %v1427_v58 = vmul.f32 %v15925_v61, %v10190_v51  ;;  %v2802_v0 = vmul.f32 %v16032_v22, %v10200_v15  ;;  %v2803_v60 = vmul.f32 %v16032_v22, %v10204_v44 }
 0x1b2   :  { %v5774_v18 = vadd.f32 %v5199_v49, %v5198_v33  ;;  %v4696_v5 = vadd.f32 %v4184_v32, %v3320_v3  ;;  %v4697_v57 = vadd.f32 %v4185_v13, %v3321_v20  ;;  %v4178_v17 = vmul.f32 %v15930_v55, %v10212_v39 }
 0x1b3   :  { %v1938_v52 = vadd.f32 %v1426_v43, %v562_v54  ;;  %v1939_v35 = vadd.f32 %v1427_v58, %v563_v37  ;;  %v4179_v38 = vmul.f32 %v15930_v55, %v10217_v6  ;;  %v572_v23 = vmul.f32 %v15993_v59, %v10177_v7 }
 0x1b4   :  { %5775 = vadd.xlane.f32.xlu0 %v5774_v18  ;;  %v5208_v21 = vmax.f32 %v4696_v5, 0.0  ;;  %v5209_v4 = vmax.f32 %v4697_v57, 0.0  ;;  %v573_v22 = vmul.f32 %v15993_v59, %v10181_v12  ;;  %v1436_v13 = vmul.f32 %v15931_v19, %v10184_v45 }
 0x1b5   :  { %v3314_v20 = vadd.f32 %v2802_v0, %v1938_v52  ;;  %v3315_v32 = vadd.f32 %v2803_v60, %v1939_v35  ;;  %v1437_v37 = vmul.f32 %v15931_v19, %v10190_v51  ;;  %v2812_v33 = vmul.f32 %v15933_v9, %v10200_v15 }
 0x1b6   :  { %v5789_v54 = vadd.f32 %v5209_v4, %v5208_v21  ;;  %v1948_v49 = vadd.f32 %v1436_v13, %v572_v23  ;;  %v2813_v3 = vmul.f32 %v15933_v9, %v10204_v44  ;;  %v4188_v43 = vmul.f32 %v9445_v47, %v10212_v39 }
 0x1b7   :  { %v4690_v58 = vadd.f32 %v4178_v17, %v3314_v20  ;;  %v4691_v18 = vadd.f32 %v4179_v38, %v3315_v32  ;;  %v1949_v5 = vadd.f32 %v1437_v37, %v573_v22  ;;  %v4189_v0 = vmul.f32 %v9445_v47, %v10217_v6 }
 0x1b8   :  { %5790 = vadd.xlane.f32.xlu1 %v5789_v54  ;;  %v3324_v60 = vadd.f32 %v2812_v33, %v1948_v49  ;;  %v566_v57 = vmul.f32 %v15994_v1, %v10177_v7  ;;  %v1430_v21 = vmul.f32 %v15935_v10, %v10184_v45  ;;  %v567_v17 = vmul.f32 %v15994_v1, %v10181_v12 }
 0x1b9   :  { %v5202_v52 = vmax.f32 %v4690_v58, 0.0  ;;  %v5203_v35 = vmax.f32 %v4691_v18, 0.0  ;;  %v3325_v23 = vadd.f32 %v2813_v3, %v1949_v5  ;;  %v1431_v22 = vmul.f32 %v15935_v10, %v10190_v51 }
 0x1ba   :  { %v4700_v4 = vadd.f32 %v4188_v43, %v3324_v60  ;;  %v2806_v38 = vmul.f32 %v15936_v50, %v10200_v15  ;;  %v1942_v32 = vadd.f32 %v1430_v21, %v566_v57  ;;  %v2807_v37 = vmul.f32 %v15936_v50, %v10204_v44  ;;  %v16033_v60 = vld [vmem:[#allocation97_spill] sm:$0xff]  ;;  %v16034_v21 = vld [vmem:[#allocation120_spill] sm:$0xff] }
 0x1bb   :  { %v5780_v13 = vadd.f32 %v5203_v35, %v5202_v52  ;;  %v4701_v20 = vadd.f32 %v4189_v0, %v3325_v23  ;;  %v1943_v54 = vadd.f32 %v1431_v22, %v567_v17  ;;  %v4182_v49 = vmul.f32 %v9472_v42, %v10212_v39 }
 0x1bc   :  { %v5212_v33 = vmax.f32 %v4700_v4, 0.0  ;;  %v3318_v43 = vadd.f32 %v2806_v38, %v1942_v32  ;;  %v4183_v58 = vmul.f32 %v9472_v42, %v10217_v6  ;;  %v576_v18 = vmul.f32 %v15995_v63, %v10177_v7 }
 0x1bd   :  { %5781 = vadd.xlane.f32.xlu0 %v5780_v13  ;;  %v5213_v3 = vmax.f32 %v4701_v20, 0.0  ;;  %v3319_v5 = vadd.f32 %v2807_v37, %v1943_v54  ;;  %v577_v0 = vmul.f32 %v15995_v63, %v10181_v12  ;;  %v1440_v57 = vmul.f32 %v16033_v60, %v10184_v45 }
 0x1be   :  { %v1441_v52 = vmul.f32 %v16033_v60, %v10190_v51  ;;  %v4694_v23 = vadd.f32 %v4182_v49, %v3318_v43  ;;  %v2816_v4 = vmul.f32 %v16034_v21, %v10200_v15  ;;  %v2817_v17 = vmul.f32 %v16034_v21, %v10204_v44 }
 0x1bf   :  { %v5795_v35 = vadd.f32 %v5213_v3, %v5212_v33  ;;  %v4695_v22 = vadd.f32 %v4183_v58, %v3319_v5  ;;  %v1952_v38 = vadd.f32 %v1440_v57, %v576_v18  ;;  %v4192_v20 = vmul.f32 %v9474_v36, %v10212_v39  ;;  %v16035_v58 = vld [vmem:[#allocation94_spill] sm:$0xff] }
 0x1c0   :  { %v1953_v13 = vadd.f32 %v1441_v52, %v577_v0  ;;  %v5206_v32 = vmax.f32 %v4694_v23, 0.0  ;;  %v4193_v37 = vmul.f32 %v9474_v36, %v10217_v6  ;;  %v570_v3 = vmul.f32 %v15996_v46, %v10177_v7  ;;  %v16036_v0 = vld [vmem:[#allocation21_spill] sm:$0xff] }
 0x1c1   :  { %5796 = vadd.xlane.f32.xlu1 %v5795_v35  ;;  %v5207_v54 = vmax.f32 %v4695_v22, 0.0  ;;  %v3328_v33 = vadd.f32 %v2816_v4, %v1952_v38  ;;  %v571_v43 = vmul.f32 %v15996_v46, %v10181_v12  ;;  %v1434_v18 = vmul.f32 %v16035_v58, %v10184_v45 }
 0x1c2   :  { %v3329_v49 = vadd.f32 %v2817_v17, %v1953_v13  ;;  %v1435_v5 = vmul.f32 %v16035_v58, %v10190_v51  ;;  %v2810_v57 = vmul.f32 %v16036_v0, %v10200_v15  ;;  %v2811_v4 = vmul.f32 %v16036_v0, %v10204_v44 }
 0x1c3   :  { %v5786_v52 = vadd.f32 %v5207_v54, %v5206_v32  ;;  %v4704_v35 = vadd.f32 %v4192_v20, %v3328_v33  ;;  %v1946_v17 = vadd.f32 %v1434_v18, %v570_v3  ;;  %v4186_v38 = vmul.f32 %v9490_v16, %v10212_v39 }
 0x1c4   :  { %v4705_v23 = vadd.f32 %v4193_v37, %v3329_v49  ;;  %v1947_v22 = vadd.f32 %v1435_v5, %v571_v43  ;;  %v4187_v58 = vmul.f32 %v9490_v16, %v10217_v6  ;;  %v580_v36 = vmul.f32 %v15997_v2, %v10177_v7  ;;  %v16038_v16 = vld [vmem:[#allocation36_spill] sm:$0xff] }
 0x1c5   :  { %5787 = vadd.xlane.f32.xlu0 %v5786_v52  ;;  %v5216_v13 = vmax.f32 %v4704_v35, 0.0  ;;  %v3322_v32 = vadd.f32 %v2810_v57, %v1946_v17  ;;  %v581_v37 = vmul.f32 %v15997_v2, %v10181_v12  ;;  %v1444_v54 = vmul.f32 %v15947_v24, %v10184_v45  ;;  %v16037_v52 = vld [vmem:[#allocation75_spill] sm:$0xff] }
 0x1c6   :  { %v5217_v46 = vmax.f32 %v4705_v23, 0.0  ;;  %v3323_v20 = vadd.f32 %v2811_v4, %v1947_v22  ;;  %v1445_v49 = vmul.f32 %v15947_v24, %v10190_v51  ;;  %v2820_v3 = vmul.f32 %v15948_v31, %v10200_v15 }
 0x1c7   :  { %v2821_v43 = vmul.f32 %v15948_v31, %v10204_v44  ;;  %v4698_v18 = vadd.f32 %v4186_v38, %v3322_v32  ;;  %v1956_v57 = vadd.f32 %v1444_v54, %v580_v36  ;;  %v4196_v35 = vmul.f32 %v16037_v52, %v10212_v39 }
 0x1c8   :  { %v5801_v33 = vadd.f32 %v5217_v46, %v5216_v13  ;;  %v4699_v5 = vadd.f32 %v4187_v58, %v3323_v20  ;;  %v1957_v23 = vadd.f32 %v1445_v49, %v581_v37  ;;  %v4197_v46 = vmul.f32 %v16037_v52, %v10217_v6  ;;  %v16039_v58 = vld [vmem:[#allocation96_spill] sm:$0xff]  ;;  %v16040_v37 = vld [vmem:[#allocation26_spill] sm:$0xff] }
 0x1c9   :  { %v5210_v4 = vmax.f32 %v4698_v18, 0.0  ;;  %v3332_v22 = vadd.f32 %v2820_v3, %v1956_v57  ;;  %v574_v31 = vmul.f32 %v16038_v16, %v10177_v7  ;;  %v1438_v36 = vmul.f32 %v16039_v58, %v10184_v45 }
 0x1ca   :  { %5802 = vadd.xlane.f32.xlu1 %v5801_v33  ;;  %v5211_v17 = vmax.f32 %v4699_v5, 0.0  ;;  %v3333_v13 = vadd.f32 %v2821_v43, %v1957_v23  ;;  %v575_v32 = vmul.f32 %v16038_v16, %v10181_v12  ;;  %v1439_v20 = vmul.f32 %v16039_v58, %v10190_v51  ;;  %v16041_v5 = vld [vmem:[#allocation22_spill] sm:$0xff] }
 0x1cb   :  { %v4708_v2 = vadd.f32 %v4196_v35, %v3332_v22  ;;  %v2814_v54 = vmul.f32 %v16040_v37, %v10200_v15  ;;  %v1950_v49 = vadd.f32 %v1438_v36, %v574_v31  ;;  %v2815_v3 = vmul.f32 %v16040_v37, %v10204_v44  ;;  %v16047_v58 = vld [vmem:[#allocation98_spill] sm:$0xff] }
 0x1cc   :  { %v5792_v24 = vadd.f32 %v5211_v17, %v5210_v4  ;;  %v4709_v38 = vadd.f32 %v4197_v46, %v3333_v13  ;;  %v1951_v18 = vadd.f32 %v1439_v20, %v575_v32  ;;  %v4190_v57 = vmul.f32 %v16041_v5, %v10212_v39  ;;  %v16042_v46 = vld [vmem:[#allocation47_spill] sm:$0xff]  ;;  %v16043_v17 = vld [vmem:[#allocation105_spill] sm:$0xff] }
 0x1cd   :  { %v5220_v33 = vmax.f32 %v4708_v2, 0.0  ;;  %v3326_v35 = vadd.f32 %v2814_v54, %v1950_v49  ;;  %v4191_v23 = vmul.f32 %v16041_v5, %v10217_v6  ;;  %v584_v4 = vmul.f32 %v16042_v46, %v10177_v7  ;;  %v16045_v54 = vld [vmem:[#allocation129_spill] sm:$0xff] }
 0x1ce   :  { %5793 = vadd.xlane.f32.xlu0 %v5792_v24  ;;  %v5221_v43 = vmax.f32 %v4709_v38, 0.0  ;;  %v585_v24 = vmul.f32 %v16042_v46, %v10181_v12  ;;  %v3327_v31 = vadd.f32 %v2815_v3, %v1951_v18  ;;  %v1448_v22 = vmul.f32 %v16043_v17, %v10184_v45  ;;  %v16044_v38 = vld [vmem:[#allocation102_spill] sm:$0xff] }
 0x1cf   :  { %v1449_v13 = vmul.f32 %v16043_v17, %v10190_v51  ;;  %v4702_v36 = vadd.f32 %v4190_v57, %v3326_v35  ;;  %v2824_v32 = vmul.f32 %v16044_v38, %v10200_v15  ;;  %v2825_v20 = vmul.f32 %v16044_v38, %v10204_v44  ;;  %v16046_v35 = vld [vmem:[#allocation42_spill] sm:$0xff] }
 0x1d0   :  { %v5807_v2 = vadd.f32 %v5221_v43, %v5220_v33  ;;  %v4200_v49 = vmul.f32 %v16045_v54, %v10212_v39  ;;  %v4703_v46 = vadd.f32 %v4191_v23, %v3327_v31  ;;  %v1960_v33 = vadd.f32 %v1448_v22, %v584_v4 }
 0x1d1   :  { %v1961_v3 = vadd.f32 %v1449_v13, %v585_v24  ;;  %v4201_v43 = vmul.f32 %v16045_v54, %v10217_v6  ;;  %v5214_v18 = vmax.f32 %v4702_v36, 0.0  ;;  %v578_v37 = vmul.f32 %v16046_v35, %v10177_v7 }
 0x1d2   :  { %5808 = vadd.xlane.f32.xlu1 %v5807_v2  ;;  %v5215_v5 = vmax.f32 %v4703_v46, 0.0  ;;  %v3336_v17 = vadd.f32 %v2824_v32, %v1960_v33  ;;  %v579_v38 = vmul.f32 %v16046_v35, %v10181_v12  ;;  %v1442_v16 = vmul.f32 %v16047_v58, %v10184_v45  ;;  %v16048_v46 = vld [vmem:[#allocation117_spill] sm:$0xff] }
 0x1d3   :  { %v3337_v57 = vadd.f32 %v2825_v20, %v1961_v3  ;;  %v1443_v24 = vmul.f32 %v16047_v58, %v10190_v51  ;;  %v2818_v22 = vmul.f32 %v16048_v46, %v10200_v15  ;;  %v2819_v20 = vmul.f32 %v16048_v46, %v10204_v44  ;;  %v16049_v3 = vld [vmem:[#allocation130_spill] sm:$0xff]  ;;  %v16054_v58 = vld [vmem:[#allocation48_spill] sm:$0xff] }
 0x1d4   :  { %v5798_v2 = vadd.f32 %v5215_v5, %v5214_v18  ;;  %v4712_v23 = vadd.f32 %v4200_v49, %v3336_v17  ;;  %v1954_v31 = vadd.f32 %v1442_v16, %v578_v37  ;;  %v4194_v5 = vmul.f32 %v16049_v3, %v10212_v39  ;;  %v16050_v16 = vld [vmem:[#allocation57_spill] sm:$0xff] }
 0x1d5   :  { %v4713_v4 = vadd.f32 %v4201_v43, %v3337_v57  ;;  %v1955_v32 = vadd.f32 %v1443_v24, %v579_v38  ;;  %v4195_v17 = vmul.f32 %v16049_v3, %v10217_v6  ;;  %v588_v37 = vmul.f32 %v16050_v16, %v10177_v7  ;;  %v16051_v38 = vld [vmem:[#allocation64_spill] sm:$0xff] }
 0x1d6   :  { %5799 = vadd.xlane.f32.xlu0 %v5798_v2  ;;  %v5224_v13 = vmax.f32 %v4712_v23, 0.0  ;;  %v3330_v33 = vadd.f32 %v2818_v22, %v1954_v31  ;;  %v589_v18 = vmul.f32 %v16050_v16, %v10181_v12  ;;  %v1452_v2 = vmul.f32 %v16051_v38, %v10184_v45 }
 0x1d7   :  { %v5225_v36 = vmax.f32 %v4713_v4, 0.0  ;;  %v3331_v43 = vadd.f32 %v2819_v20, %v1955_v32  ;;  %v1453_v23 = vmul.f32 %v16051_v38, %v10190_v51  ;;  %v16052_v4 = vld [vmem:[#allocation59_spill] sm:$0xff] }
 0x1d8   :  { %v4706_v57 = vadd.f32 %v4194_v5, %v3330_v33  ;;  %v2828_v24 = vmul.f32 %v16052_v4, %v10200_v15  ;;  %v2829_v22 = vmul.f32 %v16052_v4, %v10204_v44  ;;  %v1964_v20 = vadd.f32 %v1452_v2, %v588_v37  ;;  %v16056_v2 = vld [vmem:[#allocation121_spill] sm:$0xff] }
 0x1d9   :  { %v5813_v49 = vadd.f32 %v5225_v36, %v5224_v13  ;;  %v4707_v31 = vadd.f32 %v4195_v17, %v3331_v43  ;;  %v16053_v13 = vld [vmem:[#allocation131_spill] sm:$0xff]  ;;  %v1965_v33 = vadd.f32 %v1453_v23, %v589_v18  ;;  %v16055_v17 = vld [vmem:[#allocation104_spill] sm:$0xff]  ;;  %v2822_v23 = vmul.f32 %v16056_v2, %v10200_v15 }
 0x1da   :  { %v4204_v36 = vmul.f32 %v16053_v13, %v10212_v39  ;;  %v5218_v32 = vmax.f32 %v4706_v57, 0.0  ;;  %v4205_v5 = vmul.f32 %v16053_v13, %v10217_v6  ;;  %v3340_v3 = vadd.f32 %v2828_v24, %v1964_v20 }
 0x1db   :  { %5814 = vadd.xlane.f32.xlu1 %v5813_v49  ;;  %v5219_v16 = vmax.f32 %v4707_v31, 0.0  ;;  %v3341_v38 = vadd.f32 %v2829_v22, %v1965_v33  ;;  %v582_v49 = vmul.f32 %v16054_v58, %v10177_v7  ;;  %v1446_v43 = vmul.f32 %v16055_v17, %v10184_v45 }
 0x1dc   :  { %v4716_v4 = vadd.f32 %v4204_v36, %v3340_v3  ;;  %v583_v57 = vmul.f32 %v16054_v58, %v10181_v12  ;;  %v1447_v37 = vmul.f32 %v16055_v17, %v10190_v51  ;;  %v16057_v3 = vld [vmem:[#allocation132_spill] sm:$0xff]  ;;  %v16062_v58 = vld [vmem:[#allocation58_spill] sm:$0xff] }
 0x1dd   :  { %v5804_v46 = vadd.f32 %v5219_v16, %v5218_v32  ;;  %v4717_v35 = vadd.f32 %v4205_v5, %v3341_v38  ;;  %v1958_v18 = vadd.f32 %v1446_v43, %v582_v49  ;;  %v2823_v16 = vmul.f32 %v16056_v2, %v10204_v44 }
 0x1de   :  { %v5228_v24 = vmax.f32 %v4716_v4, 0.0  ;;  %v1959_v22 = vadd.f32 %v1447_v37, %v583_v57  ;;  %v4198_v38 = vmul.f32 %v16057_v3, %v10212_v39  ;;  %v4199_v36 = vmul.f32 %v16057_v3, %v10217_v6  ;;  %v16059_v4 = vld [vmem:[#allocation110_spill] sm:$0xff]  ;;  %v16060_v37 = vld [vmem:[#allocation29_spill] sm:$0xff] }
 0x1df   :  { %5805 = vadd.xlane.f32.xlu0 %v5804_v46  ;;  %v5229_v31 = vmax.f32 %v4717_v35, 0.0  ;;  %v3334_v32 = vadd.f32 %v2822_v23, %v1958_v18  ;;  %v16058_v46 = vld [vmem:[#allocation67_spill] sm:$0xff]  ;;  %v1456_v35 = vmul.f32 %v16059_v4, %v10184_v45  ;;  %v1457_v57 = vmul.f32 %v16059_v4, %v10190_v51 }
 0x1e0   :  { %v3335_v33 = vadd.f32 %v2823_v16, %v1959_v22  ;;  %v592_v5 = vmul.f32 %v16058_v46, %v10177_v7  ;;  %v593_v49 = vmul.f32 %v16058_v46, %v10181_v12  ;;  %v2832_v18 = vmul.f32 %v16060_v37, %v10200_v15 }
 0x1e1   :  { %v5819_v20 = vadd.f32 %v5229_v31, %v5228_v24  ;;  %v4710_v43 = vadd.f32 %v4198_v38, %v3334_v32  ;;  %v2833_v16 = vmul.f32 %v16060_v37, %v10204_v44  ;;  %v16061_v24 = vld [vmem:[#allocation133_spill] sm:$0xff] }
 0x1e2   :  { %v4711_v23 = vadd.f32 %v4199_v36, %v3335_v33  ;;  %v4208_v31 = vmul.f32 %v16061_v24, %v10212_v39  ;;  %v1968_v46 = vadd.f32 %v1456_v35, %v592_v5  ;;  %v1969_v32 = vadd.f32 %v1457_v57, %v593_v49  ;;  %v16063_v36 = vld [vmem:[#allocation63_spill] sm:$0xff]  ;;  %v23_v57 = vld [vmem:[%s15057_s0 + $0x28] sm:$0xff] }
 0x1e3   :  { %5820 = vadd.xlane.f32.xlu1 %v5819_v20  ;;  %v5222_v22 = vmax.f32 %v4710_v43, 0.0  ;;  %v4209_v38 = vmul.f32 %v16061_v24, %v10217_v6  ;;  %v586_v20 = vmul.f32 %v16062_v58, %v10177_v7  ;;  %v1450_v33 = vmul.f32 %v16063_v36, %v10184_v45 }
 0x1e4   :  { %v5223_v3 = vmax.f32 %v4711_v23, 0.0  ;;  %v3344_v2 = vadd.f32 %v2832_v18, %v1968_v46  ;;  %v3345_v4 = vadd.f32 %v2833_v16, %v1969_v32  ;;  %v587_v43 = vmul.f32 %v16062_v58, %v10181_v12  ;;  %v16064_v46 = vld [vmem:[#allocation125_spill] sm:$0xff] }
 0x1e5   :  { %v1451_v5 = vmul.f32 %v16063_v36, %v10190_v51  ;;  %v1962_v49 = vadd.f32 %v1450_v33, %v586_v20  ;;  %v2826_v35 = vmul.f32 %v16064_v46, %v10200_v15  ;;  %v4202_v16 = vmul.f32 %v9570_v27, %v10212_v39 }
 0x1e6   :  { %v5810_v17 = vadd.f32 %v5223_v3, %v5222_v22  ;;  %v4720_v37 = vadd.f32 %v4208_v31, %v3344_v2  ;;  %v4721_v13 = vadd.f32 %v4209_v38, %v3345_v4  ;;  %v2827_v3 = vmul.f32 %v16064_v46, %v10204_v44 }
 0x1e7   :  { %v1963_v18 = vadd.f32 %v1451_v5, %v587_v43  ;;  %v3338_v23 = vadd.f32 %v2826_v35, %v1962_v49  ;;  %v109_v32 = vrot.slane %v23_v57, %v16021_v25  ;;  %v113_v38 = vrot.slane %v23_v57, %v16022_v8 }
 0x1e8   :  { %5811 = vadd.xlane.f32.xlu0 %v5810_v17  ;;  %v5232_v2 = vmax.f32 %v4720_v37, 0.0  ;;  %v5233_v4 = vmax.f32 %v4721_v13, 0.0  ;;  %v4203_v17 = vmul.f32 %v9570_v27, %v10217_v6  ;;  %v989_v33 = vrot.slane %v23_v57, %v16023_v29 }
 0x1e9   :  { %v3339_v22 = vadd.f32 %v2827_v3, %v1963_v18  ;;  %v4714_v20 = vadd.f32 %v4202_v16, %v3338_v23  ;;  %v993_v37 = vrot.slane %v23_v57, %v16024_v41  ;;  %v2365_v13 = vrot.slane %v23_v57, %v15981_v30  ;;  %v16065_v16 = vld [vmem:[#allocation18_spill] sm:$0xff] }
 0x1ea   :  { %v5825_v31 = vadd.f32 %v5233_v4, %v5232_v2  ;;  %v10470_v5 = vrot.slane %v109_v32, %v16021_v25  ;;  %v2369_v49 = vrot.slane %v23_v57, %v16027_v11  ;;  %v10474_v3 = vrot.slane %v989_v33, %v16023_v29 }
 0x1eb   :  { %v4715_v43 = vadd.f32 %v4203_v17, %v3339_v22  ;;  %v5226_v35 = vmax.f32 %v4714_v20, 0.0  ;;  %v10477_v2 = vrot.slane %v993_v37, %v16023_v29  ;;  %v10480_v4 = vrot.slane %v2365_v13, %v15981_v30  ;;  %v16066_v22 = vld [vmem:[#allocation85_spill] sm:$0xff] }
 0x1ec   :  { %5826 = vadd.xlane.f32.xlu1 %v5825_v31  ;;  %v10483_v23 = vrot.slane %v113_v38, %v16021_v25  ;;  %v596_v17 = vmul.f32 %v16065_v16, %v10470_v5  ;;  %v10488_v31 = vrot.slane %v2369_v49, %v15981_v30  ;;  %v1460_v32 = vmul.f32 %v16066_v22, %v10474_v3 }
 0x1ed   :  { %v5227_v18 = vmax.f32 %v4715_v43, 0.0  ;;  %v1461_v20 = vmul.f32 %v16066_v22, %v10477_v2  ;;  %v2836_v33 = vmul.f32 %v15988_v53, %v10480_v4  ;;  %v3741_v37 = vrot.slane %v23_v57, %v15985_v26 }
 0x1ee   :  { %v597_v38 = vmul.f32 %v16065_v16, %v10483_v23  ;;  %v2837_v43 = vmul.f32 %v15988_v53, %v10488_v31  ;;  %v3745_v49 = vrot.slane %v23_v57, %v15986_v28  ;;  %v1972_v11 = vadd.f32 %v1460_v32, %v596_v17 }
 0x1ef   :  { %v5816_v13 = vadd.f32 %v5227_v18, %v5226_v35  ;;  %v10503_v30 = vrot.slane %v3741_v37, %v15985_v26  ;;  %v590_v57 = vmul.f32 %v15987_v48, %v10177_v7  ;;  %v591_v32 = vmul.f32 %v15987_v48, %v10181_v12 }
 0x1f0   :  { %v1973_v22 = vadd.f32 %v1461_v20, %v597_v38  ;;  %v10506_v41 = vrot.slane %v3745_v49, %v15985_v26  ;;  %v3348_v29 = vadd.f32 %v2836_v33, %v1972_v11  ;;  %v16067_v20 = vld [vmem:[#allocation109_spill] sm:$0xff]  ;;  %v4206_v12 = vmul.f32 %v9583_v14, %v10212_v39 }
 0x1f1   :  { %5817 = vadd.xlane.f32.xlu0 %v5816_v13  ;;  %v4212_v35 = vmul.f32 %v9443_v62, %v10503_v30  ;;  %v1454_v37 = vmul.f32 %v16067_v20, %v10184_v45  ;;  %v1455_v11 = vmul.f32 %v16067_v20, %v10190_v51  ;;  %v2831_v13 = vmul.f32 %v15915_v56, %v10204_v44  ;;  %v16068_v49 = vld [vmem:[#allocation17_spill] sm:$0xff]  ;;  %v16069_v44 = vld [vmem:[#allocation92_spill] sm:$0xff] }
 0x1f2   :  { %v3349_v18 = vadd.f32 %v2837_v43, %v1973_v22  ;;  %v4213_v16 = vmul.f32 %v9443_v62, %v10506_v41  ;;  %v2830_v22 = vmul.f32 %v15915_v56, %v10200_v15  ;;  %v4207_v45 = vmul.f32 %v9583_v14, %v10217_v6  ;;  %v16070_v39 = vld [vmem:[#allocation25_spill] sm:$0xff] }
 0x1f3   :  { %v4724_v17 = vadd.f32 %v4212_v35, %v3348_v29  ;;  %v1966_v43 = vadd.f32 %v1454_v37, %v590_v57  ;;  %v1967_v7 = vadd.f32 %v1455_v11, %v591_v32  ;;  %v600_v51 = vmul.f32 %v16068_v49, %v10470_v5 }
 0x1f4   :  { %v4725_v33 = vadd.f32 %v4213_v16, %v3349_v18  ;;  %v601_v15 = vmul.f32 %v16068_v49, %v10483_v23  ;;  %v1464_v18 = vmul.f32 %v16069_v44, %v10474_v3  ;;  %v2840_v32 = vmul.f32 %v16070_v39, %v10480_v4 }
 0x1f5   :  { %v5236_v38 = vmax.f32 %v4724_v17, 0.0  ;;  %v3342_v16 = vadd.f32 %v2830_v22, %v1966_v43  ;;  %v3343_v35 = vadd.f32 %v2831_v13, %v1967_v7  ;;  %v1465_v17 = vmul.f32 %v16069_v44, %v10477_v2 }
 0x1f6   :  { %v5237_v29 = vmax.f32 %v4725_v33, 0.0  ;;  %v2841_v6 = vmul.f32 %v16070_v39, %v10488_v31  ;;  %v1976_v33 = vadd.f32 %v1464_v18, %v600_v51  ;;  %v4216_v22 = vmul.f32 %v15923_v40, %v10503_v30 }
 0x1f7   :  { %v4718_v37 = vadd.f32 %v4206_v12, %v3342_v16  ;;  %v4719_v11 = vadd.f32 %v4207_v45, %v3343_v35  ;;  %v1977_v13 = vadd.f32 %v1465_v17, %v601_v15  ;;  %v594_v12 = vmul.f32 %v15992_v34, %v10470_v5  ;;  %v16071_v15 = vld [vmem:[#allocation78_spill] sm:$0xff] }
 0x1f8   :  { %v5831_v57 = vadd.f32 %v5237_v29, %v5236_v38  ;;  %v4217_v38 = vmul.f32 %v15923_v40, %v10506_v41  ;;  %v3352_v29 = vadd.f32 %v2840_v32, %v1976_v33  ;;  %v595_v45 = vmul.f32 %v15992_v34, %v10483_v23 }
 0x1f9   :  { %v5230_v43 = vmax.f32 %v4718_v37, 0.0  ;;  %v5231_v7 = vmax.f32 %v4719_v11, 0.0  ;;  %v3353_v44 = vadd.f32 %v2841_v6, %v1977_v13  ;;  %v1458_v51 = vmul.f32 %v15925_v61, %v10474_v3 }
 0x1fa   :  { %5832 = vadd.xlane.f32.xlu1 %v5831_v57  ;;  %v4728_v14 = vadd.f32 %v4216_v22, %v3352_v29  ;;  %v1459_v35 = vmul.f32 %v15925_v61, %v10477_v2  ;;  %v2834_v18 = vmul.f32 %v16071_v15, %v10480_v4  ;;  %v4210_v6 = vmul.f32 %v15930_v55, %v10503_v30 }
 0x1fb   :  { %v5822_v49 = vadd.f32 %v5231_v7, %v5230_v43  ;;  %v4729_v56 = vadd.f32 %v4217_v38, %v3353_v44  ;;  %v2835_v44 = vmul.f32 %v16071_v15, %v10488_v31  ;;  %v1970_v17 = vadd.f32 %v1458_v51, %v594_v12 }
 0x1fc   :  { %v5240_v16 = vmax.f32 %v4728_v14, 0.0  ;;  %v1971_v32 = vadd.f32 %v1459_v35, %v595_v45  ;;  %v4211_v37 = vmul.f32 %v15930_v55, %v10506_v41  ;;  %v604_v14 = vmul.f32 %v15993_v59, %v10470_v5 }
 0x1fd   :  { %5823 = vadd.xlane.f32.xlu0 %v5822_v49  ;;  %v5241_v57 = vmax.f32 %v4729_v56, 0.0  ;;  %v3346_v11 = vadd.f32 %v2834_v18, %v1970_v17  ;;  %v605_v33 = vmul.f32 %v15993_v59, %v10483_v23  ;;  %v1468_v22 = vmul.f32 %v15931_v19, %v10474_v3 }
 0x1fe   :  { %v3347_v56 = vadd.f32 %v2835_v44, %v1971_v32  ;;  %v1469_v13 = vmul.f32 %v15931_v19, %v10477_v2  ;;  %v2844_v38 = vmul.f32 %v15933_v9, %v10480_v4  ;;  %v2845_v43 = vmul.f32 %v15933_v9, %v10488_v31 }
 0x1ff   :  { %v5837_v49 = vadd.f32 %v5241_v57, %v5240_v16  ;;  %v4722_v7 = vadd.f32 %v4210_v6, %v3346_v11  ;;  %v1980_v29 = vadd.f32 %v1468_v22, %v604_v14  ;;  %v4220_v12 = vmul.f32 %v9445_v47, %v10503_v30 }
 0x200   :  { %v4723_v45 = vadd.f32 %v4211_v37, %v3347_v56  ;;  %v1981_v51 = vadd.f32 %v1469_v13, %v605_v33  ;;  %v4221_v16 = vmul.f32 %v9445_v47, %v10506_v41  ;;  %v598_v32 = vmul.f32 %v15994_v1, %v10470_v5 }
 0x201   :  { %5838 = vadd.xlane.f32.xlu1 %v5837_v49  ;;  %v5234_v35 = vmax.f32 %v4722_v7, 0.0  ;;  %v3356_v18 = vadd.f32 %v2844_v38, %v1980_v29  ;;  %v1462_v6 = vmul.f32 %v15935_v10, %v10474_v3  ;;  %v599_v37 = vmul.f32 %v15994_v1, %v10483_v23 }
 0x202   :  { %v5235_v44 = vmax.f32 %v4723_v45, 0.0  ;;  %v3357_v57 = vadd.f32 %v2845_v43, %v1981_v51  ;;  %v1463_v11 = vmul.f32 %v15935_v10, %v10477_v2  ;;  %v2838_v56 = vmul.f32 %v15936_v50, %v10480_v4 }
 0x203   :  { %v4732_v17 = vadd.f32 %v4220_v12, %v3356_v18  ;;  %v1974_v22 = vadd.f32 %v1462_v6, %v598_v32  ;;  %v2839_v13 = vmul.f32 %v15936_v50, %v10488_v31  ;;  %v4214_v7 = vmul.f32 %v9472_v42, %v10503_v30  ;;  %v16072_v6 = vld [vmem:[#allocation72_spill] sm:$0xff] }
 0x204   :  { %v5828_v14 = vadd.f32 %v5235_v44, %v5234_v35  ;;  %v4733_v49 = vadd.f32 %v4221_v16, %v3357_v57  ;;  %v1975_v43 = vadd.f32 %v1463_v11, %v599_v37  ;;  %v4215_v12 = vmul.f32 %v9472_v42, %v10506_v41 }
 0x205   :  { %v5244_v33 = vmax.f32 %v4732_v17, 0.0  ;;  %v3350_v29 = vadd.f32 %v2838_v56, %v1974_v22  ;;  %v608_v45 = vmul.f32 %v15995_v63, %v10470_v5  ;;  %v609_v51 = vmul.f32 %v15995_v63, %v10483_v23 }
 0x206   :  { %5829 = vadd.xlane.f32.xlu0 %v5828_v14  ;;  %v5245_v38 = vmax.f32 %v4733_v49, 0.0  ;;  %v3351_v35 = vadd.f32 %v2839_v13, %v1975_v43  ;;  %v1472_v18 = vmul.f32 %v16033_v60, %v10474_v3  ;;  %v1473_v44 = vmul.f32 %v16033_v60, %v10477_v2  ;;  %v16073_v60 = vld [vmem:[#allocation20_spill] sm:$0xff] }
 0x207   :  { %v4726_v57 = vadd.f32 %v4214_v7, %v3350_v29  ;;  %v2848_v17 = vmul.f32 %v16034_v21, %v10480_v4  ;;  %v2849_v32 = vmul.f32 %v16034_v21, %v10488_v31  ;;  %v4224_v14 = vmul.f32 %v16072_v6, %v10503_v30 }
 0x208   :  { %v5843_v16 = vadd.f32 %v5245_v38, %v5244_v33  ;;  %v4727_v49 = vadd.f32 %v4215_v12, %v3351_v35  ;;  %v1984_v37 = vadd.f32 %v1472_v18, %v608_v45  ;;  %v1985_v11 = vadd.f32 %v1473_v44, %v609_v51  ;;  %v16074_v12 = vld [vmem:[#allocation94_spill] sm:$0xff] }
 0x209   :  { %v4225_v33 = vmul.f32 %v16072_v6, %v10506_v41  ;;  %v5238_v22 = vmax.f32 %v4726_v57, 0.0  ;;  %v602_v21 = vmul.f32 %v16073_v60, %v10470_v5  ;;  %v603_v63 = vmul.f32 %v16073_v60, %v10483_v23 }
 0x20a   :  { %5844 = vadd.xlane.f32.xlu1 %v5843_v16  ;;  %v5239_v56 = vmax.f32 %v4727_v49, 0.0  ;;  %v3360_v13 = vadd.f32 %v2848_v17, %v1984_v37  ;;  %v3361_v38 = vadd.f32 %v2849_v32, %v1985_v11  ;;  %v1466_v45 = vmul.f32 %v16074_v12, %v10474_v3  ;;  %v16075_v32 = vld [vmem:[#allocation111_spill] sm:$0xff]  ;;  %v16076_v11 = vld [vmem:[#allocation41_spill] sm:$0xff] }
 0x20b   :  { %v1467_v51 = vmul.f32 %v16074_v12, %v10477_v2  ;;  %v2842_v16 = vmul.f32 %v16036_v0, %v10480_v4  ;;  %v2843_v44 = vmul.f32 %v16036_v0, %v10488_v31  ;;  %v4219_v49 = vmul.f32 %v16075_v32, %v10506_v41  ;;  %v16080_v0 = vld [vmem:[#allocation96_spill] sm:$0xff] }
 0x20c   :  { %v5834_v43 = vadd.f32 %v5239_v56, %v5238_v22  ;;  %v4736_v7 = vadd.f32 %v4224_v14, %v3360_v13  ;;  %v4737_v29 = vadd.f32 %v4225_v33, %v3361_v38  ;;  %v1978_v57 = vadd.f32 %v1466_v45, %v602_v21  ;;  %v16077_v38 = vld [vmem:[#allocation99_spill] sm:$0xff]  ;;  %v16078_v21 = vld [vmem:[#allocation124_spill] sm:$0xff] }
 0x20d   :  { %v1979_v17 = vadd.f32 %v1467_v51, %v603_v63  ;;  %v4218_v14 = vmul.f32 %v16075_v32, %v10503_v30  ;;  %v612_v33 = vmul.f32 %v16076_v11, %v10470_v5  ;;  %v613_v22 = vmul.f32 %v16076_v11, %v10483_v23 }
 0x20e   :  { %5835 = vadd.xlane.f32.xlu0 %v5834_v43  ;;  %v5248_v35 = vmax.f32 %v4736_v7, 0.0  ;;  %v5249_v18 = vmax.f32 %v4737_v29, 0.0  ;;  %v3354_v56 = vadd.f32 %v2842_v16, %v1978_v57  ;;  %v1476_v43 = vmul.f32 %v16077_v38, %v10474_v3  ;;  %v16079_v57 = vld [vmem:[#allocation36_spill] sm:$0xff] }
 0x20f   :  { %v3355_v13 = vadd.f32 %v2843_v44, %v1979_v17  ;;  %v1477_v63 = vmul.f32 %v16077_v38, %v10477_v2  ;;  %v2852_v7 = vmul.f32 %v16078_v21, %v10480_v4  ;;  %v2853_v29 = vmul.f32 %v16078_v21, %v10488_v31 }
 0x210   :  { %v5849_v37 = vadd.f32 %v5249_v18, %v5248_v35  ;;  %v4228_v45 = vmul.f32 %v16037_v52, %v10503_v30  ;;  %v4229_v51 = vmul.f32 %v16037_v52, %v10506_v41  ;;  %v4730_v16 = vadd.f32 %v4218_v14, %v3354_v56  ;;  %v16081_v14 = vld [vmem:[#allocation26_spill] sm:$0xff] }
 0x211   :  { %v4731_v35 = vadd.f32 %v4219_v49, %v3355_v13  ;;  %v1988_v18 = vadd.f32 %v1476_v43, %v612_v33  ;;  %v1989_v44 = vadd.f32 %v1477_v63, %v613_v22  ;;  %v606_v17 = vmul.f32 %v16079_v57, %v10470_v5 }
 0x212   :  { %5850 = vadd.xlane.f32.xlu1 %v5849_v37  ;;  %v5242_v37 = vmax.f32 %v4730_v16, 0.0  ;;  %v607_v21 = vmul.f32 %v16079_v57, %v10483_v23  ;;  %v1470_v12 = vmul.f32 %v16080_v0, %v10474_v3  ;;  %v1471_v52 = vmul.f32 %v16080_v0, %v10477_v2 }
 0x213   :  { %v5243_v38 = vmax.f32 %v4731_v35, 0.0  ;;  %v3364_v11 = vadd.f32 %v2852_v7, %v1988_v18  ;;  %v3365_v32 = vadd.f32 %v2853_v29, %v1989_v44  ;;  %v2846_v49 = vmul.f32 %v16081_v14, %v10480_v4  ;;  %v16082_v7 = vld [vmem:[#allocation22_spill] sm:$0xff]  ;;  %v16083_v44 = vld [vmem:[#allocation47_spill] sm:$0xff] }
 0x214   :  { %v2847_v13 = vmul.f32 %v16081_v14, %v10488_v31  ;;  %v1982_v43 = vadd.f32 %v1470_v12, %v606_v17  ;;  %v1983_v63 = vadd.f32 %v1471_v52, %v607_v21  ;;  %v4222_v29 = vmul.f32 %v16082_v7, %v10503_v30  ;;  %v16084_v12 = vld [vmem:[#allocation105_spill] sm:$0xff]  ;;  %v16087_v14 = vld [vmem:[#allocation98_spill] sm:$0xff] }
 0x215   :  { %v5840_v33 = vadd.f32 %v5243_v38, %v5242_v37  ;;  %v4740_v22 = vadd.f32 %v4228_v45, %v3364_v11  ;;  %v4741_v56 = vadd.f32 %v4229_v51, %v3365_v32  ;;  %v4223_v16 = vmul.f32 %v16082_v7, %v10506_v41  ;;  %v16085_v51 = vld [vmem:[#allocation102_spill] sm:$0xff] }
 0x216   :  { %v616_v0 = vmul.f32 %v16083_v44, %v10470_v5  ;;  %v617_v32 = vmul.f32 %v16083_v44, %v10483_v23  ;;  %v3358_v11 = vadd.f32 %v2846_v49, %v1982_v43  ;;  %v3359_v38 = vadd.f32 %v2847_v13, %v1983_v63  ;;  %v16086_v44 = vld [vmem:[#allocation42_spill] sm:$0xff] }
 0x217   :  { %5841 = vadd.xlane.f32.xlu0 %v5840_v33  ;;  %v5252_v35 = vmax.f32 %v4740_v22, 0.0  ;;  %v5253_v18 = vmax.f32 %v4741_v56, 0.0  ;;  %v1480_v52 = vmul.f32 %v16084_v12, %v10474_v3  ;;  %v1481_v21 = vmul.f32 %v16084_v12, %v10477_v2 }
 0x218   :  { %v2856_v17 = vmul.f32 %v16085_v51, %v10480_v4  ;;  %v2857_v37 = vmul.f32 %v16085_v51, %v10488_v31  ;;  %v4232_v33 = vmul.f32 %v16045_v54, %v10503_v30  ;;  %v4734_v22 = vadd.f32 %v4222_v29, %v3358_v11 }
 0x219   :  { %v5855_v45 = vadd.f32 %v5253_v18, %v5252_v35  ;;  %v4735_v56 = vadd.f32 %v4223_v16, %v3359_v38  ;;  %v1992_v49 = vadd.f32 %v1480_v52, %v616_v0  ;;  %v1993_v13 = vadd.f32 %v1481_v21, %v617_v32  ;;  %v16088_v38 = vld [vmem:[#allocation117_spill] sm:$0xff] }
 0x21a   :  { %v4233_v43 = vmul.f32 %v16045_v54, %v10506_v41  ;;  %v5246_v63 = vmax.f32 %v4734_v22, 0.0  ;;  %v610_v7 = vmul.f32 %v16086_v44, %v10470_v5  ;;  %v611_v51 = vmul.f32 %v16086_v44, %v10483_v23 }
 0x21b   :  { %5856 = vadd.xlane.f32.xlu1 %v5855_v45  ;;  %v5247_v12 = vmax.f32 %v4735_v56, 0.0  ;;  %v3368_v35 = vadd.f32 %v2856_v17, %v1992_v49  ;;  %v3369_v18 = vadd.f32 %v2857_v37, %v1993_v13  ;;  %v1474_v29 = vmul.f32 %v16087_v14, %v10474_v3  ;;  %v16089_v37 = vld [vmem:[#allocation130_spill] sm:$0xff] }
 0x21c   :  { %v1475_v0 = vmul.f32 %v16087_v14, %v10477_v2  ;;  %v2850_v52 = vmul.f32 %v16088_v38, %v10480_v4  ;;  %v2851_v17 = vmul.f32 %v16088_v38, %v10488_v31  ;;  %v4226_v22 = vmul.f32 %v16089_v37, %v10503_v30  ;;  %v16094_v14 = vld [vmem:[#allocation48_spill] sm:$0xff] }
 0x21d   :  { %v5846_v16 = vadd.f32 %v5247_v12, %v5246_v63  ;;  %v4744_v32 = vadd.f32 %v4232_v33, %v3368_v35  ;;  %v4745_v11 = vadd.f32 %v4233_v43, %v3369_v18  ;;  %v1986_v21 = vadd.f32 %v1474_v29, %v610_v7  ;;  %v16090_v12 = vld [vmem:[#allocation57_spill] sm:$0xff] }
 0x21e   :  { %v1987_v45 = vadd.f32 %v1475_v0, %v611_v51  ;;  %v4227_v13 = vmul.f32 %v16089_v37, %v10506_v41  ;;  %v620_v33 = vmul.f32 %v16090_v12, %v10470_v5  ;;  %v621_v7 = vmul.f32 %v16090_v12, %v10483_v23  ;;  %v16091_v51 = vld [vmem:[#allocation64_spill] sm:$0xff]  ;;  %v16092_v0 = vld [vmem:[#allocation59_spill] sm:$0xff] }
 0x21f   :  { %5847 = vadd.xlane.f32.xlu0 %v5846_v16  ;;  %v5256_v56 = vmax.f32 %v4744_v32, 0.0  ;;  %v5257_v49 = vmax.f32 %v4745_v11, 0.0  ;;  %v3362_v43 = vadd.f32 %v2850_v52, %v1986_v21  ;;  %v1484_v35 = vmul.f32 %v16091_v51, %v10474_v3  ;;  %v16093_v21 = vld [vmem:[#allocation131_spill] sm:$0xff] }
 0x220   :  { %v3363_v63 = vadd.f32 %v2851_v17, %v1987_v45  ;;  %v1485_v29 = vmul.f32 %v16091_v51, %v10477_v2  ;;  %v2860_v16 = vmul.f32 %v16092_v0, %v10480_v4  ;;  %v2861_v32 = vmul.f32 %v16092_v0, %v10488_v31 }
 0x221   :  { %v5861_v18 = vadd.f32 %v5257_v49, %v5256_v56  ;;  %v4738_v11 = vadd.f32 %v4226_v22, %v3362_v43  ;;  %v1996_v52 = vadd.f32 %v1484_v35, %v620_v33  ;;  %v4236_v45 = vmul.f32 %v16093_v21, %v10503_v30  ;;  %v16095_v43 = vld [vmem:[#allocation104_spill] sm:$0xff] }
 0x222   :  { %v4739_v37 = vadd.f32 %v4227_v13, %v3363_v63  ;;  %v1997_v17 = vadd.f32 %v1485_v29, %v621_v7  ;;  %v4237_v56 = vmul.f32 %v16093_v21, %v10506_v41  ;;  %v614_v44 = vmul.f32 %v16094_v14, %v10470_v5 }
 0x223   :  { %5862 = vadd.xlane.f32.xlu1 %v5861_v18  ;;  %v5250_v49 = vmax.f32 %v4738_v11, 0.0  ;;  %v3372_v51 = vadd.f32 %v2860_v16, %v1996_v52  ;;  %v615_v22 = vmul.f32 %v16094_v14, %v10483_v23  ;;  %v1478_v63 = vmul.f32 %v16095_v43, %v10474_v3  ;;  %v16096_v18 = vld [vmem:[#allocation121_spill] sm:$0xff]  ;;  %v16097_v16 = vld [vmem:[#allocation132_spill] sm:$0xff] }
 0x224   :  { %v5251_v12 = vmax.f32 %v4739_v37, 0.0  ;;  %v3373_v38 = vadd.f32 %v2861_v32, %v1997_v17  ;;  %v1479_v7 = vmul.f32 %v16095_v43, %v10477_v2  ;;  %v2854_v37 = vmul.f32 %v16096_v18, %v10480_v4  ;;  %v16098_v17 = vld [vmem:[#allocation67_spill] sm:$0xff] }
 0x225   :  { %v4748_v33 = vadd.f32 %v4236_v45, %v3372_v51  ;;  %v2855_v29 = vmul.f32 %v16096_v18, %v10488_v31  ;;  %v4230_v32 = vmul.f32 %v16097_v16, %v10503_v30  ;;  %v4231_v52 = vmul.f32 %v16097_v16, %v10506_v41 }
 0x226   :  { %v5852_v13 = vadd.f32 %v5251_v12, %v5250_v49  ;;  %v4749_v35 = vadd.f32 %v4237_v56, %v3373_v38  ;;  %v1990_v12 = vadd.f32 %v1478_v63, %v614_v44  ;;  %v1991_v51 = vadd.f32 %v1479_v7, %v615_v22  ;;  %v16099_v49 = vld [vmem:[#allocation110_spill] sm:$0xff]  ;;  %v16100_v44 = vld [vmem:[#allocation29_spill] sm:$0xff] }
 0x227   :  { %v5260_v11 = vmax.f32 %v4748_v33, 0.0  ;;  %v624_v38 = vmul.f32 %v16098_v17, %v10470_v5  ;;  %v625_v56 = vmul.f32 %v16098_v17, %v10483_v23  ;;  %v1488_v18 = vmul.f32 %v16099_v49, %v10474_v3 }
 0x228   :  { %5853 = vadd.xlane.f32.xlu0 %v5852_v13  ;;  %v5261_v45 = vmax.f32 %v4749_v35, 0.0  ;;  %v3366_v43 = vadd.f32 %v2854_v37, %v1990_v12  ;;  %v3367_v14 = vadd.f32 %v2855_v29, %v1991_v51  ;;  %v1489_v13 = vmul.f32 %v16099_v49, %v10477_v2 }
 0x229   :  { %v2864_v22 = vmul.f32 %v16100_v44, %v10480_v4  ;;  %v2000_v63 = vadd.f32 %v1488_v18, %v624_v38  ;;  %v2865_v7 = vmul.f32 %v16100_v44, %v10488_v31  ;;  %v4240_v35 = vmul.f32 %v16061_v24, %v10503_v30 }
 0x22a   :  { %v5867_v33 = vadd.f32 %v5261_v45, %v5260_v11  ;;  %v4742_v17 = vadd.f32 %v4230_v32, %v3366_v43  ;;  %v4743_v16 = vadd.f32 %v4231_v52, %v3367_v14  ;;  %v2001_v21 = vadd.f32 %v1489_v13, %v625_v56  ;;  %v24_v14 = vld [vmem:[%s15057_s0 + $0x30] sm:$0xff] }
 0x22b   :  { %v4241_v37 = vmul.f32 %v16061_v24, %v10506_v41  ;;  %v3376_v29 = vadd.f32 %v2864_v22, %v2000_v63  ;;  %v618_v18 = vmul.f32 %v16062_v58, %v10470_v5  ;;  %v619_v11 = vmul.f32 %v16062_v58, %v10483_v23 }
 0x22c   :  { %5868 = vadd.xlane.f32.xlu1 %v5867_v33  ;;  %v5254_v12 = vmax.f32 %v4742_v17, 0.0  ;;  %v5255_v51 = vmax.f32 %v4743_v16, 0.0  ;;  %v3377_v49 = vadd.f32 %v2865_v7, %v2001_v21  ;;  %v1482_v43 = vmul.f32 %v16063_v36, %v10474_v3 }
 0x22d   :  { %v4752_v0 = vadd.f32 %v4240_v35, %v3376_v29  ;;  %v1483_v16 = vmul.f32 %v16063_v36, %v10477_v2  ;;  %v2858_v21 = vmul.f32 %v16064_v46, %v10480_v4  ;;  %v2859_v38 = vmul.f32 %v16064_v46, %v10488_v31  ;;  %v16101_v35 = vld [vmem:[#allocation9_spill] sm:$0xff] }
 0x22e   :  { %v5858_v32 = vadd.f32 %v5255_v51, %v5254_v12  ;;  %v4753_v52 = vadd.f32 %v4241_v37, %v3377_v49  ;;  %v1994_v17 = vadd.f32 %v1482_v43, %v618_v18  ;;  %v4234_v56 = vmul.f32 %v9570_v27, %v10503_v30  ;;  %v16102_v37 = vld [vmem:[#allocation10_spill] sm:$0xff]  ;;  %v16103_v43 = vld [vmem:[#allocation13_spill] sm:$0xff] }
 0x22f   :  { %v5264_v45 = vmax.f32 %v4752_v0, 0.0  ;;  %v1995_v22 = vadd.f32 %v1483_v16, %v619_v11  ;;  %v4235_v49 = vmul.f32 %v9570_v27, %v10506_v41  ;;  %v117_v33 = vrot.slane %v24_v14, %v16021_v25 }
 0x230   :  { %5859 = vadd.xlane.f32.xlu0 %v5858_v32  ;;  %v5265_v13 = vmax.f32 %v4753_v52, 0.0  ;;  %v3370_v63 = vadd.f32 %v2858_v21, %v1994_v17  ;;  %v121_v7 = vrot.slane %v24_v14, %v16022_v8  ;;  %v997_v0 = vrot.slane %v24_v14, %v16101_v35 }
 0x231   :  { %v1001_v29 = vrot.slane %v24_v14, %v16102_v37  ;;  %v3371_v51 = vadd.f32 %v2859_v38, %v1995_v22  ;;  %v10760_v18 = vrot.slane %v117_v33, %v16021_v25  ;;  %v2373_v32 = vrot.slane %v24_v14, %v16103_v43 }
 0x232   :  { %v5873_v12 = vadd.f32 %v5265_v13, %v5264_v45  ;;  %v4746_v11 = vadd.f32 %v4234_v56, %v3370_v63  ;;  %v10764_v52 = vrot.slane %v121_v7, %v16021_v25  ;;  %v10767_v16 = vrot.slane %v997_v0, %v16101_v35  ;;  %v16104_v45 = vld [vmem:[#allocation18_spill] sm:$0xff]  ;;  %v16106_v7 = vld [vmem:[#allocation85_spill] sm:$0xff] }
 0x233   :  { %v10770_v21 = vrot.slane %v1001_v29, %v16101_v35  ;;  %v4747_v17 = vadd.f32 %v4235_v49, %v3371_v51  ;;  %v628_v38 = vmul.f32 %v16104_v45, %v10760_v18  ;;  %v16105_v13 = vld [vmem:[#allocation14_spill] sm:$0xff]  ;;  %v10776_v33 = vrot.slane %v2373_v32, %v16103_v43 }
 0x234   :  { %5874 = vadd.xlane.f32.xlu1 %v5873_v12  ;;  %v2377_v22 = vrot.slane %v24_v14, %v16105_v13  ;;  %v5258_v56 = vmax.f32 %v4746_v11, 0.0  ;;  %v629_v63 = vmul.f32 %v16104_v45, %v10764_v52  ;;  %v1492_v0 = vmul.f32 %v16106_v7, %v10767_v16 }
 0x235   :  { %v1493_v29 = vmul.f32 %v16106_v7, %v10770_v21  ;;  %v5259_v12 = vmax.f32 %v4747_v17, 0.0  ;;  %v2868_v51 = vmul.f32 %v15988_v53, %v10776_v33  ;;  %v3749_v32 = vrot.slane %v24_v14, %v15985_v26 }
 0x236   :  { %v10785_v49 = vrot.slane %v2377_v22, %v16103_v43  ;;  %v2004_v13 = vadd.f32 %v1492_v0, %v628_v38  ;;  %v3753_v11 = vrot.slane %v24_v14, %v15986_v28  ;;  %v622_v14 = vmul.f32 %v15987_v48, %v10470_v5  ;;  %v16108_v5 = vld [vmem:[#allocation135_spill] sm:$0xff] }
 0x237   :  { %v5864_v37 = vadd.f32 %v5259_v12, %v5258_v56  ;;  %v2005_v45 = vadd.f32 %v1493_v29, %v629_v63  ;;  %v10794_v8 = vrot.slane %v3749_v32, %v15985_v26  ;;  %v623_v38 = vmul.f32 %v15987_v48, %v10483_v23 }
 0x238   :  { %v2869_v35 = vmul.f32 %v15988_v53, %v10785_v49  ;;  %v3380_v17 = vadd.f32 %v2868_v51, %v2004_v13  ;;  %v10797_v22 = vrot.slane %v3753_v11, %v15985_v26  ;;  %v1486_v13 = vmul.f32 %v16067_v20, %v10474_v3  ;;  %v16109_v3 = vld [vmem:[#allocation17_spill] sm:$0xff] }
 0x239   :  { %5865 = vadd.xlane.f32.xlu0 %v5864_v37  ;;  %v4244_v43 = vmul.f32 %v9443_v62, %v10794_v8  ;;  %v1487_v63 = vmul.f32 %v16067_v20, %v10477_v2  ;;  %v4238_v29 = vmul.f32 %v16108_v5, %v10503_v30  ;;  %v4239_v23 = vmul.f32 %v16108_v5, %v10506_v41 }
 0x23a   :  { %v3381_v7 = vadd.f32 %v2869_v35, %v2005_v45  ;;  %v4245_v56 = vmul.f32 %v9443_v62, %v10797_v22  ;;  %v16107_v35 = vld [vmem:[#allocation103_spill] sm:$0xff]  ;;  %v1998_v51 = vadd.f32 %v1486_v13, %v622_v14  ;;  %v632_v11 = vmul.f32 %v16109_v3, %v10760_v18 }
 0x23b   :  { %v2862_v37 = vmul.f32 %v16107_v35, %v10480_v4  ;;  %v4756_v45 = vadd.f32 %v4244_v43, %v3380_v17  ;;  %v2863_v0 = vmul.f32 %v16107_v35, %v10488_v31  ;;  %v1999_v32 = vadd.f32 %v1487_v63, %v623_v38  ;;  %v16110_v43 = vld [vmem:[#allocation92_spill] sm:$0xff] }
 0x23c   :  { %v4757_v12 = vadd.f32 %v4245_v56, %v3381_v7  ;;  %v633_v4 = vmul.f32 %v16109_v3, %v10764_v52  ;;  %v1496_v17 = vmul.f32 %v16110_v43, %v10767_v16  ;;  %v1497_v31 = vmul.f32 %v16110_v43, %v10770_v21 }
 0x23d   :  { %v5268_v2 = vmax.f32 %v4756_v45, 0.0  ;;  %v3374_v35 = vadd.f32 %v2862_v37, %v1998_v51  ;;  %v3375_v20 = vadd.f32 %v2863_v0, %v1999_v32  ;;  %v2872_v41 = vmul.f32 %v16070_v39, %v10776_v33 }
 0x23e   :  { %v5269_v30 = vmax.f32 %v4757_v12, 0.0  ;;  %v2008_v7 = vadd.f32 %v1496_v17, %v632_v11  ;;  %v2009_v14 = vadd.f32 %v1497_v31, %v633_v4  ;;  %v2873_v38 = vmul.f32 %v16070_v39, %v10785_v49 }
 0x23f   :  { %v4248_v56 = vmul.f32 %v15923_v40, %v10794_v8  ;;  %v4750_v63 = vadd.f32 %v4238_v29, %v3374_v35  ;;  %v4751_v45 = vadd.f32 %v4239_v23, %v3375_v20  ;;  %v4249_v43 = vmul.f32 %v15923_v40, %v10797_v22 }
 0x240   :  { %v5879_v13 = vadd.f32 %v5269_v30, %v5268_v2  ;;  %v3384_v12 = vadd.f32 %v2872_v41, %v2008_v7  ;;  %v3385_v37 = vadd.f32 %v2873_v38, %v2009_v14  ;;  %v626_v4 = vmul.f32 %v15992_v34, %v10760_v18 }
 0x241   :  { %v5262_v0 = vmax.f32 %v4750_v63, 0.0  ;;  %v5263_v51 = vmax.f32 %v4751_v45, 0.0  ;;  %v627_v17 = vmul.f32 %v15992_v34, %v10764_v52  ;;  %v1490_v20 = vmul.f32 %v15925_v61, %v10767_v16 }
 0x242   :  { %5880 = vadd.xlane.f32.xlu1 %v5879_v13  ;;  %v4760_v32 = vadd.f32 %v4248_v56, %v3384_v12  ;;  %v4761_v11 = vadd.f32 %v4249_v43, %v3385_v37  ;;  %v1491_v35 = vmul.f32 %v15925_v61, %v10770_v21  ;;  %v2866_v29 = vmul.f32 %v16071_v15, %v10776_v33 }
 0x243   :  { %v5870_v31 = vadd.f32 %v5263_v51, %v5262_v0  ;;  %v2867_v43 = vmul.f32 %v16071_v15, %v10785_v49  ;;  %v4242_v30 = vmul.f32 %v15930_v55, %v10794_v8  ;;  %v2002_v41 = vadd.f32 %v1490_v20, %v626_v4 }
 0x244   :  { %v5272_v23 = vmax.f32 %v4760_v32, 0.0  ;;  %v5273_v2 = vmax.f32 %v4761_v11, 0.0  ;;  %v2003_v7 = vadd.f32 %v1491_v35, %v627_v17  ;;  %v4243_v14 = vmul.f32 %v15930_v55, %v10797_v22  ;;  %v10863_v32 = vpop.xlane.xlu1 %5589 }
 0x245   :  { %5871 = vadd.xlane.f32.xlu0 %v5870_v31  ;;  %v636_v38 = vmul.f32 %v15993_v59, %v10760_v18  ;;  %v637_v13 = vmul.f32 %v15993_v59, %v10764_v52  ;;  %v1500_v63 = vmul.f32 %v15931_v19, %v10767_v16  ;;  %v1501_v45 = vmul.f32 %v15931_v19, %v10770_v21 }
 0x246   :  { %v5885_v56 = vadd.f32 %v5273_v2, %v5272_v23  ;;  %v3378_v12 = vadd.f32 %v2866_v29, %v2002_v41  ;;  %v3379_v37 = vadd.f32 %v2867_v43, %v2003_v7  ;;  %v2876_v0 = vmul.f32 %v15933_v9, %v10776_v33  ;;  %16111 = vst [vmem:[#allocation93_spill] sm:$0xff] %v10863_v32 }
 0x247   :  { %v2877_v51 = vmul.f32 %v15933_v9, %v10785_v49  ;;  %v2012_v11 = vadd.f32 %v1500_v63, %v636_v38  ;;  %v2013_v4 = vadd.f32 %v1501_v45, %v637_v13  ;;  %v4252_v17 = vmul.f32 %v9445_v47, %v10794_v8 }
 0x248   :  { %5886 = vadd.xlane.f32.xlu1 %v5885_v56  ;;  %v4253_v31 = vmul.f32 %v9445_v47, %v10797_v22  ;;  %v4754_v20 = vadd.f32 %v4242_v30, %v3378_v12  ;;  %v4755_v35 = vadd.f32 %v4243_v14, %v3379_v37  ;;  %v630_v41 = vmul.f32 %v15994_v1, %v10760_v18 }
 0x249   :  { %v3388_v29 = vadd.f32 %v2876_v0, %v2012_v11  ;;  %v3389_v23 = vadd.f32 %v2877_v51, %v2013_v4  ;;  %v631_v7 = vmul.f32 %v15994_v1, %v10764_v52  ;;  %v1494_v13 = vmul.f32 %v15935_v10, %v10767_v16 }
 0x24a   :  { %v5266_v2 = vmax.f32 %v4754_v20, 0.0  ;;  %v5267_v43 = vmax.f32 %v4755_v35, 0.0  ;;  %v1495_v63 = vmul.f32 %v15935_v10, %v10770_v21  ;;  %v2870_v14 = vmul.f32 %v15936_v50, %v10776_v33  ;;  %v16113_v35 = vld [vmem:[#allocation97_spill] sm:$0xff] }
 0x24b   :  { %v4764_v38 = vadd.f32 %v4252_v17, %v3388_v29  ;;  %v4765_v56 = vadd.f32 %v4253_v31, %v3389_v23  ;;  %v2871_v45 = vmul.f32 %v15936_v50, %v10785_v49  ;;  %v4246_v12 = vmul.f32 %v9472_v42, %v10794_v8  ;;  %v16112_v17 = vld [vmem:[#allocation35_spill] sm:$0xff] }
 0x24c   :  { %v5876_v30 = vadd.f32 %v5267_v43, %v5266_v2  ;;  %v2006_v51 = vadd.f32 %v1494_v13, %v630_v41  ;;  %v2007_v11 = vadd.f32 %v1495_v63, %v631_v7  ;;  %v4247_v4 = vmul.f32 %v9472_v42, %v10797_v22  ;;  %v16116_v42 = vld [vmem:[#allocation94_spill] sm:$0xff] }
 0x24d   :  { %v5276_v37 = vmax.f32 %v4764_v38, 0.0  ;;  %v5277_v0 = vmax.f32 %v4765_v56, 0.0  ;;  %v640_v31 = vmul.f32 %v16112_v17, %v10760_v18  ;;  %v641_v20 = vmul.f32 %v16112_v17, %v10764_v52  ;;  %v16114_v38 = vld [vmem:[#allocation120_spill] sm:$0xff] }
 0x24e   :  { %5877 = vadd.xlane.f32.xlu0 %v5876_v30  ;;  %v1504_v29 = vmul.f32 %v16113_v35, %v10767_v16  ;;  %v3382_v2 = vadd.f32 %v2870_v14, %v2006_v51  ;;  %v3383_v43 = vadd.f32 %v2871_v45, %v2007_v11  ;;  %v1505_v41 = vmul.f32 %v16113_v35, %v10770_v21  ;;  %v10899_v30 = vpop.xlane.xlu1 %5598 }
 0x24f   :  { %v5891_v23 = vadd.f32 %v5277_v0, %v5276_v37  ;;  %v2880_v56 = vmul.f32 %v16114_v38, %v10776_v33  ;;  %v2881_v13 = vmul.f32 %v16114_v38, %v10785_v49  ;;  %v4256_v63 = vmul.f32 %v16072_v6, %v10794_v8  ;;  %16115 = vst [vmem:[#allocation113_spill] sm:$0xff] %v10899_v30 }
 0x250   :  { %v2016_v7 = vadd.f32 %v1504_v29, %v640_v31  ;;  %v4758_v32 = vadd.f32 %v4246_v12, %v3382_v2  ;;  %v4759_v37 = vadd.f32 %v4247_v4, %v3383_v43  ;;  %v2017_v14 = vadd.f32 %v1505_v41, %v641_v20  ;;  %v10913_v2 = vpop.xlane.xlu0 %5592 }
 0x251   :  { %5892 = vadd.xlane.f32.xlu1 %v5891_v23  ;;  %v4257_v45 = vmul.f32 %v16072_v6, %v10797_v22  ;;  %v634_v38 = vmul.f32 %v16073_v60, %v10760_v18  ;;  %v1498_v30 = vmul.f32 %v16116_v42, %v10767_v16  ;;  %v635_v12 = vmul.f32 %v16073_v60, %v10764_v52 }
 0x252   :  { %v3392_v0 = vadd.f32 %v2880_v56, %v2016_v7  ;;  %v5270_v51 = vmax.f32 %v4758_v32, 0.0  ;;  %v5271_v11 = vmax.f32 %v4759_v37, 0.0  ;;  %v3393_v31 = vadd.f32 %v2881_v13, %v2017_v14  ;;  %v16117_v32 = vld [vmem:[#allocation21_spill] sm:$0xff]  ;;  %16118 = vst [vmem:[#allocation100_spill] sm:$0xff] %v10913_v2  ;;  %v16119_v56 = vld [vmem:[#allocation111_spill] sm:$0xff] }
 0x253   :  { %v1499_v4 = vmul.f32 %v16116_v42, %v10770_v21  ;;  %v2874_v20 = vmul.f32 %v16117_v32, %v10776_v33  ;;  %v2010_v41 = vadd.f32 %v1498_v30, %v634_v38  ;;  %v2875_v7 = vmul.f32 %v16117_v32, %v10785_v49  ;;  %v16120_v14 = vld [vmem:[#allocation41_spill] sm:$0xff] }
 0x254   :  { %v4768_v29 = vadd.f32 %v4256_v63, %v3392_v0  ;;  %v5882_v35 = vadd.f32 %v5271_v11, %v5270_v51  ;;  %v4769_v17 = vadd.f32 %v4257_v45, %v3393_v31  ;;  %v4250_v13 = vmul.f32 %v16119_v56, %v10794_v8  ;;  %v16122_v31 = vld [vmem:[#allocation124_spill] sm:$0xff] }
 0x255   :  { %v2011_v63 = vadd.f32 %v1499_v4, %v635_v12  ;;  %v4251_v37 = vmul.f32 %v16119_v56, %v10797_v22  ;;  %v644_v45 = vmul.f32 %v16120_v14, %v10760_v18  ;;  %v645_v0 = vmul.f32 %v16120_v14, %v10764_v52  ;;  %v16123_v4 = vld [vmem:[#allocation75_spill] sm:$0xff]  ;;  %v10935_v56 = vpop.xlane.xlu1 %5604 }
 0x256   :  { %v5280_v23 = vmax.f32 %v4768_v29, 0.0  ;;  %5883 = vadd.xlane.f32.xlu0 %v5882_v35  ;;  %v5281_v43 = vmax.f32 %v4769_v17, 0.0  ;;  %v3386_v35 = vadd.f32 %v2874_v20, %v2010_v41  ;;  %v16121_v17 = vld [vmem:[#allocation99_spill] sm:$0xff]  ;;  %v2884_v29 = vmul.f32 %v16122_v31, %v10776_v33  ;;  %16124 = vst [vmem:[#allocation112_spill] sm:$0xff] %v10935_v56  ;;  %v16125_v56 = vld [vmem:[#allocation96_spill] sm:$0xff] }
 0x257   :  { %v1508_v38 = vmul.f32 %v16121_v17, %v10767_v16  ;;  %v1509_v30 = vmul.f32 %v16121_v17, %v10770_v21  ;;  %v3387_v11 = vadd.f32 %v2875_v7, %v2011_v63  ;;  %v2885_v12 = vmul.f32 %v16122_v31, %v10785_v49 }
 0x258   :  { %v5897_v51 = vadd.f32 %v5281_v43, %v5280_v23  ;;  %v4260_v2 = vmul.f32 %v16123_v4, %v10794_v8  ;;  %v4762_v23 = vadd.f32 %v4250_v13, %v3386_v35  ;;  %v4261_v41 = vmul.f32 %v16123_v4, %v10797_v22 }
 0x259   :  { %v2020_v20 = vadd.f32 %v1508_v38, %v644_v45  ;;  %v2021_v43 = vadd.f32 %v1509_v30, %v645_v0  ;;  %v4763_v17 = vadd.f32 %v4251_v37, %v3387_v11  ;;  %v638_v32 = vmul.f32 %v16079_v57, %v10760_v18  ;;  %v16126_v37 = vld [vmem:[#allocation26_spill] sm:$0xff] }
 0x25a   :  { %5898 = vadd.xlane.f32.xlu1 %v5897_v51  ;;  %v5274_v7 = vmax.f32 %v4762_v23, 0.0  ;;  %v639_v42 = vmul.f32 %v16079_v57, %v10764_v52  ;;  %v1502_v51 = vmul.f32 %v16125_v56, %v10767_v16  ;;  %v1503_v13 = vmul.f32 %v16125_v56, %v10770_v21 }
 0x25b   :  { %v3396_v63 = vadd.f32 %v2884_v29, %v2020_v20  ;;  %v3397_v14 = vadd.f32 %v2885_v12, %v2021_v43  ;;  %v5275_v31 = vmax.f32 %v4763_v17, 0.0  ;;  %v2878_v35 = vmul.f32 %v16126_v37, %v10776_v33  ;;  %v16127_v29 = vld [vmem:[#allocation22_spill] sm:$0xff] }
 0x25c   :  { %v2879_v38 = vmul.f32 %v16126_v37, %v10785_v49  ;;  %v2014_v11 = vadd.f32 %v1502_v51, %v638_v32  ;;  %v2015_v17 = vadd.f32 %v1503_v13, %v639_v42  ;;  %v4254_v12 = vmul.f32 %v16127_v29, %v10794_v8  ;;  %v16130_v42 = vld [vmem:[#allocation105_spill] sm:$0xff]  ;;  %v16131_v13 = vld [vmem:[#allocation102_spill] sm:$0xff] }
 0x25d   :  { %v4772_v45 = vadd.f32 %v4260_v2, %v3396_v63  ;;  %v4773_v0 = vadd.f32 %v4261_v41, %v3397_v14  ;;  %v5888_v30 = vadd.f32 %v5275_v31, %v5274_v7  ;;  %v4255_v43 = vmul.f32 %v16127_v29, %v10797_v22  ;;  %v16128_v2 = vld [vmem:[#allocation47_spill] sm:$0xff]  ;;  %v10957_v41 = vpop.xlane.xlu0 %5595  ;;  %v16133_v37 = vld [vmem:[#allocation42_spill] sm:$0xff] }
 0x25e   :  { %v648_v14 = vmul.f32 %v16128_v2, %v10760_v18  ;;  %16129 = vst [vmem:[#allocation76_spill] sm:$0xff] %v10957_v41  ;;  %v3390_v63 = vadd.f32 %v2878_v35, %v2014_v11  ;;  %v3391_v56 = vadd.f32 %v2879_v38, %v2015_v17  ;;  %v649_v32 = vmul.f32 %v16128_v2, %v10764_v52  ;;  %v10971_v11 = vpop.xlane.xlu1 %5610 }
 0x25f   :  { %v5284_v23 = vmax.f32 %v4772_v45, 0.0  ;;  %v5285_v20 = vmax.f32 %v4773_v0, 0.0  ;;  %5889 = vadd.xlane.f32.xlu0 %v5888_v30  ;;  %v1512_v31 = vmul.f32 %v16130_v42, %v10767_v16  ;;  %v1513_v51 = vmul.f32 %v16130_v42, %v10770_v21  ;;  %16132 = vst [vmem:[#allocation101_spill] sm:$0xff] %v10971_v11 }
 0x260   :  { %v2888_v45 = vmul.f32 %v16131_v13, %v10776_v33  ;;  %v2889_v0 = vmul.f32 %v16131_v13, %v10785_v49  ;;  %v4766_v41 = vadd.f32 %v4254_v12, %v3390_v63  ;;  %v4767_v30 = vadd.f32 %v4255_v43, %v3391_v56  ;;  %v16134_v12 = vld [vmem:[#allocation98_spill] sm:$0xff] }
 0x261   :  { %v5903_v7 = vadd.f32 %v5285_v20, %v5284_v23  ;;  %v2024_v35 = vadd.f32 %v1512_v31, %v648_v14  ;;  %v4264_v38 = vmul.f32 %v16045_v54, %v10794_v8  ;;  %v2025_v17 = vadd.f32 %v1513_v51, %v649_v32  ;;  %v16135_v31 = vld [vmem:[#allocation117_spill] sm:$0xff] }
 0x262   :  { %v4265_v23 = vmul.f32 %v16045_v54, %v10797_v22  ;;  %v5278_v20 = vmax.f32 %v4766_v41, 0.0  ;;  %v5279_v42 = vmax.f32 %v4767_v30, 0.0  ;;  %v642_v13 = vmul.f32 %v16133_v37, %v10760_v18 }
 0x263   :  { %5904 = vadd.xlane.f32.xlu1 %v5903_v7  ;;  %v3400_v2 = vadd.f32 %v2888_v45, %v2024_v35  ;;  %v3401_v29 = vadd.f32 %v2889_v0, %v2025_v17  ;;  %v643_v56 = vmul.f32 %v16133_v37, %v10764_v52  ;;  %v1506_v43 = vmul.f32 %v16134_v12, %v10767_v16  ;;  %v16136_v0 = vld [vmem:[#allocation130_spill] sm:$0xff]  ;;  %v10989_v35 = vpop.xlane.xlu0 %5601 }
 0x264   :  { %v5894_v14 = vadd.f32 %v5279_v42, %v5278_v20  ;;  %v1507_v32 = vmul.f32 %v16134_v12, %v10770_v21  ;;  %v2882_v41 = vmul.f32 %v16135_v31, %v10776_v33  ;;  %v2883_v45 = vmul.f32 %v16135_v31, %v10785_v49  ;;  %16137 = vst [vmem:[#allocation114_spill] sm:$0xff] %v10989_v35 }
 0x265   :  { %v4776_v63 = vadd.f32 %v4264_v38, %v3400_v2  ;;  %v4777_v7 = vadd.f32 %v4265_v23, %v3401_v29  ;;  %v2018_v51 = vadd.f32 %v1506_v43, %v642_v13  ;;  %v4258_v30 = vmul.f32 %v16136_v0, %v10794_v8  ;;  %v16138_v38 = vld [vmem:[#allocation57_spill] sm:$0xff]  ;;  %v16139_v23 = vld [vmem:[#allocation64_spill] sm:$0xff] }
 0x266   :  { %5895 = vadd.xlane.f32.xlu0 %v5894_v14  ;;  %v2019_v42 = vadd.f32 %v1507_v32, %v643_v56  ;;  %v4259_v2 = vmul.f32 %v16136_v0, %v10797_v22  ;;  %v652_v20 = vmul.f32 %v16138_v38, %v10760_v18  ;;  %v653_v13 = vmul.f32 %v16138_v38, %v10764_v52  ;;  %v16140_v56 = vld [vmem:[#allocation59_spill] sm:$0xff] }
 0x267   :  { %v5288_v17 = vmax.f32 %v4776_v63, 0.0  ;;  %v5289_v11 = vmax.f32 %v4777_v7, 0.0  ;;  %v3394_v29 = vadd.f32 %v2882_v41, %v2018_v51  ;;  %v1516_v43 = vmul.f32 %v16139_v23, %v10767_v16  ;;  %v16141_v41 = vld [vmem:[#allocation131_spill] sm:$0xff] }
 0x268   :  { %v3395_v31 = vadd.f32 %v2883_v45, %v2019_v42  ;;  %v1517_v14 = vmul.f32 %v16139_v23, %v10770_v21  ;;  %v2892_v63 = vmul.f32 %v16140_v56, %v10776_v33  ;;  %v2893_v32 = vmul.f32 %v16140_v56, %v10785_v49  ;;  %v11009_v42 = vpop.xlane.xlu1 %5616  ;;  %v16143_v56 = vld [vmem:[#allocation48_spill] sm:$0xff] }
 0x269   :  { %v5909_v35 = vadd.f32 %v5289_v11, %v5288_v17  ;;  %v4770_v0 = vadd.f32 %v4258_v30, %v3394_v29  ;;  %v2028_v7 = vadd.f32 %v1516_v43, %v652_v20  ;;  %v4268_v51 = vmul.f32 %v16141_v41, %v10794_v8  ;;  %16142 = vst [vmem:[#allocation115_spill] sm:$0xff] %v11009_v42 }
 0x26a   :  { %v4771_v38 = vadd.f32 %v4259_v2, %v3395_v31  ;;  %v2029_v12 = vadd.f32 %v1517_v14, %v653_v13  ;;  %v4269_v45 = vmul.f32 %v16141_v41, %v10797_v22  ;;  %v646_v11 = vmul.f32 %v16143_v56, %v10760_v18  ;;  %v16144_v31 = vld [vmem:[#allocation104_spill] sm:$0xff] }
 0x26b   :  { %5910 = vadd.xlane.f32.xlu1 %v5909_v35  ;;  %v5282_v23 = vmax.f32 %v4770_v0, 0.0  ;;  %v3404_v37 = vadd.f32 %v2892_v63, %v2028_v7  ;;  %v647_v17 = vmul.f32 %v16143_v56, %v10764_v52  ;;  %v1510_v2 = vmul.f32 %v16144_v31, %v10767_v16  ;;  %v16145_v0 = vld [vmem:[#allocation121_spill] sm:$0xff]  ;;  %v16146_v14 = vld [vmem:[#allocation132_spill] sm:$0xff] }
 0x26c   :  { %v5283_v54 = vmax.f32 %v4771_v38, 0.0  ;;  %v3405_v57 = vadd.f32 %v2893_v32, %v2029_v12  ;;  %v1511_v20 = vmul.f32 %v16144_v31, %v10770_v21  ;;  %v2886_v35 = vmul.f32 %v16145_v0, %v10776_v33  ;;  %v11025_v32 = vpop.xlane.xlu0 %5607 }
 0x26d   :  { %v4780_v30 = vadd.f32 %v4268_v51, %v3404_v37  ;;  %v2887_v12 = vmul.f32 %v16145_v0, %v10785_v49  ;;  %v2022_v43 = vadd.f32 %v1510_v2, %v646_v11  ;;  %v4262_v63 = vmul.f32 %v16146_v14, %v10794_v8  ;;  %16147 = vst [vmem:[#allocation73_spill] sm:$0xff] %v11025_v32  ;;  %v16149_v11 = vld [vmem:[#allocation110_spill] sm:$0xff] }
 0x26e   :  { %v5900_v29 = vadd.f32 %v5283_v54, %v5282_v23  ;;  %v4781_v13 = vadd.f32 %v4269_v45, %v3405_v57  ;;  %v2023_v37 = vadd.f32 %v1511_v20, %v647_v17  ;;  %v4263_v54 = vmul.f32 %v16146_v14, %v10797_v22  ;;  %v16148_v57 = vld [vmem:[#allocation67_spill] sm:$0xff] }
 0x26f   :  { %v5292_v38 = vmax.f32 %v4780_v30, 0.0  ;;  %v656_v23 = vmul.f32 %v16148_v57, %v10760_v18  ;;  %v657_v51 = vmul.f32 %v16148_v57, %v10764_v52  ;;  %v3398_v45 = vadd.f32 %v2886_v35, %v2022_v43  ;;  %v11043_v43 = vpop.xlane.xlu1 %5622 }
 0x270   :  { %5901 = vadd.xlane.f32.xlu0 %v5900_v29  ;;  %v5293_v7 = vmax.f32 %v4781_v13, 0.0  ;;  %v3399_v30 = vadd.f32 %v2887_v12, %v2023_v37  ;;  %v1520_v17 = vmul.f32 %v16149_v11, %v10767_v16  ;;  %v1521_v2 = vmul.f32 %v16149_v11, %v10770_v21  ;;  %16150 = vst [vmem:[#allocation74_spill] sm:$0xff] %v11043_v43  ;;  %v16154_v43 = vld [vmem:[#allocation10_spill] sm:$0xff] }
 0x271   :  { %v2896_v29 = vmul.f32 %v16100_v44, %v10776_v33  ;;  %v2897_v13 = vmul.f32 %v16100_v44, %v10785_v49  ;;  %v4272_v42 = vmul.f32 %v16061_v24, %v10794_v8  ;;  %v4774_v32 = vadd.f32 %v4262_v63, %v3398_v45 }
 0x272   :  { %v5915_v20 = vadd.f32 %v5293_v7, %v5292_v38  ;;  %v4775_v57 = vadd.f32 %v4263_v54, %v3399_v30  ;;  %v2032_v35 = vadd.f32 %v1520_v17, %v656_v23  ;;  %v2033_v12 = vadd.f32 %v1521_v2, %v657_v51 }
 0x273   :  { %v4273_v37 = vmul.f32 %v16061_v24, %v10797_v22  ;;  %v5286_v38 = vmax.f32 %v4774_v32, 0.0  ;;  %v650_v44 = vmul.f32 %v16062_v58, %v10760_v18  ;;  %v651_v0 = vmul.f32 %v16062_v58, %v10764_v52  ;;  %v25_v32 = vld [vmem:[%s15057_s0 + $0x38] sm:$0xff] }
 0x274   :  { %5916 = vadd.xlane.f32.xlu1 %v5915_v20  ;;  %v5287_v7 = vmax.f32 %v4775_v57, 0.0  ;;  %v3408_v11 = vadd.f32 %v2896_v29, %v2032_v35  ;;  %v3409_v14 = vadd.f32 %v2897_v13, %v2033_v12  ;;  %v1514_v63 = vmul.f32 %v16063_v36, %v10767_v16  ;;  %v11064_v20 = vpop.xlane.xlu0 %5613  ;;  %v16152_v35 = vld [vmem:[#allocation8_spill] sm:$0xff] }
 0x275   :  { %v1515_v45 = vmul.f32 %v16063_v36, %v10770_v21  ;;  %v2890_v30 = vmul.f32 %v16064_v46, %v10776_v33  ;;  %v2891_v17 = vmul.f32 %v16064_v46, %v10785_v49  ;;  %v4266_v2 = vmul.f32 %v9570_v27, %v10794_v8  ;;  %16151 = vst [vmem:[#allocation118_spill] sm:$0xff] %v11064_v20  ;;  %v16155_v36 = vld [vmem:[#allocation13_spill] sm:$0xff] }
 0x276   :  { %v5906_v54 = vadd.f32 %v5287_v7, %v5286_v38  ;;  %v4784_v23 = vadd.f32 %v4272_v42, %v3408_v11  ;;  %v4785_v51 = vadd.f32 %v4273_v37, %v3409_v14  ;;  %v2026_v57 = vadd.f32 %v1514_v63, %v650_v44  ;;  %v16153_v37 = vld [vmem:[#allocation9_spill] sm:$0xff] }
 0x277   :  { %v2027_v11 = vadd.f32 %v1515_v45, %v651_v0  ;;  %v4267_v29 = vmul.f32 %v9570_v27, %v10797_v22  ;;  %v125_v44 = vrot.slane %v25_v32, %v16021_v25  ;;  %v129_v12 = vrot.slane %v25_v32, %v16152_v35  ;;  %v11082_v45 = vpop.xlane.xlu1 %5628 }
 0x278   :  { %5907 = vadd.xlane.f32.xlu0 %v5906_v54  ;;  %v5296_v42 = vmax.f32 %v4784_v23, 0.0  ;;  %v5297_v14 = vmax.f32 %v4785_v51, 0.0  ;;  %v3402_v13 = vadd.f32 %v2890_v30, %v2026_v57  ;;  %v1005_v38 = vrot.slane %v25_v32, %v16153_v37  ;;  %16156 = vst [vmem:[#allocation119_spill] sm:$0xff] %v11082_v45 }
 0x279   :  { %v3403_v63 = vadd.f32 %v2891_v17, %v2027_v11  ;;  %v1009_v46 = vrot.slane %v25_v32, %v16154_v43  ;;  %v2381_v20 = vrot.slane %v25_v32, %v16155_v36  ;;  %v11074_v23 = vrot.slane %v125_v44, %v16021_v25  ;;  %v16157_v17 = vld [vmem:[#allocation14_spill] sm:$0xff] }
 0x27a   :  { %v5921_v7 = vadd.f32 %v5297_v14, %v5296_v42  ;;  %v4778_v54 = vadd.f32 %v4266_v2, %v3402_v13  ;;  %v11077_v0 = vrot.slane %v129_v12, %v16021_v25  ;;  %v11080_v51 = vrot.slane %v1005_v38, %v16153_v37  ;;  %v16158_v11 = vld [vmem:[#allocation18_spill] sm:$0xff]  ;;  %v16159_v12 = vld [vmem:[#allocation85_spill] sm:$0xff] }
 0x27b   :  { %v4779_v57 = vadd.f32 %v4267_v29, %v3403_v63  ;;  %v11085_v30 = vrot.slane %v1009_v46, %v16153_v37  ;;  %v2385_v42 = vrot.slane %v25_v32, %v16157_v17  ;;  %v11089_v2 = vrot.slane %v2381_v20, %v16155_v36 }
 0x27c   :  { %5922 = vadd.xlane.f32.xlu1 %v5921_v7  ;;  %v5290_v14 = vmax.f32 %v4778_v54, 0.0  ;;  %v660_v13 = vmul.f32 %v16158_v11, %v11074_v23  ;;  %v661_v44 = vmul.f32 %v16158_v11, %v11077_v0  ;;  %v1524_v38 = vmul.f32 %v16159_v12, %v11080_v51 }
 0x27d   :  { %v5291_v7 = vmax.f32 %v4779_v57, 0.0  ;;  %v1525_v46 = vmul.f32 %v16159_v12, %v11085_v30  ;;  %v11100_v29 = vrot.slane %v2385_v42, %v16155_v36  ;;  %v2900_v20 = vmul.f32 %v15988_v53, %v11089_v2  ;;  %v11114_v42 = vpop.xlane.xlu0 %5619 }
 0x27e   :  { %v3757_v63 = vrot.slane %v25_v32, %v15985_v26  ;;  %v3761_v54 = vrot.slane %v25_v32, %v15986_v28  ;;  %v2036_v17 = vadd.f32 %v1524_v38, %v660_v13  ;;  %16160 = vst [vmem:[#allocation60_spill] sm:$0xff] %v11114_v42  ;;  %v654_v32 = vmul.f32 %v15987_v48, %v10760_v18  ;;  %v16161_v38 = vld [vmem:[#allocation109_spill] sm:$0xff] }
 0x27f   :  { %v5912_v45 = vadd.f32 %v5291_v7, %v5290_v14  ;;  %v2037_v11 = vadd.f32 %v1525_v46, %v661_v44  ;;  %v2901_v43 = vmul.f32 %v15988_v53, %v11100_v29  ;;  %v655_v14 = vmul.f32 %v15987_v48, %v10764_v52 }
 0x280   :  { %v11109_v57 = vrot.slane %v3757_v63, %v15985_v26  ;;  %v11112_v12 = vrot.slane %v3761_v54, %v15985_v26  ;;  %v3412_v36 = vadd.f32 %v2900_v20, %v2036_v17  ;;  %v1518_v7 = vmul.f32 %v16161_v38, %v10767_v16 }
 0x281   :  { %5913 = vadd.xlane.f32.xlu0 %v5912_v45  ;;  %v3413_v37 = vadd.f32 %v2901_v43, %v2037_v11  ;;  %v1519_v45 = vmul.f32 %v16161_v38, %v10770_v21  ;;  %v16162_v43 = vld [vmem:[#allocation103_spill] sm:$0xff]  ;;  %v4270_v52 = vmul.f32 %v16108_v5, %v10794_v8  ;;  %v4271_v11 = vmul.f32 %v16108_v5, %v10797_v22 }
 0x282   :  { %v4276_v13 = vmul.f32 %v9443_v62, %v11109_v57  ;;  %v4277_v44 = vmul.f32 %v9443_v62, %v11112_v12  ;;  %v2894_v17 = vmul.f32 %v16162_v43, %v10776_v33  ;;  %v2895_v18 = vmul.f32 %v16162_v43, %v10785_v49  ;;  %v16163_v33 = vld [vmem:[#allocation92_spill] sm:$0xff] }
 0x283   :  { %v2030_v63 = vadd.f32 %v1518_v7, %v654_v32  ;;  %v2031_v54 = vadd.f32 %v1519_v45, %v655_v14  ;;  %v664_v16 = vmul.f32 %v16109_v3, %v11074_v23  ;;  %v665_v21 = vmul.f32 %v16109_v3, %v11077_v0 }
 0x284   :  { %v4788_v46 = vadd.f32 %v4276_v13, %v3412_v36  ;;  %v4789_v20 = vadd.f32 %v4277_v44, %v3413_v37  ;;  %v1528_v42 = vmul.f32 %v16163_v33, %v11080_v51  ;;  %v1529_v49 = vmul.f32 %v16163_v33, %v11085_v30 }
 0x285   :  { %v3406_v38 = vadd.f32 %v2894_v17, %v2030_v63  ;;  %v3407_v22 = vadd.f32 %v2895_v18, %v2031_v54  ;;  %v2904_v32 = vmul.f32 %v16070_v39, %v11089_v2  ;;  %v2905_v14 = vmul.f32 %v16070_v39, %v11100_v29  ;;  %v11152_v18 = vpop.xlane.xlu1 %5634 }
 0x286   :  { %v5300_v8 = vmax.f32 %v4788_v46, 0.0  ;;  %v5301_v43 = vmax.f32 %v4789_v20, 0.0  ;;  %v2040_v36 = vadd.f32 %v1528_v42, %v664_v16  ;;  %v2041_v37 = vadd.f32 %v1529_v49, %v665_v21  ;;  %16164 = vst [vmem:[#allocation65_spill] sm:$0xff] %v11152_v18 }
 0x287   :  { %v4782_v44 = vadd.f32 %v4270_v52, %v3406_v38  ;;  %v4783_v7 = vadd.f32 %v4271_v11, %v3407_v22  ;;  %v4280_v45 = vmul.f32 %v15923_v40, %v11109_v57  ;;  %v4281_v17 = vmul.f32 %v15923_v40, %v11112_v12 }
 0x288   :  { %v5927_v13 = vadd.f32 %v5301_v43, %v5300_v8  ;;  %v3416_v3 = vadd.f32 %v2904_v32, %v2040_v36  ;;  %v3417_v33 = vadd.f32 %v2905_v14, %v2041_v37  ;;  %v658_v43 = vmul.f32 %v15992_v34, %v11074_v23 }
 0x289   :  { %v5294_v42 = vmax.f32 %v4782_v44, 0.0  ;;  %v5295_v46 = vmax.f32 %v4783_v7, 0.0  ;;  %v659_v52 = vmul.f32 %v15992_v34, %v11077_v0  ;;  %v1522_v11 = vmul.f32 %v15925_v61, %v11080_v51 }
 0x28a   :  { %5928 = vadd.xlane.f32.xlu1 %v5927_v13  ;;  %v4792_v20 = vadd.f32 %v4280_v45, %v3416_v3  ;;  %v4793_v63 = vadd.f32 %v4281_v17, %v3417_v33  ;;  %v1523_v54 = vmul.f32 %v15925_v61, %v11085_v30  ;;  %v2898_v49 = vmul.f32 %v16071_v15, %v11089_v2  ;;  %v11166_v33 = vpop.xlane.xlu0 %5625 }
 0x28b   :  { %v5918_v38 = vadd.f32 %v5295_v46, %v5294_v42  ;;  %v2899_v3 = vmul.f32 %v16071_v15, %v11100_v29  ;;  %16165 = vst [vmem:[#allocation122_spill] sm:$0xff] %v11166_v33  ;;  %v2034_v8 = vadd.f32 %v1522_v11, %v658_v43  ;;  %v4274_v36 = vmul.f32 %v15930_v55, %v11109_v57  ;;  %v11182_v46 = vpop.xlane.xlu1 %5640 }
 0x28c   :  { %v5304_v16 = vmax.f32 %v4792_v20, 0.0  ;;  %v5305_v21 = vmax.f32 %v4793_v63, 0.0  ;;  %v2035_v22 = vadd.f32 %v1523_v54, %v659_v52  ;;  %v4275_v37 = vmul.f32 %v15930_v55, %v11112_v12  ;;  %16166 = vst [vmem:[#allocation123_spill] sm:$0xff] %v11182_v46 }
 0x28d   :  { %5919 = vadd.xlane.f32.xlu0 %v5918_v38  ;;  %v668_v14 = vmul.f32 %v15993_v59, %v11074_v23  ;;  %v669_v13 = vmul.f32 %v15993_v59, %v11077_v0  ;;  %v1532_v44 = vmul.f32 %v15931_v19, %v11080_v51  ;;  %v3410_v7 = vadd.f32 %v2898_v49, %v2034_v8 }
 0x28e   :  { %v5933_v32 = vadd.f32 %v5305_v21, %v5304_v16  ;;  %v3411_v45 = vadd.f32 %v2899_v3, %v2035_v22  ;;  %v1533_v17 = vmul.f32 %v15931_v19, %v11085_v30  ;;  %v2908_v42 = vmul.f32 %v15933_v9, %v11089_v2 }
 0x28f   :  { %v2044_v20 = vadd.f32 %v1532_v44, %v668_v14  ;;  %v2909_v63 = vmul.f32 %v15933_v9, %v11100_v29  ;;  %v4284_v43 = vmul.f32 %v9445_v47, %v11109_v57  ;;  %v4786_v38 = vadd.f32 %v4274_v36, %v3410_v7 }
 0x290   :  { %5934 = vadd.xlane.f32.xlu1 %v5933_v32  ;;  %v4787_v52 = vadd.f32 %v4275_v37, %v3411_v45  ;;  %v2045_v11 = vadd.f32 %v1533_v17, %v669_v13  ;;  %v4285_v54 = vmul.f32 %v9445_v47, %v11112_v12  ;;  %v662_v8 = vmul.f32 %v15994_v1, %v11074_v23 }
 0x291   :  { %v3420_v16 = vadd.f32 %v2908_v42, %v2044_v20  ;;  %v5298_v21 = vmax.f32 %v4786_v38, 0.0  ;;  %v663_v32 = vmul.f32 %v15994_v1, %v11077_v0  ;;  %v1526_v14 = vmul.f32 %v15935_v10, %v11080_v51  ;;  %v16167_v20 = vld [vmem:[#allocation108_spill] sm:$0xff] }
 0x292   :  { %v5299_v49 = vmax.f32 %v4787_v52, 0.0  ;;  %v3421_v3 = vadd.f32 %v2909_v63, %v2045_v11  ;;  %v1527_v36 = vmul.f32 %v15935_v10, %v11085_v30  ;;  %v2902_v44 = vmul.f32 %v15936_v50, %v11089_v2  ;;  %v16169_v11 = vld [vmem:[#allocation35_spill] sm:$0xff] }
 0x293   :  { %v4796_v22 = vadd.f32 %v4284_v43, %v3420_v16  ;;  %v2903_v7 = vmul.f32 %v15936_v50, %v11100_v29  ;;  %v2038_v17 = vadd.f32 %v1526_v14, %v662_v8  ;;  %v4278_v63 = vmul.f32 %v16167_v20, %v11109_v57  ;;  %v11204_v43 = vpop.xlane.xlu0 %5631  ;;  %v16171_v14 = vld [vmem:[#allocation120_spill] sm:$0xff] }
 0x294   :  { %v5924_v37 = vadd.f32 %v5299_v49, %v5298_v21  ;;  %v4797_v13 = vadd.f32 %v4285_v54, %v3421_v3  ;;  %v2039_v42 = vadd.f32 %v1527_v36, %v663_v32  ;;  %16168 = vst [vmem:[#allocation126_spill] sm:$0xff] %v11204_v43  ;;  %v4279_v52 = vmul.f32 %v16167_v20, %v11112_v12  ;;  %v16170_v3 = vld [vmem:[#allocation97_spill] sm:$0xff] }
 0x295   :  { %v5308_v45 = vmax.f32 %v4796_v22, 0.0  ;;  %v672_v54 = vmul.f32 %v16169_v11, %v11074_v23  ;;  %v673_v16 = vmul.f32 %v16169_v11, %v11077_v0  ;;  %v3414_v21 = vadd.f32 %v2902_v44, %v2038_v17  ;;  %v11222_v17 = vpop.xlane.xlu1 %5646 }
 0x296   :  { %5925 = vadd.xlane.f32.xlu0 %v5924_v37  ;;  %v5309_v38 = vmax.f32 %v4797_v13, 0.0  ;;  %v3415_v49 = vadd.f32 %v2903_v7, %v2039_v42  ;;  %v1536_v8 = vmul.f32 %v16170_v3, %v11080_v51  ;;  %v1537_v22 = vmul.f32 %v16170_v3, %v11085_v30  ;;  %16172 = vst [vmem:[#allocation77_spill] sm:$0xff] %v11222_v17 }
 0x297   :  { %v2912_v36 = vmul.f32 %v16171_v14, %v11089_v2  ;;  %v2913_v37 = vmul.f32 %v16171_v14, %v11100_v29  ;;  %v4288_v13 = vmul.f32 %v16072_v6, %v11109_v57  ;;  %v4790_v43 = vadd.f32 %v4278_v63, %v3414_v21  ;;  %v11236_v21 = vpop.xlane.xlu0 %5637 }
 0x298   :  { %v5939_v32 = vadd.f32 %v5309_v38, %v5308_v45  ;;  %v4791_v18 = vadd.f32 %v4279_v52, %v3415_v49  ;;  %v2048_v44 = vadd.f32 %v1536_v8, %v672_v54  ;;  %v2049_v7 = vadd.f32 %v1537_v22, %v673_v16  ;;  %v16173_v52 = vld [vmem:[#allocation94_spill] sm:$0xff]  ;;  %16175 = vst [vmem:[#allocation69_spill] sm:$0xff] %v11236_v21  ;;  %v16176_v8 = vld [vmem:[#allocation111_spill] sm:$0xff] }
 0x299   :  { %v4289_v42 = vmul.f32 %v16072_v6, %v11112_v12  ;;  %v5302_v45 = vmax.f32 %v4790_v43, 0.0  ;;  %v666_v20 = vmul.f32 %v16073_v60, %v11074_v23  ;;  %v667_v63 = vmul.f32 %v16073_v60, %v11077_v0  ;;  %v16174_v43 = vld [vmem:[#allocation21_spill] sm:$0xff] }
 0x29a   :  { %5940 = vadd.xlane.f32.xlu1 %v5939_v32  ;;  %v5303_v38 = vmax.f32 %v4791_v18, 0.0  ;;  %v3424_v33 = vadd.f32 %v2912_v36, %v2048_v44  ;;  %v3425_v46 = vadd.f32 %v2913_v37, %v2049_v7  ;;  %v1530_v54 = vmul.f32 %v16173_v52, %v11080_v51 }
 0x29b   :  { %v1531_v16 = vmul.f32 %v16173_v52, %v11085_v30  ;;  %v2906_v18 = vmul.f32 %v16174_v43, %v11089_v2  ;;  %v2907_v49 = vmul.f32 %v16174_v43, %v11100_v29  ;;  %v4282_v22 = vmul.f32 %v16176_v8, %v11109_v57 }
 0x29c   :  { %v5930_v3 = vadd.f32 %v5303_v38, %v5302_v45  ;;  %v4800_v11 = vadd.f32 %v4288_v13, %v3424_v33  ;;  %v4801_v14 = vadd.f32 %v4289_v42, %v3425_v46  ;;  %v2042_v32 = vadd.f32 %v1530_v54, %v666_v20  ;;  %v16177_v13 = vld [vmem:[#allocation41_spill] sm:$0xff]  ;;  %v16179_v20 = vld [vmem:[#allocation124_spill] sm:$0xff] }
 0x29d   :  { %v2043_v36 = vadd.f32 %v1531_v16, %v667_v63  ;;  %v4283_v37 = vmul.f32 %v16176_v8, %v11112_v12  ;;  %v676_v44 = vmul.f32 %v16177_v13, %v11074_v23  ;;  %v2916_v63 = vmul.f32 %v16179_v20, %v11089_v2  ;;  %v11256_v16 = vpop.xlane.xlu1 %5652 }
 0x29e   :  { %5931 = vadd.xlane.f32.xlu0 %v5930_v3  ;;  %v5312_v33 = vmax.f32 %v4800_v11, 0.0  ;;  %v5313_v46 = vmax.f32 %v4801_v14, 0.0  ;;  %v677_v3 = vmul.f32 %v16177_v13, %v11077_v0  ;;  %v16178_v11 = vld [vmem:[#allocation99_spill] sm:$0xff]  ;;  %v3418_v45 = vadd.f32 %v2906_v18, %v2042_v32  ;;  %16180 = vst [vmem:[#allocation106_spill] sm:$0xff] %v11256_v16 }
 0x29f   :  { %v1540_v14 = vmul.f32 %v16178_v11, %v11080_v51  ;;  %v1541_v42 = vmul.f32 %v16178_v11, %v11085_v30  ;;  %v3419_v38 = vadd.f32 %v2907_v49, %v2043_v36  ;;  %v2917_v54 = vmul.f32 %v16179_v20, %v11100_v29  ;;  %v16181_v36 = vld [vmem:[#allocation36_spill] sm:$0xff] }
 0x2a0   :  { %v5945_v7 = vadd.f32 %v5313_v46, %v5312_v33  ;;  %v4292_v17 = vmul.f32 %v16123_v4, %v11109_v57  ;;  %v4293_v21 = vmul.f32 %v16123_v4, %v11112_v12  ;;  %v4794_v11 = vadd.f32 %v4282_v22, %v3418_v45  ;;  %v16183_v22 = vld [vmem:[#allocation26_spill] sm:$0xff] }
 0x2a1   :  { %v2052_v33 = vadd.f32 %v1540_v14, %v676_v44  ;;  %v2053_v46 = vadd.f32 %v1541_v42, %v677_v3  ;;  %v4795_v18 = vadd.f32 %v4283_v37, %v3419_v38  ;;  %v670_v13 = vmul.f32 %v16181_v36, %v11074_v23  ;;  %v16182_v44 = vld [vmem:[#allocation96_spill] sm:$0xff] }
 0x2a2   :  { %5946 = vadd.xlane.f32.xlu1 %v5945_v7  ;;  %v5306_v8 = vmax.f32 %v4794_v11, 0.0  ;;  %v671_v7 = vmul.f32 %v16181_v36, %v11077_v0  ;;  %v1534_v3 = vmul.f32 %v16182_v44, %v11080_v51  ;;  %v1535_v16 = vmul.f32 %v16182_v44, %v11085_v30 }
 0x2a3   :  { %v3428_v49 = vadd.f32 %v2916_v63, %v2052_v33  ;;  %v3429_v32 = vadd.f32 %v2917_v54, %v2053_v46  ;;  %v5307_v20 = vmax.f32 %v4795_v18, 0.0  ;;  %v2910_v37 = vmul.f32 %v16183_v22, %v11089_v2  ;;  %v16184_v63 = vld [vmem:[#allocation22_spill] sm:$0xff] }
 0x2a4   :  { %v2046_v38 = vadd.f32 %v1534_v3, %v670_v13  ;;  %v2911_v11 = vmul.f32 %v16183_v22, %v11100_v29  ;;  %v4286_v54 = vmul.f32 %v16184_v63, %v11109_v57  ;;  %v2047_v18 = vadd.f32 %v1535_v16, %v671_v7  ;;  %v16188_v7 = vld [vmem:[#allocation102_spill] sm:$0xff] }
 0x2a5   :  { %v4804_v14 = vadd.f32 %v4292_v17, %v3428_v49  ;;  %v4805_v42 = vadd.f32 %v4293_v21, %v3429_v32  ;;  %v5936_v45 = vadd.f32 %v5307_v20, %v5306_v8  ;;  %v4287_v17 = vmul.f32 %v16184_v63, %v11112_v12  ;;  %v11278_v21 = vpop.xlane.xlu0 %5643  ;;  %v16186_v32 = vld [vmem:[#allocation47_spill] sm:$0xff]  ;;  %v16187_v20 = vld [vmem:[#allocation105_spill] sm:$0xff] }
 0x2a6   :  { %16185 = vst [vmem:[#allocation53_spill] sm:$0xff] %v11278_v21  ;;  %v3422_v49 = vadd.f32 %v2910_v37, %v2046_v38  ;;  %v680_v8 = vmul.f32 %v16186_v32, %v11074_v23  ;;  %v681_v13 = vmul.f32 %v16186_v32, %v11077_v0  ;;  %v1544_v3 = vmul.f32 %v16187_v20, %v11080_v51  ;;  %v16189_v38 = vld [vmem:[#allocation129_spill] sm:$0xff]  ;;  %v11294_v32 = vpop.xlane.xlu1 %5658 }
 0x2a7   :  { %v5316_v33 = vmax.f32 %v4804_v14, 0.0  ;;  %v5317_v46 = vmax.f32 %v4805_v42, 0.0  ;;  %5937 = vadd.xlane.f32.xlu0 %v5936_v45  ;;  %v3423_v14 = vadd.f32 %v2911_v11, %v2047_v18  ;;  %v1545_v16 = vmul.f32 %v16187_v20, %v11085_v30  ;;  %16190 = vst [vmem:[#allocation54_spill] sm:$0xff] %v11294_v32 }
 0x2a8   :  { %v2920_v42 = vmul.f32 %v16188_v7, %v11089_v2  ;;  %v4798_v21 = vadd.f32 %v4286_v54, %v3422_v49  ;;  %v2056_v45 = vadd.f32 %v1544_v3, %v680_v8  ;;  %v2921_v37 = vmul.f32 %v16188_v7, %v11100_v29  ;;  %v16191_v54 = vld [vmem:[#allocation42_spill] sm:$0xff] }
 0x2a9   :  { %v5951_v22 = vadd.f32 %v5317_v46, %v5316_v33  ;;  %v4296_v63 = vmul.f32 %v16189_v38, %v11109_v57  ;;  %v4799_v44 = vadd.f32 %v4287_v17, %v3423_v14  ;;  %v2057_v33 = vadd.f32 %v1545_v16, %v681_v13  ;;  %v16192_v7 = vld [vmem:[#allocation98_spill] sm:$0xff]  ;;  %v16193_v17 = vld [vmem:[#allocation117_spill] sm:$0xff] }
 0x2aa   :  { %v4297_v11 = vmul.f32 %v16189_v38, %v11112_v12  ;;  %v5310_v46 = vmax.f32 %v4798_v21, 0.0  ;;  %v3432_v18 = vadd.f32 %v2920_v42, %v2056_v45  ;;  %v674_v49 = vmul.f32 %v16191_v54, %v11074_v23  ;;  %v16194_v16 = vld [vmem:[#allocation130_spill] sm:$0xff] }
 0x2ab   :  { %5952 = vadd.xlane.f32.xlu1 %v5951_v22  ;;  %v5311_v20 = vmax.f32 %v4799_v44, 0.0  ;;  %v3433_v36 = vadd.f32 %v2921_v37, %v2057_v33  ;;  %v675_v8 = vmul.f32 %v16191_v54, %v11077_v0  ;;  %v1538_v32 = vmul.f32 %v16192_v7, %v11080_v51  ;;  %v16196_v54 = vld [vmem:[#allocation57_spill] sm:$0xff] }
 0x2ac   :  { %v4808_v3 = vadd.f32 %v4296_v63, %v3432_v18  ;;  %v1539_v22 = vmul.f32 %v16192_v7, %v11085_v30  ;;  %v2914_v13 = vmul.f32 %v16193_v17, %v11089_v2  ;;  %v2915_v44 = vmul.f32 %v16193_v17, %v11100_v29  ;;  %v11314_v18 = vpop.xlane.xlu0 %5649 }
 0x2ad   :  { %v5942_v21 = vadd.f32 %v5311_v20, %v5310_v46  ;;  %v4809_v14 = vadd.f32 %v4297_v11, %v3433_v36  ;;  %v4290_v42 = vmul.f32 %v16194_v16, %v11109_v57  ;;  %v2050_v37 = vadd.f32 %v1538_v32, %v674_v49  ;;  %16195 = vst [vmem:[#allocation107_spill] sm:$0xff] %v11314_v18  ;;  %v16197_v11 = vld [vmem:[#allocation64_spill] sm:$0xff]  ;;  %v16198_v49 = vld [vmem:[#allocation59_spill] sm:$0xff] }
 0x2ae   :  { %v5320_v45 = vmax.f32 %v4808_v3, 0.0  ;;  %v2051_v63 = vadd.f32 %v1539_v22, %v675_v8  ;;  %v4291_v33 = vmul.f32 %v16194_v16, %v11112_v12  ;;  %v684_v20 = vmul.f32 %v16196_v54, %v11074_v23 }
 0x2af   :  { %5943 = vadd.xlane.f32.xlu0 %v5942_v21  ;;  %v5321_v7 = vmax.f32 %v4809_v14, 0.0  ;;  %v685_v36 = vmul.f32 %v16196_v54, %v11077_v0  ;;  %v1548_v46 = vmul.f32 %v16197_v11, %v11080_v51  ;;  %v3426_v17 = vadd.f32 %v2914_v13, %v2050_v37 }
 0x2b0   :  { %v3427_v3 = vadd.f32 %v2915_v44, %v2051_v63  ;;  %v1549_v32 = vmul.f32 %v16197_v11, %v11085_v30  ;;  %v2924_v8 = vmul.f32 %v16198_v49, %v11089_v2  ;;  %v2925_v14 = vmul.f32 %v16198_v49, %v11100_v29  ;;  %v11332_v44 = vpop.xlane.xlu1 %5664 }
 0x2b1   :  { %v5957_v22 = vadd.f32 %v5321_v7, %v5320_v45  ;;  %v2060_v21 = vadd.f32 %v1548_v46, %v684_v20  ;;  %v4300_v18 = vmul.f32 %v16141_v41, %v11109_v57  ;;  %v4802_v54 = vadd.f32 %v4290_v42, %v3426_v17  ;;  %16199 = vst [vmem:[#allocation87_spill] sm:$0xff] %v11332_v44 }
 0x2b2   :  { %v4803_v16 = vadd.f32 %v4291_v33, %v3427_v3  ;;  %v2061_v38 = vadd.f32 %v1549_v32, %v685_v36  ;;  %v4301_v13 = vmul.f32 %v16141_v41, %v11112_v12  ;;  %v678_v20 = vmul.f32 %v16143_v56, %v11074_v23  ;;  %v16200_v3 = vld [vmem:[#allocation121_spill] sm:$0xff]  ;;  %v16201_v32 = vld [vmem:[#allocation132_spill] sm:$0xff] }
 0x2b3   :  { %5958 = vadd.xlane.f32.xlu1 %v5957_v22  ;;  %v3436_v37 = vadd.f32 %v2924_v8, %v2060_v21  ;;  %v5314_v63 = vmax.f32 %v4802_v54, 0.0  ;;  %v679_v46 = vmul.f32 %v16143_v56, %v11077_v0  ;;  %v1542_v17 = vmul.f32 %v16144_v31, %v11080_v51  ;;  %v11348_v22 = vpop.xlane.xlu0 %5655 }
 0x2b4   :  { %v5315_v11 = vmax.f32 %v4803_v16, 0.0  ;;  %v3437_v7 = vadd.f32 %v2925_v14, %v2061_v38  ;;  %v1543_v36 = vmul.f32 %v16144_v31, %v11085_v30  ;;  %v2918_v54 = vmul.f32 %v16200_v3, %v11089_v2  ;;  %16202 = vst [vmem:[#allocation82_spill] sm:$0xff] %v11348_v22 }
 0x2b5   :  { %v4812_v45 = vadd.f32 %v4300_v18, %v3436_v37  ;;  %v2054_v38 = vadd.f32 %v1542_v17, %v678_v20  ;;  %v2919_v18 = vmul.f32 %v16200_v3, %v11100_v29  ;;  %v4294_v8 = vmul.f32 %v16201_v32, %v11109_v57 }
 0x2b6   :  { %v5948_v42 = vadd.f32 %v5315_v11, %v5314_v63  ;;  %v4813_v33 = vadd.f32 %v4301_v13, %v3437_v7  ;;  %v2055_v11 = vadd.f32 %v1543_v36, %v679_v46  ;;  %v4295_v14 = vmul.f32 %v16201_v32, %v11112_v12  ;;  %v16203_v13 = vld [vmem:[#allocation67_spill] sm:$0xff]  ;;  %v16205_v46 = vld [vmem:[#allocation29_spill] sm:$0xff] }
 0x2b7   :  { %v5324_v16 = vmax.f32 %v4812_v45, 0.0  ;;  %v688_v37 = vmul.f32 %v16203_v13, %v11074_v23  ;;  %v3430_v63 = vadd.f32 %v2918_v54, %v2054_v38  ;;  %v689_v7 = vmul.f32 %v16203_v13, %v11077_v0  ;;  %v16204_v45 = vld [vmem:[#allocation110_spill] sm:$0xff]  ;;  %v11366_v13 = vpop.xlane.xlu1 %5670 }
 0x2b8   :  { %5949 = vadd.xlane.f32.xlu0 %v5948_v42  ;;  %v5325_v21 = vmax.f32 %v4813_v33, 0.0  ;;  %v1552_v20 = vmul.f32 %v16204_v45, %v11080_v51  ;;  %v1553_v17 = vmul.f32 %v16204_v45, %v11085_v30  ;;  %v3431_v42 = vadd.f32 %v2919_v18, %v2055_v11  ;;  %16206 = vst [vmem:[#allocation66_spill] sm:$0xff] %v11366_v13 }
 0x2b9   :  { %v2928_v33 = vmul.f32 %v16205_v46, %v11089_v2  ;;  %v2929_v36 = vmul.f32 %v16205_v46, %v11100_v29  ;;  %v4806_v22 = vadd.f32 %v4294_v8, %v3430_v63  ;;  %v4304_v38 = vmul.f32 %v16061_v24, %v11109_v57 }
 0x2ba   :  { %v5963_v44 = vadd.f32 %v5325_v21, %v5324_v16  ;;  %v2064_v32 = vadd.f32 %v1552_v20, %v688_v37  ;;  %v2065_v54 = vadd.f32 %v1553_v17, %v689_v7  ;;  %v4807_v3 = vadd.f32 %v4295_v14, %v3431_v42  ;;  %v16207_v7 = vld [vmem:[#allocation63_spill] sm:$0xff] }
 0x2bb   :  { %v4305_v16 = vmul.f32 %v16061_v24, %v11112_v12  ;;  %v5318_v18 = vmax.f32 %v4806_v22, 0.0  ;;  %v682_v46 = vmul.f32 %v16062_v58, %v11074_v23  ;;  %v683_v8 = vmul.f32 %v16062_v58, %v11077_v0  ;;  %v16211_v24 = vld [vmem:[#allocation10_spill] sm:$0xff] }
 0x2bc   :  { %5964 = vadd.xlane.f32.xlu1 %v5963_v44  ;;  %v3440_v21 = vadd.f32 %v2928_v33, %v2064_v32  ;;  %v3441_v11 = vadd.f32 %v2929_v36, %v2065_v54  ;;  %v5319_v45 = vmax.f32 %v4807_v3, 0.0  ;;  %v1546_v20 = vmul.f32 %v16207_v7, %v11080_v51  ;;  %v26_v32 = vld [vmem:[%s15057_s0 + $0x40] sm:$0xff] }
 0x2bd   :  { %v1547_v44 = vmul.f32 %v16207_v7, %v11085_v30  ;;  %v16208_v3 = vld [vmem:[#allocation125_spill] sm:$0xff]  ;;  %v4298_v42 = vmul.f32 %v9570_v27, %v11109_v57 }
 0x2be   :  { %v4816_v37 = vadd.f32 %v4304_v38, %v3440_v21  ;;  %v4817_v63 = vadd.f32 %v4305_v16, %v3441_v11  ;;  %v5954_v22 = vadd.f32 %v5319_v45, %v5318_v18  ;;  %v2922_v14 = vmul.f32 %v16208_v3, %v11089_v2  ;;  %v11387_v16 = vpop.xlane.xlu0 %5661  ;;  %v16210_v11 = vld [vmem:[#allocation9_spill] sm:$0xff] }
 0x2bf   :  { %v2923_v17 = vmul.f32 %v16208_v3, %v11100_v29  ;;  %v2058_v54 = vadd.f32 %v1546_v20, %v682_v46  ;;  %v2059_v38 = vadd.f32 %v1547_v44, %v683_v8  ;;  %16209 = vst [vmem:[#allocation127_spill] sm:$0xff] %v11387_v16  ;;  %v4299_v21 = vmul.f32 %v9570_v27, %v11112_v12  ;;  %v16212_v20 = vld [vmem:[#allocation13_spill] sm:$0xff] }
 0x2c0   :  { %v5328_v33 = vmax.f32 %v4816_v37, 0.0  ;;  %v5329_v36 = vmax.f32 %v4817_v63, 0.0  ;;  %5955 = vadd.xlane.f32.xlu0 %v5954_v22  ;;  %v133_v45 = vrot.slane %v26_v32, %v16021_v25  ;;  %v137_v18 = vrot.slane %v26_v32, %v16152_v35  ;;  %v11405_v22 = vpop.xlane.xlu1 %5676 }
 0x2c1   :  { %v1013_v13 = vrot.slane %v26_v32, %v16210_v11  ;;  %v3434_v7 = vadd.f32 %v2922_v14, %v2058_v54  ;;  %v3435_v58 = vadd.f32 %v2923_v17, %v2059_v38  ;;  %v1017_v37 = vrot.slane %v26_v32, %v16211_v24  ;;  %16213 = vst [vmem:[#allocation88_spill] sm:$0xff] %v11405_v22  ;;  %v16214_v17 = vld [vmem:[#allocation14_spill] sm:$0xff] }
 0x2c2   :  { %v5969_v3 = vadd.f32 %v5329_v36, %v5328_v33  ;;  %v11396_v46 = vrot.slane %v133_v45, %v16021_v25  ;;  %v11399_v8 = vrot.slane %v137_v18, %v16021_v25  ;;  %v2389_v44 = vrot.slane %v26_v32, %v16212_v20  ;;  %v16215_v54 = vld [vmem:[#allocation18_spill] sm:$0xff] }
 0x2c3   :  { %v11402_v63 = vrot.slane %v1013_v13, %v16210_v11  ;;  %v4810_v16 = vadd.f32 %v4298_v42, %v3434_v7  ;;  %v4811_v33 = vadd.f32 %v4299_v21, %v3435_v58  ;;  %v11408_v14 = vrot.slane %v1017_v37, %v16210_v11  ;;  %v16216_v13 = vld [vmem:[#allocation85_spill] sm:$0xff] }
 0x2c4   :  { %5970 = vadd.xlane.f32.xlu1 %v5969_v3  ;;  %v2393_v36 = vrot.slane %v26_v32, %v16214_v17  ;;  %v692_v38 = vmul.f32 %v16215_v54, %v11396_v46  ;;  %v693_v45 = vmul.f32 %v16215_v54, %v11399_v8  ;;  %v11418_v24 = vrot.slane %v2389_v44, %v16212_v20 }
 0x2c5   :  { %v1556_v18 = vmul.f32 %v16216_v13, %v11402_v63  ;;  %v5322_v3 = vmax.f32 %v4810_v16, 0.0  ;;  %v5323_v7 = vmax.f32 %v4811_v33, 0.0  ;;  %v1557_v58 = vmul.f32 %v16216_v13, %v11408_v14 }
 0x2c6   :  { %v11423_v42 = vrot.slane %v2393_v36, %v16212_v20  ;;  %v2932_v21 = vmul.f32 %v15988_v53, %v11418_v24  ;;  %v3765_v37 = vrot.slane %v26_v32, %v15985_v26  ;;  %v3769_v22 = vrot.slane %v26_v32, %v15986_v28  ;;  %v11437_v36 = vpop.xlane.xlu0 %5667 }
 0x2c7   :  { %v5960_v17 = vadd.f32 %v5323_v7, %v5322_v3  ;;  %v2068_v54 = vadd.f32 %v1556_v18, %v692_v38  ;;  %v2069_v11 = vadd.f32 %v1557_v58, %v693_v45  ;;  %16217 = vst [vmem:[#allocation83_spill] sm:$0xff] %v11437_v36  ;;  %v686_v32 = vmul.f32 %v15987_v48, %v11074_v23 }
 0x2c8   :  { %v2933_v16 = vmul.f32 %v15988_v53, %v11423_v42  ;;  %v11432_v44 = vrot.slane %v3765_v37, %v15985_v26  ;;  %v11435_v33 = vrot.slane %v3769_v22, %v15985_v26  ;;  %v687_v18 = vmul.f32 %v15987_v48, %v11077_v0  ;;  %v16218_v22 = vld [vmem:[#allocation109_spill] sm:$0xff] }
 0x2c9   :  { %5961 = vadd.xlane.f32.xlu0 %v5960_v17  ;;  %v3444_v13 = vadd.f32 %v2932_v21, %v2068_v54  ;;  %v1550_v3 = vmul.f32 %v16218_v22, %v11080_v51  ;;  %v1551_v17 = vmul.f32 %v16218_v22, %v11085_v30  ;;  %v4302_v7 = vmul.f32 %v16108_v5, %v11109_v57  ;;  %v16220_v51 = vld [vmem:[#allocation17_spill] sm:$0xff] }
 0x2ca   :  { %v3445_v20 = vadd.f32 %v2933_v16, %v2069_v11  ;;  %v4308_v38 = vmul.f32 %v9443_v62, %v11432_v44  ;;  %v4309_v45 = vmul.f32 %v9443_v62, %v11435_v33  ;;  %v16219_v11 = vld [vmem:[#allocation103_spill] sm:$0xff]  ;;  %v4303_v0 = vmul.f32 %v16108_v5, %v11112_v12 }
 0x2cb   :  { %v2926_v54 = vmul.f32 %v16219_v11, %v11089_v2  ;;  %v2927_v23 = vmul.f32 %v16219_v11, %v11100_v29  ;;  %v2062_v37 = vadd.f32 %v1550_v3, %v686_v32  ;;  %v2063_v16 = vadd.f32 %v1551_v17, %v687_v18  ;;  %v16221_v2 = vld [vmem:[#allocation92_spill] sm:$0xff] }
 0x2cc   :  { %v4820_v58 = vadd.f32 %v4308_v38, %v3444_v13  ;;  %v4821_v21 = vadd.f32 %v4309_v45, %v3445_v20  ;;  %v696_v36 = vmul.f32 %v16220_v51, %v11396_v46  ;;  %v697_v30 = vmul.f32 %v16220_v51, %v11399_v8 }
 0x2cd   :  { %v1560_v22 = vmul.f32 %v16221_v2, %v11402_v63  ;;  %v3438_v62 = vadd.f32 %v2926_v54, %v2062_v37  ;;  %v1561_v57 = vmul.f32 %v16221_v2, %v11408_v14  ;;  %v3439_v20 = vadd.f32 %v2927_v23, %v2063_v16 }
 0x2ce   :  { %v5332_v29 = vmax.f32 %v4820_v58, 0.0  ;;  %v5333_v11 = vmax.f32 %v4821_v21, 0.0  ;;  %v2936_v12 = vmul.f32 %v16070_v39, %v11418_v24  ;;  %v2937_v32 = vmul.f32 %v16070_v39, %v11423_v42  ;;  %v11475_v21 = vpop.xlane.xlu1 %5682 }
 0x2cf   :  { %v2072_v13 = vadd.f32 %v1560_v22, %v696_v36  ;;  %v4814_v45 = vadd.f32 %v4302_v7, %v3438_v62  ;;  %v2073_v18 = vadd.f32 %v1561_v57, %v697_v30  ;;  %v4312_v3 = vmul.f32 %v15923_v40, %v11432_v44  ;;  %16222 = vst [vmem:[#allocation45_spill] sm:$0xff] %v11475_v21 }
 0x2d0   :  { %v5975_v38 = vadd.f32 %v5333_v11, %v5332_v29  ;;  %v4815_v17 = vadd.f32 %v4303_v0, %v3439_v20  ;;  %v4313_v54 = vmul.f32 %v15923_v40, %v11435_v33  ;;  %v690_v11 = vmul.f32 %v15992_v34, %v11396_v46 }
 0x2d1   :  { %v3448_v58 = vadd.f32 %v2936_v12, %v2072_v13  ;;  %v5326_v36 = vmax.f32 %v4814_v45, 0.0  ;;  %v3449_v22 = vadd.f32 %v2937_v32, %v2073_v18  ;;  %v691_v7 = vmul.f32 %v15992_v34, %v11399_v8  ;;  %v11491_v45 = vpop.xlane.xlu0 %5673 }
 0x2d2   :  { %5976 = vadd.xlane.f32.xlu1 %v5975_v38  ;;  %v5327_v23 = vmax.f32 %v4815_v17, 0.0  ;;  %v1554_v0 = vmul.f32 %v15925_v61, %v11402_v63  ;;  %v1555_v16 = vmul.f32 %v15925_v61, %v11408_v14  ;;  %v2930_v57 = vmul.f32 %v16071_v15, %v11418_v24  ;;  %16223 = vst [vmem:[#allocation84_spill] sm:$0xff] %v11491_v45 }
 0x2d3   :  { %v4824_v37 = vadd.f32 %v4312_v3, %v3448_v58  ;;  %v4825_v62 = vadd.f32 %v4313_v54, %v3449_v22  ;;  %v2931_v20 = vmul.f32 %v16071_v15, %v11423_v42  ;;  %v4306_v38 = vmul.f32 %v15930_v55, %v11432_v44 }
 0x2d4   :  { %v5966_v30 = vadd.f32 %v5327_v23, %v5326_v36  ;;  %v2066_v12 = vadd.f32 %v1554_v0, %v690_v11  ;;  %v2067_v32 = vadd.f32 %v1555_v16, %v691_v7  ;;  %v4307_v18 = vmul.f32 %v15930_v55, %v11435_v33  ;;  %v11509_v0 = vpop.xlane.xlu1 %5688 }
 0x2d5   :  { %v5336_v29 = vmax.f32 %v4824_v37, 0.0  ;;  %v5337_v13 = vmax.f32 %v4825_v62, 0.0  ;;  %v700_v3 = vmul.f32 %v15993_v59, %v11396_v46  ;;  %v701_v17 = vmul.f32 %v15993_v59, %v11399_v8  ;;  %16224 = vst [vmem:[#allocation46_spill] sm:$0xff] %v11509_v0 }
 0x2d6   :  { %5967 = vadd.xlane.f32.xlu0 %v5966_v30  ;;  %v1564_v58 = vmul.f32 %v15931_v19, %v11402_v63  ;;  %v3442_v36 = vadd.f32 %v2930_v57, %v2066_v12  ;;  %v3443_v22 = vadd.f32 %v2931_v20, %v2067_v32  ;;  %v1565_v23 = vmul.f32 %v15931_v19, %v11408_v14 }
 0x2d7   :  { %v5981_v54 = vadd.f32 %v5337_v13, %v5336_v29  ;;  %v2940_v11 = vmul.f32 %v15933_v9, %v11418_v24  ;;  %v2941_v62 = vmul.f32 %v15933_v9, %v11423_v42  ;;  %v4316_v7 = vmul.f32 %v9445_v47, %v11432_v44 }
 0x2d8   :  { %v2076_v37 = vadd.f32 %v1564_v58, %v700_v3  ;;  %v4818_v16 = vadd.f32 %v4306_v38, %v3442_v36  ;;  %v4819_v30 = vadd.f32 %v4307_v18, %v3443_v22  ;;  %v2077_v29 = vadd.f32 %v1565_v23, %v701_v17  ;;  %v11545_v0 = vpop.xlane.xlu1 %5694 }
 0x2d9   :  { %5982 = vadd.xlane.f32.xlu1 %v5981_v54  ;;  %v4317_v57 = vmul.f32 %v9445_v47, %v11435_v33  ;;  %v694_v58 = vmul.f32 %v15994_v1, %v11396_v46  ;;  %v695_v21 = vmul.f32 %v15994_v1, %v11399_v8  ;;  %v1558_v54 = vmul.f32 %v15935_v10, %v11402_v63 }
 0x2da   :  { %v3452_v20 = vadd.f32 %v2940_v11, %v2076_v37  ;;  %v5330_v13 = vmax.f32 %v4818_v16, 0.0  ;;  %v5331_v12 = vmax.f32 %v4819_v30, 0.0  ;;  %v3453_v32 = vadd.f32 %v2941_v62, %v2077_v29  ;;  %v16225_v11 = vld [vmem:[#allocation108_spill] sm:$0xff]  ;;  %16230 = vst [vmem:[#allocation33_spill] sm:$0xff] %v11545_v0 }
 0x2db   :  { %v1559_v17 = vmul.f32 %v15935_v10, %v11408_v14  ;;  %v2934_v36 = vmul.f32 %v15936_v50, %v11418_v24  ;;  %v2070_v23 = vadd.f32 %v1558_v54, %v694_v58  ;;  %v2935_v37 = vmul.f32 %v15936_v50, %v11423_v42 }
 0x2dc   :  { %v4828_v3 = vadd.f32 %v4316_v7, %v3452_v20  ;;  %v5972_v38 = vadd.f32 %v5331_v12, %v5330_v13  ;;  %v4829_v18 = vadd.f32 %v4317_v57, %v3453_v32  ;;  %v4310_v62 = vmul.f32 %v16225_v11, %v11432_v44  ;;  %v11527_v7 = vpop.xlane.xlu0 %5679  ;;  %v16227_v57 = vld [vmem:[#allocation35_spill] sm:$0xff]  ;;  %v16228_v32 = vld [vmem:[#allocation97_spill] sm:$0xff] }
 0x2dd   :  { %16226 = vst [vmem:[#allocation43_spill] sm:$0xff] %v11527_v7  ;;  %v2071_v30 = vadd.f32 %v1559_v17, %v695_v21  ;;  %v4311_v29 = vmul.f32 %v16225_v11, %v11435_v33  ;;  %v704_v20 = vmul.f32 %v16227_v57, %v11396_v46  ;;  %v3446_v13 = vadd.f32 %v2934_v36, %v2070_v23  ;;  %v16229_v21 = vld [vmem:[#allocation120_spill] sm:$0xff] }
 0x2de   :  { %v5340_v22 = vmax.f32 %v4828_v3, 0.0  ;;  %5973 = vadd.xlane.f32.xlu0 %v5972_v38  ;;  %v5341_v16 = vmax.f32 %v4829_v18, 0.0  ;;  %v705_v12 = vmul.f32 %v16227_v57, %v11399_v8  ;;  %v1568_v3 = vmul.f32 %v16228_v32, %v11402_v63 }
 0x2df   :  { %v1569_v58 = vmul.f32 %v16228_v32, %v11408_v14  ;;  %v3447_v38 = vadd.f32 %v2935_v37, %v2071_v30  ;;  %v2944_v18 = vmul.f32 %v16229_v21, %v11418_v24  ;;  %v2945_v17 = vmul.f32 %v16229_v21, %v11423_v42 }
 0x2e0   :  { %v5987_v54 = vadd.f32 %v5341_v16, %v5340_v22  ;;  %v4822_v7 = vadd.f32 %v4310_v62, %v3446_v13  ;;  %v2080_v45 = vadd.f32 %v1568_v3, %v704_v20  ;;  %v4320_v23 = vmul.f32 %v16072_v6, %v11432_v44 }
 0x2e1   :  { %v2081_v36 = vadd.f32 %v1569_v58, %v705_v12  ;;  %v4823_v57 = vadd.f32 %v4311_v29, %v3447_v38  ;;  %v4321_v22 = vmul.f32 %v16072_v6, %v11435_v33  ;;  %v698_v62 = vmul.f32 %v16073_v60, %v11396_v46  ;;  %v11559_v58 = vpop.xlane.xlu0 %5685 }
 0x2e2   :  { %5988 = vadd.xlane.f32.xlu1 %v5987_v54  ;;  %v5334_v37 = vmax.f32 %v4822_v7, 0.0  ;;  %v3456_v16 = vadd.f32 %v2944_v18, %v2080_v45  ;;  %v1562_v20 = vmul.f32 %v16173_v52, %v11402_v63  ;;  %v699_v12 = vmul.f32 %v16073_v60, %v11399_v8  ;;  %16231 = vst [vmem:[#allocation34_spill] sm:$0xff] %v11559_v58  ;;  %v16237_v58 = vld [vmem:[#allocation36_spill] sm:$0xff] }
 0x2e3   :  { %v3457_v30 = vadd.f32 %v2945_v17, %v2081_v36  ;;  %v5335_v32 = vmax.f32 %v4823_v57, 0.0  ;;  %v1563_v29 = vmul.f32 %v16173_v52, %v11408_v14  ;;  %v2938_v45 = vmul.f32 %v16174_v43, %v11418_v24 }
 0x2e4   :  { %v4832_v11 = vadd.f32 %v4320_v23, %v3456_v16  ;;  %v2074_v3 = vadd.f32 %v1562_v20, %v698_v62  ;;  %v2939_v38 = vmul.f32 %v16174_v43, %v11423_v42  ;;  %v16234_v16 = vld [vmem:[#allocation99_spill] sm:$0xff]  ;;  %v16235_v20 = vld [vmem:[#allocation124_spill] sm:$0xff] }
 0x2e5   :  { %v4833_v50 = vadd.f32 %v4321_v22, %v3457_v30  ;;  %v5978_v13 = vadd.f32 %v5335_v32, %v5334_v37  ;;  %v2075_v54 = vadd.f32 %v1563_v29, %v699_v12  ;;  %v16232_v32 = vld [vmem:[#allocation111_spill] sm:$0xff]  ;;  %v16233_v22 = vld [vmem:[#allocation41_spill] sm:$0xff]  ;;  %v1572_v30 = vmul.f32 %v16234_v16, %v11402_v63  ;;  %v11577_v12 = vpop.xlane.xlu1 %5700 }
 0x2e6   :  { %v5344_v7 = vmax.f32 %v4832_v11, 0.0  ;;  %v4314_v18 = vmul.f32 %v16232_v32, %v11432_v44  ;;  %v4315_v17 = vmul.f32 %v16232_v32, %v11435_v33  ;;  %v3450_v23 = vadd.f32 %v2938_v45, %v2074_v3  ;;  %16236 = vst [vmem:[#allocation30_spill] sm:$0xff] %v11577_v12 }
 0x2e7   :  { %v5345_v57 = vmax.f32 %v4833_v50, 0.0  ;;  %5979 = vadd.xlane.f32.xlu0 %v5978_v13  ;;  %v708_v11 = vmul.f32 %v16233_v22, %v11396_v46  ;;  %v709_v50 = vmul.f32 %v16233_v22, %v11399_v8  ;;  %v3451_v37 = vadd.f32 %v2939_v38, %v2075_v54 }
 0x2e8   :  { %v1573_v62 = vmul.f32 %v16234_v16, %v11408_v14  ;;  %v2948_v13 = vmul.f32 %v16235_v20, %v11418_v24  ;;  %v4826_v29 = vadd.f32 %v4314_v18, %v3450_v23  ;;  %v2949_v45 = vmul.f32 %v16235_v20, %v11423_v42  ;;  %v16238_v23 = vld [vmem:[#allocation96_spill] sm:$0xff] }
 0x2e9   :  { %v5993_v36 = vadd.f32 %v5345_v57, %v5344_v7  ;;  %v4324_v7 = vmul.f32 %v16123_v4, %v11432_v44  ;;  %v4827_v57 = vadd.f32 %v4315_v17, %v3451_v37  ;;  %v2084_v3 = vadd.f32 %v1572_v30, %v708_v11  ;;  %v16239_v11 = vld [vmem:[#allocation26_spill] sm:$0xff] }
 0x2ea   :  { %v2085_v54 = vadd.f32 %v1573_v62, %v709_v50  ;;  %v4325_v38 = vmul.f32 %v16123_v4, %v11435_v33  ;;  %v5338_v0 = vmax.f32 %v4826_v29, 0.0  ;;  %v702_v16 = vmul.f32 %v16237_v58, %v11396_v46  ;;  %v11603_v4 = vpop.xlane.xlu0 %5691 }
 0x2eb   :  { %5994 = vadd.xlane.f32.xlu1 %v5993_v36  ;;  %v5339_v22 = vmax.f32 %v4827_v57, 0.0  ;;  %v3460_v12 = vadd.f32 %v2948_v13, %v2084_v3  ;;  %v703_v18 = vmul.f32 %v16237_v58, %v11399_v8  ;;  %v1566_v20 = vmul.f32 %v16238_v23, %v11402_v63  ;;  %v16240_v13 = vld [vmem:[#allocation22_spill] sm:$0xff]  ;;  %v16241_v58 = vld [vmem:[#allocation47_spill] sm:$0xff]  ;;  %16242 = vst [vmem:[#allocation27_spill] sm:$0xff] %v11603_v4 }
 0x2ec   :  { %v3461_v36 = vadd.f32 %v2949_v45, %v2085_v54  ;;  %v1567_v17 = vmul.f32 %v16238_v23, %v11408_v14  ;;  %v2942_v50 = vmul.f32 %v16239_v11, %v11418_v24  ;;  %v2943_v37 = vmul.f32 %v16239_v11, %v11423_v42 }
 0x2ed   :  { %v5984_v30 = vadd.f32 %v5339_v22, %v5338_v0  ;;  %v4836_v62 = vadd.f32 %v4324_v7, %v3460_v12  ;;  %v4318_v45 = vmul.f32 %v16240_v13, %v11432_v44  ;;  %v2078_v57 = vadd.f32 %v1566_v20, %v702_v16  ;;  %v16243_v22 = vld [vmem:[#allocation105_spill] sm:$0xff] }
 0x2ee   :  { %v4837_v29 = vadd.f32 %v4325_v38, %v3461_v36  ;;  %v2079_v3 = vadd.f32 %v1567_v17, %v703_v18  ;;  %v4319_v54 = vmul.f32 %v16240_v13, %v11435_v33  ;;  %v712_v23 = vmul.f32 %v16241_v58, %v11396_v46  ;;  %v16244_v38 = vld [vmem:[#allocation102_spill] sm:$0xff] }
 0x2ef   :  { %5985 = vadd.xlane.f32.xlu0 %v5984_v30  ;;  %v5348_v32 = vmax.f32 %v4836_v62, 0.0  ;;  %v713_v0 = vmul.f32 %v16241_v58, %v11399_v8  ;;  %v1576_v12 = vmul.f32 %v16243_v22, %v11402_v63  ;;  %v3454_v7 = vadd.f32 %v2942_v50, %v2078_v57  ;;  %v16245_v62 = vld [vmem:[#allocation129_spill] sm:$0xff] }
 0x2f0   :  { %v5349_v43 = vmax.f32 %v4837_v29, 0.0  ;;  %v3455_v16 = vadd.f32 %v2943_v37, %v2079_v3  ;;  %v1577_v20 = vmul.f32 %v16243_v22, %v11408_v14  ;;  %v2952_v36 = vmul.f32 %v16244_v38, %v11418_v24  ;;  %v11619_v37 = vpop.xlane.xlu1 %5706 }
 0x2f1   :  { %v2088_v17 = vadd.f32 %v1576_v12, %v712_v23  ;;  %v2953_v30 = vmul.f32 %v16244_v38, %v11423_v42  ;;  %v4328_v29 = vmul.f32 %v16245_v62, %v11432_v44  ;;  %v4830_v4 = vadd.f32 %v4318_v45, %v3454_v7  ;;  %16246 = vst [vmem:[#allocation86_spill] sm:$0xff] %v11619_v37  ;;  %v16248_v45 = vld [vmem:[#allocation98_spill] sm:$0xff] }
 0x2f2   :  { %v5999_v18 = vadd.f32 %v5349_v43, %v5348_v32  ;;  %v4831_v58 = vadd.f32 %v4319_v54, %v3455_v16  ;;  %v2089_v13 = vadd.f32 %v1577_v20, %v713_v0  ;;  %v4329_v50 = vmul.f32 %v16245_v62, %v11435_v33  ;;  %v16247_v32 = vld [vmem:[#allocation42_spill] sm:$0xff]  ;;  %v16249_v20 = vld [vmem:[#allocation117_spill] sm:$0xff] }
 0x2f3   :  { %v3464_v57 = vadd.f32 %v2952_v36, %v2088_v17  ;;  %v5342_v3 = vmax.f32 %v4830_v4, 0.0  ;;  %v706_v23 = vmul.f32 %v16247_v32, %v11396_v46  ;;  %v707_v38 = vmul.f32 %v16247_v32, %v11399_v8  ;;  %v16250_v17 = vld [vmem:[#allocation130_spill] sm:$0xff] }
 0x2f4   :  { %6000 = vadd.xlane.f32.xlu1 %v5999_v18  ;;  %v5343_v22 = vmax.f32 %v4831_v58, 0.0  ;;  %v3465_v43 = vadd.f32 %v2953_v30, %v2089_v13  ;;  %v1570_v54 = vmul.f32 %v16248_v45, %v11402_v63  ;;  %v1571_v0 = vmul.f32 %v16248_v45, %v11408_v14 }
 0x2f5   :  { %v4840_v12 = vadd.f32 %v4328_v29, %v3464_v57  ;;  %v2946_v4 = vmul.f32 %v16249_v20, %v11418_v24  ;;  %v2947_v58 = vmul.f32 %v16249_v20, %v11423_v42  ;;  %v4322_v30 = vmul.f32 %v16250_v17, %v11432_v44  ;;  %v11635_v29 = vpop.xlane.xlu0 %5697 }
 0x2f6   :  { %v5990_v7 = vadd.f32 %v5343_v22, %v5342_v3  ;;  %v4841_v16 = vadd.f32 %v4329_v50, %v3465_v43  ;;  %v2082_v36 = vadd.f32 %v1570_v54, %v706_v23  ;;  %v2083_v18 = vadd.f32 %v1571_v0, %v707_v38  ;;  %16251 = vst [vmem:[#allocation28_spill] sm:$0xff] %v11635_v29  ;;  %v16252_v50 = vld [vmem:[#allocation57_spill] sm:$0xff]  ;;  %v16253_v38 = vld [vmem:[#allocation64_spill] sm:$0xff] }
 0x2f7   :  { %v5352_v13 = vmax.f32 %v4840_v12, 0.0  ;;  %v4323_v22 = vmul.f32 %v16250_v17, %v11435_v33  ;;  %v716_v3 = vmul.f32 %v16252_v50, %v11396_v46  ;;  %v717_v43 = vmul.f32 %v16252_v50, %v11399_v8 }
 0x2f8   :  { %5991 = vadd.xlane.f32.xlu0 %v5990_v7  ;;  %v5353_v57 = vmax.f32 %v4841_v16, 0.0  ;;  %v3458_v37 = vadd.f32 %v2946_v4, %v2082_v36  ;;  %v3459_v12 = vadd.f32 %v2947_v58, %v2083_v18  ;;  %v1580_v23 = vmul.f32 %v16253_v38, %v11402_v63  ;;  %v11653_v36 = vpop.xlane.xlu1 %5712 }
 0x2f9   :  { %v1581_v54 = vmul.f32 %v16253_v38, %v11408_v14  ;;  %v2956_v7 = vmul.f32 %v16198_v49, %v11418_v24  ;;  %v2957_v16 = vmul.f32 %v16198_v49, %v11423_v42  ;;  %v4332_v29 = vmul.f32 %v16141_v41, %v11432_v44  ;;  %16254 = vst [vmem:[#allocation37_spill] sm:$0xff] %v11653_v36 }
 0x2fa   :  { %v6005_v0 = vadd.f32 %v5353_v57, %v5352_v13  ;;  %v4834_v17 = vadd.f32 %v4322_v30, %v3458_v37  ;;  %v4835_v50 = vadd.f32 %v4323_v22, %v3459_v12  ;;  %v2092_v4 = vadd.f32 %v1580_v23, %v716_v3 }
 0x2fb   :  { %v2093_v58 = vadd.f32 %v1581_v54, %v717_v43  ;;  %v4333_v18 = vmul.f32 %v16141_v41, %v11435_v33  ;;  %v710_v49 = vmul.f32 %v16143_v56, %v11396_v46  ;;  %v711_v45 = vmul.f32 %v16143_v56, %v11399_v8  ;;  %v16256_v54 = vld [vmem:[#allocation132_spill] sm:$0xff] }
 0x2fc   :  { %6006 = vadd.xlane.f32.xlu1 %v6005_v0  ;;  %v5346_v13 = vmax.f32 %v4834_v17, 0.0  ;;  %v5347_v57 = vmax.f32 %v4835_v50, 0.0  ;;  %v3468_v38 = vadd.f32 %v2956_v7, %v2092_v4  ;;  %v1574_v37 = vmul.f32 %v16144_v31, %v11402_v63  ;;  %v16255_v17 = vld [vmem:[#allocation121_spill] sm:$0xff]  ;;  %v11671_v7 = vpop.xlane.xlu0 %5703 }
 0x2fd   :  { %v3469_v20 = vadd.f32 %v2957_v16, %v2093_v58  ;;  %v1575_v43 = vmul.f32 %v16144_v31, %v11408_v14  ;;  %v2950_v50 = vmul.f32 %v16255_v17, %v11418_v24  ;;  %v2951_v23 = vmul.f32 %v16255_v17, %v11423_v42  ;;  %16257 = vst [vmem:[#allocation38_spill] sm:$0xff] %v11671_v7 }
 0x2fe   :  { %v5996_v30 = vadd.f32 %v5347_v57, %v5346_v13  ;;  %v4844_v22 = vadd.f32 %v4332_v29, %v3468_v38  ;;  %v2086_v12 = vadd.f32 %v1574_v37, %v710_v49  ;;  %v4326_v0 = vmul.f32 %v16256_v54, %v11432_v44  ;;  %v16258_v49 = vld [vmem:[#allocation67_spill] sm:$0xff]  ;;  %v16259_v13 = vld [vmem:[#allocation110_spill] sm:$0xff] }
 0x2ff   :  { %v4845_v3 = vadd.f32 %v4333_v18, %v3469_v20  ;;  %v2087_v29 = vadd.f32 %v1575_v43, %v711_v45  ;;  %v4327_v20 = vmul.f32 %v16256_v54, %v11435_v33  ;;  %v720_v58 = vmul.f32 %v16258_v49, %v11396_v46  ;;  %v16260_v45 = vld [vmem:[#allocation29_spill] sm:$0xff] }
 0x300   :  { %5997 = vadd.xlane.f32.xlu0 %v5996_v30  ;;  %v5356_v16 = vmax.f32 %v4844_v22, 0.0  ;;  %v3462_v38 = vadd.f32 %v2950_v50, %v2086_v12  ;;  %v721_v18 = vmul.f32 %v16258_v49, %v11399_v8  ;;  %v1584_v57 = vmul.f32 %v16259_v13, %v11402_v63  ;;  %v16261_v50 = vld [vmem:[#allocation133_spill] sm:$0xff]  ;;  %v11689_v49 = vpop.xlane.xlu1 %5718 }
 0x301   :  { %v5357_v4 = vmax.f32 %v4845_v3, 0.0  ;;  %v3463_v36 = vadd.f32 %v2951_v23, %v2087_v29  ;;  %v1585_v30 = vmul.f32 %v16259_v13, %v11408_v14  ;;  %v2960_v22 = vmul.f32 %v16260_v45, %v11418_v24  ;;  %16262 = vst [vmem:[#allocation128_spill] sm:$0xff] %v11689_v49 }
 0x302   :  { %v4838_v3 = vadd.f32 %v4326_v0, %v3462_v38  ;;  %v2096_v43 = vadd.f32 %v1584_v57, %v720_v58  ;;  %v2961_v12 = vmul.f32 %v16260_v45, %v11423_v42  ;;  %v4336_v7 = vmul.f32 %v16261_v50, %v11432_v44  ;;  %v16263_v0 = vld [vmem:[#allocation58_spill] sm:$0xff]  ;;  %v16264_v45 = vld [vmem:[#allocation63_spill] sm:$0xff] }
 0x303   :  { %v6011_v37 = vadd.f32 %v5357_v4, %v5356_v16  ;;  %v4839_v54 = vadd.f32 %v4327_v20, %v3463_v36  ;;  %v2097_v16 = vadd.f32 %v1585_v30, %v721_v18  ;;  %v4337_v23 = vmul.f32 %v16261_v50, %v11435_v33  ;;  %v27_v20 = vld [vmem:[%s15057_s0 + $0x48] sm:$0xff] }
 0x304   :  { %v5350_v4 = vmax.f32 %v4838_v3, 0.0  ;;  %v3472_v29 = vadd.f32 %v2960_v22, %v2096_v43  ;;  %v714_v38 = vmul.f32 %v16263_v0, %v11396_v46  ;;  %v715_v57 = vmul.f32 %v16263_v0, %v11399_v8 }
 0x305   :  { %6012 = vadd.xlane.f32.xlu1 %v6011_v37  ;;  %v5351_v13 = vmax.f32 %v4839_v54, 0.0  ;;  %v3473_v17 = vadd.f32 %v2961_v12, %v2097_v16  ;;  %v1578_v49 = vmul.f32 %v16264_v45, %v11402_v63  ;;  %v1579_v36 = vmul.f32 %v16264_v45, %v11408_v14  ;;  %v16265_v37 = vld [vmem:[#allocation125_spill] sm:$0xff]  ;;  %v11710_v16 = vpop.xlane.xlu0 %5709 }
 0x306   :  { %v4848_v58 = vadd.f32 %v4336_v7, %v3472_v29  ;;  %v2954_v30 = vmul.f32 %v16265_v37, %v11418_v24  ;;  %v2955_v7 = vmul.f32 %v16265_v37, %v11423_v42  ;;  %v4330_v12 = vmul.f32 %v9570_v27, %v11432_v44  ;;  %16266 = vst [vmem:[#allocation49_spill] sm:$0xff] %v11710_v16  ;;  %v16267_v37 = vld [vmem:[#allocation9_spill] sm:$0xff] }
 0x307   :  { %v6002_v18 = vadd.f32 %v5351_v13, %v5350_v4  ;;  %v4849_v54 = vadd.f32 %v4337_v23, %v3473_v17  ;;  %v2090_v3 = vadd.f32 %v1578_v49, %v714_v38  ;;  %v2091_v43 = vadd.f32 %v1579_v36, %v715_v57  ;;  %v16268_v49 = vld [vmem:[#allocation10_spill] sm:$0xff] }
 0x308   :  { %v5360_v22 = vmax.f32 %v4848_v58, 0.0  ;;  %v4331_v13 = vmul.f32 %v9570_v27, %v11435_v33  ;;  %v141_v17 = vrot.slane %v27_v20, %v16021_v25  ;;  %v145_v23 = vrot.slane %v27_v20, %v16152_v35 }
 0x309   :  { %6003 = vadd.xlane.f32.xlu0 %v6002_v18  ;;  %v5361_v29 = vmax.f32 %v4849_v54, 0.0  ;;  %v3466_v4 = vadd.f32 %v2954_v30, %v2090_v3  ;;  %v3467_v45 = vadd.f32 %v2955_v7, %v2091_v43  ;;  %v1021_v58 = vrot.slane %v27_v20, %v16267_v37  ;;  %v16269_v54 = vld [vmem:[#allocation13_spill] sm:$0xff]  ;;  %v11731_v7 = vpop.xlane.xlu1 %5724 }
 0x30a   :  { %v1025_v38 = vrot.slane %v27_v20, %v16268_v49  ;;  %v11719_v36 = vrot.slane %v141_v17, %v16021_v25  ;;  %v11722_v18 = vrot.slane %v145_v23, %v16021_v25  ;;  %v2397_v16 = vrot.slane %v27_v20, %v16269_v54  ;;  %16270 = vst [vmem:[#allocation50_spill] sm:$0xff] %v11731_v7  ;;  %v16273_v23 = vld [vmem:[#allocation85_spill] sm:$0xff] }
 0x30b   :  { %v6017_v57 = vadd.f32 %v5361_v29, %v5360_v22  ;;  %v4842_v27 = vadd.f32 %v4330_v12, %v3466_v4  ;;  %v4843_v0 = vadd.f32 %v4331_v13, %v3467_v45  ;;  %v11726_v50 = vrot.slane %v1021_v58, %v16267_v37  ;;  %v16271_v22 = vld [vmem:[#allocation18_spill] sm:$0xff] }
 0x30c   :  { %v11729_v30 = vrot.slane %v1025_v38, %v16267_v37  ;;  %v724_v3 = vmul.f32 %v16271_v22, %v11719_v36  ;;  %v725_v43 = vmul.f32 %v16271_v22, %v11722_v18  ;;  %v16272_v29 = vld [vmem:[#allocation14_spill] sm:$0xff]  ;;  %v11739_v12 = vrot.slane %v2397_v16, %v16269_v54 }
 0x30d   :  { %6018 = vadd.xlane.f32.xlu1 %v6017_v57  ;;  %v2401_v17 = vrot.slane %v27_v20, %v16272_v29  ;;  %v5354_v45 = vmax.f32 %v4842_v27, 0.0  ;;  %v5355_v13 = vmax.f32 %v4843_v0, 0.0  ;;  %v1588_v4 = vmul.f32 %v16273_v23, %v11726_v50 }
 0x30e   :  { %v1589_v58 = vmul.f32 %v16273_v23, %v11729_v30  ;;  %v2964_v57 = vmul.f32 %v15988_v53, %v11739_v12  ;;  %v3773_v7 = vrot.slane %v27_v20, %v15985_v26  ;;  %v3777_v29 = vrot.slane %v27_v20, %v15986_v28 }
 0x30f   :  { %v11746_v38 = vrot.slane %v2401_v17, %v16269_v54  ;;  %v6008_v16 = vadd.f32 %v5355_v13, %v5354_v45  ;;  %v2100_v22 = vadd.f32 %v1588_v4, %v724_v3  ;;  %v11760_v17 = vpop.xlane.xlu0 %5715  ;;  %v718_v37 = vmul.f32 %v15987_v48, %v11396_v46  ;;  %v16275_v3 = vld [vmem:[#allocation31_spill] sm:$0xff] }
 0x310   :  { %v2101_v27 = vadd.f32 %v1589_v58, %v725_v43  ;;  %v11755_v49 = vrot.slane %v3773_v7, %v15985_v26  ;;  %v11758_v23 = vrot.slane %v3777_v29, %v15985_v26  ;;  %16274 = vst [vmem:[#allocation91_spill] sm:$0xff] %v11760_v17  ;;  %v719_v7 = vmul.f32 %v15987_v48, %v11399_v8  ;;  %v16276_v29 = vld [vmem:[#allocation109_spill] sm:$0xff] }
 0x311   :  { %v2965_v0 = vmul.f32 %v15988_v53, %v11746_v38  ;;  %6009 = vadd.xlane.f32.xlu0 %v6008_v16  ;;  %v3476_v54 = vadd.f32 %v2964_v57, %v2100_v22  ;;  %v1582_v13 = vmul.f32 %v16276_v29, %v11402_v63  ;;  %v1583_v4 = vmul.f32 %v16276_v29, %v11408_v14  ;;  %v16277_v22 = vld [vmem:[#allocation103_spill] sm:$0xff] }
 0x312   :  { %v4340_v43 = vmul.f32 %v16275_v3, %v11755_v49  ;;  %v4341_v45 = vmul.f32 %v16275_v3, %v11758_v23  ;;  %v2958_v58 = vmul.f32 %v16277_v22, %v11418_v24  ;;  %v2959_v46 = vmul.f32 %v16277_v22, %v11423_v42 }
 0x313   :  { %v3477_v20 = vadd.f32 %v2965_v0, %v2101_v27  ;;  %v4334_v27 = vmul.f32 %v16108_v5, %v11432_v44  ;;  %v4335_v8 = vmul.f32 %v16108_v5, %v11435_v33  ;;  %v2094_v0 = vadd.f32 %v1582_v13, %v718_v37 }
 0x314   :  { %v4852_v57 = vadd.f32 %v4340_v43, %v3476_v54  ;;  %v2095_v17 = vadd.f32 %v1583_v4, %v719_v7  ;;  %v728_v63 = vmul.f32 %v16220_v51, %v11719_v36  ;;  %v729_v14 = vmul.f32 %v16220_v51, %v11722_v18 }
 0x315   :  { %v4853_v16 = vadd.f32 %v4341_v45, %v3477_v20  ;;  %v1592_v42 = vmul.f32 %v16221_v2, %v11726_v50  ;;  %v1593_v54 = vmul.f32 %v16221_v2, %v11729_v30  ;;  %v3470_v44 = vadd.f32 %v2958_v58, %v2094_v0  ;;  %v11798_v2 = vpop.xlane.xlu1 %5730 }
 0x316   :  { %v5364_v24 = vmax.f32 %v4852_v57, 0.0  ;;  %v3471_v20 = vadd.f32 %v2959_v46, %v2095_v17  ;;  %v2968_v33 = vmul.f32 %v16070_v39, %v11739_v12  ;;  %v2969_v37 = vmul.f32 %v16070_v39, %v11746_v38  ;;  %16278 = vst [vmem:[#allocation39_spill] sm:$0xff] %v11798_v2 }
 0x317   :  { %v5365_v29 = vmax.f32 %v4853_v16, 0.0  ;;  %v2104_v45 = vadd.f32 %v1592_v42, %v728_v63  ;;  %v2105_v7 = vadd.f32 %v1593_v54, %v729_v14  ;;  %v4344_v13 = vmul.f32 %v15923_v40, %v11755_v49 }
 0x318   :  { %v4846_v4 = vadd.f32 %v4334_v27, %v3470_v44  ;;  %v4847_v57 = vadd.f32 %v4335_v8, %v3471_v20  ;;  %v4345_v16 = vmul.f32 %v15923_v40, %v11758_v23  ;;  %v1586_v27 = vmul.f32 %v15925_v61, %v11726_v50 }
 0x319   :  { %v6023_v43 = vadd.f32 %v5365_v29, %v5364_v24  ;;  %v3480_v17 = vadd.f32 %v2968_v33, %v2104_v45  ;;  %v3481_v58 = vadd.f32 %v2969_v37, %v2105_v7  ;;  %v722_v29 = vmul.f32 %v15992_v34, %v11719_v36  ;;  %v11814_v45 = vpop.xlane.xlu0 %5721 }
 0x31a   :  { %v5358_v46 = vmax.f32 %v4846_v4, 0.0  ;;  %v5359_v0 = vmax.f32 %v4847_v57, 0.0  ;;  %v723_v24 = vmul.f32 %v15992_v34, %v11722_v18  ;;  %v1587_v42 = vmul.f32 %v15925_v61, %v11729_v30  ;;  %16279 = vst [vmem:[#allocation40_spill] sm:$0xff] %v11814_v45 }
 0x31b   :  { %6024 = vadd.xlane.f32.xlu1 %v6023_v43  ;;  %v4856_v63 = vadd.f32 %v4344_v13, %v3480_v17  ;;  %v4857_v14 = vadd.f32 %v4345_v16, %v3481_v58  ;;  %v2962_v54 = vmul.f32 %v16071_v15, %v11739_v12  ;;  %v2963_v44 = vmul.f32 %v16071_v15, %v11746_v38 }
 0x31c   :  { %v6014_v8 = vadd.f32 %v5359_v0, %v5358_v46  ;;  %v2098_v37 = vadd.f32 %v1586_v27, %v722_v29  ;;  %v4338_v43 = vmul.f32 %v15930_v55, %v11755_v49  ;;  %v2099_v7 = vadd.f32 %v1587_v42, %v723_v24  ;;  %v11832_v24 = vpop.xlane.xlu1 %5736 }
 0x31d   :  { %v5368_v20 = vmax.f32 %v4856_v63, 0.0  ;;  %v5369_v33 = vmax.f32 %v4857_v14, 0.0  ;;  %v4339_v13 = vmul.f32 %v15930_v55, %v11758_v23  ;;  %v732_v4 = vmul.f32 %v15993_v59, %v11719_v36  ;;  %16280 = vst [vmem:[#allocation55_spill] sm:$0xff] %v11832_v24 }
 0x31e   :  { %6015 = vadd.xlane.f32.xlu0 %v6014_v8  ;;  %v733_v57 = vmul.f32 %v15993_v59, %v11722_v18  ;;  %v3474_v17 = vadd.f32 %v2962_v54, %v2098_v37  ;;  %v1596_v58 = vmul.f32 %v15931_v19, %v11726_v50  ;;  %v1597_v46 = vmul.f32 %v15931_v19, %v11729_v30 }
 0x31f   :  { %v6029_v16 = vadd.f32 %v5369_v33, %v5368_v20  ;;  %v3475_v0 = vadd.f32 %v2963_v44, %v2099_v7  ;;  %v2972_v29 = vmul.f32 %v15933_v9, %v11739_v12  ;;  %v2973_v63 = vmul.f32 %v15933_v9, %v11746_v38 }
 0x320   :  { %v4348_v14 = vmul.f32 %v9445_v47, %v11755_v49  ;;  %v4850_v27 = vadd.f32 %v4338_v43, %v3474_v17  ;;  %v2108_v8 = vadd.f32 %v1596_v58, %v732_v4  ;;  %v2109_v42 = vadd.f32 %v1597_v46, %v733_v57 }
 0x321   :  { %6030 = vadd.xlane.f32.xlu1 %v6029_v16  ;;  %v4349_v54 = vmul.f32 %v9445_v47, %v11758_v23  ;;  %v4851_v20 = vadd.f32 %v4339_v13, %v3475_v0  ;;  %v726_v2 = vmul.f32 %v15994_v1, %v11719_v36  ;;  %v727_v45 = vmul.f32 %v15994_v1, %v11722_v18  ;;  %v16281_v13 = vld [vmem:[#allocation44_spill] sm:$0xff] }
 0x322   :  { %v5362_v44 = vmax.f32 %v4850_v27, 0.0  ;;  %v3484_v33 = vadd.f32 %v2972_v29, %v2108_v8  ;;  %v3485_v37 = vadd.f32 %v2973_v63, %v2109_v42  ;;  %v1590_v16 = vmul.f32 %v15935_v10, %v11726_v50  ;;  %v16282_v29 = vld [vmem:[#allocation108_spill] sm:$0xff] }
 0x323   :  { %v5363_v7 = vmax.f32 %v4851_v20, 0.0  ;;  %v1591_v57 = vmul.f32 %v15935_v10, %v11729_v30  ;;  %v2966_v17 = vmul.f32 %v16281_v13, %v11739_v12  ;;  %v2967_v0 = vmul.f32 %v16281_v13, %v11746_v38 }
 0x324   :  { %v4860_v43 = vadd.f32 %v4348_v14, %v3484_v33  ;;  %v4861_v4 = vadd.f32 %v4349_v54, %v3485_v37  ;;  %v2102_v46 = vadd.f32 %v1590_v16, %v726_v2  ;;  %v4342_v63 = vmul.f32 %v16282_v29, %v11755_v49  ;;  %v11852_v54 = vpop.xlane.xlu0 %5727  ;;  %v16284_v33 = vld [vmem:[#allocation35_spill] sm:$0xff]  ;;  %v16285_v37 = vld [vmem:[#allocation97_spill] sm:$0xff] }
 0x325   :  { %v6020_v58 = vadd.f32 %v5363_v7, %v5362_v44  ;;  %v2103_v42 = vadd.f32 %v1591_v57, %v727_v45  ;;  %v4343_v14 = vmul.f32 %v16282_v29, %v11758_v23  ;;  %16283 = vst [vmem:[#allocation56_spill] sm:$0xff] %v11852_v54  ;;  %v736_v44 = vmul.f32 %v16284_v33, %v11719_v36  ;;  %v11868_v54 = vpop.xlane.xlu1 %5742 }
 0x326   :  { %v5372_v27 = vmax.f32 %v4860_v43, 0.0  ;;  %v5373_v8 = vmax.f32 %v4861_v4, 0.0  ;;  %v3478_v20 = vadd.f32 %v2966_v17, %v2102_v46  ;;  %v737_v2 = vmul.f32 %v16284_v33, %v11722_v18  ;;  %16286 = vst [vmem:[#allocation51_spill] sm:$0xff] %v11868_v54  ;;  %v16293_v54 = vld [vmem:[#allocation75_spill] sm:$0xff] }
 0x327   :  { %6021 = vadd.xlane.f32.xlu0 %v6020_v58  ;;  %v1600_v7 = vmul.f32 %v16285_v37, %v11726_v50  ;;  %v3479_v43 = vadd.f32 %v2967_v0, %v2103_v42  ;;  %v1601_v45 = vmul.f32 %v16285_v37, %v11729_v30  ;;  %v2976_v4 = vmul.f32 %v16229_v21, %v11739_v12 }
 0x328   :  { %v6035_v16 = vadd.f32 %v5373_v8, %v5372_v27  ;;  %v4854_v57 = vadd.f32 %v4342_v63, %v3478_v20  ;;  %v2977_v17 = vmul.f32 %v16229_v21, %v11746_v38  ;;  %v4352_v46 = vmul.f32 %v16072_v6, %v11755_v49 }
 0x329   :  { %v2112_v58 = vadd.f32 %v1600_v7, %v736_v44  ;;  %v4855_v24 = vadd.f32 %v4343_v14, %v3479_v43  ;;  %v2113_v27 = vadd.f32 %v1601_v45, %v737_v2  ;;  %v4353_v0 = vmul.f32 %v16072_v6, %v11758_v23 }
 0x32a   :  { %6036 = vadd.xlane.f32.xlu1 %v6035_v16  ;;  %v5366_v8 = vmax.f32 %v4854_v57, 0.0  ;;  %v730_v20 = vmul.f32 %v16073_v60, %v11719_v36  ;;  %v1594_v44 = vmul.f32 %v16173_v52, %v11726_v50  ;;  %v731_v14 = vmul.f32 %v16073_v60, %v11722_v18  ;;  %v16296_v60 = vld [vmem:[#allocation96_spill] sm:$0xff] }
 0x32b   :  { %v3488_v42 = vadd.f32 %v2976_v4, %v2112_v58  ;;  %v5367_v37 = vmax.f32 %v4855_v24, 0.0  ;;  %v3489_v33 = vadd.f32 %v2977_v17, %v2113_v27  ;;  %v1595_v2 = vmul.f32 %v16173_v52, %v11729_v30  ;;  %v16287_v24 = vld [vmem:[#allocation21_spill] sm:$0xff]  ;;  %v11882_v4 = vpop.xlane.xlu0 %5733 }
 0x32c   :  { %v2106_v43 = vadd.f32 %v1594_v44, %v730_v20  ;;  %v2970_v45 = vmul.f32 %v16287_v24, %v11739_v12  ;;  %16288 = vst [vmem:[#allocation52_spill] sm:$0xff] %v11882_v4  ;;  %v4356_v4 = vmul.f32 %v16293_v54, %v11755_v49 }
 0x32d   :  { %v4864_v63 = vadd.f32 %v4352_v46, %v3488_v42  ;;  %v6026_v7 = vadd.f32 %v5367_v37, %v5366_v8  ;;  %v4865_v21 = vadd.f32 %v4353_v0, %v3489_v33  ;;  %v2107_v58 = vadd.f32 %v1595_v2, %v731_v14  ;;  %v16289_v33 = vld [vmem:[#allocation111_spill] sm:$0xff]  ;;  %v16290_v0 = vld [vmem:[#allocation41_spill] sm:$0xff]  ;;  %v16292_v2 = vld [vmem:[#allocation124_spill] sm:$0xff] }
 0x32e   :  { %v2971_v37 = vmul.f32 %v16287_v24, %v11746_v38  ;;  %v4346_v17 = vmul.f32 %v16289_v33, %v11755_v49  ;;  %v3482_v46 = vadd.f32 %v2970_v45, %v2106_v43  ;;  %v4347_v27 = vmul.f32 %v16289_v33, %v11758_v23  ;;  %v11904_v33 = vpop.xlane.xlu1 %5748  ;;  %v16295_v24 = vld [vmem:[#allocation36_spill] sm:$0xff] }
 0x32f   :  { %v5376_v16 = vmax.f32 %v4864_v63, 0.0  ;;  %6027 = vadd.xlane.f32.xlu0 %v6026_v7  ;;  %v5377_v57 = vmax.f32 %v4865_v21, 0.0  ;;  %v740_v8 = vmul.f32 %v16290_v0, %v11719_v36  ;;  %v741_v42 = vmul.f32 %v16290_v0, %v11722_v18  ;;  %v16291_v21 = vld [vmem:[#allocation99_spill] sm:$0xff]  ;;  %16294 = vst [vmem:[#allocation70_spill] sm:$0xff] %v11904_v33 }
 0x330   :  { %v3483_v20 = vadd.f32 %v2971_v37, %v2107_v58  ;;  %v1604_v44 = vmul.f32 %v16291_v21, %v11726_v50  ;;  %v1605_v7 = vmul.f32 %v16291_v21, %v11729_v30  ;;  %v4858_v14 = vadd.f32 %v4346_v17, %v3482_v46 }
 0x331   :  { %v6041_v63 = vadd.f32 %v5377_v57, %v5376_v16  ;;  %v2980_v43 = vmul.f32 %v16292_v2, %v11739_v12  ;;  %v2981_v45 = vmul.f32 %v16292_v2, %v11746_v38  ;;  %v4357_v37 = vmul.f32 %v16293_v54, %v11758_v23 }
 0x332   :  { %v4859_v16 = vadd.f32 %v4347_v27, %v3483_v20  ;;  %v2116_v57 = vadd.f32 %v1604_v44, %v740_v8  ;;  %v2117_v58 = vadd.f32 %v1605_v7, %v741_v42  ;;  %v5370_v21 = vmax.f32 %v4858_v14, 0.0 }
 0x333   :  { %6042 = vadd.xlane.f32.xlu1 %v6041_v63  ;;  %v734_v52 = vmul.f32 %v16295_v24, %v11719_v36  ;;  %v735_v2 = vmul.f32 %v16295_v24, %v11722_v18  ;;  %v1598_v33 = vmul.f32 %v16296_v60, %v11726_v50  ;;  %v1599_v27 = vmul.f32 %v16296_v60, %v11729_v30 }
 0x334   :  { %v5371_v17 = vmax.f32 %v4859_v16, 0.0  ;;  %v3492_v46 = vadd.f32 %v2980_v43, %v2116_v57  ;;  %v3493_v0 = vadd.f32 %v2981_v45, %v2117_v58  ;;  %v2974_v8 = vmul.f32 %v16239_v11, %v11739_v12  ;;  %v16297_v43 = vld [vmem:[#allocation22_spill] sm:$0xff]  ;;  %v11924_v57 = vpop.xlane.xlu0 %5739 }
 0x335   :  { %v2975_v44 = vmul.f32 %v16239_v11, %v11746_v38  ;;  %v2110_v7 = vadd.f32 %v1598_v33, %v734_v52  ;;  %v2111_v14 = vadd.f32 %v1599_v27, %v735_v2  ;;  %v4350_v45 = vmul.f32 %v16297_v43, %v11755_v49  ;;  %16298 = vst [vmem:[#allocation71_spill] sm:$0xff] %v11924_v57  ;;  %v16300_v33 = vld [vmem:[#allocation105_spill] sm:$0xff]  ;;  %v16301_v27 = vld [vmem:[#allocation102_spill] sm:$0xff] }
 0x336   :  { %v6032_v42 = vadd.f32 %v5371_v17, %v5370_v21  ;;  %v4868_v63 = vadd.f32 %v4356_v4, %v3492_v46  ;;  %v4869_v20 = vadd.f32 %v4357_v37, %v3493_v0  ;;  %v4351_v16 = vmul.f32 %v16297_v43, %v11758_v23  ;;  %v16299_v21 = vld [vmem:[#allocation47_spill] sm:$0xff] }
 0x337   :  { %v744_v4 = vmul.f32 %v16299_v21, %v11719_v36  ;;  %v745_v0 = vmul.f32 %v16299_v21, %v11722_v18  ;;  %v3486_v37 = vadd.f32 %v2974_v8, %v2110_v7  ;;  %v3487_v52 = vadd.f32 %v2975_v44, %v2111_v14  ;;  %v11940_v7 = vpop.xlane.xlu1 %5754 }
 0x338   :  { %6033 = vadd.xlane.f32.xlu0 %v6032_v42  ;;  %v5380_v58 = vmax.f32 %v4868_v63, 0.0  ;;  %v5381_v60 = vmax.f32 %v4869_v20, 0.0  ;;  %v1608_v2 = vmul.f32 %v16300_v33, %v11726_v50  ;;  %v1609_v17 = vmul.f32 %v16300_v33, %v11729_v30  ;;  %16302 = vst [vmem:[#allocation61_spill] sm:$0xff] %v11940_v7 }
 0x339   :  { %v2984_v42 = vmul.f32 %v16301_v27, %v11739_v12  ;;  %v2985_v63 = vmul.f32 %v16301_v27, %v11746_v38  ;;  %v4360_v20 = vmul.f32 %v16245_v62, %v11755_v49  ;;  %v4862_v57 = vadd.f32 %v4350_v45, %v3486_v37  ;;  %v16303_v45 = vld [vmem:[#allocation98_spill] sm:$0xff] }
 0x33a   :  { %v6047_v46 = vadd.f32 %v5381_v60, %v5380_v58  ;;  %v4863_v21 = vadd.f32 %v4351_v16, %v3487_v52  ;;  %v2120_v8 = vadd.f32 %v1608_v2, %v744_v4  ;;  %v2121_v44 = vadd.f32 %v1609_v17, %v745_v0 }
 0x33b   :  { %v4361_v14 = vmul.f32 %v16245_v62, %v11758_v23  ;;  %v5374_v60 = vmax.f32 %v4862_v57, 0.0  ;;  %v738_v27 = vmul.f32 %v16247_v32, %v11719_v36  ;;  %v739_v11 = vmul.f32 %v16247_v32, %v11722_v18  ;;  %v16304_v57 = vld [vmem:[#allocation117_spill] sm:$0xff] }
 0x33c   :  { %6048 = vadd.xlane.f32.xlu1 %v6047_v46  ;;  %v5375_v58 = vmax.f32 %v4863_v21, 0.0  ;;  %v3496_v33 = vadd.f32 %v2984_v42, %v2120_v8  ;;  %v3497_v43 = vadd.f32 %v2985_v63, %v2121_v44  ;;  %v1602_v16 = vmul.f32 %v16303_v45, %v11726_v50  ;;  %v16305_v42 = vld [vmem:[#allocation130_spill] sm:$0xff]  ;;  %v11958_v8 = vpop.xlane.xlu0 %5745 }
 0x33d   :  { %v1603_v4 = vmul.f32 %v16303_v45, %v11729_v30  ;;  %v2978_v21 = vmul.f32 %v16304_v57, %v11739_v12  ;;  %v2979_v46 = vmul.f32 %v16304_v57, %v11746_v38  ;;  %v4354_v63 = vmul.f32 %v16305_v42, %v11755_v49  ;;  %16306 = vst [vmem:[#allocation62_spill] sm:$0xff] %v11958_v8 }
 0x33e   :  { %v6038_v0 = vadd.f32 %v5375_v58, %v5374_v60  ;;  %v4872_v37 = vadd.f32 %v4360_v20, %v3496_v33  ;;  %v4873_v52 = vadd.f32 %v4361_v14, %v3497_v43  ;;  %v2114_v2 = vadd.f32 %v1602_v16, %v738_v27  ;;  %v16307_v43 = vld [vmem:[#allocation57_spill] sm:$0xff]  ;;  %v16308_v60 = vld [vmem:[#allocation64_spill] sm:$0xff] }
 0x33f   :  { %v2115_v17 = vadd.f32 %v1603_v4, %v739_v11  ;;  %v4355_v33 = vmul.f32 %v16305_v42, %v11758_v23  ;;  %v748_v20 = vmul.f32 %v16307_v43, %v11719_v36  ;;  %v749_v11 = vmul.f32 %v16307_v43, %v11722_v18 }
 0x340   :  { %6039 = vadd.xlane.f32.xlu0 %v6038_v0  ;;  %v5384_v44 = vmax.f32 %v4872_v37, 0.0  ;;  %v5385_v7 = vmax.f32 %v4873_v52, 0.0  ;;  %v3490_v14 = vadd.f32 %v2978_v21, %v2114_v2  ;;  %v1612_v58 = vmul.f32 %v16308_v60, %v11726_v50  ;;  %v16309_v0 = vld [vmem:[#allocation59_spill] sm:$0xff] }
 0x341   :  { %v3491_v27 = vadd.f32 %v2979_v46, %v2115_v17  ;;  %v1613_v4 = vmul.f32 %v16308_v60, %v11729_v30  ;;  %v2988_v37 = vmul.f32 %v16309_v0, %v11739_v12  ;;  %v2989_v52 = vmul.f32 %v16309_v0, %v11746_v38  ;;  %v11976_v17 = vpop.xlane.xlu1 %5760 }
 0x342   :  { %v6053_v16 = vadd.f32 %v5385_v7, %v5384_v44  ;;  %v4866_v8 = vadd.f32 %v4354_v63, %v3490_v14  ;;  %v2124_v21 = vadd.f32 %v1612_v58, %v748_v20  ;;  %v4364_v2 = vmul.f32 %v16141_v41, %v11755_v49  ;;  %16310 = vst [vmem:[#allocation89_spill] sm:$0xff] %v11976_v17 }
 0x343   :  { %v4867_v42 = vadd.f32 %v4355_v33, %v3491_v27  ;;  %v2125_v46 = vadd.f32 %v1613_v4, %v749_v11  ;;  %v4365_v7 = vmul.f32 %v16141_v41, %v11758_v23  ;;  %v742_v0 = vmul.f32 %v16143_v56, %v11719_v36 }
 0x344   :  { %6054 = vadd.xlane.f32.xlu1 %v6053_v16  ;;  %v5378_v44 = vmax.f32 %v4866_v8, 0.0  ;;  %v3500_v43 = vadd.f32 %v2988_v37, %v2124_v21  ;;  %v743_v63 = vmul.f32 %v16143_v56, %v11722_v18  ;;  %v1606_v14 = vmul.f32 %v16144_v31, %v11726_v50  ;;  %v16311_v8 = vld [vmem:[#allocation121_spill] sm:$0xff]  ;;  %v16312_v16 = vld [vmem:[#allocation132_spill] sm:$0xff]  ;;  %v11994_v37 = vpop.xlane.xlu0 %5751 }
 0x345   :  { %v5379_v60 = vmax.f32 %v4867_v42, 0.0  ;;  %v3501_v57 = vadd.f32 %v2989_v52, %v2125_v46  ;;  %v1607_v27 = vmul.f32 %v16144_v31, %v11729_v30  ;;  %v2982_v42 = vmul.f32 %v16311_v8, %v11739_v12  ;;  %16313 = vst [vmem:[#allocation90_spill] sm:$0xff] %v11994_v37 }
 0x346   :  { %v4876_v20 = vadd.f32 %v4364_v2, %v3500_v43  ;;  %v2983_v58 = vmul.f32 %v16311_v8, %v11746_v38  ;;  %v4358_v4 = vmul.f32 %v16312_v16, %v11755_v49  ;;  %v4359_v21 = vmul.f32 %v16312_v16, %v11758_v23 }
 0x347   :  { %v6044_v33 = vadd.f32 %v5379_v60, %v5378_v44  ;;  %v4877_v11 = vadd.f32 %v4365_v7, %v3501_v57  ;;  %v2118_v60 = vadd.f32 %v1606_v14, %v742_v0  ;;  %v2119_v52 = vadd.f32 %v1607_v27, %v743_v63  ;;  %v16314_v57 = vld [vmem:[#allocation67_spill] sm:$0xff]  ;;  %v16315_v44 = vld [vmem:[#allocation110_spill] sm:$0xff]  ;;  %v16316_v0 = vld [vmem:[#allocation29_spill] sm:$0xff] }
 0x348   :  { %v5388_v43 = vmax.f32 %v4876_v20, 0.0  ;;  %v752_v46 = vmul.f32 %v16314_v57, %v11719_v36  ;;  %v753_v7 = vmul.f32 %v16314_v57, %v11722_v18  ;;  %v1616_v17 = vmul.f32 %v16315_v44, %v11726_v50 }
 0x349   :  { %6045 = vadd.xlane.f32.xlu0 %v6044_v33  ;;  %v5389_v2 = vmax.f32 %v4877_v11, 0.0  ;;  %v3494_v8 = vadd.f32 %v2982_v42, %v2118_v60  ;;  %v3495_v31 = vadd.f32 %v2983_v58, %v2119_v52  ;;  %v1617_v33 = vmul.f32 %v16315_v44, %v11729_v30  ;;  %v16317_v11 = vld [vmem:[#allocation133_spill] sm:$0xff]  ;;  %v12014_v58 = vpop.xlane.xlu1 %5766 }
 0x34a   :  { %v2992_v63 = vmul.f32 %v16316_v0, %v11739_v12  ;;  %v2128_v14 = vadd.f32 %v1616_v17, %v752_v46  ;;  %v2993_v27 = vmul.f32 %v16316_v0, %v11746_v38  ;;  %v4368_v37 = vmul.f32 %v16317_v11, %v11755_v49  ;;  %16318 = vst [vmem:[#allocation79_spill] sm:$0xff] %v12014_v58  ;;  %v16325_v58 = vld [vmem:[#allocation10_spill] sm:$0xff] }
 0x34b   :  { %v6059_v20 = vadd.f32 %v5389_v2, %v5388_v43  ;;  %v4870_v57 = vadd.f32 %v4358_v4, %v3494_v8  ;;  %v4871_v16 = vadd.f32 %v4359_v21, %v3495_v31  ;;  %v2129_v56 = vadd.f32 %v1617_v33, %v753_v7  ;;  %v16319_v2 = vld [vmem:[#allocation58_spill] sm:$0xff]  ;;  %v16320_v31 = vld [vmem:[#allocation63_spill] sm:$0xff] }
 0x34c   :  { %v4369_v42 = vmul.f32 %v16317_v11, %v11758_v23  ;;  %v3504_v60 = vadd.f32 %v2992_v63, %v2128_v14  ;;  %v746_v46 = vmul.f32 %v16319_v2, %v11719_v36  ;;  %v747_v0 = vmul.f32 %v16319_v2, %v11722_v18  ;;  %v28_v4 = vld [vmem:[%s15057_s0 + $0x50] sm:$0xff] }
 0x34d   :  { %6060 = vadd.xlane.f32.xlu1 %v6059_v20  ;;  %v5382_v52 = vmax.f32 %v4870_v57, 0.0  ;;  %v5383_v44 = vmax.f32 %v4871_v16, 0.0  ;;  %v3505_v43 = vadd.f32 %v2993_v27, %v2129_v56  ;;  %v1610_v8 = vmul.f32 %v16320_v31, %v11726_v50  ;;  %v16321_v56 = vld [vmem:[#allocation125_spill] sm:$0xff]  ;;  %v16322_v20 = vld [vmem:[#allocation134_spill] sm:$0xff]  ;;  %v12033_v27 = vpop.xlane.xlu0 %5757 }
 0x34e   :  { %v4880_v17 = vadd.f32 %v4368_v37, %v3504_v60  ;;  %v1611_v16 = vmul.f32 %v16320_v31, %v11729_v30  ;;  %v2986_v37 = vmul.f32 %v16321_v56, %v11739_v12  ;;  %v2987_v63 = vmul.f32 %v16321_v56, %v11746_v38  ;;  %16323 = vst [vmem:[#allocation80_spill] sm:$0xff] %v12033_v27 }
 0x34f   :  { %v6050_v21 = vadd.f32 %v5383_v44, %v5382_v52  ;;  %v4881_v7 = vadd.f32 %v4369_v42, %v3505_v43  ;;  %v2122_v33 = vadd.f32 %v1610_v8, %v746_v46  ;;  %v4362_v14 = vmul.f32 %v16322_v20, %v11755_v49  ;;  %v16324_v46 = vld [vmem:[#allocation9_spill] sm:$0xff] }
 0x350   :  { %v5392_v57 = vmax.f32 %v4880_v17, 0.0  ;;  %v2123_v44 = vadd.f32 %v1611_v16, %v747_v0  ;;  %v4363_v42 = vmul.f32 %v16322_v20, %v11758_v23  ;;  %v149_v52 = vrot.slane %v28_v4, %v16021_v25 }
 0x351   :  { %6051 = vadd.xlane.f32.xlu0 %v6050_v21  ;;  %v5393_v60 = vmax.f32 %v4881_v7, 0.0  ;;  %v3498_v43 = vadd.f32 %v2986_v37, %v2122_v33  ;;  %v153_v17 = vrot.slane %v28_v4, %v16152_v35  ;;  %v1029_v8 = vrot.slane %v28_v4, %v16324_v46  ;;  %v16326_v21 = vld [vmem:[#allocation13_spill] sm:$0xff]  ;;  %v12054_v33 = vpop.xlane.xlu1 %5772 }
 0x352   :  { %v1033_v56 = vrot.slane %v28_v4, %v16325_v58  ;;  %v3499_v2 = vadd.f32 %v2987_v63, %v2123_v44  ;;  %v12042_v11 = vrot.slane %v149_v52, %v16021_v25  ;;  %v2405_v7 = vrot.slane %v28_v4, %v16326_v21  ;;  %16327 = vst [vmem:[#allocation23_spill] sm:$0xff] %v12054_v33  ;;  %v16328_v63 = vld [vmem:[#allocation18_spill] sm:$0xff] }
 0x353   :  { %v6065_v31 = vadd.f32 %v5393_v60, %v5392_v57  ;;  %v4874_v0 = vadd.f32 %v4362_v14, %v3498_v43  ;;  %v12046_v16 = vrot.slane %v153_v17, %v16021_v25  ;;  %v12049_v27 = vrot.slane %v1029_v8, %v16324_v46  ;;  %v16329_v44 = vld [vmem:[#allocation14_spill] sm:$0xff]  ;;  %v16330_v8 = vld [vmem:[#allocation85_spill] sm:$0xff] }
 0x354   :  { %v12052_v37 = vrot.slane %v1033_v56, %v16324_v46  ;;  %v4875_v57 = vadd.f32 %v4363_v42, %v3499_v2  ;;  %v756_v60 = vmul.f32 %v16328_v63, %v12042_v11  ;;  %v2409_v52 = vrot.slane %v28_v4, %v16329_v44 }
 0x355   :  { %6066 = vadd.xlane.f32.xlu1 %v6065_v31  ;;  %v12060_v14 = vrot.slane %v2405_v7, %v16326_v21  ;;  %v5386_v43 = vmax.f32 %v4874_v0, 0.0  ;;  %v757_v17 = vmul.f32 %v16328_v63, %v12046_v16  ;;  %v1620_v56 = vmul.f32 %v16330_v8, %v12049_v27 }
 0x356   :  { %v1621_v33 = vmul.f32 %v16330_v8, %v12052_v37  ;;  %v5387_v31 = vmax.f32 %v4875_v57, 0.0  ;;  %v12069_v2 = vrot.slane %v2409_v52, %v16326_v21  ;;  %v3781_v7 = vrot.slane %v28_v4, %v15985_v26  ;;  %v12083_v8 = vpop.xlane.xlu0 %5763 }
 0x357   :  { %v2996_v42 = vmul.f32 %v15988_v53, %v12060_v14  ;;  %v2132_v44 = vadd.f32 %v1620_v56, %v756_v60  ;;  %v3785_v0 = vrot.slane %v28_v4, %v15986_v28  ;;  %16331 = vst [vmem:[#allocation24_spill] sm:$0xff] %v12083_v8  ;;  %v750_v4 = vmul.f32 %v15987_v48, %v11719_v36 }
 0x358   :  { %v6056_v58 = vadd.f32 %v5387_v31, %v5386_v43  ;;  %v2133_v63 = vadd.f32 %v1621_v33, %v757_v17  ;;  %v2997_v46 = vmul.f32 %v15988_v53, %v12069_v2  ;;  %v12078_v35 = vrot.slane %v3781_v7, %v15985_v26 }
 0x359   :  { %v3508_v57 = vadd.f32 %v2996_v42, %v2132_v44  ;;  %v12081_v52 = vrot.slane %v3785_v0, %v15985_v26  ;;  %v751_v33 = vmul.f32 %v15987_v48, %v11722_v18  ;;  %v16332_v44 = vld [vmem:[#allocation109_spill] sm:$0xff]  ;;  %v4366_v36 = vmul.f32 %v16108_v5, %v11755_v49  ;;  %v16333_v0 = vld [vmem:[#allocation92_spill] sm:$0xff] }
 0x35a   :  { %6057 = vadd.xlane.f32.xlu0 %v6056_v58  ;;  %v3509_v21 = vadd.f32 %v2997_v46, %v2133_v63  ;;  %v4372_v60 = vmul.f32 %v16275_v3, %v12078_v35  ;;  %v1614_v17 = vmul.f32 %v16332_v44, %v11726_v50  ;;  %v1615_v56 = vmul.f32 %v16332_v44, %v11729_v30 }
 0x35b   :  { %v4373_v43 = vmul.f32 %v16275_v3, %v12081_v52  ;;  %v2990_v58 = vmul.f32 %v16277_v22, %v11739_v12  ;;  %v2991_v63 = vmul.f32 %v16277_v22, %v11746_v38  ;;  %v4367_v18 = vmul.f32 %v16108_v5, %v11758_v23 }
 0x35c   :  { %v4884_v46 = vadd.f32 %v4372_v60, %v3508_v57  ;;  %v2126_v42 = vadd.f32 %v1614_v17, %v750_v4  ;;  %v2127_v7 = vadd.f32 %v1615_v56, %v751_v33  ;;  %v760_v50 = vmul.f32 %v16220_v51, %v12042_v11 }
 0x35d   :  { %v4885_v31 = vadd.f32 %v4373_v43, %v3509_v21  ;;  %v761_v12 = vmul.f32 %v16220_v51, %v12046_v16  ;;  %v1624_v57 = vmul.f32 %v16333_v0, %v12049_v27  ;;  %v1625_v38 = vmul.f32 %v16333_v0, %v12052_v37 }
 0x35e   :  { %v5396_v30 = vmax.f32 %v4884_v46, 0.0  ;;  %v3502_v60 = vadd.f32 %v2990_v58, %v2126_v42  ;;  %v3503_v8 = vadd.f32 %v2991_v63, %v2127_v7  ;;  %v3000_v23 = vmul.f32 %v16070_v39, %v12060_v14  ;;  %v12121_v63 = vpop.xlane.xlu1 %5778 }
 0x35f   :  { %v5397_v49 = vmax.f32 %v4885_v31, 0.0  ;;  %v2136_v21 = vadd.f32 %v1624_v57, %v760_v50  ;;  %v2137_v4 = vadd.f32 %v1625_v38, %v761_v12  ;;  %v3001_v33 = vmul.f32 %v16070_v39, %v12069_v2  ;;  %16334 = vst [vmem:[#allocation15_spill] sm:$0xff] %v12121_v63 }
 0x360   :  { %v4376_v43 = vmul.f32 %v15923_v40, %v12078_v35  ;;  %v4878_v56 = vadd.f32 %v4366_v36, %v3502_v60  ;;  %v4879_v46 = vadd.f32 %v4367_v18, %v3503_v8  ;;  %v4377_v0 = vmul.f32 %v15923_v40, %v12081_v52 }
 0x361   :  { %v6071_v17 = vadd.f32 %v5397_v49, %v5396_v30  ;;  %v3512_v31 = vadd.f32 %v3000_v23, %v2136_v21  ;;  %v3513_v58 = vadd.f32 %v3001_v33, %v2137_v4  ;;  %v754_v57 = vmul.f32 %v15992_v34, %v12042_v11  ;;  %v12137_v21 = vpop.xlane.xlu0 %5769 }
 0x362   :  { %v5390_v42 = vmax.f32 %v4878_v56, 0.0  ;;  %v5391_v7 = vmax.f32 %v4879_v46, 0.0  ;;  %v755_v30 = vmul.f32 %v15992_v34, %v12046_v16  ;;  %v1618_v8 = vmul.f32 %v15925_v61, %v12049_v27  ;;  %16335 = vst [vmem:[#allocation16_spill] sm:$0xff] %v12137_v21 }
 0x363   :  { %6072 = vadd.xlane.f32.xlu1 %v6071_v17  ;;  %v4888_v50 = vadd.f32 %v4376_v43, %v3512_v31  ;;  %v4889_v12 = vadd.f32 %v4377_v0, %v3513_v58  ;;  %v1619_v18 = vmul.f32 %v15925_v61, %v12052_v37  ;;  %v2994_v38 = vmul.f32 %v16071_v15, %v12060_v14 }
 0x364   :  { %v6062_v36 = vadd.f32 %v5391_v7, %v5390_v42  ;;  %v2995_v0 = vmul.f32 %v16071_v15, %v12069_v2  ;;  %v4370_v23 = vmul.f32 %v15930_v55, %v12078_v35  ;;  %v2130_v4 = vadd.f32 %v1618_v8, %v754_v57  ;;  %v12153_v57 = vpop.xlane.xlu1 %5784 }
 0x365   :  { %v5400_v49 = vmax.f32 %v4888_v50, 0.0  ;;  %v5401_v60 = vmax.f32 %v4889_v12, 0.0  ;;  %v2131_v33 = vadd.f32 %v1619_v18, %v755_v30  ;;  %v4371_v43 = vmul.f32 %v15930_v55, %v12081_v52  ;;  %16336 = vst [vmem:[#allocation81_spill] sm:$0xff] %v12153_v57 }
 0x366   :  { %6063 = vadd.xlane.f32.xlu0 %v6062_v36  ;;  %v764_v17 = vmul.f32 %v15993_v59, %v12042_v11  ;;  %v765_v46 = vmul.f32 %v15993_v59, %v12046_v16  ;;  %v1628_v31 = vmul.f32 %v15931_v19, %v12049_v27  ;;  %v1629_v58 = vmul.f32 %v15931_v19, %v12052_v37 }
 0x367   :  { %v6077_v56 = vadd.f32 %v5401_v60, %v5400_v49  ;;  %v3506_v42 = vadd.f32 %v2994_v38, %v2130_v4  ;;  %v3507_v7 = vadd.f32 %v2995_v0, %v2131_v33  ;;  %v3004_v50 = vmul.f32 %v15933_v9, %v12060_v14 }
 0x368   :  { %v3005_v12 = vmul.f32 %v15933_v9, %v12069_v2  ;;  %v2140_v30 = vadd.f32 %v1628_v31, %v764_v17  ;;  %v2141_v36 = vadd.f32 %v1629_v58, %v765_v46  ;;  %v4380_v8 = vmul.f32 %v9445_v47, %v12078_v35  ;;  %v12191_v21 = vpop.xlane.xlu1 %5790 }
 0x369   :  { %6078 = vadd.xlane.f32.xlu1 %v6077_v56  ;;  %v4381_v18 = vmul.f32 %v9445_v47, %v12081_v52  ;;  %v4882_v49 = vadd.f32 %v4370_v23, %v3506_v42  ;;  %v4883_v38 = vadd.f32 %v4371_v43, %v3507_v7  ;;  %v758_v63 = vmul.f32 %v15994_v1, %v12042_v11 }
 0x36a   :  { %v3516_v60 = vadd.f32 %v3004_v50, %v2140_v30  ;;  %v3517_v0 = vadd.f32 %v3005_v12, %v2141_v36  ;;  %v759_v56 = vmul.f32 %v15994_v1, %v12046_v16  ;;  %v1622_v31 = vmul.f32 %v15935_v10, %v12049_v27  ;;  %16341 = vst [vmem:[#allocation11_spill] sm:$0xff] %v12191_v21 }
 0x36b   :  { %v5394_v4 = vmax.f32 %v4882_v49, 0.0  ;;  %v5395_v33 = vmax.f32 %v4883_v38, 0.0  ;;  %v1623_v58 = vmul.f32 %v15935_v10, %v12052_v37  ;;  %v2998_v43 = vmul.f32 %v16281_v13, %v12060_v14  ;;  %v16338_v49 = vld [vmem:[#allocation35_spill] sm:$0xff] }
 0x36c   :  { %v4892_v17 = vadd.f32 %v4380_v8, %v3516_v60  ;;  %v4893_v46 = vadd.f32 %v4381_v18, %v3517_v0  ;;  %v2999_v42 = vmul.f32 %v16281_v13, %v12069_v2  ;;  %v4374_v7 = vmul.f32 %v16282_v29, %v12078_v35  ;;  %v12173_v8 = vpop.xlane.xlu0 %5775  ;;  %v16339_v0 = vld [vmem:[#allocation97_spill] sm:$0xff] }
 0x36d   :  { %v6068_v23 = vadd.f32 %v5395_v33, %v5394_v4  ;;  %v2134_v30 = vadd.f32 %v1622_v31, %v758_v63  ;;  %v2135_v36 = vadd.f32 %v1623_v58, %v759_v56  ;;  %16337 = vst [vmem:[#allocation12_spill] sm:$0xff] %v12173_v8  ;;  %v4375_v18 = vmul.f32 %v16282_v29, %v12081_v52  ;;  %v16340_v31 = vld [vmem:[#allocation120_spill] sm:$0xff] }
 0x36e   :  { %v5404_v50 = vmax.f32 %v4892_v17, 0.0  ;;  %v5405_v12 = vmax.f32 %v4893_v46, 0.0  ;;  %v768_v38 = vmul.f32 %v16338_v49, %v12042_v11  ;;  %v769_v60 = vmul.f32 %v16338_v49, %v12046_v16  ;;  %v16343_v49 = vld [vmem:[#allocation94_spill] sm:$0xff] }
 0x36f   :  { %6069 = vadd.xlane.f32.xlu0 %v6068_v23  ;;  %v1632_v4 = vmul.f32 %v16339_v0, %v12049_v27  ;;  %v3510_v17 = vadd.f32 %v2998_v43, %v2134_v30  ;;  %v3511_v46 = vadd.f32 %v2999_v42, %v2135_v36  ;;  %v1633_v63 = vmul.f32 %v16339_v0, %v12052_v37  ;;  %v16342_v0 = vld [vmem:[#allocation20_spill] sm:$0xff] }
 0x370   :  { %v6083_v33 = vadd.f32 %v5405_v12, %v5404_v50  ;;  %v3008_v58 = vmul.f32 %v16340_v31, %v12060_v14  ;;  %v3009_v23 = vmul.f32 %v16340_v31, %v12069_v2  ;;  %v4384_v8 = vmul.f32 %v16072_v6, %v12078_v35 }
 0x371   :  { %v2144_v56 = vadd.f32 %v1632_v4, %v768_v38  ;;  %v4886_v57 = vadd.f32 %v4374_v7, %v3510_v17  ;;  %v4887_v50 = vadd.f32 %v4375_v18, %v3511_v46  ;;  %v2145_v43 = vadd.f32 %v1633_v63, %v769_v60  ;;  %v12207_v46 = vpop.xlane.xlu0 %5781 }
 0x372   :  { %6084 = vadd.xlane.f32.xlu1 %v6083_v33  ;;  %v4385_v42 = vmul.f32 %v16072_v6, %v12081_v52  ;;  %v762_v31 = vmul.f32 %v16342_v0, %v12042_v11  ;;  %v1626_v29 = vmul.f32 %v16343_v49, %v12049_v27  ;;  %v763_v7 = vmul.f32 %v16342_v0, %v12046_v16 }
 0x373   :  { %v3520_v12 = vadd.f32 %v3008_v58, %v2144_v56  ;;  %v5398_v30 = vmax.f32 %v4886_v57, 0.0  ;;  %v5399_v36 = vmax.f32 %v4887_v50, 0.0  ;;  %v3521_v38 = vadd.f32 %v3009_v23, %v2145_v43  ;;  %v16344_v57 = vld [vmem:[#allocation21_spill] sm:$0xff]  ;;  %16345 = vst [vmem:[#allocation7_spill] sm:$0xff] %v12207_v46  ;;  %v16346_v58 = vld [vmem:[#allocation111_spill] sm:$0xff]  ;;  %v12227_v46 = vpop.xlane.xlu1 %5796 }
 0x374   :  { %v1627_v18 = vmul.f32 %v16343_v49, %v12052_v37  ;;  %v2138_v33 = vadd.f32 %v1626_v29, %v762_v31  ;;  %v3002_v17 = vmul.f32 %v16344_v57, %v12060_v14  ;;  %v4378_v23 = vmul.f32 %v16346_v58, %v12078_v35  ;;  %v16347_v29 = vld [vmem:[#allocation41_spill] sm:$0xff]  ;;  %16350 = vst [vmem:[#allocation78_spill] sm:$0xff] %v12227_v46 }
 0x375   :  { %v4896_v4 = vadd.f32 %v4384_v8, %v3520_v12  ;;  %v6074_v13 = vadd.f32 %v5399_v36, %v5398_v30  ;;  %v4897_v21 = vadd.f32 %v4385_v42, %v3521_v38  ;;  %v3003_v8 = vmul.f32 %v16344_v57, %v12069_v2  ;;  %v16348_v12 = vld [vmem:[#allocation99_spill] sm:$0xff]  ;;  %v16349_v38 = vld [vmem:[#allocation124_spill] sm:$0xff] }
 0x376   :  { %v2139_v56 = vadd.f32 %v1627_v18, %v763_v7  ;;  %v4379_v50 = vmul.f32 %v16346_v58, %v12081_v52  ;;  %v3514_v43 = vadd.f32 %v3002_v17, %v2138_v33  ;;  %v772_v31 = vmul.f32 %v16347_v29, %v12042_v11 }
 0x377   :  { %v5408_v60 = vmax.f32 %v4896_v4, 0.0  ;;  %6075 = vadd.xlane.f32.xlu0 %v6074_v13  ;;  %v5409_v63 = vmax.f32 %v4897_v21, 0.0  ;;  %v773_v42 = vmul.f32 %v16347_v29, %v12046_v16  ;;  %v1636_v30 = vmul.f32 %v16348_v12, %v12049_v27 }
 0x378   :  { %v3515_v13 = vadd.f32 %v3003_v8, %v2139_v56  ;;  %v1637_v21 = vmul.f32 %v16348_v12, %v12052_v37  ;;  %v3012_v4 = vmul.f32 %v16349_v38, %v12060_v14  ;;  %v4890_v7 = vadd.f32 %v4378_v23, %v3514_v43 }
 0x379   :  { %v6089_v36 = vadd.f32 %v5409_v63, %v5408_v60  ;;  %v2148_v18 = vadd.f32 %v1636_v30, %v772_v31  ;;  %v3013_v33 = vmul.f32 %v16349_v38, %v12069_v2  ;;  %v4388_v17 = vmul.f32 %v16293_v54, %v12078_v35  ;;  %v16351_v30 = vld [vmem:[#allocation96_spill] sm:$0xff] }
 0x37a   :  { %v4891_v29 = vadd.f32 %v4379_v50, %v3515_v13  ;;  %v2149_v60 = vadd.f32 %v1637_v21, %v773_v42  ;;  %v4389_v8 = vmul.f32 %v16293_v54, %v12081_v52  ;;  %v5402_v63 = vmax.f32 %v4890_v7, 0.0  ;;  %v16352_v42 = vld [vmem:[#allocation26_spill] sm:$0xff] }
 0x37b   :  { %6090 = vadd.xlane.f32.xlu1 %v6089_v36  ;;  %v3524_v56 = vadd.f32 %v3012_v4, %v2148_v18  ;;  %v766_v23 = vmul.f32 %v16295_v24, %v12042_v11  ;;  %v767_v43 = vmul.f32 %v16295_v24, %v12046_v16  ;;  %v1630_v46 = vmul.f32 %v16351_v30, %v12049_v27  ;;  %v16353_v4 = vld [vmem:[#allocation22_spill] sm:$0xff]  ;;  %v12245_v18 = vpop.xlane.xlu0 %5787  ;;  %v16355_v24 = vld [vmem:[#allocation47_spill] sm:$0xff] }
 0x37c   :  { %v5403_v12 = vmax.f32 %v4891_v29, 0.0  ;;  %v3525_v58 = vadd.f32 %v3013_v33, %v2149_v60  ;;  %v1631_v50 = vmul.f32 %v16351_v30, %v12052_v37  ;;  %v3006_v36 = vmul.f32 %v16352_v42, %v12060_v14  ;;  %16354 = vst [vmem:[#allocation31_spill] sm:$0xff] %v12245_v18 }
 0x37d   :  { %v4900_v31 = vadd.f32 %v4388_v17, %v3524_v56  ;;  %v3007_v29 = vmul.f32 %v16352_v42, %v12069_v2  ;;  %v4382_v7 = vmul.f32 %v16353_v4, %v12078_v35  ;;  %v2142_v17 = vadd.f32 %v1630_v46, %v766_v23  ;;  %v16357_v23 = vld [vmem:[#allocation102_spill] sm:$0xff] }
 0x37e   :  { %v6080_v13 = vadd.f32 %v5403_v12, %v5402_v63  ;;  %v4901_v21 = vadd.f32 %v4389_v8, %v3525_v58  ;;  %v2143_v60 = vadd.f32 %v1631_v50, %v767_v43  ;;  %v4383_v56 = vmul.f32 %v16353_v4, %v12081_v52  ;;  %v16356_v8 = vld [vmem:[#allocation105_spill] sm:$0xff] }
 0x37f   :  { %v5412_v33 = vmax.f32 %v4900_v31, 0.0  ;;  %v776_v12 = vmul.f32 %v16355_v24, %v12042_v11  ;;  %v777_v58 = vmul.f32 %v16355_v24, %v12046_v16  ;;  %v1640_v63 = vmul.f32 %v16356_v8, %v12049_v27 }
 0x380   :  { %6081 = vadd.xlane.f32.xlu0 %v6080_v13  ;;  %v5413_v30 = vmax.f32 %v4901_v21, 0.0  ;;  %v3518_v42 = vadd.f32 %v3006_v36, %v2142_v17  ;;  %v3519_v54 = vadd.f32 %v3007_v29, %v2143_v60  ;;  %v1641_v46 = vmul.f32 %v16356_v8, %v12052_v37  ;;  %v12265_v29 = vpop.xlane.xlu1 %5802  ;;  %v12267_v60 = vpop.xlane.xlu0 %5793 }
 0x381   :  { %v3016_v43 = vmul.f32 %v16357_v23, %v12060_v14  ;;  %v2152_v50 = vadd.f32 %v1640_v63, %v776_v12  ;;  %v3017_v13 = vmul.f32 %v16357_v23, %v12069_v2  ;;  %v4392_v21 = vmul.f32 %v16245_v62, %v12078_v35  ;;  %16358 = vst [vmem:[#allocation136_spill] sm:$0xff] %v12265_v29 }
 0x382   :  { %v6095_v31 = vadd.f32 %v5413_v30, %v5412_v33  ;;  %v4894_v18 = vadd.f32 %v4382_v7, %v3518_v42  ;;  %v4895_v24 = vadd.f32 %v4383_v56, %v3519_v54  ;;  %v2153_v4 = vadd.f32 %v1641_v46, %v777_v58  ;;  %16359 = vst [vmem:[#allocation137_spill] sm:$0xff] %v12267_v60  ;;  %v16360_v46 = vld [vmem:[#allocation117_spill] sm:$0xff] }
 0x383   :  { %v4393_v36 = vmul.f32 %v16245_v62, %v12081_v52  ;;  %v3528_v17 = vadd.f32 %v3016_v43, %v2152_v50  ;;  %v770_v63 = vmul.f32 %v16247_v32, %v12042_v11  ;;  %v771_v54 = vmul.f32 %v16247_v32, %v12046_v16  ;;  %v16361_v50 = vld [vmem:[#allocation130_spill] sm:$0xff] }
 0x384   :  { %6096 = vadd.xlane.f32.xlu1 %v6095_v31  ;;  %v5406_v30 = vmax.f32 %v4894_v18, 0.0  ;;  %v5407_v33 = vmax.f32 %v4895_v24, 0.0  ;;  %v3529_v12 = vadd.f32 %v3017_v13, %v2153_v4  ;;  %v1634_v42 = vmul.f32 %v16303_v45, %v12049_v27 }
 0x385   :  { %v4904_v23 = vadd.f32 %v4392_v21, %v3528_v17  ;;  %v1635_v7 = vmul.f32 %v16303_v45, %v12052_v37  ;;  %v3010_v18 = vmul.f32 %v16360_v46, %v12060_v14  ;;  %v3011_v24 = vmul.f32 %v16360_v46, %v12069_v2  ;;  %v16367_v45 = vld [vmem:[#allocation48_spill] sm:$0xff] }
 0x386   :  { %v6086_v56 = vadd.f32 %v5407_v33, %v5406_v30  ;;  %v4905_v58 = vadd.f32 %v4393_v36, %v3529_v12  ;;  %v2146_v43 = vadd.f32 %v1634_v42, %v770_v63  ;;  %v4386_v13 = vmul.f32 %v16361_v50, %v12078_v35  ;;  %v16362_v30 = vld [vmem:[#allocation57_spill] sm:$0xff]  ;;  %v12293_v42 = vpop.xlane.xlu0 %5799 }
 0x387   :  { %v5416_v4 = vmax.f32 %v4904_v23, 0.0  ;;  %v2147_v31 = vadd.f32 %v1635_v7, %v771_v54  ;;  %v4387_v17 = vmul.f32 %v16361_v50, %v12081_v52  ;;  %v780_v36 = vmul.f32 %v16362_v30, %v12042_v11  ;;  %v16363_v23 = vld [vmem:[#allocation64_spill] sm:$0xff]  ;;  %16364 = vst [vmem:[#allocation138_spill] sm:$0xff] %v12293_v42  ;;  %v12301_v50 = vpop.xlane.xlu1 %5808 }
 0x388   :  { %6087 = vadd.xlane.f32.xlu0 %v6086_v56  ;;  %v5417_v21 = vmax.f32 %v4905_v58, 0.0  ;;  %v781_v33 = vmul.f32 %v16362_v30, %v12046_v16  ;;  %v3522_v12 = vadd.f32 %v3010_v18, %v2146_v43  ;;  %v1644_v63 = vmul.f32 %v16363_v23, %v12049_v27  ;;  %v16365_v56 = vld [vmem:[#allocation59_spill] sm:$0xff]  ;;  %16366 = vst [vmem:[#allocation139_spill] sm:$0xff] %v12301_v50 }
 0x389   :  { %v3523_v29 = vadd.f32 %v3011_v24, %v2147_v31  ;;  %v1645_v54 = vmul.f32 %v16363_v23, %v12052_v37  ;;  %v3020_v58 = vmul.f32 %v16365_v56, %v12060_v14  ;;  %v3021_v60 = vmul.f32 %v16365_v56, %v12069_v2 }
 0x38a   :  { %v6101_v7 = vadd.f32 %v5417_v21, %v5416_v4  ;;  %v4396_v30 = vmul.f32 %v16141_v41, %v12078_v35  ;;  %v4898_v18 = vadd.f32 %v4386_v13, %v3522_v12  ;;  %v2156_v43 = vadd.f32 %v1644_v63, %v780_v36  ;;  %v12313_v63 = vpop.xlane.xlu0 %5805 }
 0x38b   :  { %v4899_v24 = vadd.f32 %v4387_v17, %v3523_v29  ;;  %v2157_v31 = vadd.f32 %v1645_v54, %v781_v33  ;;  %v4397_v42 = vmul.f32 %v16141_v41, %v12081_v52  ;;  %v774_v56 = vmul.f32 %v16367_v45, %v12042_v11  ;;  %v16368_v29 = vld [vmem:[#allocation104_spill] sm:$0xff]  ;;  %16369 = vst [vmem:[#allocation140_spill] sm:$0xff] %v12313_v63 }
 0x38c   :  { %6102 = vadd.xlane.f32.xlu1 %v6101_v7  ;;  %v5410_v4 = vmax.f32 %v4898_v18, 0.0  ;;  %v3532_v23 = vadd.f32 %v3020_v58, %v2156_v43  ;;  %v775_v32 = vmul.f32 %v16367_v45, %v12046_v16  ;;  %v1638_v13 = vmul.f32 %v16368_v29, %v12049_v27  ;;  %v16371_v18 = vld [vmem:[#allocation132_spill] sm:$0xff] }
 0x38d   :  { %v5411_v21 = vmax.f32 %v4899_v24, 0.0  ;;  %v3533_v46 = vadd.f32 %v3021_v60, %v2157_v31  ;;  %v1639_v12 = vmul.f32 %v16368_v29, %v12052_v37  ;;  %v16370_v60 = vld [vmem:[#allocation121_spill] sm:$0xff]  ;;  %v4390_v24 = vmul.f32 %v16371_v18, %v12078_v35 }
 0x38e   :  { %v4908_v36 = vadd.f32 %v4396_v30, %v3532_v23  ;;  %v2150_v54 = vadd.f32 %v1638_v13, %v774_v56  ;;  %v3014_v7 = vmul.f32 %v16370_v60, %v12060_v14  ;;  %v3015_v58 = vmul.f32 %v16370_v60, %v12069_v2 }
 0x38f   :  { %v6092_v17 = vadd.f32 %v5411_v21, %v5410_v4  ;;  %v4909_v33 = vadd.f32 %v4397_v42, %v3533_v46  ;;  %v2151_v30 = vadd.f32 %v1639_v12, %v775_v32  ;;  %v4391_v46 = vmul.f32 %v16371_v18, %v12081_v52  ;;  %v16372_v42 = vld [vmem:[#allocation67_spill] sm:$0xff]  ;;  %v16373_v21 = vld [vmem:[#allocation110_spill] sm:$0xff]  ;;  %v16374_v32 = vld [vmem:[#allocation29_spill] sm:$0xff] }
 0x390   :  { %v5420_v43 = vmax.f32 %v4908_v36, 0.0  ;;  %v3526_v23 = vadd.f32 %v3014_v7, %v2150_v54  ;;  %v784_v56 = vmul.f32 %v16372_v42, %v12042_v11  ;;  %v785_v4 = vmul.f32 %v16372_v42, %v12046_v16  ;;  %v16375_v7 = vld [vmem:[#allocation133_spill] sm:$0xff]  ;;  %v12337_v42 = vpop.xlane.xlu1 %5814 }
 0x391   :  { %6093 = vadd.xlane.f32.xlu0 %v6092_v17  ;;  %v5421_v31 = vmax.f32 %v4909_v33, 0.0  ;;  %v1648_v13 = vmul.f32 %v16373_v21, %v12049_v27  ;;  %v3527_v63 = vadd.f32 %v3015_v58, %v2151_v30  ;;  %v1649_v17 = vmul.f32 %v16373_v21, %v12052_v37  ;;  %16376 = vst [vmem:[#allocation141_spill] sm:$0xff] %v12337_v42 }
 0x392   :  { %v3024_v36 = vmul.f32 %v16374_v32, %v12060_v14  ;;  %v4902_v33 = vadd.f32 %v4390_v24, %v3526_v23  ;;  %v3025_v54 = vmul.f32 %v16374_v32, %v12069_v2  ;;  %v4400_v18 = vmul.f32 %v16375_v7, %v12078_v35 }
 0x393   :  { %v6107_v50 = vadd.f32 %v5421_v31, %v5420_v43  ;;  %v2160_v12 = vadd.f32 %v1648_v13, %v784_v56  ;;  %v4903_v60 = vadd.f32 %v4391_v46, %v3527_v63  ;;  %v2161_v43 = vadd.f32 %v1649_v17, %v785_v4  ;;  %v12341_v31 = vpop.xlane.xlu0 %5811  ;;  %v16378_v56 = vld [vmem:[#allocation58_spill] sm:$0xff]  ;;  %v29_v4 = vld [vmem:[%s15057_s0 + $0x58] sm:$0xff] }
 0x394   :  { %v4401_v58 = vmul.f32 %v16375_v7, %v12081_v52  ;;  %16377 = vst [vmem:[#allocation142_spill] sm:$0xff] %v12341_v31  ;;  %v5414_v30 = vmax.f32 %v4902_v33, 0.0  ;;  %v778_v13 = vmul.f32 %v16378_v56, %v12042_v11  ;;  %v779_v29 = vmul.f32 %v16378_v56, %v12046_v16 }
 0x395   :  { %6108 = vadd.xlane.f32.xlu1 %v6107_v50  ;;  %v3536_v21 = vadd.f32 %v3024_v36, %v2160_v12  ;;  %v5415_v24 = vmax.f32 %v4903_v60, 0.0  ;;  %v3537_v23 = vadd.f32 %v3025_v54, %v2161_v43  ;;  %v16379_v50 = vld [vmem:[#allocation63_spill] sm:$0xff]  ;;  %v16380_v36 = vld [vmem:[#allocation125_spill] sm:$0xff]  ;;  %v4394_v43 = vmul.f32 %v16322_v20, %v12078_v35 }
 0x396   :  { %v1642_v63 = vmul.f32 %v16379_v50, %v12049_v27  ;;  %v1643_v46 = vmul.f32 %v16379_v50, %v12052_v37  ;;  %v3018_v33 = vmul.f32 %v16380_v36, %v12060_v14  ;;  %v4395_v31 = vmul.f32 %v16322_v20, %v12081_v52 }
 0x397   :  { %v4912_v32 = vadd.f32 %v4400_v18, %v3536_v21  ;;  %v6098_v17 = vadd.f32 %v5415_v24, %v5414_v30  ;;  %v4913_v60 = vadd.f32 %v4401_v58, %v3537_v23  ;;  %v3019_v18 = vmul.f32 %v16380_v36, %v12069_v2  ;;  %v16381_v58 = vld [vmem:[#allocation8_spill] sm:$0xff]  ;;  %v12364_v23 = vpop.xlane.xlu0 %5817  ;;  %v16383_v36 = vld [vmem:[#allocation9_spill] sm:$0xff] }
 0x398   :  { %v2154_v12 = vadd.f32 %v1642_v63, %v778_v13  ;;  %v2155_v54 = vadd.f32 %v1643_v46, %v779_v29  ;;  %v157_v30 = vrot.slane %v29_v4, %v16021_v25  ;;  %v161_v24 = vrot.slane %v29_v4, %v16381_v58  ;;  %16382 = vst [vmem:[#allocation143_spill] sm:$0xff] %v12364_v23  ;;  %v16384_v13 = vld [vmem:[#allocation10_spill] sm:$0xff] }
 0x399   :  { %v5424_v21 = vmax.f32 %v4912_v32, 0.0  ;;  %6099 = vadd.xlane.f32.xlu0 %v6098_v17  ;;  %v5425_v42 = vmax.f32 %v4913_v60, 0.0  ;;  %v1037_v32 = vrot.slane %v29_v4, %v16383_v36  ;;  %v1041_v29 = vrot.slane %v29_v4, %v16384_v13  ;;  %v16385_v60 = vld [vmem:[#allocation13_spill] sm:$0xff] }
 0x39a   :  { %v3530_v50 = vadd.f32 %v3018_v33, %v2154_v12  ;;  %v3531_v56 = vadd.f32 %v3019_v18, %v2155_v54  ;;  %v12369_v46 = vrot.slane %v157_v30, %v16021_v25  ;;  %v12372_v17 = vrot.slane %v161_v24, %v16021_v25  ;;  %v12381_v18 = vpop.xlane.xlu1 %5820  ;;  %v16388_v54 = vld [vmem:[#allocation14_spill] sm:$0xff] }
 0x39b   :  { %v6113_v63 = vadd.f32 %v5425_v42, %v5424_v21  ;;  %v2413_v20 = vrot.slane %v29_v4, %v16385_v60  ;;  %v12376_v58 = vrot.slane %v1037_v32, %v16383_v36  ;;  %v12379_v33 = vrot.slane %v1041_v29, %v16383_v36  ;;  %16386 = vst [vmem:[#allocation9_spill] sm:$0xff] %v12381_v18  ;;  %v16387_v42 = vld [vmem:[#allocation18_spill] sm:$0xff] }
 0x39c   :  { %v4906_v7 = vadd.f32 %v4394_v43, %v3530_v50  ;;  %v4907_v45 = vadd.f32 %v4395_v31, %v3531_v56  ;;  %v788_v21 = vmul.f32 %v16387_v42, %v12369_v46  ;;  %v789_v12 = vmul.f32 %v16387_v42, %v12372_v17  ;;  %v16389_v43 = vld [vmem:[#allocation85_spill] sm:$0xff] }
 0x39d   :  { %6114 = vadd.xlane.f32.xlu1 %v6113_v63  ;;  %v2417_v30 = vrot.slane %v29_v4, %v16388_v54  ;;  %v12389_v50 = vrot.slane %v2413_v20, %v16385_v60  ;;  %v1652_v24 = vmul.f32 %v16389_v43, %v12376_v58  ;;  %v1653_v32 = vmul.f32 %v16389_v43, %v12379_v33  ;;  %v12402_v20 = vpop.xlane.xlu0 %5823 }
 0x39e   :  { %v5418_v31 = vmax.f32 %v4906_v7, 0.0  ;;  %v5419_v56 = vmax.f32 %v4907_v45, 0.0  ;;  %v3789_v18 = vrot.slane %v29_v4, %v15985_v26  ;;  %v3793_v23 = vrot.slane %v29_v4, %v15986_v28  ;;  %16390 = vst [vmem:[#allocation144_spill] sm:$0xff] %v12402_v20 }
 0x39f   :  { %v12396_v29 = vrot.slane %v2417_v30, %v16385_v60  ;;  %v3028_v63 = vmul.f32 %v15988_v53, %v12389_v50  ;;  %v2164_v45 = vadd.f32 %v1652_v24, %v788_v21  ;;  %v2165_v42 = vadd.f32 %v1653_v32, %v789_v12  ;;  %v12432_v32 = vpop.xlane.xlu1 %5826 }
 0x3a0   :  { %v6104_v7 = vadd.f32 %v5419_v56, %v5418_v31  ;;  %v12407_v43 = vrot.slane %v3789_v18, %v15985_v26  ;;  %v12410_v30 = vrot.slane %v3793_v23, %v15985_v26  ;;  %v782_v13 = vmul.f32 %v15987_v48, %v12042_v11  ;;  %16391 = vst [vmem:[#allocation145_spill] sm:$0xff] %v12432_v32 }
 0x3a1   :  { %v3029_v54 = vmul.f32 %v15988_v53, %v12396_v29  ;;  %v3540_v60 = vadd.f32 %v3028_v63, %v2164_v45  ;;  %v783_v12 = vmul.f32 %v15987_v48, %v12046_v16  ;;  %v1646_v18 = vmul.f32 %v16332_v44, %v12049_v27  ;;  %v12434_v27 = vpop.xlane.xlu0 %5829  ;;  %v16393_v45 = vld [vmem:[#allocation92_spill] sm:$0xff] }
 0x3a2   :  { %6105 = vadd.xlane.f32.xlu0 %v6104_v7  ;;  %v4404_v31 = vmul.f32 %v16275_v3, %v12407_v43  ;;  %v4405_v21 = vmul.f32 %v16275_v3, %v12410_v30  ;;  %v1647_v23 = vmul.f32 %v16332_v44, %v12052_v37  ;;  %v3022_v56 = vmul.f32 %v16277_v22, %v12060_v14 }
 0x3a3   :  { %v3541_v4 = vadd.f32 %v3029_v54, %v2165_v42  ;;  %v3023_v11 = vmul.f32 %v16277_v22, %v12069_v2  ;;  %v4398_v24 = vmul.f32 %v16108_v5, %v12078_v35  ;;  %v4399_v16 = vmul.f32 %v16108_v5, %v12081_v52  ;;  %16392 = vst [vmem:[#allocation146_spill] sm:$0xff] %v12434_v27 }
 0x3a4   :  { %v4916_v42 = vadd.f32 %v4404_v31, %v3540_v60  ;;  %v2158_v63 = vadd.f32 %v1646_v18, %v782_v13  ;;  %v2159_v37 = vadd.f32 %v1647_v23, %v783_v12  ;;  %v792_v14 = vmul.f32 %v16220_v51, %v12369_v46 }
 0x3a5   :  { %v4917_v54 = vadd.f32 %v4405_v21, %v3541_v4  ;;  %v793_v2 = vmul.f32 %v16220_v51, %v12372_v17  ;;  %v1656_v35 = vmul.f32 %v16393_v45, %v12376_v58  ;;  %v1657_v52 = vmul.f32 %v16393_v45, %v12379_v33 }
 0x3a6   :  { %v5428_v60 = vmax.f32 %v4916_v42, 0.0  ;;  %v3534_v4 = vadd.f32 %v3022_v56, %v2158_v63  ;;  %v3535_v31 = vadd.f32 %v3023_v11, %v2159_v37  ;;  %v3032_v13 = vmul.f32 %v16070_v39, %v12389_v50  ;;  %v12452_v63 = vpop.xlane.xlu1 %5832  ;;  %v12454_v37 = vpop.xlane.xlu0 %5835 }
 0x3a7   :  { %v5429_v7 = vmax.f32 %v4917_v54, 0.0  ;;  %v3033_v21 = vmul.f32 %v16070_v39, %v12396_v29  ;;  %v2168_v18 = vadd.f32 %v1656_v35, %v792_v14  ;;  %v2169_v23 = vadd.f32 %v1657_v52, %v793_v2  ;;  %16394 = vst [vmem:[#allocation147_spill] sm:$0xff] %v12452_v63  ;;  %16395 = vst [vmem:[#allocation148_spill] sm:$0xff] %v12454_v37 }
 0x3a8   :  { %v4408_v42 = vmul.f32 %v15923_v40, %v12407_v43  ;;  %v4910_v54 = vadd.f32 %v4398_v24, %v3534_v4  ;;  %v4911_v20 = vadd.f32 %v4399_v16, %v3535_v31  ;;  %v4409_v32 = vmul.f32 %v15923_v40, %v12410_v30 }
 0x3a9   :  { %v6119_v12 = vadd.f32 %v5429_v7, %v5428_v60  ;;  %v3544_v56 = vadd.f32 %v3032_v13, %v2168_v18  ;;  %v3545_v11 = vadd.f32 %v3033_v21, %v2169_v23  ;;  %v786_v14 = vmul.f32 %v15992_v34, %v12369_v46 }
 0x3aa   :  { %v5422_v27 = vmax.f32 %v4910_v54, 0.0  ;;  %v5423_v39 = vmax.f32 %v4911_v20, 0.0  ;;  %v787_v24 = vmul.f32 %v15992_v34, %v12372_v17  ;;  %v1650_v16 = vmul.f32 %v15925_v61, %v12376_v58 }
 0x3ab   :  { %6120 = vadd.xlane.f32.xlu1 %v6119_v12  ;;  %v4920_v2 = vadd.f32 %v4408_v42, %v3544_v56  ;;  %v4921_v60 = vadd.f32 %v4409_v32, %v3545_v11  ;;  %v1651_v35 = vmul.f32 %v15925_v61, %v12379_v33  ;;  %v3026_v52 = vmul.f32 %v16071_v15, %v12389_v50  ;;  %v12480_v56 = vpop.xlane.xlu1 %5838  ;;  %v12482_v11 = vpop.xlane.xlu0 %5841 }
 0x3ac   :  { %v6110_v7 = vadd.f32 %v5423_v39, %v5422_v27  ;;  %v3027_v20 = vmul.f32 %v16071_v15, %v12396_v29  ;;  %v2162_v13 = vadd.f32 %v1650_v16, %v786_v14  ;;  %v4402_v32 = vmul.f32 %v15930_v55, %v12407_v43  ;;  %16396 = vst [vmem:[#allocation149_spill] sm:$0xff] %v12480_v56 }
 0x3ad   :  { %v5432_v4 = vmax.f32 %v4920_v2, 0.0  ;;  %v5433_v31 = vmax.f32 %v4921_v60, 0.0  ;;  %v2163_v21 = vadd.f32 %v1651_v35, %v787_v24  ;;  %v4403_v39 = vmul.f32 %v15930_v55, %v12410_v30  ;;  %16397 = vst [vmem:[#allocation150_spill] sm:$0xff] %v12482_v11 }
 0x3ae   :  { %6111 = vadd.xlane.f32.xlu0 %v6110_v7  ;;  %v796_v27 = vmul.f32 %v15993_v59, %v12369_v46  ;;  %v797_v12 = vmul.f32 %v15993_v59, %v12372_v17  ;;  %v3538_v23 = vadd.f32 %v3026_v52, %v2162_v13  ;;  %v1660_v42 = vmul.f32 %v15931_v19, %v12376_v58 }
 0x3af   :  { %v6125_v18 = vadd.f32 %v5433_v31, %v5432_v4  ;;  %v1661_v54 = vmul.f32 %v15931_v19, %v12379_v33  ;;  %v3539_v14 = vadd.f32 %v3027_v20, %v2163_v21  ;;  %v3036_v2 = vmul.f32 %v15933_v9, %v12389_v50 }
 0x3b0   :  { %v3037_v60 = vmul.f32 %v15933_v9, %v12396_v29  ;;  %v4412_v24 = vmul.f32 %v9445_v47, %v12407_v43  ;;  %v4914_v16 = vadd.f32 %v4402_v32, %v3538_v23  ;;  %v2172_v7 = vadd.f32 %v1660_v42, %v796_v27  ;;  %v12502_v42 = vpop.xlane.xlu1 %5844 }
 0x3b1   :  { %6126 = vadd.xlane.f32.xlu1 %v6125_v18  ;;  %v2173_v35 = vadd.f32 %v1661_v54, %v797_v12  ;;  %v4413_v52 = vmul.f32 %v9445_v47, %v12410_v30  ;;  %v4915_v4 = vadd.f32 %v4403_v39, %v3539_v14  ;;  %v790_v56 = vmul.f32 %v15994_v1, %v12369_v46  ;;  %v16398_v39 = vld [vmem:[#allocation44_spill] sm:$0xff]  ;;  %v12504_v54 = vpop.xlane.xlu0 %5847 }
 0x3b2   :  { %v5426_v31 = vmax.f32 %v4914_v16, 0.0  ;;  %v3548_v13 = vadd.f32 %v3036_v2, %v2172_v7  ;;  %v791_v11 = vmul.f32 %v15994_v1, %v12372_v17  ;;  %v1654_v18 = vmul.f32 %v15935_v10, %v12376_v58  ;;  %16399 = vst [vmem:[#allocation44_spill] sm:$0xff] %v12502_v42  ;;  %16400 = vst [vmem:[#allocation151_spill] sm:$0xff] %v12504_v54  ;;  %v16401_v16 = vld [vmem:[#allocation108_spill] sm:$0xff] }
 0x3b3   :  { %v3549_v20 = vadd.f32 %v3037_v60, %v2173_v35  ;;  %v5427_v21 = vmax.f32 %v4915_v4, 0.0  ;;  %v1655_v12 = vmul.f32 %v15935_v10, %v12379_v33  ;;  %v3030_v23 = vmul.f32 %v16398_v39, %v12389_v50 }
 0x3b4   :  { %v4924_v32 = vadd.f32 %v4412_v24, %v3548_v13  ;;  %v2166_v2 = vadd.f32 %v1654_v18, %v790_v56  ;;  %v3031_v60 = vmul.f32 %v16398_v39, %v12396_v29  ;;  %v4406_v7 = vmul.f32 %v16401_v16, %v12407_v43 }
 0x3b5   :  { %v4925_v27 = vadd.f32 %v4413_v52, %v3549_v20  ;;  %v6116_v14 = vadd.f32 %v5427_v21, %v5426_v31  ;;  %v2167_v52 = vadd.f32 %v1655_v12, %v791_v11  ;;  %v4407_v4 = vmul.f32 %v16401_v16, %v12410_v30  ;;  %v16402_v20 = vld [vmem:[#allocation35_spill] sm:$0xff]  ;;  %v16403_v31 = vld [vmem:[#allocation97_spill] sm:$0xff]  ;;  %v16404_v11 = vld [vmem:[#allocation120_spill] sm:$0xff] }
 0x3b6   :  { %v5436_v24 = vmax.f32 %v4924_v32, 0.0  ;;  %v3542_v13 = vadd.f32 %v3030_v23, %v2166_v2  ;;  %v800_v42 = vmul.f32 %v16402_v20, %v12369_v46  ;;  %v801_v56 = vmul.f32 %v16402_v20, %v12372_v17 }
 0x3b7   :  { %v5437_v35 = vmax.f32 %v4925_v27, 0.0  ;;  %6117 = vadd.xlane.f32.xlu0 %v6116_v14  ;;  %v1664_v21 = vmul.f32 %v16403_v31, %v12376_v58  ;;  %v3543_v54 = vadd.f32 %v3031_v60, %v2167_v52  ;;  %v1665_v32 = vmul.f32 %v16403_v31, %v12379_v33 }
 0x3b8   :  { %v3040_v27 = vmul.f32 %v16404_v11, %v12389_v50  ;;  %v4918_v12 = vadd.f32 %v4406_v7, %v3542_v13  ;;  %v3041_v23 = vmul.f32 %v16404_v11, %v12396_v29  ;;  %v4416_v2 = vmul.f32 %v16072_v6, %v12407_v43 }
 0x3b9   :  { %v6131_v18 = vadd.f32 %v5437_v35, %v5436_v24  ;;  %v2176_v14 = vadd.f32 %v1664_v21, %v800_v42  ;;  %v4919_v63 = vadd.f32 %v4407_v4, %v3543_v54  ;;  %v2177_v37 = vadd.f32 %v1665_v32, %v801_v56  ;;  %v12528_v24 = vpop.xlane.xlu1 %5850  ;;  %v12530_v35 = vpop.xlane.xlu0 %5853 }
 0x3ba   :  { %v4417_v60 = vmul.f32 %v16072_v6, %v12410_v30  ;;  %16405 = vst [vmem:[#allocation108_spill] sm:$0xff] %v12528_v24  ;;  %16406 = vst [vmem:[#allocation152_spill] sm:$0xff] %v12530_v35  ;;  %v5430_v52 = vmax.f32 %v4918_v12, 0.0  ;;  %v794_v13 = vmul.f32 %v16342_v0, %v12369_v46  ;;  %v1658_v54 = vmul.f32 %v16343_v49, %v12376_v58 }
 0x3bb   :  { %6132 = vadd.xlane.f32.xlu1 %v6131_v18  ;;  %v3552_v31 = vadd.f32 %v3040_v27, %v2176_v14  ;;  %v5431_v7 = vmax.f32 %v4919_v63, 0.0  ;;  %v3553_v42 = vadd.f32 %v3041_v23, %v2177_v37  ;;  %v795_v18 = vmul.f32 %v16342_v0, %v12372_v17  ;;  %v16407_v23 = vld [vmem:[#allocation111_spill] sm:$0xff] }
 0x3bc   :  { %v1659_v4 = vmul.f32 %v16343_v49, %v12379_v33  ;;  %v3034_v27 = vmul.f32 %v16344_v57, %v12389_v50  ;;  %v2170_v37 = vadd.f32 %v1658_v54, %v794_v13  ;;  %v4411_v24 = vmul.f32 %v16407_v23, %v12410_v30  ;;  %v16411_v54 = vld [vmem:[#allocation99_spill] sm:$0xff]  ;;  %v16413_v49 = vld [vmem:[#allocation36_spill] sm:$0xff] }
 0x3bd   :  { %v4928_v21 = vadd.f32 %v4416_v2, %v3552_v31  ;;  %v6122_v56 = vadd.f32 %v5431_v7, %v5430_v52  ;;  %v4929_v32 = vadd.f32 %v4417_v60, %v3553_v42  ;;  %v3035_v31 = vmul.f32 %v16344_v57, %v12396_v29  ;;  %v16408_v52 = vld [vmem:[#allocation41_spill] sm:$0xff]  ;;  %v12550_v7 = vpop.xlane.xlu1 %5856  ;;  %v12552_v42 = vpop.xlane.xlu0 %5859 }
 0x3be   :  { %v2171_v12 = vadd.f32 %v1659_v4, %v795_v18  ;;  %v4410_v2 = vmul.f32 %v16407_v23, %v12407_v43  ;;  %v804_v60 = vmul.f32 %v16408_v52, %v12369_v46  ;;  %16409 = vst [vmem:[#allocation153_spill] sm:$0xff] %v12550_v7  ;;  %16410 = vst [vmem:[#allocation154_spill] sm:$0xff] %v12552_v42 }
 0x3bf   :  { %v5440_v63 = vmax.f32 %v4928_v21, 0.0  ;;  %6123 = vadd.xlane.f32.xlu0 %v6122_v56  ;;  %v5441_v14 = vmax.f32 %v4929_v32, 0.0  ;;  %v3546_v13 = vadd.f32 %v3034_v27, %v2170_v37  ;;  %v805_v18 = vmul.f32 %v16408_v52, %v12372_v17  ;;  %v16412_v37 = vld [vmem:[#allocation75_spill] sm:$0xff] }
 0x3c0   :  { %v3547_v21 = vadd.f32 %v3035_v31, %v2171_v12  ;;  %v1668_v4 = vmul.f32 %v16411_v54, %v12376_v58  ;;  %v1669_v32 = vmul.f32 %v16411_v54, %v12379_v33  ;;  %v3044_v35 = vmul.f32 %v16349_v38, %v12389_v50 }
 0x3c1   :  { %v6137_v56 = vadd.f32 %v5441_v14, %v5440_v63  ;;  %v3045_v7 = vmul.f32 %v16349_v38, %v12396_v29  ;;  %v4922_v23 = vadd.f32 %v4410_v2, %v3546_v13  ;;  %v4420_v12 = vmul.f32 %v16412_v37, %v12407_v43  ;;  %v12574_v13 = vpop.xlane.xlu1 %5862 }
 0x3c2   :  { %v4923_v42 = vadd.f32 %v4411_v24, %v3547_v21  ;;  %v2180_v27 = vadd.f32 %v1668_v4, %v804_v60  ;;  %v2181_v31 = vadd.f32 %v1669_v32, %v805_v18  ;;  %v4421_v63 = vmul.f32 %v16412_v37, %v12410_v30  ;;  %v16414_v24 = vld [vmem:[#allocation96_spill] sm:$0xff]  ;;  %16415 = vst [vmem:[#allocation155_spill] sm:$0xff] %v12574_v13  ;;  %v12576_v21 = vpop.xlane.xlu0 %5865 }
 0x3c3   :  { %6138 = vadd.xlane.f32.xlu1 %v6137_v56  ;;  %v5434_v14 = vmax.f32 %v4922_v23, 0.0  ;;  %v798_v0 = vmul.f32 %v16413_v49, %v12369_v46  ;;  %v799_v2 = vmul.f32 %v16413_v49, %v12372_v17  ;;  %v1662_v60 = vmul.f32 %v16414_v24, %v12376_v58  ;;  %16416 = vst [vmem:[#allocation156_spill] sm:$0xff] %v12576_v21 }
 0x3c4   :  { %v5435_v52 = vmax.f32 %v4923_v42, 0.0  ;;  %v3556_v54 = vadd.f32 %v3044_v35, %v2180_v27  ;;  %v3557_v57 = vadd.f32 %v3045_v7, %v2181_v31  ;;  %v1663_v23 = vmul.f32 %v16414_v24, %v12379_v33  ;;  %v16417_v35 = vld [vmem:[#allocation26_spill] sm:$0xff] }
 0x3c5   :  { %v3038_v7 = vmul.f32 %v16417_v35, %v12389_v50  ;;  %v2174_v56 = vadd.f32 %v1662_v60, %v798_v0  ;;  %v3039_v32 = vmul.f32 %v16417_v35, %v12396_v29  ;;  %v16418_v27 = vld [vmem:[#allocation22_spill] sm:$0xff]  ;;  %v1673_v60 = vmul.f32 %v16356_v8, %v12379_v33 }
 0x3c6   :  { %v6128_v18 = vadd.f32 %v5435_v52, %v5434_v14  ;;  %v4932_v4 = vadd.f32 %v4420_v12, %v3556_v54  ;;  %v4933_v42 = vadd.f32 %v4421_v63, %v3557_v57  ;;  %v4414_v31 = vmul.f32 %v16418_v27, %v12407_v43  ;;  %v16419_v54 = vld [vmem:[#allocation47_spill] sm:$0xff] }
 0x3c7   :  { %v2175_v49 = vadd.f32 %v1663_v23, %v799_v2  ;;  %v4415_v52 = vmul.f32 %v16418_v27, %v12410_v30  ;;  %v808_v12 = vmul.f32 %v16419_v54, %v12369_v46  ;;  %v3550_v21 = vadd.f32 %v3038_v7, %v2174_v56  ;;  %v16420_v2 = vld [vmem:[#allocation102_spill] sm:$0xff]  ;;  %v12602_v56 = vpop.xlane.xlu1 %5868 }
 0x3c8   :  { %6129 = vadd.xlane.f32.xlu0 %v6128_v18  ;;  %v5444_v13 = vmax.f32 %v4932_v4, 0.0  ;;  %v5445_v14 = vmax.f32 %v4933_v42, 0.0  ;;  %v809_v0 = vmul.f32 %v16419_v54, %v12372_v17  ;;  %v1672_v57 = vmul.f32 %v16356_v8, %v12376_v58  ;;  %16421 = vst [vmem:[#allocation157_spill] sm:$0xff] %v12602_v56  ;;  %v12604_v54 = vpop.xlane.xlu0 %5871 }
 0x3c9   :  { %v3551_v63 = vadd.f32 %v3039_v32, %v2175_v49  ;;  %v3048_v18 = vmul.f32 %v16420_v2, %v12389_v50  ;;  %v3049_v4 = vmul.f32 %v16420_v2, %v12396_v29  ;;  %v4926_v27 = vadd.f32 %v4414_v31, %v3550_v21  ;;  %16422 = vst [vmem:[#allocation158_spill] sm:$0xff] %v12604_v54 }
 0x3ca   :  { %v6143_v23 = vadd.f32 %v5445_v14, %v5444_v13  ;;  %v2184_v42 = vadd.f32 %v1672_v57, %v808_v12  ;;  %v4424_v7 = vmul.f32 %v16245_v62, %v12407_v43  ;;  %v2185_v32 = vadd.f32 %v1673_v60, %v809_v0  ;;  %v16423_v13 = vld [vmem:[#allocation42_spill] sm:$0xff]  ;;  %v16425_v0 = vld [vmem:[#allocation117_spill] sm:$0xff] }
 0x3cb   :  { %v4927_v49 = vadd.f32 %v4415_v52, %v3551_v63  ;;  %v4425_v8 = vmul.f32 %v16245_v62, %v12410_v30  ;;  %v5438_v35 = vmax.f32 %v4926_v27, 0.0  ;;  %v802_v21 = vmul.f32 %v16423_v13, %v12369_v46  ;;  %v16424_v14 = vld [vmem:[#allocation98_spill] sm:$0xff] }
 0x3cc   :  { %6144 = vadd.xlane.f32.xlu1 %v6143_v23  ;;  %v3560_v24 = vadd.f32 %v3048_v18, %v2184_v42  ;;  %v3561_v2 = vadd.f32 %v3049_v4, %v2185_v32  ;;  %v803_v31 = vmul.f32 %v16423_v13, %v12372_v17  ;;  %v1666_v57 = vmul.f32 %v16424_v14, %v12376_v58  ;;  %v16426_v4 = vld [vmem:[#allocation130_spill] sm:$0xff]  ;;  %v12624_v32 = vpop.xlane.xlu1 %5874  ;;  %v12626_v54 = vpop.xlane.xlu0 %5877 }
 0x3cd   :  { %v5439_v37 = vmax.f32 %v4927_v49, 0.0  ;;  %v1667_v52 = vmul.f32 %v16424_v14, %v12379_v33  ;;  %v3042_v63 = vmul.f32 %v16425_v0, %v12389_v50  ;;  %v3043_v18 = vmul.f32 %v16425_v0, %v12396_v29  ;;  %16427 = vst [vmem:[#allocation159_spill] sm:$0xff] %v12624_v32  ;;  %16428 = vst [vmem:[#allocation160_spill] sm:$0xff] %v12626_v54 }
 0x3ce   :  { %v4936_v12 = vadd.f32 %v4424_v7, %v3560_v24  ;;  %v4937_v60 = vadd.f32 %v4425_v8, %v3561_v2  ;;  %v4418_v23 = vmul.f32 %v16426_v4, %v12407_v43  ;;  %v2178_v49 = vadd.f32 %v1666_v57, %v802_v21  ;;  %v16429_v8 = vld [vmem:[#allocation57_spill] sm:$0xff]  ;;  %v16430_v2 = vld [vmem:[#allocation64_spill] sm:$0xff] }
 0x3cf   :  { %v6134_v27 = vadd.f32 %v5439_v37, %v5438_v35  ;;  %v2179_v24 = vadd.f32 %v1667_v52, %v803_v31  ;;  %v4419_v7 = vmul.f32 %v16426_v4, %v12410_v30  ;;  %v812_v37 = vmul.f32 %v16429_v8, %v12369_v46  ;;  %v16431_v52 = vld [vmem:[#allocation59_spill] sm:$0xff] }
 0x3d0   :  { %v5448_v42 = vmax.f32 %v4936_v12, 0.0  ;;  %v5449_v56 = vmax.f32 %v4937_v60, 0.0  ;;  %v813_v35 = vmul.f32 %v16429_v8, %v12372_v17  ;;  %v1676_v12 = vmul.f32 %v16430_v2, %v12376_v58  ;;  %v12644_v13 = vpop.xlane.xlu1 %5880 }
 0x3d1   :  { %6135 = vadd.xlane.f32.xlu0 %v6134_v27  ;;  %v3554_v21 = vadd.f32 %v3042_v63, %v2178_v49  ;;  %v3555_v31 = vadd.f32 %v3043_v18, %v2179_v24  ;;  %v1677_v57 = vmul.f32 %v16430_v2, %v12379_v33  ;;  %v3052_v32 = vmul.f32 %v16431_v52, %v12389_v50 }
 0x3d2   :  { %v6149_v54 = vadd.f32 %v5449_v56, %v5448_v42  ;;  %v2188_v27 = vadd.f32 %v1676_v12, %v812_v37  ;;  %v3053_v60 = vmul.f32 %v16431_v52, %v12396_v29  ;;  %v4428_v4 = vmul.f32 %v16141_v41, %v12407_v43  ;;  %16432 = vst [vmem:[#allocation161_spill] sm:$0xff] %v12644_v13  ;;  %v12646_v56 = vpop.xlane.xlu0 %5883  ;;  %v16434_v37 = vld [vmem:[#allocation48_spill] sm:$0xff] }
 0x3d3   :  { %v4930_v8 = vadd.f32 %v4418_v23, %v3554_v21  ;;  %v4931_v0 = vadd.f32 %v4419_v7, %v3555_v31  ;;  %v2189_v14 = vadd.f32 %v1677_v57, %v813_v35  ;;  %v4429_v63 = vmul.f32 %v16141_v41, %v12410_v30  ;;  %16433 = vst [vmem:[#allocation162_spill] sm:$0xff] %v12646_v56  ;;  %v16435_v7 = vld [vmem:[#allocation104_spill] sm:$0xff] }
 0x3d4   :  { %6150 = vadd.xlane.f32.xlu1 %v6149_v54  ;;  %v3564_v18 = vadd.f32 %v3052_v32, %v2188_v27  ;;  %v806_v12 = vmul.f32 %v16434_v37, %v12369_v46  ;;  %v807_v23 = vmul.f32 %v16434_v37, %v12372_v17  ;;  %v1670_v35 = vmul.f32 %v16435_v7, %v12376_v58  ;;  %v16437_v57 = vld [vmem:[#allocation132_spill] sm:$0xff] }
 0x3d5   :  { %v5442_v49 = vmax.f32 %v4930_v8, 0.0  ;;  %v5443_v24 = vmax.f32 %v4931_v0, 0.0  ;;  %v3565_v2 = vadd.f32 %v3053_v60, %v2189_v14  ;;  %v1671_v0 = vmul.f32 %v16435_v7, %v12379_v33  ;;  %v16436_v14 = vld [vmem:[#allocation121_spill] sm:$0xff] }
 0x3d6   :  { %v4940_v42 = vadd.f32 %v4428_v4, %v3564_v18  ;;  %v3046_v32 = vmul.f32 %v16436_v14, %v12389_v50  ;;  %v2182_v31 = vadd.f32 %v1670_v35, %v806_v12  ;;  %v3047_v4 = vmul.f32 %v16436_v14, %v12396_v29  ;;  %v16439_v12 = vld [vmem:[#allocation110_spill] sm:$0xff]  ;;  %v16443_v7 = vld [vmem:[#allocation133_spill] sm:$0xff] }
 0x3d7   :  { %v6140_v21 = vadd.f32 %v5443_v24, %v5442_v49  ;;  %v4941_v54 = vadd.f32 %v4429_v63, %v3565_v2  ;;  %v4422_v27 = vmul.f32 %v16437_v57, %v12407_v43  ;;  %v2183_v18 = vadd.f32 %v1671_v0, %v807_v23  ;;  %v16438_v63 = vld [vmem:[#allocation67_spill] sm:$0xff]  ;;  %v16440_v23 = vld [vmem:[#allocation29_spill] sm:$0xff] }
 0x3d8   :  { %v5452_v8 = vmax.f32 %v4940_v42, 0.0  ;;  %v4423_v2 = vmul.f32 %v16437_v57, %v12410_v30  ;;  %v816_v49 = vmul.f32 %v16438_v63, %v12369_v46  ;;  %v3558_v24 = vadd.f32 %v3046_v32, %v2182_v31  ;;  %v12676_v57 = vpop.xlane.xlu1 %5886  ;;  %v12678_v32 = vpop.xlane.xlu0 %5889 }
 0x3d9   :  { %6141 = vadd.xlane.f32.xlu0 %v6140_v21  ;;  %v5453_v60 = vmax.f32 %v4941_v54, 0.0  ;;  %v817_v42 = vmul.f32 %v16438_v63, %v12372_v17  ;;  %v1680_v35 = vmul.f32 %v16439_v12, %v12376_v58  ;;  %v1681_v13 = vmul.f32 %v16439_v12, %v12379_v33  ;;  %16441 = vst [vmem:[#allocation163_spill] sm:$0xff] %v12676_v57 }
 0x3da   :  { %v3559_v21 = vadd.f32 %v3047_v4, %v2183_v18  ;;  %v3056_v54 = vmul.f32 %v16440_v23, %v12389_v50  ;;  %v3057_v0 = vmul.f32 %v16440_v23, %v12396_v29  ;;  %16442 = vst [vmem:[#allocation164_spill] sm:$0xff] %v12678_v32  ;;  %v4934_v31 = vadd.f32 %v4422_v27, %v3558_v24  ;;  %v16444_v23 = vld [vmem:[#allocation58_spill] sm:$0xff]  ;;  %v16445_v24 = vld [vmem:[#allocation63_spill] sm:$0xff]  ;;  %v16450_v32 = vld [vmem:[#allocation8_spill] sm:$0xff] }
 0x3db   :  { %v6155_v56 = vadd.f32 %v5453_v60, %v5452_v8  ;;  %v2192_v63 = vadd.f32 %v1680_v35, %v816_v49  ;;  %v2193_v14 = vadd.f32 %v1681_v13, %v817_v42  ;;  %v4432_v37 = vmul.f32 %v16443_v7, %v12407_v43 }
 0x3dc   :  { %v4935_v12 = vadd.f32 %v4423_v2, %v3559_v21  ;;  %v4433_v8 = vmul.f32 %v16443_v7, %v12410_v30  ;;  %v5446_v4 = vmax.f32 %v4934_v31, 0.0  ;;  %v810_v57 = vmul.f32 %v16444_v23, %v12369_v46  ;;  %v30_v2 = vld [vmem:[%s15057_s0 + $0x60] sm:$0xff] }
 0x3dd   :  { %6156 = vadd.xlane.f32.xlu1 %v6155_v56  ;;  %v3568_v60 = vadd.f32 %v3056_v54, %v2192_v63  ;;  %v3569_v18 = vadd.f32 %v3057_v0, %v2193_v14  ;;  %v811_v27 = vmul.f32 %v16444_v23, %v12372_v17  ;;  %v1674_v42 = vmul.f32 %v16445_v24, %v12376_v58  ;;  %v16446_v63 = vld [vmem:[#allocation125_spill] sm:$0xff]  ;;  %v12701_v54 = vpop.xlane.xlu1 %5892  ;;  %v12703_v0 = vpop.xlane.xlu0 %5895 }
 0x3de   :  { %v5447_v41 = vmax.f32 %v4935_v12, 0.0  ;;  %v1675_v56 = vmul.f32 %v16445_v24, %v12379_v33  ;;  %v3050_v12 = vmul.f32 %v16446_v63, %v12389_v50  ;;  %v3051_v35 = vmul.f32 %v16446_v63, %v12396_v29  ;;  %16448 = vst [vmem:[#allocation165_spill] sm:$0xff] %v12701_v54  ;;  %16449 = vst [vmem:[#allocation166_spill] sm:$0xff] %v12703_v0  ;;  %v16451_v54 = vld [vmem:[#allocation10_spill] sm:$0xff] }
 0x3df   :  { %v4944_v49 = vadd.f32 %v4432_v37, %v3568_v60  ;;  %v4945_v13 = vadd.f32 %v4433_v8, %v3569_v18  ;;  %v16447_v37 = vld [vmem:[#allocation134_spill] sm:$0xff]  ;;  %v2186_v60 = vadd.f32 %v1674_v42, %v810_v57  ;;  %v169_v24 = vrot.slane %v30_v2, %v16450_v32 }
 0x3e0   :  { %v6146_v14 = vadd.f32 %v5447_v41, %v5446_v4  ;;  %v4426_v21 = vmul.f32 %v16447_v37, %v12407_v43  ;;  %v2187_v18 = vadd.f32 %v1675_v56, %v811_v27  ;;  %v4427_v41 = vmul.f32 %v16447_v37, %v12410_v30 }
 0x3e1   :  { %v5456_v31 = vmax.f32 %v4944_v49, 0.0  ;;  %v5457_v8 = vmax.f32 %v4945_v13, 0.0  ;;  %v165_v4 = vrot.slane %v30_v2, %v16021_v25  ;;  %v1045_v63 = vrot.slane %v30_v2, %v16383_v36  ;;  %v16452_v13 = vld [vmem:[#allocation13_spill] sm:$0xff] }
 0x3e2   :  { %6147 = vadd.xlane.f32.xlu0 %v6146_v14  ;;  %v3562_v7 = vadd.f32 %v3050_v12, %v2186_v60  ;;  %v3563_v52 = vadd.f32 %v3051_v35, %v2187_v18  ;;  %v1049_v62 = vrot.slane %v30_v2, %v16451_v54  ;;  %v12715_v57 = vrot.slane %v169_v24, %v16021_v25  ;;  %v16453_v12 = vld [vmem:[#allocation14_spill] sm:$0xff]  ;;  %v16455_v18 = vld [vmem:[#allocation85_spill] sm:$0xff] }
 0x3e3   :  { %v6161_v23 = vadd.f32 %v5457_v8, %v5456_v31  ;;  %v12712_v49 = vrot.slane %v165_v4, %v16021_v25  ;;  %v12718_v27 = vrot.slane %v1045_v63, %v16383_v36  ;;  %v2421_v42 = vrot.slane %v30_v2, %v16452_v13  ;;  %v16454_v8 = vld [vmem:[#allocation18_spill] sm:$0xff] }
 0x3e4   :  { %v4938_v56 = vadd.f32 %v4426_v21, %v3562_v7  ;;  %v4939_v14 = vadd.f32 %v4427_v41, %v3563_v52  ;;  %v12722_v31 = vrot.slane %v1049_v62, %v16383_v36  ;;  %v2425_v35 = vrot.slane %v30_v2, %v16453_v12  ;;  %v12736_v52 = vpop.xlane.xlu0 %5901 }
 0x3e5   :  { %6162 = vadd.xlane.f32.xlu1 %v6161_v23  ;;  %v820_v60 = vmul.f32 %v16454_v8, %v12712_v49  ;;  %v821_v24 = vmul.f32 %v16454_v8, %v12715_v57  ;;  %v1684_v63 = vmul.f32 %v16455_v18, %v12718_v27  ;;  %v12732_v4 = vrot.slane %v2421_v42, %v16452_v13  ;;  %v12734_v23 = vpop.xlane.xlu1 %5898 }
 0x3e6   :  { %16456 = vst [vmem:[#allocation8_spill] sm:$0xff] %v12734_v23  ;;  %16457 = vst [vmem:[#allocation167_spill] sm:$0xff] %v12736_v52  ;;  %v5450_v62 = vmax.f32 %v4938_v56, 0.0  ;;  %v5451_v7 = vmax.f32 %v4939_v14, 0.0  ;;  %v1685_v21 = vmul.f32 %v16455_v18, %v12722_v31  ;;  %v12741_v41 = vrot.slane %v2425_v35, %v16452_v13 }
 0x3e7   :  { %v3060_v0 = vmul.f32 %v15988_v53, %v12732_v4  ;;  %v3797_v8 = vrot.slane %v30_v2, %v15985_v26  ;;  %v3801_v42 = vrot.slane %v30_v2, %v15986_v28  ;;  %v2196_v54 = vadd.f32 %v1684_v63, %v820_v60 }
 0x3e8   :  { %v6152_v12 = vadd.f32 %v5451_v7, %v5450_v62  ;;  %v2197_v23 = vadd.f32 %v1685_v21, %v821_v24  ;;  %v3061_v56 = vmul.f32 %v15988_v53, %v12741_v41  ;;  %v814_v13 = vmul.f32 %v15987_v48, %v12369_v46 }
 0x3e9   :  { %v12750_v14 = vrot.slane %v3797_v8, %v15985_v26  ;;  %v12753_v52 = vrot.slane %v3801_v42, %v15985_v26  ;;  %v3572_v35 = vadd.f32 %v3060_v0, %v2196_v54  ;;  %v815_v24 = vmul.f32 %v15987_v48, %v12372_v17  ;;  %v12765_v63 = vpop.xlane.xlu1 %5904 }
 0x3ea   :  { %6153 = vadd.xlane.f32.xlu0 %v6152_v12  ;;  %v3573_v18 = vadd.f32 %v3061_v56, %v2197_v23  ;;  %v1678_v8 = vmul.f32 %v16332_v44, %v12376_v58  ;;  %16458 = vst [vmem:[#allocation168_spill] sm:$0xff] %v12765_v63  ;;  %v12767_v12 = vpop.xlane.xlu0 %5907  ;;  %v1679_v54 = vmul.f32 %v16332_v44, %v12379_v33 }
 0x3eb   :  { %v4436_v2 = vmul.f32 %v16275_v3, %v12750_v14  ;;  %v4437_v60 = vmul.f32 %v16275_v3, %v12753_v52  ;;  %16459 = vst [vmem:[#allocation169_spill] sm:$0xff] %v12767_v12  ;;  %v3054_v46 = vmul.f32 %v16277_v22, %v12389_v50  ;;  %v3055_v0 = vmul.f32 %v16277_v22, %v12396_v29 }
 0x3ec   :  { %v4430_v23 = vmul.f32 %v16108_v5, %v12407_v43  ;;  %v2190_v7 = vadd.f32 %v1678_v8, %v814_v13  ;;  %v4431_v58 = vmul.f32 %v16108_v5, %v12410_v30  ;;  %v2191_v21 = vadd.f32 %v1679_v54, %v815_v24  ;;  %v16460_v30 = vld [vmem:[#allocation25_spill] sm:$0xff] }
 0x3ed   :  { %v4948_v17 = vadd.f32 %v4436_v2, %v3572_v35  ;;  %v4949_v62 = vadd.f32 %v4437_v60, %v3573_v18  ;;  %v824_v42 = vmul.f32 %v16220_v51, %v12712_v49  ;;  %v825_v33 = vmul.f32 %v16220_v51, %v12715_v57 }
 0x3ee   :  { %v1688_v50 = vmul.f32 %v16393_v45, %v12718_v27  ;;  %v3566_v12 = vadd.f32 %v3054_v46, %v2190_v7  ;;  %v1689_v43 = vmul.f32 %v16393_v45, %v12722_v31  ;;  %v3567_v13 = vadd.f32 %v3055_v0, %v2191_v21  ;;  %v12795_v46 = vpop.xlane.xlu0 %5913 }
 0x3ef   :  { %v5460_v29 = vmax.f32 %v4948_v17, 0.0  ;;  %v5461_v56 = vmax.f32 %v4949_v62, 0.0  ;;  %v3064_v35 = vmul.f32 %v16460_v30, %v12732_v4  ;;  %v3065_v2 = vmul.f32 %v16460_v30, %v12741_v41  ;;  %v12793_v17 = vpop.xlane.xlu1 %5910  ;;  %16462 = vst [vmem:[#allocation171_spill] sm:$0xff] %v12795_v46 }
 0x3f0   :  { %v2200_v18 = vadd.f32 %v1688_v50, %v824_v42  ;;  %v4942_v24 = vadd.f32 %v4430_v23, %v3566_v12  ;;  %v2201_v8 = vadd.f32 %v1689_v43, %v825_v33  ;;  %v4440_v54 = vmul.f32 %v15923_v40, %v12750_v14  ;;  %16461 = vst [vmem:[#allocation170_spill] sm:$0xff] %v12793_v17 }
 0x3f1   :  { %v6167_v60 = vadd.f32 %v5461_v56, %v5460_v29  ;;  %v4943_v62 = vadd.f32 %v4431_v58, %v3567_v13  ;;  %v4441_v0 = vmul.f32 %v15923_v40, %v12753_v52  ;;  %v818_v12 = vmul.f32 %v15992_v34, %v12712_v49 }
 0x3f2   :  { %v3576_v7 = vadd.f32 %v3064_v35, %v2200_v18  ;;  %v5454_v21 = vmax.f32 %v4942_v24, 0.0  ;;  %v3577_v42 = vadd.f32 %v3065_v2, %v2201_v8  ;;  %v819_v33 = vmul.f32 %v15992_v34, %v12715_v57 }
 0x3f3   :  { %6168 = vadd.xlane.f32.xlu1 %v6167_v60  ;;  %v5455_v50 = vmax.f32 %v4943_v62, 0.0  ;;  %v1682_v29 = vmul.f32 %v15925_v61, %v12718_v27  ;;  %v1683_v58 = vmul.f32 %v15925_v61, %v12722_v31  ;;  %v3058_v13 = vmul.f32 %v16071_v15, %v12732_v4  ;;  %v12813_v8 = vpop.xlane.xlu1 %5916 }
 0x3f4   :  { %v4952_v63 = vadd.f32 %v4440_v54, %v3576_v7  ;;  %v4953_v23 = vadd.f32 %v4441_v0, %v3577_v42  ;;  %v3059_v18 = vmul.f32 %v16071_v15, %v12741_v41  ;;  %v4434_v24 = vmul.f32 %v15930_v55, %v12750_v14  ;;  %16463 = vst [vmem:[#allocation172_spill] sm:$0xff] %v12813_v8  ;;  %v12815_v54 = vpop.xlane.xlu0 %5919 }
 0x3f5   :  { %v6158_v56 = vadd.f32 %v5455_v50, %v5454_v21  ;;  %v2194_v2 = vadd.f32 %v1682_v29, %v818_v12  ;;  %v2195_v60 = vadd.f32 %v1683_v58, %v819_v33  ;;  %16464 = vst [vmem:[#allocation173_spill] sm:$0xff] %v12815_v54  ;;  %v828_v62 = vmul.f32 %v15993_v59, %v12712_v49 }
 0x3f6   :  { %v5464_v43 = vmax.f32 %v4952_v63, 0.0  ;;  %v5465_v35 = vmax.f32 %v4953_v23, 0.0  ;;  %v4435_v63 = vmul.f32 %v15930_v55, %v12753_v52  ;;  %v829_v7 = vmul.f32 %v15993_v59, %v12715_v57  ;;  %v16491_v59 = vld [vmem:[#allocation42_spill] sm:$0xff] }
 0x3f7   :  { %6159 = vadd.xlane.f32.xlu0 %v6158_v56  ;;  %v1692_v0 = vmul.f32 %v15931_v19, %v12718_v27  ;;  %v3570_v42 = vadd.f32 %v3058_v13, %v2194_v2  ;;  %v3571_v50 = vadd.f32 %v3059_v18, %v2195_v60  ;;  %v1693_v12 = vmul.f32 %v15931_v19, %v12722_v31  ;;  %v12835_v60 = vpop.xlane.xlu1 %5922 }
 0x3f8   :  { %v6173_v21 = vadd.f32 %v5465_v35, %v5464_v43  ;;  %v3068_v33 = vmul.f32 %v15933_v9, %v12732_v4  ;;  %v3069_v29 = vmul.f32 %v15933_v9, %v12741_v41  ;;  %v4444_v58 = vmul.f32 %v9445_v47, %v12750_v14  ;;  %16465 = vst [vmem:[#allocation174_spill] sm:$0xff] %v12835_v60 }
 0x3f9   :  { %v2204_v23 = vadd.f32 %v1692_v0, %v828_v62  ;;  %v4946_v56 = vadd.f32 %v4434_v24, %v3570_v42  ;;  %v4947_v8 = vadd.f32 %v4435_v63, %v3571_v50  ;;  %v2205_v54 = vadd.f32 %v1693_v12, %v829_v7  ;;  %v12837_v62 = vpop.xlane.xlu0 %5925 }
 0x3fa   :  { %6174 = vadd.xlane.f32.xlu1 %v6173_v21  ;;  %v4445_v43 = vmul.f32 %v9445_v47, %v12753_v52  ;;  %16466 = vst [vmem:[#allocation175_spill] sm:$0xff] %v12837_v62  ;;  %v822_v46 = vmul.f32 %v15994_v1, %v12712_v49  ;;  %v823_v24 = vmul.f32 %v15994_v1, %v12715_v57 }
 0x3fb   :  { %v3580_v13 = vadd.f32 %v3068_v33, %v2204_v23  ;;  %v5458_v18 = vmax.f32 %v4946_v56, 0.0  ;;  %v5459_v35 = vmax.f32 %v4947_v8, 0.0  ;;  %v3581_v2 = vadd.f32 %v3069_v29, %v2205_v54 }
 0x3fc   :  { %v1686_v63 = vmul.f32 %v15935_v10, %v12718_v27  ;;  %v1687_v8 = vmul.f32 %v15935_v10, %v12722_v31  ;;  %v3062_v54 = vmul.f32 %v16398_v39, %v12732_v4  ;;  %v3063_v12 = vmul.f32 %v16398_v39, %v12741_v41 }
 0x3fd   :  { %v4956_v0 = vadd.f32 %v4444_v58, %v3580_v13  ;;  %v6164_v7 = vadd.f32 %v5459_v35, %v5458_v18  ;;  %v4957_v21 = vadd.f32 %v4445_v43, %v3581_v2  ;;  %v4438_v23 = vmul.f32 %v16401_v16, %v12750_v14 }
 0x3fe   :  { %v2198_v50 = vadd.f32 %v1686_v63, %v822_v46  ;;  %v2199_v29 = vadd.f32 %v1687_v8, %v823_v24  ;;  %v4439_v58 = vmul.f32 %v16401_v16, %v12753_v52  ;;  %v832_v56 = vmul.f32 %v16402_v20, %v12712_v49  ;;  %v16467_v46 = vld [vmem:[#allocation97_spill] sm:$0xff] }
 0x3ff   :  { %v5468_v42 = vmax.f32 %v4956_v0, 0.0  ;;  %6165 = vadd.xlane.f32.xlu0 %v6164_v7  ;;  %v5469_v33 = vmax.f32 %v4957_v21, 0.0  ;;  %v833_v13 = vmul.f32 %v16402_v20, %v12715_v57  ;;  %v1696_v18 = vmul.f32 %v16467_v46, %v12718_v27  ;;  %v12867_v7 = vpop.xlane.xlu1 %5928  ;;  %v12869_v21 = vpop.xlane.xlu0 %5931 }
 0x400   :  { %v3574_v43 = vadd.f32 %v3062_v54, %v2198_v50  ;;  %v1697_v35 = vmul.f32 %v16467_v46, %v12722_v31  ;;  %v3575_v0 = vadd.f32 %v3063_v12, %v2199_v29  ;;  %v3072_v24 = vmul.f32 %v16404_v11, %v12732_v4  ;;  %16468 = vst [vmem:[#allocation176_spill] sm:$0xff] %v12867_v7 }
 0x401   :  { %v6179_v2 = vadd.f32 %v5469_v33, %v5468_v42  ;;  %v3073_v63 = vmul.f32 %v16404_v11, %v12741_v41  ;;  %16469 = vst [vmem:[#allocation177_spill] sm:$0xff] %v12869_v21  ;;  %v2208_v54 = vadd.f32 %v1696_v18, %v832_v56  ;;  %v4448_v60 = vmul.f32 %v16072_v6, %v12750_v14  ;;  %v16470_v11 = vld [vmem:[#allocation20_spill] sm:$0xff]  ;;  %v16471_v56 = vld [vmem:[#allocation94_spill] sm:$0xff]  ;;  %v16472_v18 = vld [vmem:[#allocation21_spill] sm:$0xff] }
 0x402   :  { %v4950_v8 = vadd.f32 %v4438_v23, %v3574_v43  ;;  %v2209_v50 = vadd.f32 %v1697_v35, %v833_v13  ;;  %v4951_v62 = vadd.f32 %v4439_v58, %v3575_v0  ;;  %v4449_v42 = vmul.f32 %v16072_v6, %v12753_v52 }
 0x403   :  { %6180 = vadd.xlane.f32.xlu1 %v6179_v2  ;;  %v3584_v33 = vadd.f32 %v3072_v24, %v2208_v54  ;;  %v826_v7 = vmul.f32 %v16470_v11, %v12712_v49  ;;  %v827_v23 = vmul.f32 %v16470_v11, %v12715_v57  ;;  %v1690_v43 = vmul.f32 %v16471_v56, %v12718_v27  ;;  %v12887_v2 = vpop.xlane.xlu1 %5934 }
 0x404   :  { %v5462_v12 = vmax.f32 %v4950_v8, 0.0  ;;  %v3585_v29 = vadd.f32 %v3073_v63, %v2209_v50  ;;  %v5463_v17 = vmax.f32 %v4951_v62, 0.0  ;;  %v1691_v58 = vmul.f32 %v16471_v56, %v12722_v31  ;;  %16473 = vst [vmem:[#allocation20_spill] sm:$0xff] %v12887_v2  ;;  %v16475_v8 = vld [vmem:[#allocation111_spill] sm:$0xff] }
 0x405   :  { %v4960_v46 = vadd.f32 %v4448_v60, %v3584_v33  ;;  %v3066_v35 = vmul.f32 %v16472_v18, %v12732_v4  ;;  %v3067_v62 = vmul.f32 %v16472_v18, %v12741_v41  ;;  %v12889_v60 = vpop.xlane.xlu0 %5937  ;;  %v2202_v63 = vadd.f32 %v1690_v43, %v826_v7 }
 0x406   :  { %v4961_v21 = vadd.f32 %v4449_v42, %v3585_v29  ;;  %v6170_v13 = vadd.f32 %v5463_v17, %v5462_v12  ;;  %16474 = vst [vmem:[#allocation94_spill] sm:$0xff] %v12889_v60  ;;  %v4442_v54 = vmul.f32 %v16475_v8, %v12750_v14  ;;  %v2203_v17 = vadd.f32 %v1691_v58, %v827_v23  ;;  %v16476_v42 = vld [vmem:[#allocation41_spill] sm:$0xff]  ;;  %v16478_v58 = vld [vmem:[#allocation75_spill] sm:$0xff] }
 0x407   :  { %v5472_v0 = vmax.f32 %v4960_v46, 0.0  ;;  %v4443_v50 = vmul.f32 %v16475_v8, %v12753_v52  ;;  %v836_v12 = vmul.f32 %v16476_v42, %v12712_v49  ;;  %v837_v33 = vmul.f32 %v16476_v42, %v12715_v57  ;;  %v16477_v46 = vld [vmem:[#allocation99_spill] sm:$0xff]  ;;  %v12911_v6 = vpop.xlane.xlu1 %5940 }
 0x408   :  { %v5473_v24 = vmax.f32 %v4961_v21, 0.0  ;;  %6171 = vadd.xlane.f32.xlu0 %v6170_v13  ;;  %v3578_v2 = vadd.f32 %v3066_v35, %v2202_v63  ;;  %v1700_v21 = vmul.f32 %v16477_v46, %v12718_v27  ;;  %v1701_v7 = vmul.f32 %v16477_v46, %v12722_v31  ;;  %16479 = vst [vmem:[#allocation178_spill] sm:$0xff] %v12911_v6 }
 0x409   :  { %v3579_v43 = vadd.f32 %v3067_v62, %v2203_v17  ;;  %v3076_v23 = vmul.f32 %v16349_v38, %v12732_v4  ;;  %v3077_v13 = vmul.f32 %v16349_v38, %v12741_v41  ;;  %v4452_v60 = vmul.f32 %v16478_v58, %v12750_v14  ;;  %v12913_v62 = vpop.xlane.xlu0 %5943  ;;  %v16481_v38 = vld [vmem:[#allocation36_spill] sm:$0xff] }
 0x40a   :  { %v6185_v29 = vadd.f32 %v5473_v24, %v5472_v0  ;;  %v4954_v42 = vadd.f32 %v4442_v54, %v3578_v2  ;;  %v2212_v0 = vadd.f32 %v1700_v21, %v836_v12  ;;  %v2213_v35 = vadd.f32 %v1701_v7, %v837_v33  ;;  %16480 = vst [vmem:[#allocation179_spill] sm:$0xff] %v12913_v62  ;;  %v16482_v54 = vld [vmem:[#allocation96_spill] sm:$0xff]  ;;  %v16483_v21 = vld [vmem:[#allocation26_spill] sm:$0xff] }
 0x40b   :  { %v4453_v24 = vmul.f32 %v16478_v58, %v12753_v52  ;;  %v4955_v63 = vadd.f32 %v4443_v50, %v3579_v43  ;;  %v830_v47 = vmul.f32 %v16481_v38, %v12712_v49  ;;  %v831_v2 = vmul.f32 %v16481_v38, %v12715_v57 }
 0x40c   :  { %6186 = vadd.xlane.f32.xlu1 %v6185_v29  ;;  %v5466_v17 = vmax.f32 %v4954_v42, 0.0  ;;  %v3588_v46 = vadd.f32 %v3076_v23, %v2212_v0  ;;  %v3589_v20 = vadd.f32 %v3077_v13, %v2213_v35  ;;  %v1694_v12 = vmul.f32 %v16482_v54, %v12718_v27  ;;  %v16484_v0 = vld [vmem:[#allocation22_spill] sm:$0xff] }
 0x40d   :  { %v5467_v9 = vmax.f32 %v4955_v63, 0.0  ;;  %v1695_v50 = vmul.f32 %v16482_v54, %v12722_v31  ;;  %v3070_v42 = vmul.f32 %v16483_v21, %v12732_v4  ;;  %v3071_v7 = vmul.f32 %v16483_v21, %v12741_v41 }
 0x40e   :  { %v4964_v33 = vadd.f32 %v4452_v60, %v3588_v46  ;;  %v4965_v29 = vadd.f32 %v4453_v24, %v3589_v20  ;;  %v2206_v23 = vadd.f32 %v1694_v12, %v830_v47  ;;  %v4446_v35 = vmul.f32 %v16484_v0, %v12750_v14  ;;  %v16485_v60 = vld [vmem:[#allocation47_spill] sm:$0xff]  ;;  %v16486_v47 = vld [vmem:[#allocation105_spill] sm:$0xff] }
 0x40f   :  { %v6176_v43 = vadd.f32 %v5467_v9, %v5466_v17  ;;  %v2207_v13 = vadd.f32 %v1695_v50, %v831_v2  ;;  %v4447_v6 = vmul.f32 %v16484_v0, %v12753_v52  ;;  %v840_v20 = vmul.f32 %v16485_v60, %v12712_v49  ;;  %v12937_v17 = vpop.xlane.xlu1 %5946  ;;  %v12939_v2 = vpop.xlane.xlu0 %5949 }
 0x410   :  { %v5476_v63 = vmax.f32 %v4964_v33, 0.0  ;;  %v5477_v62 = vmax.f32 %v4965_v29, 0.0  ;;  %v3582_v46 = vadd.f32 %v3070_v42, %v2206_v23  ;;  %v841_v58 = vmul.f32 %v16485_v60, %v12715_v57  ;;  %16487 = vst [vmem:[#allocation180_spill] sm:$0xff] %v12937_v17  ;;  %16488 = vst [vmem:[#allocation181_spill] sm:$0xff] %v12939_v2  ;;  %v16489_v33 = vld [vmem:[#allocation102_spill] sm:$0xff] }
 0x411   :  { %6177 = vadd.xlane.f32.xlu0 %v6176_v43  ;;  %v3583_v24 = vadd.f32 %v3071_v7, %v2207_v13  ;;  %v1704_v9 = vmul.f32 %v16486_v47, %v12718_v27  ;;  %v1705_v50 = vmul.f32 %v16486_v47, %v12722_v31  ;;  %v3080_v29 = vmul.f32 %v16489_v33, %v12732_v4  ;;  %v16490_v13 = vld [vmem:[#allocation129_spill] sm:$0xff] }
 0x412   :  { %v6191_v12 = vadd.f32 %v5477_v62, %v5476_v63  ;;  %v3081_v42 = vmul.f32 %v16489_v33, %v12741_v41  ;;  %v4958_v7 = vadd.f32 %v4446_v35, %v3582_v46  ;;  %v4456_v60 = vmul.f32 %v16490_v13, %v12750_v14 }
 0x413   :  { %v4959_v43 = vadd.f32 %v4447_v6, %v3583_v24  ;;  %v2216_v23 = vadd.f32 %v1704_v9, %v840_v20  ;;  %v2217_v17 = vadd.f32 %v1705_v50, %v841_v58  ;;  %v4457_v62 = vmul.f32 %v16490_v13, %v12753_v52  ;;  %v16492_v6 = vld [vmem:[#allocation98_spill] sm:$0xff]  ;;  %v16493_v9 = vld [vmem:[#allocation117_spill] sm:$0xff]  ;;  %v12961_v50 = vpop.xlane.xlu1 %5952 }
 0x414   :  { %6192 = vadd.xlane.f32.xlu1 %v6191_v12  ;;  %v5470_v63 = vmax.f32 %v4958_v7, 0.0  ;;  %v834_v0 = vmul.f32 %v16491_v59, %v12712_v49  ;;  %v835_v35 = vmul.f32 %v16491_v59, %v12715_v57  ;;  %v1698_v20 = vmul.f32 %v16492_v6, %v12718_v27  ;;  %16494 = vst [vmem:[#allocation182_spill] sm:$0xff] %v12961_v50 }
 0x415   :  { %v5471_v2 = vmax.f32 %v4959_v43, 0.0  ;;  %v3592_v47 = vadd.f32 %v3080_v29, %v2216_v23  ;;  %v3593_v19 = vadd.f32 %v3081_v42, %v2217_v17  ;;  %v1699_v58 = vmul.f32 %v16492_v6, %v12722_v31  ;;  %v12963_v17 = vpop.xlane.xlu0 %5955  ;;  %v16496_v43 = vld [vmem:[#allocation130_spill] sm:$0xff] }
 0x416   :  { %v3074_v12 = vmul.f32 %v16493_v9, %v12732_v4  ;;  %16495 = vst [vmem:[#allocation183_spill] sm:$0xff] %v12963_v17  ;;  %v2210_v42 = vadd.f32 %v1698_v20, %v834_v0  ;;  %v3075_v7 = vmul.f32 %v16493_v9, %v12741_v41  ;;  %v4450_v23 = vmul.f32 %v16496_v43, %v12750_v14  ;;  %v16498_v0 = vld [vmem:[#allocation64_spill] sm:$0xff] }
 0x417   :  { %v6182_v46 = vadd.f32 %v5471_v2, %v5470_v63  ;;  %v4968_v24 = vadd.f32 %v4456_v60, %v3592_v47  ;;  %v4969_v29 = vadd.f32 %v4457_v62, %v3593_v19  ;;  %v2211_v47 = vadd.f32 %v1699_v58, %v835_v35  ;;  %v16497_v63 = vld [vmem:[#allocation57_spill] sm:$0xff]  ;;  %v16499_v35 = vld [vmem:[#allocation59_spill] sm:$0xff] }
 0x418   :  { %v4451_v2 = vmul.f32 %v16496_v43, %v12753_v52  ;;  %v844_v13 = vmul.f32 %v16497_v63, %v12712_v49  ;;  %v3586_v33 = vadd.f32 %v3074_v12, %v2210_v42  ;;  %v845_v19 = vmul.f32 %v16497_v63, %v12715_v57  ;;  %v16500_v12 = vld [vmem:[#allocation131_spill] sm:$0xff] }
 0x419   :  { %6183 = vadd.xlane.f32.xlu0 %v6182_v46  ;;  %v5480_v60 = vmax.f32 %v4968_v24, 0.0  ;;  %v5481_v50 = vmax.f32 %v4969_v29, 0.0  ;;  %v1708_v62 = vmul.f32 %v16498_v0, %v12718_v27  ;;  %v3587_v20 = vadd.f32 %v3075_v7, %v2211_v47  ;;  %v12987_v47 = vpop.xlane.xlu1 %5958 }
 0x41a   :  { %v1709_v46 = vmul.f32 %v16498_v0, %v12722_v31  ;;  %v3084_v24 = vmul.f32 %v16499_v35, %v12732_v4  ;;  %v3085_v58 = vmul.f32 %v16499_v35, %v12741_v41  ;;  %v4962_v43 = vadd.f32 %v4450_v23, %v3586_v33  ;;  %16501 = vst [vmem:[#allocation184_spill] sm:$0xff] %v12987_v47  ;;  %v12989_v0 = vpop.xlane.xlu0 %5961  ;;  %v16503_v33 = vld [vmem:[#allocation48_spill] sm:$0xff] }
 0x41b   :  { %v6197_v17 = vadd.f32 %v5481_v50, %v5480_v60  ;;  %v2220_v29 = vadd.f32 %v1708_v62, %v844_v13  ;;  %v4460_v42 = vmul.f32 %v16500_v12, %v12750_v14  ;;  %v4963_v63 = vadd.f32 %v4451_v2, %v3587_v20  ;;  %16502 = vst [vmem:[#allocation185_spill] sm:$0xff] %v12989_v0  ;;  %v16504_v60 = vld [vmem:[#allocation104_spill] sm:$0xff] }
 0x41c   :  { %v2221_v9 = vadd.f32 %v1709_v46, %v845_v19  ;;  %v4461_v7 = vmul.f32 %v16500_v12, %v12753_v52  ;;  %v5474_v6 = vmax.f32 %v4962_v43, 0.0  ;;  %v838_v13 = vmul.f32 %v16503_v33, %v12712_v49 }
 0x41d   :  { %6198 = vadd.xlane.f32.xlu1 %v6197_v17  ;;  %v3596_v59 = vadd.f32 %v3084_v24, %v2220_v29  ;;  %v5475_v21 = vmax.f32 %v4963_v63, 0.0  ;;  %v839_v23 = vmul.f32 %v16503_v33, %v12715_v57  ;;  %v1702_v2 = vmul.f32 %v16504_v60, %v12718_v27  ;;  %v16505_v17 = vld [vmem:[#allocation121_spill] sm:$0xff]  ;;  %v16506_v24 = vld [vmem:[#allocation132_spill] sm:$0xff]  ;;  %v16514_v33 = vld [vmem:[#allocation63_spill] sm:$0xff] }
 0x41e   :  { %v3597_v35 = vadd.f32 %v3085_v58, %v2221_v9  ;;  %v1703_v19 = vmul.f32 %v16504_v60, %v12722_v31  ;;  %v3078_v43 = vmul.f32 %v16505_v17, %v12732_v4  ;;  %v3079_v9 = vmul.f32 %v16505_v17, %v12741_v41  ;;  %v13013_v47 = vpop.xlane.xlu0 %5967  ;;  %v16513_v17 = vld [vmem:[#allocation58_spill] sm:$0xff] }
 0x41f   :  { %v4972_v50 = vadd.f32 %v4460_v42, %v3596_v59  ;;  %v6188_v62 = vadd.f32 %v5475_v21, %v5474_v6  ;;  %v2214_v46 = vadd.f32 %v1702_v2, %v838_v13  ;;  %v4454_v58 = vmul.f32 %v16506_v24, %v12750_v14  ;;  %v16507_v21 = vld [vmem:[#allocation67_spill] sm:$0xff]  ;;  %16509 = vst [vmem:[#allocation187_spill] sm:$0xff] %v13013_v47 }
 0x420   :  { %v4973_v20 = vadd.f32 %v4461_v7, %v3597_v35  ;;  %v2215_v59 = vadd.f32 %v1703_v19, %v839_v23  ;;  %v4455_v42 = vmul.f32 %v16506_v24, %v12753_v52  ;;  %v848_v6 = vmul.f32 %v16507_v21, %v12712_v49  ;;  %v13011_v7 = vpop.xlane.xlu1 %5964  ;;  %v16510_v23 = vld [vmem:[#allocation110_spill] sm:$0xff] }
 0x421   :  { %v5484_v63 = vmax.f32 %v4972_v50, 0.0  ;;  %6189 = vadd.xlane.f32.xlu0 %v6188_v62  ;;  %v849_v35 = vmul.f32 %v16507_v21, %v12715_v57  ;;  %16508 = vst [vmem:[#allocation186_spill] sm:$0xff] %v13011_v7  ;;  %v3590_v13 = vadd.f32 %v3078_v43, %v2214_v46  ;;  %v1712_v2 = vmul.f32 %v16510_v23, %v12718_v27  ;;  %v16512_v21 = vld [vmem:[#allocation133_spill] sm:$0xff] }
 0x422   :  { %v5485_v29 = vmax.f32 %v4973_v20, 0.0  ;;  %v3591_v50 = vadd.f32 %v3079_v9, %v2215_v59  ;;  %v1713_v19 = vmul.f32 %v16510_v23, %v12722_v31  ;;  %v16511_v20 = vld [vmem:[#allocation29_spill] sm:$0xff]  ;;  %v4464_v7 = vmul.f32 %v16512_v21, %v12750_v14 }
 0x423   :  { %v3088_v0 = vmul.f32 %v16511_v20, %v12732_v4  ;;  %v3089_v12 = vmul.f32 %v16511_v20, %v12741_v41  ;;  %v4966_v24 = vadd.f32 %v4454_v58, %v3590_v13  ;;  %v2224_v43 = vadd.f32 %v1712_v2, %v848_v6  ;;  %v13035_v6 = vpop.xlane.xlu0 %5973 }
 0x424   :  { %v6203_v62 = vadd.f32 %v5485_v29, %v5484_v63  ;;  %v4967_v47 = vadd.f32 %v4455_v42, %v3591_v50  ;;  %v2225_v9 = vadd.f32 %v1713_v19, %v849_v35  ;;  %v4465_v46 = vmul.f32 %v16512_v21, %v12753_v52  ;;  %v13033_v42 = vpop.xlane.xlu1 %5970  ;;  %16516 = vst [vmem:[#allocation189_spill] sm:$0xff] %v13035_v6  ;;  %v16519_v21 = vld [vmem:[#allocation13_spill] sm:$0xff] }
 0x425   :  { %v5478_v59 = vmax.f32 %v4966_v24, 0.0  ;;  %v3600_v63 = vadd.f32 %v3088_v0, %v2224_v43  ;;  %v842_v60 = vmul.f32 %v16513_v17, %v12712_v49  ;;  %v843_v20 = vmul.f32 %v16513_v17, %v12715_v57  ;;  %16515 = vst [vmem:[#allocation188_spill] sm:$0xff] %v13033_v42  ;;  %v16517_v24 = vld [vmem:[#allocation125_spill] sm:$0xff]  ;;  %v16518_v42 = vld [vmem:[#allocation10_spill] sm:$0xff] }
 0x426   :  { %6204 = vadd.xlane.f32.xlu1 %v6203_v62  ;;  %v5479_v23 = vmax.f32 %v4967_v47, 0.0  ;;  %v3601_v29 = vadd.f32 %v3089_v12, %v2225_v9  ;;  %v1706_v58 = vmul.f32 %v16514_v33, %v12718_v27  ;;  %v1707_v0 = vmul.f32 %v16514_v33, %v12722_v31  ;;  %v31_v12 = vld [vmem:[%s15057_s0 + $0x68] sm:$0xff] }
 0x427   :  { %v4976_v13 = vadd.f32 %v4464_v7, %v3600_v63  ;;  %v3082_v2 = vmul.f32 %v16517_v24, %v12732_v4  ;;  %v3083_v19 = vmul.f32 %v16517_v24, %v12741_v41  ;;  %v4458_v62 = vmul.f32 %v16447_v37, %v12750_v14 }
 0x428   :  { %v6194_v35 = vadd.f32 %v5479_v23, %v5478_v59  ;;  %v4977_v50 = vadd.f32 %v4465_v46, %v3601_v29  ;;  %v2218_v47 = vadd.f32 %v1706_v58, %v842_v60  ;;  %v2219_v43 = vadd.f32 %v1707_v0, %v843_v20  ;;  %v13064_v0 = vpop.xlane.xlu1 %5976 }
 0x429   :  { %v5488_v7 = vmax.f32 %v4976_v13, 0.0  ;;  %v4459_v9 = vmul.f32 %v16447_v37, %v12753_v52  ;;  %v173_v59 = vrot.slane %v31_v12, %v16021_v25  ;;  %v177_v60 = vrot.slane %v31_v12, %v16450_v32  ;;  %16520 = vst [vmem:[#allocation10_spill] sm:$0xff] %v13064_v0 }
 0x42a   :  { %6195 = vadd.xlane.f32.xlu0 %v6194_v35  ;;  %v5489_v23 = vmax.f32 %v4977_v50, 0.0  ;;  %v3594_v46 = vadd.f32 %v3082_v2, %v2218_v47  ;;  %v1053_v63 = vrot.slane %v31_v12, %v16383_v36  ;;  %v3595_v58 = vadd.f32 %v3083_v19, %v2219_v43  ;;  %v13066_v47 = vpop.xlane.xlu0 %5979 }
 0x42b   :  { %v1057_v6 = vrot.slane %v31_v12, %v16518_v42  ;;  %v2429_v24 = vrot.slane %v31_v12, %v16519_v21  ;;  %v13056_v13 = vrot.slane %v173_v59, %v16021_v25  ;;  %v13059_v20 = vrot.slane %v177_v60, %v16021_v25  ;;  %16521 = vst [vmem:[#allocation13_spill] sm:$0xff] %v13066_v47 }
 0x42c   :  { %v6209_v29 = vadd.f32 %v5489_v23, %v5488_v7  ;;  %v4970_v35 = vadd.f32 %v4458_v62, %v3594_v46  ;;  %v13062_v50 = vrot.slane %v1053_v63, %v16383_v36  ;;  %v4971_v2 = vadd.f32 %v4459_v9, %v3595_v58  ;;  %v16522_v7 = vld [vmem:[#allocation14_spill] sm:$0xff]  ;;  %v16524_v63 = vld [vmem:[#allocation85_spill] sm:$0xff] }
 0x42d   :  { %v13069_v19 = vrot.slane %v1057_v6, %v16383_v36  ;;  %v2433_v62 = vrot.slane %v31_v12, %v16522_v7  ;;  %v13073_v23 = vrot.slane %v2429_v24, %v16519_v21  ;;  %v16523_v46 = vld [vmem:[#allocation18_spill] sm:$0xff]  ;;  %v3805_v58 = vrot.slane %v31_v12, %v15985_v26 }
 0x42e   :  { %6210 = vadd.xlane.f32.xlu1 %v6209_v29  ;;  %v5482_v43 = vmax.f32 %v4970_v35, 0.0  ;;  %v852_v59 = vmul.f32 %v16523_v46, %v13056_v13  ;;  %v853_v60 = vmul.f32 %v16523_v46, %v13059_v20  ;;  %v1716_v0 = vmul.f32 %v16524_v63, %v13062_v50  ;;  %v13100_v38 = vpop.xlane.xlu0 %5985 }
 0x42f   :  { %v5483_v29 = vmax.f32 %v4971_v2, 0.0  ;;  %v1717_v6 = vmul.f32 %v16524_v63, %v13069_v19  ;;  %v13084_v9 = vrot.slane %v2433_v62, %v16519_v21  ;;  %v3092_v24 = vmul.f32 %v15988_v53, %v13073_v23  ;;  %v13098_v62 = vpop.xlane.xlu1 %5982  ;;  %16526 = vst [vmem:[#allocation18_spill] sm:$0xff] %v13100_v38 }
 0x430   :  { %v3809_v35 = vrot.slane %v31_v12, %v15986_v28  ;;  %v2228_v37 = vadd.f32 %v1716_v0, %v852_v59  ;;  %v13093_v2 = vrot.slane %v3805_v58, %v15985_v26  ;;  %16525 = vst [vmem:[#allocation14_spill] sm:$0xff] %v13098_v62  ;;  %v846_v12 = vmul.f32 %v15987_v48, %v12712_v49 }
 0x431   :  { %v6200_v47 = vadd.f32 %v5483_v29, %v5482_v43  ;;  %v2229_v33 = vadd.f32 %v1717_v6, %v853_v60  ;;  %v3093_v17 = vmul.f32 %v15988_v53, %v13084_v9  ;;  %v847_v0 = vmul.f32 %v15987_v48, %v12715_v57 }
 0x432   :  { %v13096_v54 = vrot.slane %v3809_v35, %v15985_v26  ;;  %v3604_v8 = vadd.f32 %v3092_v24, %v2228_v37  ;;  %v4468_v43 = vmul.f32 %v16275_v3, %v13093_v2  ;;  %v1710_v60 = vmul.f32 %v16332_v44, %v12718_v27  ;;  %v32_v37 = vld [vmem:[%s15057_s0 + $0x70] sm:$0xff] }
 0x433   :  { %6201 = vadd.xlane.f32.xlu0 %v6200_v47  ;;  %v3605_v18 = vadd.f32 %v3093_v17, %v2229_v33  ;;  %v1711_v47 = vmul.f32 %v16332_v44, %v12722_v31  ;;  %v3086_v49 = vmul.f32 %v16277_v22, %v12732_v4  ;;  %v3087_v57 = vmul.f32 %v16277_v22, %v12741_v41  ;;  %v13131_v44 = vpop.xlane.xlu0 %5991 }
 0x434   :  { %v4469_v59 = vmul.f32 %v16275_v3, %v13096_v54  ;;  %v4462_v33 = vmul.f32 %v16108_v5, %v12750_v14  ;;  %v4463_v17 = vmul.f32 %v16108_v5, %v12753_v52  ;;  %v4980_v27 = vadd.f32 %v4468_v43, %v3604_v8  ;;  %v13129_v14 = vpop.xlane.xlu1 %5988  ;;  %16528 = vst [vmem:[#allocation190_spill] sm:$0xff] %v13131_v44 }
 0x435   :  { %v2222_v6 = vadd.f32 %v1710_v60, %v846_v12  ;;  %v2223_v31 = vadd.f32 %v1711_v47, %v847_v0  ;;  %v181_v24 = vrot.slane %v32_v37, %v16021_v25  ;;  %v185_v58 = vrot.slane %v32_v37, %v16450_v32  ;;  %16527 = vst [vmem:[#allocation85_spill] sm:$0xff] %v13129_v14 }
 0x436   :  { %v4981_v29 = vadd.f32 %v4469_v59, %v3605_v18  ;;  %v1061_v35 = vrot.slane %v32_v37, %v16383_v36  ;;  %v1065_v4 = vrot.slane %v32_v37, %v16518_v42  ;;  %v5492_v62 = vmax.f32 %v4980_v27, 0.0 }
 0x437   :  { %v3598_v38 = vadd.f32 %v3086_v49, %v2222_v6  ;;  %v3599_v22 = vadd.f32 %v3087_v57, %v2223_v31  ;;  %v13134_v52 = vrot.slane %v181_v24, %v16021_v25  ;;  %v2437_v59 = vrot.slane %v32_v37, %v16519_v21 }
 0x438   :  { %v5493_v41 = vmax.f32 %v4981_v29, 0.0  ;;  %v13137_v18 = vrot.slane %v1061_v35, %v16383_v36  ;;  %v13140_v8 = vrot.slane %v1065_v4, %v16383_v36  ;;  %v13144_v60 = vrot.slane %v185_v58, %v16021_v25  ;;  %v13165_v35 = vpop.xlane.xlu1 %5994  ;;  %v13167_v4 = vpop.xlane.xlu0 %5997 }
 0x439   :  { %v4974_v0 = vadd.f32 %v4462_v33, %v3598_v38  ;;  %v4975_v43 = vadd.f32 %v4463_v17, %v3599_v22  ;;  %v882_v47 = vmul.f32 %v15992_v34, %v13134_v52  ;;  %v2441_v38 = vrot.slane %v32_v37, %v16522_v7  ;;  %16529 = vst [vmem:[#allocation191_spill] sm:$0xff] %v13165_v35 }
 0x43a   :  { %v6215_v12 = vadd.f32 %v5493_v41, %v5492_v62  ;;  %v1746_v49 = vmul.f32 %v15925_v61, %v13137_v18  ;;  %v1747_v57 = vmul.f32 %v15925_v61, %v13140_v8  ;;  %v13154_v22 = vrot.slane %v2437_v59, %v16519_v21  ;;  %16530 = vst [vmem:[#allocation192_spill] sm:$0xff] %v13167_v4 }
 0x43b   :  { %v5486_v27 = vmax.f32 %v4974_v0, 0.0  ;;  %v5487_v29 = vmax.f32 %v4975_v43, 0.0  ;;  %v883_v62 = vmul.f32 %v15992_v34, %v13144_v60  ;;  %v3813_v33 = vrot.slane %v32_v37, %v15985_v26 }
 0x43c   :  { %6216 = vadd.xlane.f32.xlu1 %v6215_v12  ;;  %v3817_v17 = vrot.slane %v32_v37, %v15986_v28  ;;  %v2258_v31 = vadd.f32 %v1746_v49, %v882_v47  ;;  %v13161_v24 = vrot.slane %v2441_v38, %v16519_v21  ;;  %v3122_v58 = vmul.f32 %v16071_v15, %v13154_v22  ;;  %v13201_v14 = vpop.xlane.xlu1 %6000  ;;  %v13203_v5 = vpop.xlane.xlu0 %6003 }
 0x43d   :  { %v6206_v6 = vadd.f32 %v5487_v29, %v5486_v27  ;;  %v13170_v41 = vrot.slane %v3813_v33, %v15985_v26  ;;  %v2259_v37 = vadd.f32 %v1747_v57, %v883_v62  ;;  %v850_v59 = vmul.f32 %v15992_v34, %v13056_v13  ;;  %16531 = vst [vmem:[#allocation193_spill] sm:$0xff] %v13201_v14 }
 0x43e   :  { %v13173_v12 = vrot.slane %v3817_v17, %v15985_v26  ;;  %v3123_v0 = vmul.f32 %v16071_v15, %v13161_v24  ;;  %v3634_v43 = vadd.f32 %v3122_v58, %v2258_v31  ;;  %v851_v27 = vmul.f32 %v15992_v34, %v13059_v20  ;;  %16532 = vst [vmem:[#allocation194_spill] sm:$0xff] %v13203_v5 }
 0x43f   :  { %6207 = vadd.xlane.f32.xlu0 %v6206_v6  ;;  %v4498_v47 = vmul.f32 %v15930_v55, %v13170_v41  ;;  %v1714_v29 = vmul.f32 %v15925_v61, %v13062_v50  ;;  %v1715_v38 = vmul.f32 %v15925_v61, %v13069_v19  ;;  %v3090_v62 = vmul.f32 %v16071_v15, %v13073_v23 }
 0x440   :  { %v4499_v49 = vmul.f32 %v15930_v55, %v13173_v12  ;;  %v3635_v57 = vadd.f32 %v3123_v0, %v2259_v37  ;;  %v3091_v33 = vmul.f32 %v16071_v15, %v13084_v9  ;;  %v4466_v31 = vmul.f32 %v15930_v55, %v13093_v2 }
 0x441   :  { %v5010_v17 = vadd.f32 %v4498_v47, %v3634_v43  ;;  %v2226_v6 = vadd.f32 %v1714_v29, %v850_v59  ;;  %v4467_v58 = vmul.f32 %v15930_v55, %v13096_v54  ;;  %v2227_v4 = vadd.f32 %v1715_v38, %v851_v27 }
 0x442   :  { %v5011_v35 = vadd.f32 %v4499_v49, %v3635_v57  ;;  %v856_v37 = vmul.f32 %v16220_v51, %v13056_v13  ;;  %v857_v0 = vmul.f32 %v16220_v51, %v13059_v20  ;;  %v1720_v59 = vmul.f32 %v16393_v45, %v13062_v50 }
 0x443   :  { %v5522_v44 = vmax.f32 %v5010_v17, 0.0  ;;  %v3602_v43 = vadd.f32 %v3090_v62, %v2226_v6  ;;  %v1721_v47 = vmul.f32 %v16393_v45, %v13069_v19  ;;  %v3603_v27 = vadd.f32 %v3091_v33, %v2227_v4 }
 0x444   :  { %v5523_v49 = vmax.f32 %v5011_v35, 0.0  ;;  %v3096_v29 = vmul.f32 %v16460_v30, %v13073_v23  ;;  %v3097_v57 = vmul.f32 %v16460_v30, %v13084_v9  ;;  %v2232_v14 = vadd.f32 %v1720_v59, %v856_v37  ;;  %v13219_v30 = vpop.xlane.xlu1 %6006 }
 0x445   :  { %v4978_v38 = vadd.f32 %v4466_v31, %v3602_v43  ;;  %v2233_v17 = vadd.f32 %v1721_v47, %v857_v0  ;;  %v4472_v62 = vmul.f32 %v15923_v40, %v13093_v2  ;;  %v4979_v5 = vadd.f32 %v4467_v58, %v3603_v27  ;;  %16533 = vst [vmem:[#allocation195_spill] sm:$0xff] %v13219_v30  ;;  %v13221_v0 = vpop.xlane.xlu0 %6009 }
 0x446   :  { %v6260_v6 = vadd.f32 %v5523_v49, %v5522_v44  ;;  %v4473_v48 = vmul.f32 %v15923_v40, %v13096_v54  ;;  %v3608_v35 = vadd.f32 %v3096_v29, %v2232_v14  ;;  %v854_v51 = vmul.f32 %v15994_v1, %v13056_v13  ;;  %16534 = vst [vmem:[#allocation196_spill] sm:$0xff] %v13221_v0  ;;  %v33_v14 = vld [vmem:[%s15057_s0 + $0x78] sm:$0xff]  ;;  %s8016_s0 = smov [#allocation3]  }
 0x447   :  { %v5490_v45 = vmax.f32 %v4978_v38, 0.0  ;;  %v3609_v4 = vadd.f32 %v3097_v57, %v2233_v17  ;;  %v5491_v33 = vmax.f32 %v4979_v5, 0.0  ;;  %v855_v44 = vmul.f32 %v15994_v1, %v13059_v20  ;;  %s7955_s15 = sshll.u32 %s8016_s0, 4  ;;  %s7956_s15 = int_to_ptr.vmem [resolvable:$true] %s7955_s15 }
 0x448   :  { %6261 = vadd.xlane.f32.xlu1 %v6260_v6  ;;  %v4984_v31 = vadd.f32 %v4472_v62, %v3608_v35  ;;  %v1718_v58 = vmul.f32 %v15935_v10, %v13062_v50  ;;  %v1719_v43 = vmul.f32 %v15935_v10, %v13069_v19  ;;  %v3094_v59 = vmul.f32 %v16398_v39, %v13073_v23  ;;  %s7990_s16 = scalar_lea.vmem %s7956_s15, 128  ;;  %p7995_p1 = scmp.lt.s32.totalorder %s7956_s15, %s7956_s15 }
 0x449   :  { %v4985_v37 = vadd.f32 %v4473_v48, %v3609_v4  ;;  %v6212_v5 = vadd.f32 %v5491_v33, %v5490_v45  ;;  %v3095_v48 = vmul.f32 %v16398_v39, %v13084_v9  ;;  %v4470_v29 = vmul.f32 %v16401_v16, %v13093_v2  ;;  %p7991_p0 = scmp.ne.s32.totalorder %s7956_s15, %s7990_s16  ;;  %p7996_p2 = scmp.lt.s32.totalorder %s7990_s16, %s7990_s16 }
 0x44a   :  { %v5496_v47 = vmax.f32 %v4984_v31, 0.0  ;;  %v2230_v27 = vadd.f32 %v1718_v58, %v854_v51  ;;  %v2231_v57 = vadd.f32 %v1719_v43, %v855_v44  ;;  %v4471_v45 = vmul.f32 %v16401_v16, %v13096_v54  ;;  %v13251_v44 = vpop.xlane.xlu1 %6012  ;;  %v13260_v43 = vpop.xlane.xlu0 %6015 }
 0x44b   :  { %v5497_v49 = vmax.f32 %v4985_v37, 0.0  ;;  %6213 = vadd.xlane.f32.xlu0 %v6212_v5  ;;  %v189_v38 = vrot.slane %v33_v14, %v16021_v25  ;;  %v193_v17 = vrot.slane %v33_v14, %v16450_v32  ;;  %v1069_v35 = vrot.slane %v33_v14, %v16383_v36  ;;  %16535 = vst [vmem:[#allocation197_spill] sm:$0xff] %v13251_v44  ;;  %p7997_p3 = por %p7996_p2, %p7995_p1 }
 0x44c   :  { %v3606_v6 = vadd.f32 %v3094_v59, %v2230_v27  ;;  %v1073_v4 = vrot.slane %v33_v14, %v16518_v42  ;;  %v3607_v33 = vadd.f32 %v3095_v48, %v2231_v57  ;;  %v2445_v37 = vrot.slane %v33_v14, %v16519_v21  ;;  %16536 = vst [vmem:[#allocation198_spill] sm:$0xff] %v13260_v43 }
 0x44d   :  { %v6221_v62 = vadd.f32 %v5497_v49, %v5496_v47  ;;  %v13245_v51 = vrot.slane %v189_v38, %v16021_v25  ;;  %v13248_v31 = vrot.slane %v193_v17, %v16021_v25  ;;  %v13254_v32 = vrot.slane %v1069_v35, %v16383_v36  ;;  %p7998_p4 = pnand %p7997_p3, %p7991_p0 }
 0x44e   :  { %v4982_v58 = vadd.f32 %v4470_v29, %v3606_v6  ;;  %v13257_v5 = vrot.slane %v1073_v4, %v16383_v36  ;;  %v2449_v42 = vrot.slane %v33_v14, %v16522_v7  ;;  %v4983_v59 = vadd.f32 %v4471_v45, %v3607_v33  ;;  %v13290_v33 = vpop.xlane.xlu0 %6021 }
 0x44f   :  { %6222 = vadd.xlane.f32.xlu1 %v6221_v62  ;;  %v914_v25 = vmul.f32 %v15992_v34, %v13245_v51  ;;  %v915_v48 = vmul.f32 %v15992_v34, %v13248_v31  ;;  %v13267_v47 = vrot.slane %v2445_v37, %v16519_v21  ;;  %v1778_v27 = vmul.f32 %v15925_v61, %v13254_v32 }
 0x450   :  { %v5494_v49 = vmax.f32 %v4982_v58, 0.0  ;;  %v1779_v36 = vmul.f32 %v15925_v61, %v13257_v5  ;;  %v13274_v7 = vrot.slane %v2449_v42, %v16519_v21  ;;  %v5495_v29 = vmax.f32 %v4983_v59, 0.0  ;;  %v13288_v21 = vpop.xlane.xlu1 %6018 }
 0x451   :  { %v3154_v57 = vmul.f32 %v16071_v15, %v13267_v47  ;;  %v3821_v45 = vrot.slane %v33_v14, %v15985_v26  ;;  %v3825_v34 = vrot.slane %v33_v14, %v15986_v28  ;;  %v2290_v38 = vadd.f32 %v1778_v27, %v914_v25  ;;  %16537 = vst [vmem:[#allocation199_spill] sm:$0xff] %v13288_v21 }
 0x452   :  { %v3155_v17 = vmul.f32 %v16071_v15, %v13274_v7  ;;  %v6218_v62 = vadd.f32 %v5495_v29, %v5494_v49  ;;  %v2291_v6 = vadd.f32 %v1779_v36, %v915_v48  ;;  %v884_v14 = vmul.f32 %v16523_v46, %v13134_v52 }
 0x453   :  { %v13283_v35 = vrot.slane %v3821_v45, %v15985_v26  ;;  %v13286_v61 = vrot.slane %v3825_v34, %v15985_v26  ;;  %v3666_v4 = vadd.f32 %v3154_v57, %v2290_v38  ;;  %v885_v26 = vmul.f32 %v16523_v46, %v13144_v60 }
 0x454   :  { %6219 = vadd.xlane.f32.xlu0 %v6218_v62  ;;  %v3667_v37 = vadd.f32 %v3155_v17, %v2291_v6  ;;  %v1748_v58 = vmul.f32 %v16524_v63, %v13137_v18  ;;  %v1749_v42 = vmul.f32 %v16524_v63, %v13140_v8  ;;  %v3124_v59 = vmul.f32 %v15988_v53, %v13154_v22  ;;  %v13318_v62 = vpop.xlane.xlu1 %6024 }
 0x455   :  { %v4530_v28 = vmul.f32 %v15930_v55, %v13283_v35  ;;  %v4531_v15 = vmul.f32 %v15930_v55, %v13286_v61  ;;  %v3125_v55 = vmul.f32 %v15988_v53, %v13161_v24  ;;  %v4500_v49 = vmul.f32 %v16275_v3, %v13170_v41  ;;  %16538 = vst [vmem:[#allocation200_spill] sm:$0xff] %v13318_v62 }
 0x456   :  { %v2260_v27 = vadd.f32 %v1748_v58, %v884_v14  ;;  %v2261_v36 = vadd.f32 %v1749_v42, %v885_v26  ;;  %v4501_v29 = vmul.f32 %v16275_v3, %v13173_v12  ;;  %v858_v57 = vmul.f32 %v16470_v11, %v13056_v13  ;;  %v13324_v14 = vpop.xlane.xlu0 %6027 }
 0x457   :  { %v5042_v25 = vadd.f32 %v4530_v28, %v3666_v4  ;;  %v5043_v48 = vadd.f32 %v4531_v15, %v3667_v37  ;;  %v859_v38 = vmul.f32 %v16470_v11, %v13059_v20  ;;  %v1722_v17 = vmul.f32 %v16471_v56, %v13062_v50  ;;  %v16539_v28 = vld [vmem:[#allocation21_spill] sm:$0xff] }
 0x458   :  { %v3636_v6 = vadd.f32 %v3124_v59, %v2260_v27  ;;  %v3637_v4 = vadd.f32 %v3125_v55, %v2261_v36  ;;  %v1723_v37 = vmul.f32 %v16471_v56, %v13069_v19  ;;  %v3098_v15 = vmul.f32 %v16539_v28, %v13073_v23 }
 0x459   :  { %v5554_v45 = vmax.f32 %v5042_v25, 0.0  ;;  %v5555_v34 = vmax.f32 %v5043_v48, 0.0  ;;  %v2234_v58 = vadd.f32 %v1722_v17, %v858_v57  ;;  %v3099_v42 = vmul.f32 %v16539_v28, %v13084_v9  ;;  %v16540_v25 = vld [vmem:[#allocation111_spill] sm:$0xff] }
 0x45a   :  { %v4474_v48 = vmul.f32 %v16540_v25, %v13093_v2  ;;  %v5012_v21 = vadd.f32 %v4500_v49, %v3636_v6  ;;  %v5013_v43 = vadd.f32 %v4501_v29, %v3637_v4  ;;  %v2235_v59 = vadd.f32 %v1723_v37, %v859_v38  ;;  %v13340_v38 = vpop.xlane.xlu1 %6030  ;;  %v13346_v4 = vpop.xlane.xlu0 %6033 }
 0x45b   :  { %v6308_v26 = vadd.f32 %v5555_v34, %v5554_v45  ;;  %v4475_v55 = vmul.f32 %v16540_v25, %v13096_v54  ;;  %v3610_v27 = vadd.f32 %v3098_v15, %v2234_v58  ;;  %v886_v57 = vmul.f32 %v15994_v1, %v13134_v52  ;;  %16541 = vst [vmem:[#allocation21_spill] sm:$0xff] %v13340_v38 }
 0x45c   :  { %v5524_v36 = vmax.f32 %v5012_v21, 0.0  ;;  %v5525_v44 = vmax.f32 %v5013_v43, 0.0  ;;  %v3611_v30 = vadd.f32 %v3099_v42, %v2235_v59  ;;  %v887_v34 = vmul.f32 %v15994_v1, %v13144_v60  ;;  %16542 = vst [vmem:[#allocation111_spill] sm:$0xff] %v13346_v4 }
 0x45d   :  { %6309 = vadd.xlane.f32.xlu1 %v6308_v26  ;;  %v4986_v45 = vadd.f32 %v4474_v48, %v3610_v27  ;;  %v1750_v49 = vmul.f32 %v15935_v10, %v13137_v18  ;;  %v1751_v29 = vmul.f32 %v15935_v10, %v13140_v8  ;;  %v3126_v43 = vmul.f32 %v16398_v39, %v13154_v22 }
 0x45e   :  { %v6263_v17 = vadd.f32 %v5525_v44, %v5524_v36  ;;  %v4987_v6 = vadd.f32 %v4475_v55, %v3611_v30  ;;  %v3127_v21 = vmul.f32 %v16398_v39, %v13161_v24  ;;  %v4502_v58 = vmul.f32 %v16401_v16, %v13170_v41 }
 0x45f   :  { %v5498_v37 = vmax.f32 %v4986_v45, 0.0  ;;  %v2262_v15 = vadd.f32 %v1750_v49, %v886_v57  ;;  %v2263_v26 = vadd.f32 %v1751_v29, %v887_v34  ;;  %v4503_v44 = vmul.f32 %v16401_v16, %v13173_v12 }
 0x460   :  { %6264 = vadd.xlane.f32.xlu0 %v6263_v17  ;;  %v5499_v42 = vmax.f32 %v4987_v6, 0.0  ;;  %v918_v30 = vmul.f32 %v15994_v1, %v13245_v51  ;;  %v919_v48 = vmul.f32 %v15994_v1, %v13248_v31  ;;  %v1782_v27 = vmul.f32 %v15935_v10, %v13254_v32 }
 0x461   :  { %v3638_v59 = vadd.f32 %v3126_v43, %v2262_v15  ;;  %v3639_v55 = vadd.f32 %v3127_v21, %v2263_v26  ;;  %v1783_v36 = vmul.f32 %v15935_v10, %v13257_v5  ;;  %v3158_v45 = vmul.f32 %v16398_v39, %v13267_v47  ;;  %v13366_v43 = vpop.xlane.xlu1 %6036  ;;  %v13370_v21 = vpop.xlane.xlu0 %6039 }
 0x462   :  { %v6224_v57 = vadd.f32 %v5499_v42, %v5498_v37  ;;  %v3159_v34 = vmul.f32 %v16398_v39, %v13274_v7  ;;  %v4534_v49 = vmul.f32 %v16401_v16, %v13283_v35  ;;  %v2294_v17 = vadd.f32 %v1782_v27, %v918_v30  ;;  %16543 = vst [vmem:[#allocation201_spill] sm:$0xff] %v13366_v43 }
 0x463   :  { %v5014_v29 = vadd.f32 %v4502_v58, %v3638_v59  ;;  %v5015_v1 = vadd.f32 %v4503_v44, %v3639_v55  ;;  %v2295_v6 = vadd.f32 %v1783_v36, %v919_v48  ;;  %v4535_v10 = vmul.f32 %v16401_v16, %v13286_v61  ;;  %16544 = vst [vmem:[#allocation202_spill] sm:$0xff] %v13370_v21  ;;  %v16558_v21 = vld [vmem:[#allocation19_spill] sm:$0xff] }
 0x464   :  { %6225 = vadd.xlane.f32.xlu1 %v6224_v57  ;;  %v3670_v26 = vadd.f32 %v3158_v45, %v2294_v17  ;;  %v916_v39 = vmul.f32 %v16523_v46, %v13245_v51  ;;  %v917_v58 = vmul.f32 %v16523_v46, %v13248_v31  ;;  %v1780_v44 = vmul.f32 %v16524_v63, %v13254_v32 }
 0x465   :  { %v5526_v37 = vmax.f32 %v5014_v29, 0.0  ;;  %v5527_v15 = vmax.f32 %v5015_v1, 0.0  ;;  %v3671_v42 = vadd.f32 %v3159_v34, %v2295_v6  ;;  %v1781_v30 = vmul.f32 %v16524_v63, %v13257_v5  ;;  %v13390_v29 = vpop.xlane.xlu1 %6042 }
 0x466   :  { %v5046_v16 = vadd.f32 %v4534_v49, %v3670_v26  ;;  %v3156_v55 = vmul.f32 %v15988_v53, %v13267_v47  ;;  %v2292_v27 = vadd.f32 %v1780_v44, %v916_v39  ;;  %v3157_v57 = vmul.f32 %v15988_v53, %v13274_v7  ;;  %16545 = vst [vmem:[#allocation203_spill] sm:$0xff] %v13390_v29 }
 0x467   :  { %v6266_v48 = vadd.f32 %v5527_v15, %v5526_v37  ;;  %v5047_v59 = vadd.f32 %v4535_v10, %v3671_v42  ;;  %v2293_v36 = vadd.f32 %v1781_v30, %v917_v58  ;;  %v4532_v46 = vmul.f32 %v16275_v3, %v13283_v35  ;;  %v13396_v10 = vpop.xlane.xlu0 %6045 }
 0x468   :  { %v5558_v45 = vmax.f32 %v5046_v16, 0.0  ;;  %v4533_v63 = vmul.f32 %v16275_v3, %v13286_v61  ;;  %v890_v49 = vmul.f32 %v16470_v11, %v13134_v52  ;;  %v3668_v1 = vadd.f32 %v3156_v55, %v2292_v27  ;;  %16546 = vst [vmem:[#allocation204_spill] sm:$0xff] %v13396_v10 }
 0x469   :  { %6267 = vadd.xlane.f32.xlu0 %v6266_v48  ;;  %v5559_v34 = vmax.f32 %v5047_v59, 0.0  ;;  %v3669_v17 = vadd.f32 %v3157_v57, %v2293_v36  ;;  %v891_v6 = vmul.f32 %v16470_v11, %v13144_v60  ;;  %v1754_v53 = vmul.f32 %v16471_v56, %v13137_v18  ;;  %v16547_v36 = vld [vmem:[#allocation17_spill] sm:$0xff] }
 0x46a   :  { %v1755_v15 = vmul.f32 %v16471_v56, %v13140_v8  ;;  %v3130_v3 = vmul.f32 %v16539_v28, %v13154_v22  ;;  %v3131_v26 = vmul.f32 %v16539_v28, %v13161_v24  ;;  %v5044_v42 = vadd.f32 %v4532_v46, %v3668_v1 }
 0x46b   :  { %v6314_v37 = vadd.f32 %v5559_v34, %v5558_v45  ;;  %v5045_v39 = vadd.f32 %v4533_v63, %v3669_v17  ;;  %v2266_v58 = vadd.f32 %v1754_v53, %v890_v49  ;;  %v4506_v44 = vmul.f32 %v16540_v25, %v13170_v41  ;;  %v13412_v63 = vpop.xlane.xlu1 %6048  ;;  %v16549_v49 = vld [vmem:[#allocation92_spill] sm:$0xff] }
 0x46c   :  { %v2267_v30 = vadd.f32 %v1755_v15, %v891_v6  ;;  %v4507_v48 = vmul.f32 %v16540_v25, %v13173_v12  ;;  %v5556_v16 = vmax.f32 %v5044_v42, 0.0  ;;  %v888_v57 = vmul.f32 %v16547_v36, %v13134_v52  ;;  %16548 = vst [vmem:[#allocation17_spill] sm:$0xff] %v13412_v63  ;;  %v13418_v6 = vpop.xlane.xlu0 %6051 }
 0x46d   :  { %6315 = vadd.xlane.f32.xlu1 %v6314_v37  ;;  %v5557_v59 = vmax.f32 %v5045_v39, 0.0  ;;  %v3642_v55 = vadd.f32 %v3130_v3, %v2266_v58  ;;  %v889_v46 = vmul.f32 %v16547_v36, %v13144_v60  ;;  %v1752_v1 = vmul.f32 %v16549_v49, %v13137_v18  ;;  %16550 = vst [vmem:[#allocation92_spill] sm:$0xff] %v13418_v6  ;;  %v16551_v37 = vld [vmem:[#allocation25_spill] sm:$0xff] }
 0x46e   :  { %v3643_v27 = vadd.f32 %v3131_v26, %v2267_v30  ;;  %v1753_v17 = vmul.f32 %v16549_v49, %v13140_v8  ;;  %v3128_v15 = vmul.f32 %v16551_v37, %v13154_v22  ;;  %v3129_v3 = vmul.f32 %v16551_v37, %v13161_v24 }
 0x46f   :  { %v6311_v45 = vadd.f32 %v5557_v59, %v5556_v16  ;;  %v5018_v34 = vadd.f32 %v4506_v44, %v3642_v55  ;;  %v4504_v26 = vmul.f32 %v15923_v40, %v13170_v41  ;;  %v2264_v39 = vadd.f32 %v1752_v1, %v888_v57  ;;  %v16552_v16 = vld [vmem:[#allocation36_spill] sm:$0xff]  ;;  %v16554_v57 = vld [vmem:[#allocation26_spill] sm:$0xff] }
 0x470   :  { %v5019_v53 = vadd.f32 %v4507_v48, %v3643_v27  ;;  %v2265_v58 = vadd.f32 %v1753_v17, %v889_v46  ;;  %v4505_v44 = vmul.f32 %v15923_v40, %v13173_v12  ;;  %v862_v48 = vmul.f32 %v16552_v16, %v13056_v13  ;;  %v16553_v55 = vld [vmem:[#allocation96_spill] sm:$0xff] }
 0x471   :  { %6312 = vadd.xlane.f32.xlu0 %v6311_v45  ;;  %v5530_v42 = vmax.f32 %v5018_v34, 0.0  ;;  %v863_v59 = vmul.f32 %v16552_v16, %v13059_v20  ;;  %v1726_v27 = vmul.f32 %v16553_v55, %v13062_v50  ;;  %v3640_v0 = vadd.f32 %v3128_v15, %v2264_v39  ;;  %v13446_v39 = vpop.xlane.xlu0 %6057 }
 0x472   :  { %v5531_v30 = vmax.f32 %v5019_v53, 0.0  ;;  %v3641_v63 = vadd.f32 %v3129_v3, %v2265_v58  ;;  %v1727_v45 = vmul.f32 %v16553_v55, %v13069_v19  ;;  %v3102_v46 = vmul.f32 %v16554_v57, %v13073_v23  ;;  %v16555_v53 = vld [vmem:[#allocation22_spill] sm:$0xff]  ;;  %v13444_v3 = vpop.xlane.xlu1 %6054  ;;  %16557 = vst [vmem:[#allocation36_spill] sm:$0xff] %v13446_v39 }
 0x473   :  { %v2238_v1 = vadd.f32 %v1726_v27, %v862_v48  ;;  %v3103_v17 = vmul.f32 %v16554_v57, %v13084_v9  ;;  %v4478_v6 = vmul.f32 %v16555_v53, %v13093_v2  ;;  %v5016_v29 = vadd.f32 %v4504_v26, %v3640_v0  ;;  %16556 = vst [vmem:[#allocation25_spill] sm:$0xff] %v13444_v3 }
 0x474   :  { %v6272_v34 = vadd.f32 %v5531_v30, %v5530_v42  ;;  %v5017_v10 = vadd.f32 %v4505_v44, %v3641_v63  ;;  %v2239_v43 = vadd.f32 %v1727_v45, %v863_v59  ;;  %v4479_v15 = vmul.f32 %v16555_v53, %v13096_v54  ;;  %v16559_v63 = vld [vmem:[#allocation95_spill] sm:$0xff] }
 0x475   :  { %v3614_v58 = vadd.f32 %v3102_v46, %v2238_v1  ;;  %v5528_v42 = vmax.f32 %v5016_v29, 0.0  ;;  %v860_v38 = vmul.f32 %v16558_v21, %v13056_v13  ;;  %v861_v0 = vmul.f32 %v16558_v21, %v13059_v20  ;;  %v16560_v46 = vld [vmem:[#allocation116_spill] sm:$0xff] }
 0x476   :  { %6273 = vadd.xlane.f32.xlu1 %v6272_v34  ;;  %v5529_v30 = vmax.f32 %v5017_v10, 0.0  ;;  %v3615_v48 = vadd.f32 %v3103_v17, %v2239_v43  ;;  %v1724_v26 = vmul.f32 %v16559_v63, %v13062_v50  ;;  %v1725_v45 = vmul.f32 %v16559_v63, %v13069_v19  ;;  %v16561_v34 = vld [vmem:[#allocation32_spill] sm:$0xff] }
 0x477   :  { %v4990_v27 = vadd.f32 %v4478_v6, %v3614_v58  ;;  %v3100_v29 = vmul.f32 %v16560_v46, %v13073_v23  ;;  %v3101_v6 = vmul.f32 %v16560_v46, %v13084_v9  ;;  %v4476_v1 = vmul.f32 %v16561_v34, %v13093_v2 }
 0x478   :  { %v6269_v44 = vadd.f32 %v5529_v30, %v5528_v42  ;;  %v4991_v59 = vadd.f32 %v4479_v15, %v3615_v48  ;;  %v2236_v43 = vadd.f32 %v1724_v26, %v860_v38  ;;  %v2237_v58 = vadd.f32 %v1725_v45, %v861_v0  ;;  %v13466_v30 = vpop.xlane.xlu1 %6060  ;;  %v13468_v48 = vpop.xlane.xlu0 %6063 }
 0x479   :  { %v5502_v10 = vmax.f32 %v4990_v27, 0.0  ;;  %v4477_v15 = vmul.f32 %v16561_v34, %v13096_v54  ;;  %v922_v42 = vmul.f32 %v16470_v11, %v13245_v51  ;;  %16562 = vst [vmem:[#allocation96_spill] sm:$0xff] %v13466_v30  ;;  %16563 = vst [vmem:[#allocation26_spill] sm:$0xff] %v13468_v48  ;;  %v923_v27 = vmul.f32 %v16470_v11, %v13248_v31 }
 0x47a   :  { %6270 = vadd.xlane.f32.xlu0 %v6269_v44  ;;  %v5503_v17 = vmax.f32 %v4991_v59, 0.0  ;;  %v3612_v38 = vadd.f32 %v3100_v29, %v2236_v43  ;;  %v1786_v26 = vmul.f32 %v16471_v56, %v13254_v32  ;;  %v1787_v0 = vmul.f32 %v16471_v56, %v13257_v5 }
 0x47b   :  { %v3613_v59 = vadd.f32 %v3101_v6, %v2237_v58  ;;  %v3162_v45 = vmul.f32 %v16539_v28, %v13267_v47  ;;  %v3163_v30 = vmul.f32 %v16539_v28, %v13274_v7  ;;  %v4538_v11 = vmul.f32 %v16540_v25, %v13283_v35 }
 0x47c   :  { %v6230_v44 = vadd.f32 %v5503_v17, %v5502_v10  ;;  %v4988_v3 = vadd.f32 %v4476_v1, %v3612_v38  ;;  %v2298_v48 = vadd.f32 %v1786_v26, %v922_v42  ;;  %v2299_v29 = vadd.f32 %v1787_v0, %v923_v27  ;;  %v13488_v1 = vpop.xlane.xlu1 %6066  ;;  %v13490_v42 = vpop.xlane.xlu0 %6069 }
 0x47d   :  { %v4989_v43 = vadd.f32 %v4477_v15, %v3613_v59  ;;  %v4539_v39 = vmul.f32 %v16540_v25, %v13286_v61  ;;  %v920_v58 = vmul.f32 %v16547_v36, %v13245_v51  ;;  %v921_v28 = vmul.f32 %v16547_v36, %v13248_v31  ;;  %16564 = vst [vmem:[#allocation22_spill] sm:$0xff] %v13488_v1 }
 0x47e   :  { %6231 = vadd.xlane.f32.xlu1 %v6230_v44  ;;  %v5500_v56 = vmax.f32 %v4988_v3, 0.0  ;;  %v3674_v10 = vadd.f32 %v3162_v45, %v2298_v48  ;;  %v3675_v6 = vadd.f32 %v3163_v30, %v2299_v29  ;;  %16565 = vst [vmem:[#allocation19_spill] sm:$0xff] %v13490_v42  ;;  %v1784_v15 = vmul.f32 %v16549_v49, %v13254_v32 }
 0x47f   :  { %v5501_v17 = vmax.f32 %v4989_v43, 0.0  ;;  %v1785_v25 = vmul.f32 %v16549_v49, %v13257_v5  ;;  %v3160_v30 = vmul.f32 %v16551_v37, %v13267_v47  ;;  %v3161_v48 = vmul.f32 %v16551_v37, %v13274_v7 }
 0x480   :  { %v5050_v38 = vadd.f32 %v4538_v11, %v3674_v10  ;;  %v5051_v27 = vadd.f32 %v4539_v39, %v3675_v6  ;;  %v4536_v36 = vmul.f32 %v15923_v40, %v13283_v35  ;;  %v2296_v44 = vadd.f32 %v1784_v15, %v920_v58  ;;  %v13518_v58 = vpop.xlane.xlu1 %6072 }
 0x481   :  { %v6227_v3 = vadd.f32 %v5501_v17, %v5500_v56  ;;  %v2297_v39 = vadd.f32 %v1785_v25, %v921_v28  ;;  %v4537_v59 = vmul.f32 %v15923_v40, %v13286_v61  ;;  %v894_v49 = vmul.f32 %v16552_v16, %v13134_v52  ;;  %16566 = vst [vmem:[#allocation95_spill] sm:$0xff] %v13518_v58  ;;  %v13520_v28 = vpop.xlane.xlu0 %6075 }
 0x482   :  { %v5562_v26 = vmax.f32 %v5050_v38, 0.0  ;;  %v5563_v0 = vmax.f32 %v5051_v27, 0.0  ;;  %v895_v45 = vmul.f32 %v16552_v16, %v13144_v60  ;;  %v1758_v37 = vmul.f32 %v16553_v55, %v13137_v18  ;;  %16567 = vst [vmem:[#allocation116_spill] sm:$0xff] %v13520_v28 }
 0x483   :  { %6228 = vadd.xlane.f32.xlu0 %v6227_v3  ;;  %v3672_v11 = vadd.f32 %v3160_v30, %v2296_v44  ;;  %v3673_v43 = vadd.f32 %v3161_v48, %v2297_v39  ;;  %v1759_v56 = vmul.f32 %v16553_v55, %v13140_v8  ;;  %v3134_v6 = vmul.f32 %v16554_v57, %v13154_v22 }
 0x484   :  { %v6320_v29 = vadd.f32 %v5563_v0, %v5562_v26  ;;  %v2270_v10 = vadd.f32 %v1758_v37, %v894_v49  ;;  %v3135_v40 = vmul.f32 %v16554_v57, %v13161_v24  ;;  %v4510_v17 = vmul.f32 %v16555_v53, %v13170_v41 }
 0x485   :  { %v5048_v38 = vadd.f32 %v4536_v36, %v3672_v11  ;;  %v5049_v27 = vadd.f32 %v4537_v59, %v3673_v43  ;;  %v2271_v15 = vadd.f32 %v1759_v56, %v895_v45  ;;  %v4511_v25 = vmul.f32 %v16555_v53, %v13173_v12 }
 0x486   :  { %6321 = vadd.xlane.f32.xlu1 %v6320_v29  ;;  %v3646_v3 = vadd.f32 %v3134_v6, %v2270_v10  ;;  %v892_v44 = vmul.f32 %v16558_v21, %v13134_v52  ;;  %v893_v39 = vmul.f32 %v16558_v21, %v13144_v60  ;;  %v1756_v49 = vmul.f32 %v16559_v63, %v13137_v18  ;;  %v13538_v10 = vpop.xlane.xlu1 %6078  ;;  %v13540_v6 = vpop.xlane.xlu0 %6081 }
 0x487   :  { %v5560_v30 = vmax.f32 %v5048_v38, 0.0  ;;  %v5561_v48 = vmax.f32 %v5049_v27, 0.0  ;;  %v3647_v26 = vadd.f32 %v3135_v40, %v2271_v15  ;;  %v1757_v45 = vmul.f32 %v16559_v63, %v13140_v8  ;;  %16568 = vst [vmem:[#allocation32_spill] sm:$0xff] %v13538_v10  ;;  %16569 = vst [vmem:[#allocation205_spill] sm:$0xff] %v13540_v6  ;;  %v16570_v27 = vld [vmem:[#allocation42_spill] sm:$0xff] }
 0x488   :  { %v5022_v0 = vadd.f32 %v4510_v17, %v3646_v3  ;;  %v3132_v37 = vmul.f32 %v16560_v46, %v13154_v22  ;;  %v2268_v11 = vadd.f32 %v1756_v49, %v892_v44  ;;  %v3133_v43 = vmul.f32 %v16560_v46, %v13161_v24 }
 0x489   :  { %v6317_v36 = vadd.f32 %v5561_v48, %v5560_v30  ;;  %v5023_v59 = vadd.f32 %v4511_v25, %v3647_v26  ;;  %v4508_v56 = vmul.f32 %v16561_v34, %v13170_v41  ;;  %v2269_v17 = vadd.f32 %v1757_v45, %v893_v39  ;;  %v16571_v30 = vld [vmem:[#allocation98_spill] sm:$0xff]  ;;  %v16572_v39 = vld [vmem:[#allocation117_spill] sm:$0xff] }
 0x48a   :  { %v5534_v29 = vmax.f32 %v5022_v0, 0.0  ;;  %v4509_v38 = vmul.f32 %v16561_v34, %v13173_v12  ;;  %v866_v15 = vmul.f32 %v16570_v27, %v13056_v13  ;;  %v3644_v25 = vadd.f32 %v3132_v37, %v2268_v11  ;;  %v16573_v11 = vld [vmem:[#allocation130_spill] sm:$0xff] }
 0x48b   :  { %6318 = vadd.xlane.f32.xlu0 %v6317_v36  ;;  %v5535_v40 = vmax.f32 %v5023_v59, 0.0  ;;  %v867_v3 = vmul.f32 %v16570_v27, %v13059_v20  ;;  %v1730_v48 = vmul.f32 %v16571_v30, %v13062_v50  ;;  %v1731_v26 = vmul.f32 %v16571_v30, %v13069_v19 }
 0x48c   :  { %v3645_v44 = vadd.f32 %v3133_v43, %v2269_v17  ;;  %v3106_v49 = vmul.f32 %v16572_v39, %v13073_v23  ;;  %v3107_v36 = vmul.f32 %v16572_v39, %v13084_v9  ;;  %v5020_v59 = vadd.f32 %v4508_v56, %v3644_v25  ;;  %v13562_v17 = vpop.xlane.xlu0 %6087  ;;  %v16576_v56 = vld [vmem:[#allocation35_spill] sm:$0xff] }
 0x48d   :  { %v6278_v0 = vadd.f32 %v5535_v40, %v5534_v29  ;;  %v2242_v45 = vadd.f32 %v1730_v48, %v866_v15  ;;  %v2243_v37 = vadd.f32 %v1731_v26, %v867_v3  ;;  %v4482_v1 = vmul.f32 %v16573_v11, %v13093_v2  ;;  %v13560_v40 = vpop.xlane.xlu1 %6084  ;;  %16575 = vst [vmem:[#allocation98_spill] sm:$0xff] %v13562_v17 }
 0x48e   :  { %v5021_v10 = vadd.f32 %v4509_v38, %v3645_v44  ;;  %v4483_v6 = vmul.f32 %v16573_v11, %v13096_v54  ;;  %v5532_v58 = vmax.f32 %v5020_v59, 0.0  ;;  %16574 = vst [vmem:[#allocation42_spill] sm:$0xff] %v13560_v40  ;;  %v864_v15 = vmul.f32 %v16576_v56, %v13056_v13  ;;  %v16577_v38 = vld [vmem:[#allocation97_spill] sm:$0xff]  ;;  %v16579_v59 = vld [vmem:[#allocation72_spill] sm:$0xff] }
 0x48f   :  { %6279 = vadd.xlane.f32.xlu1 %v6278_v0  ;;  %v3618_v29 = vadd.f32 %v3106_v49, %v2242_v45  ;;  %v3619_v43 = vadd.f32 %v3107_v36, %v2243_v37  ;;  %v865_v25 = vmul.f32 %v16576_v56, %v13059_v20  ;;  %v1728_v26 = vmul.f32 %v16577_v38, %v13062_v50  ;;  %v16578_v49 = vld [vmem:[#allocation120_spill] sm:$0xff] }
 0x490   :  { %v5533_v28 = vmax.f32 %v5021_v10, 0.0  ;;  %v1729_v0 = vmul.f32 %v16577_v38, %v13069_v19  ;;  %v3104_v36 = vmul.f32 %v16578_v49, %v13073_v23  ;;  %v3105_v10 = vmul.f32 %v16578_v49, %v13084_v9 }
 0x491   :  { %v4994_v3 = vadd.f32 %v4482_v1, %v3618_v29  ;;  %v4995_v48 = vadd.f32 %v4483_v6, %v3619_v43  ;;  %v4480_v45 = vmul.f32 %v16579_v59, %v13093_v2  ;;  %v2240_v1 = vadd.f32 %v1728_v26, %v864_v15 }
 0x492   :  { %v6275_v44 = vadd.f32 %v5533_v28, %v5532_v58  ;;  %v2241_v6 = vadd.f32 %v1729_v0, %v865_v25  ;;  %v4481_v29 = vmul.f32 %v16579_v59, %v13096_v54  ;;  %v926_v58 = vmul.f32 %v16552_v16, %v13245_v51  ;;  %v13588_v25 = vpop.xlane.xlu1 %6090 }
 0x493   :  { %v5506_v37 = vmax.f32 %v4994_v3, 0.0  ;;  %v5507_v40 = vmax.f32 %v4995_v48, 0.0  ;;  %v927_v28 = vmul.f32 %v16552_v16, %v13248_v31  ;;  %v1790_v43 = vmul.f32 %v16553_v55, %v13254_v32  ;;  %16580 = vst [vmem:[#allocation117_spill] sm:$0xff] %v13588_v25  ;;  %v13590_v3 = vpop.xlane.xlu0 %6093 }
 0x494   :  { %6276 = vadd.xlane.f32.xlu0 %v6275_v44  ;;  %v3616_v42 = vadd.f32 %v3104_v36, %v2240_v1  ;;  %v3617_v4 = vadd.f32 %v3105_v10, %v2241_v6  ;;  %v1791_v15 = vmul.f32 %v16553_v55, %v13257_v5  ;;  %16581 = vst [vmem:[#allocation130_spill] sm:$0xff] %v13590_v3 }
 0x495   :  { %v6236_v17 = vadd.f32 %v5507_v40, %v5506_v37  ;;  %v2302_v48 = vadd.f32 %v1790_v43, %v926_v58  ;;  %v3166_v26 = vmul.f32 %v16554_v57, %v13267_v47  ;;  %v3167_v16 = vmul.f32 %v16554_v57, %v13274_v7 }
 0x496   :  { %v4542_v0 = vmul.f32 %v16555_v53, %v13283_v35  ;;  %v4992_v40 = vadd.f32 %v4480_v45, %v3616_v42  ;;  %v4993_v44 = vadd.f32 %v4481_v29, %v3617_v4  ;;  %v2303_v36 = vadd.f32 %v1791_v15, %v927_v28 }
 0x497   :  { %6237 = vadd.xlane.f32.xlu1 %v6236_v17  ;;  %v4543_v55 = vmul.f32 %v16555_v53, %v13286_v61  ;;  %v3678_v10 = vadd.f32 %v3166_v26, %v2302_v48  ;;  %v924_v43 = vmul.f32 %v16558_v21, %v13245_v51  ;;  %v1788_v57 = vmul.f32 %v16559_v63, %v13254_v32  ;;  %v13608_v53 = vpop.xlane.xlu1 %6096  ;;  %v13610_v17 = vpop.xlane.xlu0 %6099 }
 0x498   :  { %v5504_v37 = vmax.f32 %v4992_v40, 0.0  ;;  %v5505_v1 = vmax.f32 %v4993_v44, 0.0  ;;  %v3679_v6 = vadd.f32 %v3167_v16, %v2303_v36  ;;  %v925_v4 = vmul.f32 %v16558_v21, %v13248_v31  ;;  %16582 = vst [vmem:[#allocation35_spill] sm:$0xff] %v13608_v53  ;;  %16583 = vst [vmem:[#allocation97_spill] sm:$0xff] %v13610_v17  ;;  %v16593_v17 = vld [vmem:[#allocation99_spill] sm:$0xff] }
 0x499   :  { %v5054_v58 = vadd.f32 %v4542_v0, %v3678_v10  ;;  %v1789_v42 = vmul.f32 %v16559_v63, %v13257_v5  ;;  %v2300_v29 = vadd.f32 %v1788_v57, %v924_v43  ;;  %v3164_v28 = vmul.f32 %v16560_v46, %v13267_v47 }
 0x49a   :  { %v6233_v25 = vadd.f32 %v5505_v1, %v5504_v37  ;;  %v5055_v3 = vadd.f32 %v4543_v55, %v3679_v6  ;;  %v3165_v26 = vmul.f32 %v16560_v46, %v13274_v7  ;;  %v4540_v21 = vmul.f32 %v16561_v34, %v13283_v35 }
 0x49b   :  { %v5566_v45 = vmax.f32 %v5054_v58, 0.0  ;;  %v2301_v48 = vadd.f32 %v1789_v42, %v925_v4  ;;  %v3676_v16 = vadd.f32 %v3164_v28, %v2300_v29  ;;  %v4541_v63 = vmul.f32 %v16561_v34, %v13286_v61  ;;  %v13636_v43 = vpop.xlane.xlu1 %6102  ;;  %v13638_v57 = vpop.xlane.xlu0 %6105 }
 0x49c   :  { %6234 = vadd.xlane.f32.xlu0 %v6233_v25  ;;  %v5567_v15 = vmax.f32 %v5055_v3, 0.0  ;;  %v898_v0 = vmul.f32 %v16570_v27, %v13134_v52  ;;  %v899_v40 = vmul.f32 %v16570_v27, %v13144_v60  ;;  %v1762_v3 = vmul.f32 %v16571_v30, %v13137_v18  ;;  %16584 = vst [vmem:[#allocation120_spill] sm:$0xff] %v13636_v43  ;;  %v16592_v43 = vld [vmem:[#allocation41_spill] sm:$0xff] }
 0x49d   :  { %v3677_v25 = vadd.f32 %v3165_v26, %v2301_v48  ;;  %v1763_v46 = vmul.f32 %v16571_v30, %v13140_v8  ;;  %v5052_v36 = vadd.f32 %v4540_v21, %v3676_v16  ;;  %v3138_v55 = vmul.f32 %v16572_v39, %v13154_v22  ;;  %16585 = vst [vmem:[#allocation72_spill] sm:$0xff] %v13638_v57 }
 0x49e   :  { %v6326_v44 = vadd.f32 %v5567_v15, %v5566_v45  ;;  %v3139_v34 = vmul.f32 %v16572_v39, %v13161_v24  ;;  %v4514_v10 = vmul.f32 %v16573_v11, %v13170_v41  ;;  %v2274_v1 = vadd.f32 %v1762_v3, %v898_v0 }
 0x49f   :  { %v5053_v37 = vadd.f32 %v4541_v63, %v3677_v25  ;;  %v2275_v6 = vadd.f32 %v1763_v46, %v899_v40  ;;  %v4515_v58 = vmul.f32 %v16573_v11, %v13173_v12  ;;  %v5564_v4 = vmax.f32 %v5052_v36, 0.0 }
 0x4a0   :  { %6327 = vadd.xlane.f32.xlu1 %v6326_v44  ;;  %v3650_v45 = vadd.f32 %v3138_v55, %v2274_v1  ;;  %v896_v28 = vmul.f32 %v16576_v56, %v13134_v52  ;;  %v897_v15 = vmul.f32 %v16576_v56, %v13144_v60  ;;  %v1760_v48 = vmul.f32 %v16577_v38, %v13137_v18  ;;  %v13660_v1 = vpop.xlane.xlu1 %6108 }
 0x4a1   :  { %v5565_v42 = vmax.f32 %v5053_v37, 0.0  ;;  %v3651_v29 = vadd.f32 %v3139_v34, %v2275_v6  ;;  %v1761_v26 = vmul.f32 %v16577_v38, %v13140_v8  ;;  %v3136_v21 = vmul.f32 %v16578_v49, %v13154_v22  ;;  %v16586_v34 = vld [vmem:[#allocation48_spill] sm:$0xff]  ;;  %v13662_v6 = vpop.xlane.xlu0 %6111 }
 0x4a2   :  { %v5026_v63 = vadd.f32 %v4514_v10, %v3650_v45  ;;  %v3137_v40 = vmul.f32 %v16578_v49, %v13161_v24  ;;  %v2272_v44 = vadd.f32 %v1760_v48, %v896_v28  ;;  %v4512_v3 = vmul.f32 %v16579_v59, %v13170_v41  ;;  %16587 = vst [vmem:[#allocation48_spill] sm:$0xff] %v13660_v1 }
 0x4a3   :  { %v6323_v16 = vadd.f32 %v5565_v42, %v5564_v4  ;;  %v5027_v0 = vadd.f32 %v4515_v58, %v3651_v29  ;;  %v2273_v25 = vadd.f32 %v1761_v26, %v897_v15  ;;  %v4513_v46 = vmul.f32 %v16579_v59, %v13173_v12  ;;  %16588 = vst [vmem:[#allocation206_spill] sm:$0xff] %v13662_v6  ;;  %v16589_v42 = vld [vmem:[#allocation104_spill] sm:$0xff]  ;;  %v16590_v15 = vld [vmem:[#allocation121_spill] sm:$0xff] }
 0x4a4   :  { %v5538_v36 = vmax.f32 %v5026_v63, 0.0  ;;  %v870_v37 = vmul.f32 %v16586_v34, %v13056_v13  ;;  %v871_v10 = vmul.f32 %v16586_v34, %v13059_v20  ;;  %v3648_v58 = vadd.f32 %v3136_v21, %v2272_v44 }
 0x4a5   :  { %6324 = vadd.xlane.f32.xlu0 %v6323_v16  ;;  %v5539_v55 = vmax.f32 %v5027_v0, 0.0  ;;  %v3649_v4 = vadd.f32 %v3137_v40, %v2273_v25  ;;  %v1734_v45 = vmul.f32 %v16589_v42, %v13062_v50  ;;  %v1735_v29 = vmul.f32 %v16589_v42, %v13069_v19  ;;  %v16591_v16 = vld [vmem:[#allocation132_spill] sm:$0xff] }
 0x4a6   :  { %v3110_v48 = vmul.f32 %v16590_v15, %v13073_v23  ;;  %v3111_v26 = vmul.f32 %v16590_v15, %v13084_v9  ;;  %v4486_v63 = vmul.f32 %v16591_v16, %v13093_v2  ;;  %v5024_v0 = vadd.f32 %v4512_v3, %v3648_v58 }
 0x4a7   :  { %v6284_v28 = vadd.f32 %v5539_v55, %v5538_v36  ;;  %v5025_v1 = vadd.f32 %v4513_v46, %v3649_v4  ;;  %v2246_v21 = vadd.f32 %v1734_v45, %v870_v37  ;;  %v2247_v40 = vadd.f32 %v1735_v29, %v871_v10  ;;  %v13684_v37 = vpop.xlane.xlu1 %6114  ;;  %v13686_v10 = vpop.xlane.xlu0 %6117  ;;  %v16595_v45 = vld [vmem:[#allocation124_spill] sm:$0xff] }
 0x4a8   :  { %v4487_v44 = vmul.f32 %v16591_v16, %v13096_v54  ;;  %v5536_v25 = vmax.f32 %v5024_v0, 0.0  ;;  %v868_v57 = vmul.f32 %v16592_v43, %v13056_v13  ;;  %v869_v53 = vmul.f32 %v16592_v43, %v13059_v20  ;;  %16594 = vst [vmem:[#allocation104_spill] sm:$0xff] %v13684_v37  ;;  %v16596_v0 = vld [vmem:[#allocation75_spill] sm:$0xff] }
 0x4a9   :  { %6285 = vadd.xlane.f32.xlu1 %v6284_v28  ;;  %v5537_v6 = vmax.f32 %v5025_v1, 0.0  ;;  %v3622_v36 = vadd.f32 %v3110_v48, %v2246_v21  ;;  %v3623_v55 = vadd.f32 %v3111_v26, %v2247_v40  ;;  %v1732_v3 = vmul.f32 %v16593_v17, %v13062_v50 }
 0x4aa   :  { %v1733_v46 = vmul.f32 %v16593_v17, %v13069_v19  ;;  %v3108_v29 = vmul.f32 %v16595_v45, %v13073_v23  ;;  %v3109_v26 = vmul.f32 %v16595_v45, %v13084_v9  ;;  %v4484_v21 = vmul.f32 %v16596_v0, %v13093_v2 }
 0x4ab   :  { %v6281_v58 = vadd.f32 %v5537_v6, %v5536_v25  ;;  %v4998_v1 = vadd.f32 %v4486_v63, %v3622_v36  ;;  %v4999_v4 = vadd.f32 %v4487_v44, %v3623_v55  ;;  %v2244_v28 = vadd.f32 %v1732_v3, %v868_v57 }
 0x4ac   :  { %v2245_v48 = vadd.f32 %v1733_v46, %v869_v53  ;;  %v4485_v37 = vmul.f32 %v16596_v0, %v13096_v54  ;;  %v930_v6 = vmul.f32 %v16570_v27, %v13245_v51  ;;  %v931_v53 = vmul.f32 %v16570_v27, %v13248_v31  ;;  %v13710_v27 = vpop.xlane.xlu1 %6120 }
 0x4ad   :  { %6282 = vadd.xlane.f32.xlu0 %v6281_v58  ;;  %v5510_v40 = vmax.f32 %v4998_v1, 0.0  ;;  %v5511_v62 = vmax.f32 %v4999_v4, 0.0  ;;  %v3620_v63 = vadd.f32 %v3108_v29, %v2244_v28  ;;  %v1794_v57 = vmul.f32 %v16571_v30, %v13254_v32  ;;  %16597 = vst [vmem:[#allocation121_spill] sm:$0xff] %v13710_v27  ;;  %v13712_v29 = vpop.xlane.xlu0 %6123  ;;  %v16609_v27 = vld [vmem:[#allocation47_spill] sm:$0xff] }
 0x4ae   :  { %v3621_v44 = vadd.f32 %v3109_v26, %v2245_v48  ;;  %v1795_v36 = vmul.f32 %v16571_v30, %v13257_v5  ;;  %v3170_v55 = vmul.f32 %v16572_v39, %v13267_v47  ;;  %v3171_v3 = vmul.f32 %v16572_v39, %v13274_v7  ;;  %16598 = vst [vmem:[#allocation132_spill] sm:$0xff] %v13712_v29 }
 0x4af   :  { %v6242_v25 = vadd.f32 %v5511_v62, %v5510_v40  ;;  %v4996_v46 = vadd.f32 %v4484_v21, %v3620_v63  ;;  %v2306_v1 = vadd.f32 %v1794_v57, %v930_v6  ;;  %v4546_v4 = vmul.f32 %v16573_v11, %v13283_v35 }
 0x4b0   :  { %v4997_v58 = vadd.f32 %v4485_v37, %v3621_v44  ;;  %v2307_v62 = vadd.f32 %v1795_v36, %v931_v53  ;;  %v4547_v30 = vmul.f32 %v16573_v11, %v13286_v61  ;;  %v928_v39 = vmul.f32 %v16576_v56, %v13245_v51 }
 0x4b1   :  { %6243 = vadd.xlane.f32.xlu1 %v6242_v25  ;;  %v5508_v28 = vmax.f32 %v4996_v46, 0.0  ;;  %v3682_v26 = vadd.f32 %v3170_v55, %v2306_v1  ;;  %v929_v37 = vmul.f32 %v16576_v56, %v13248_v31  ;;  %v1792_v63 = vmul.f32 %v16577_v38, %v13254_v32  ;;  %v13732_v46 = vpop.xlane.xlu1 %6126 }
 0x4b2   :  { %v5509_v48 = vmax.f32 %v4997_v58, 0.0  ;;  %v3683_v40 = vadd.f32 %v3171_v3, %v2307_v62  ;;  %v1793_v44 = vmul.f32 %v16577_v38, %v13257_v5  ;;  %v3168_v11 = vmul.f32 %v16578_v49, %v13267_v47  ;;  %16599 = vst [vmem:[#allocation41_spill] sm:$0xff] %v13732_v46  ;;  %v13734_v38 = vpop.xlane.xlu0 %6129 }
 0x4b3   :  { %v5058_v6 = vadd.f32 %v4546_v4, %v3682_v26  ;;  %v3169_v57 = vmul.f32 %v16578_v49, %v13274_v7  ;;  %v4544_v25 = vmul.f32 %v16579_v59, %v13283_v35  ;;  %v2304_v36 = vadd.f32 %v1792_v63, %v928_v39  ;;  %16600 = vst [vmem:[#allocation99_spill] sm:$0xff] %v13734_v38 }
 0x4b4   :  { %v6239_v21 = vadd.f32 %v5509_v48, %v5508_v28  ;;  %v5059_v53 = vadd.f32 %v4547_v30, %v3683_v40  ;;  %v2305_v55 = vadd.f32 %v1793_v44, %v929_v37  ;;  %v4545_v3 = vmul.f32 %v16579_v59, %v13286_v61 }
 0x4b5   :  { %v5570_v56 = vmax.f32 %v5058_v6, 0.0  ;;  %v902_v1 = vmul.f32 %v16586_v34, %v13134_v52  ;;  %v903_v49 = vmul.f32 %v16586_v34, %v13144_v60  ;;  %v1766_v4 = vmul.f32 %v16589_v42, %v13137_v18 }
 0x4b6   :  { %6240 = vadd.xlane.f32.xlu0 %v6239_v21  ;;  %v5571_v58 = vmax.f32 %v5059_v53, 0.0  ;;  %v3680_v62 = vadd.f32 %v3168_v11, %v2304_v36  ;;  %v3681_v30 = vadd.f32 %v3169_v57, %v2305_v55  ;;  %v1767_v28 = vmul.f32 %v16589_v42, %v13140_v8  ;;  %v13752_v36 = vpop.xlane.xlu1 %6132 }
 0x4b7   :  { %v3142_v59 = vmul.f32 %v16590_v15, %v13154_v22  ;;  %v2278_v26 = vadd.f32 %v1766_v4, %v902_v1  ;;  %v3143_v40 = vmul.f32 %v16590_v15, %v13161_v24  ;;  %v4518_v39 = vmul.f32 %v16591_v16, %v13170_v41  ;;  %16601 = vst [vmem:[#allocation124_spill] sm:$0xff] %v13752_v36  ;;  %v16608_v36 = vld [vmem:[#allocation134_spill] sm:$0xff] }
 0x4b8   :  { %v6332_v48 = vadd.f32 %v5571_v58, %v5570_v56  ;;  %v5056_v37 = vadd.f32 %v4544_v25, %v3680_v62  ;;  %v5057_v21 = vadd.f32 %v4545_v3, %v3681_v30  ;;  %v2279_v6 = vadd.f32 %v1767_v28, %v903_v49  ;;  %v13754_v56 = vpop.xlane.xlu0 %6135 }
 0x4b9   :  { %v4519_v63 = vmul.f32 %v16591_v16, %v13173_v12  ;;  %v3654_v44 = vadd.f32 %v3142_v59, %v2278_v26  ;;  %16602 = vst [vmem:[#allocation75_spill] sm:$0xff] %v13754_v56  ;;  %v900_v58 = vmul.f32 %v16592_v43, %v13134_v52  ;;  %v901_v25 = vmul.f32 %v16592_v43, %v13144_v60 }
 0x4ba   :  { %6333 = vadd.xlane.f32.xlu1 %v6332_v48  ;;  %v5568_v53 = vmax.f32 %v5056_v37, 0.0  ;;  %v5569_v11 = vmax.f32 %v5057_v21, 0.0  ;;  %v3655_v57 = vadd.f32 %v3143_v40, %v2279_v6  ;;  %v1764_v3 = vmul.f32 %v16593_v17, %v13137_v18  ;;  %v16603_v37 = vld [vmem:[#allocation58_spill] sm:$0xff] }
 0x4bb   :  { %v5030_v55 = vadd.f32 %v4518_v39, %v3654_v44  ;;  %v1765_v4 = vmul.f32 %v16593_v17, %v13140_v8  ;;  %v3140_v62 = vmul.f32 %v16595_v45, %v13154_v22  ;;  %v3141_v59 = vmul.f32 %v16595_v45, %v13161_v24  ;;  %v16604_v44 = vld [vmem:[#allocation63_spill] sm:$0xff] }
 0x4bc   :  { %v6329_v1 = vadd.f32 %v5569_v11, %v5568_v53  ;;  %v5031_v49 = vadd.f32 %v4519_v63, %v3655_v57  ;;  %v2276_v28 = vadd.f32 %v1764_v3, %v900_v58  ;;  %v4516_v48 = vmul.f32 %v16596_v0, %v13170_v41  ;;  %v16605_v58 = vld [vmem:[#allocation125_spill] sm:$0xff] }
 0x4bd   :  { %v5542_v30 = vmax.f32 %v5030_v55, 0.0  ;;  %v2277_v40 = vadd.f32 %v1765_v4, %v901_v25  ;;  %v4517_v39 = vmul.f32 %v16596_v0, %v13173_v12  ;;  %v874_v21 = vmul.f32 %v16603_v37, %v13056_v13 }
 0x4be   :  { %6330 = vadd.xlane.f32.xlu0 %v6329_v1  ;;  %v5543_v26 = vmax.f32 %v5031_v49, 0.0  ;;  %v3652_v6 = vadd.f32 %v3140_v62, %v2276_v28  ;;  %v875_v63 = vmul.f32 %v16603_v37, %v13059_v20  ;;  %v1738_v53 = vmul.f32 %v16604_v44, %v13062_v50  ;;  %v13784_v1 = vpop.xlane.xlu1 %6138  ;;  %v13786_v49 = vpop.xlane.xlu0 %6141 }
 0x4bf   :  { %v1739_v11 = vmul.f32 %v16604_v44, %v13069_v19  ;;  %v3653_v55 = vadd.f32 %v3141_v59, %v2277_v40  ;;  %v3114_v25 = vmul.f32 %v16605_v58, %v13073_v23  ;;  %v3115_v3 = vmul.f32 %v16605_v58, %v13084_v9  ;;  %16606 = vst [vmem:[#allocation58_spill] sm:$0xff] %v13784_v1 }
 0x4c0   :  { %v6290_v57 = vadd.f32 %v5543_v26, %v5542_v30  ;;  %16607 = vst [vmem:[#allocation63_spill] sm:$0xff] %v13786_v49  ;;  %v5028_v4 = vadd.f32 %v4516_v48, %v3652_v6  ;;  %v2250_v62 = vadd.f32 %v1738_v53, %v874_v21  ;;  %v4490_v56 = vmul.f32 %v16608_v36, %v13093_v2 }
 0x4c1   :  { %v2251_v28 = vadd.f32 %v1739_v11, %v875_v63  ;;  %v5029_v46 = vadd.f32 %v4517_v39, %v3653_v55  ;;  %v4491_v30 = vmul.f32 %v16608_v36, %v13096_v54  ;;  %v872_v1 = vmul.f32 %v16609_v27, %v13056_v13  ;;  %v16610_v63 = vld [vmem:[#allocation105_spill] sm:$0xff] }
 0x4c2   :  { %6291 = vadd.xlane.f32.xlu1 %v6290_v57  ;;  %v5540_v59 = vmax.f32 %v5028_v4, 0.0  ;;  %v3626_v26 = vadd.f32 %v3114_v25, %v2250_v62  ;;  %v873_v48 = vmul.f32 %v16609_v27, %v13059_v20  ;;  %v1736_v53 = vmul.f32 %v16610_v63, %v13062_v50  ;;  %v16611_v57 = vld [vmem:[#allocation102_spill] sm:$0xff]  ;;  %v16612_v25 = vld [vmem:[#allocation129_spill] sm:$0xff]  ;;  %v13806_v4 = vpop.xlane.xlu1 %6144 }
 0x4c3   :  { %v3627_v40 = vadd.f32 %v3115_v3, %v2251_v28  ;;  %v5541_v38 = vmax.f32 %v5029_v46, 0.0  ;;  %v1737_v39 = vmul.f32 %v16610_v63, %v13069_v19  ;;  %v3112_v55 = vmul.f32 %v16611_v57, %v13073_v23  ;;  %16613 = vst [vmem:[#allocation125_spill] sm:$0xff] %v13806_v4 }
 0x4c4   :  { %v5002_v21 = vadd.f32 %v4490_v56, %v3626_v26  ;;  %v3113_v46 = vmul.f32 %v16611_v57, %v13084_v9  ;;  %v4488_v3 = vmul.f32 %v16612_v25, %v13093_v2  ;;  %v13808_v56 = vpop.xlane.xlu0 %6147  ;;  %v1798_v49 = vmul.f32 %v16589_v42, %v13254_v32 }
 0x4c5   :  { %v5003_v6 = vadd.f32 %v4491_v30, %v3627_v40  ;;  %v6287_v11 = vadd.f32 %v5541_v38, %v5540_v59  ;;  %16614 = vst [vmem:[#allocation134_spill] sm:$0xff] %v13808_v56  ;;  %v2248_v30 = vadd.f32 %v1736_v53, %v872_v1  ;;  %v2249_v26 = vadd.f32 %v1737_v39, %v873_v48 }
 0x4c6   :  { %v5514_v62 = vmax.f32 %v5002_v21, 0.0  ;;  %v4489_v38 = vmul.f32 %v16612_v25, %v13096_v54  ;;  %v934_v59 = vmul.f32 %v16586_v34, %v13245_v51  ;;  %v935_v40 = vmul.f32 %v16586_v34, %v13248_v31 }
 0x4c7   :  { %v5515_v28 = vmax.f32 %v5003_v6, 0.0  ;;  %6288 = vadd.xlane.f32.xlu0 %v6287_v11  ;;  %v3624_v29 = vadd.f32 %v3112_v55, %v2248_v30  ;;  %v3625_v56 = vadd.f32 %v3113_v46, %v2249_v26  ;;  %v1799_v1 = vmul.f32 %v16589_v42, %v13257_v5 }
 0x4c8   :  { %v2310_v48 = vadd.f32 %v1798_v49, %v934_v59  ;;  %v3174_v21 = vmul.f32 %v16590_v15, %v13267_v47  ;;  %v3175_v6 = vmul.f32 %v16590_v15, %v13274_v7  ;;  %v4550_v53 = vmul.f32 %v16591_v16, %v13283_v35  ;;  %v13830_v42 = vpop.xlane.xlu0 %6153 }
 0x4c9   :  { %v6248_v4 = vadd.f32 %v5515_v28, %v5514_v62  ;;  %v5000_v34 = vadd.f32 %v4488_v3, %v3624_v29  ;;  %v5001_v39 = vadd.f32 %v4489_v38, %v3625_v56  ;;  %v2311_v11 = vadd.f32 %v1799_v1, %v935_v40  ;;  %v13828_v62 = vpop.xlane.xlu1 %6150  ;;  %16616 = vst [vmem:[#allocation105_spill] sm:$0xff] %v13830_v42 }
 0x4ca   :  { %v4551_v55 = vmul.f32 %v16591_v16, %v13286_v61  ;;  %v3686_v46 = vadd.f32 %v3174_v21, %v2310_v48  ;;  %16615 = vst [vmem:[#allocation47_spill] sm:$0xff] %v13828_v62  ;;  %v932_v15 = vmul.f32 %v16592_v43, %v13245_v51  ;;  %v933_v29 = vmul.f32 %v16592_v43, %v13248_v31 }
 0x4cb   :  { %6249 = vadd.xlane.f32.xlu1 %v6248_v4  ;;  %v5512_v49 = vmax.f32 %v5000_v34, 0.0  ;;  %v5513_v28 = vmax.f32 %v5001_v39, 0.0  ;;  %v3687_v30 = vadd.f32 %v3175_v6, %v2311_v11  ;;  %v1796_v3 = vmul.f32 %v16593_v17, %v13254_v32 }
 0x4cc   :  { %v5062_v26 = vadd.f32 %v4550_v53, %v3686_v46  ;;  %v1797_v56 = vmul.f32 %v16593_v17, %v13257_v5  ;;  %v3172_v38 = vmul.f32 %v16595_v45, %v13267_v47  ;;  %v3173_v1 = vmul.f32 %v16595_v45, %v13274_v7 }
 0x4cd   :  { %v6245_v4 = vadd.f32 %v5513_v28, %v5512_v49  ;;  %v5063_v16 = vadd.f32 %v4551_v55, %v3687_v30  ;;  %v2308_v40 = vadd.f32 %v1796_v3, %v932_v15  ;;  %v4548_v48 = vmul.f32 %v16596_v0, %v13283_v35  ;;  %v13856_v11 = vpop.xlane.xlu1 %6156  ;;  %v13858_v55 = vpop.xlane.xlu0 %6159 }
 0x4ce   :  { %v5574_v59 = vmax.f32 %v5062_v26, 0.0  ;;  %v2309_v21 = vadd.f32 %v1797_v56, %v933_v29  ;;  %v4549_v6 = vmul.f32 %v16596_v0, %v13286_v61  ;;  %v906_v17 = vmul.f32 %v16603_v37, %v13134_v52  ;;  %16617 = vst [vmem:[#allocation102_spill] sm:$0xff] %v13856_v11  ;;  %16618 = vst [vmem:[#allocation129_spill] sm:$0xff] %v13858_v55  ;;  %v16625_v11 = vld [vmem:[#allocation57_spill] sm:$0xff] }
 0x4cf   :  { %6246 = vadd.xlane.f32.xlu0 %v6245_v4  ;;  %v5575_v43 = vmax.f32 %v5063_v16, 0.0  ;;  %v3684_v53 = vadd.f32 %v3172_v38, %v2308_v40  ;;  %v907_v34 = vmul.f32 %v16603_v37, %v13144_v60  ;;  %v1770_v39 = vmul.f32 %v16604_v44, %v13137_v18 }
 0x4d0   :  { %v1771_v45 = vmul.f32 %v16604_v44, %v13140_v8  ;;  %v3685_v49 = vadd.f32 %v3173_v1, %v2309_v21  ;;  %v3146_v0 = vmul.f32 %v16605_v58, %v13154_v22  ;;  %v3147_v28 = vmul.f32 %v16605_v58, %v13161_v24 }
 0x4d1   :  { %v6338_v46 = vadd.f32 %v5575_v43, %v5574_v59  ;;  %v5060_v30 = vadd.f32 %v4548_v48, %v3684_v53  ;;  %v2282_v26 = vadd.f32 %v1770_v39, %v906_v17  ;;  %v4522_v29 = vmul.f32 %v16608_v36, %v13170_v41  ;;  %v13876_v17 = vpop.xlane.xlu1 %6162  ;;  %v13878_v53 = vpop.xlane.xlu0 %6165 }
 0x4d2   :  { %v2283_v15 = vadd.f32 %v1771_v45, %v907_v34  ;;  %v5061_v3 = vadd.f32 %v4549_v6, %v3685_v49  ;;  %v4523_v4 = vmul.f32 %v16608_v36, %v13173_v12  ;;  %v904_v40 = vmul.f32 %v16609_v27, %v13134_v52  ;;  %16619 = vst [vmem:[#allocation207_spill] sm:$0xff] %v13876_v17 }
 0x4d3   :  { %6339 = vadd.xlane.f32.xlu1 %v6338_v46  ;;  %v5572_v16 = vmax.f32 %v5060_v30, 0.0  ;;  %v3658_v56 = vadd.f32 %v3146_v0, %v2282_v26  ;;  %v905_v1 = vmul.f32 %v16609_v27, %v13144_v60  ;;  %v1768_v21 = vmul.f32 %v16610_v63, %v13137_v18 }
 0x4d4   :  { %v3659_v38 = vadd.f32 %v3147_v28, %v2283_v15  ;;  %v5573_v59 = vmax.f32 %v5061_v3, 0.0  ;;  %v1769_v6 = vmul.f32 %v16610_v63, %v13140_v8  ;;  %v3144_v39 = vmul.f32 %v16611_v57, %v13154_v22  ;;  %v16620_v15 = vld [vmem:[#allocation68_spill] sm:$0xff] }
 0x4d5   :  { %v5034_v48 = vadd.f32 %v4522_v29, %v3658_v56  ;;  %v3145_v45 = vmul.f32 %v16611_v57, %v13161_v24  ;;  %v4520_v46 = vmul.f32 %v16612_v25, %v13170_v41  ;;  %v2280_v28 = vadd.f32 %v1768_v21, %v904_v40 }
 0x4d6   :  { %v5035_v43 = vadd.f32 %v4523_v4, %v3659_v38  ;;  %v6335_v34 = vadd.f32 %v5573_v59, %v5572_v16  ;;  %v2281_v30 = vadd.f32 %v1769_v6, %v905_v1  ;;  %v4521_v26 = vmul.f32 %v16612_v25, %v13173_v12  ;;  %v16621_v4 = vld [vmem:[#allocation109_spill] sm:$0xff]  ;;  %v16623_v6 = vld [vmem:[#allocation135_spill] sm:$0xff] }
 0x4d7   :  { %v5546_v49 = vmax.f32 %v5034_v48, 0.0  ;;  %v878_v29 = vmul.f32 %v16620_v15, %v13056_v13  ;;  %v879_v3 = vmul.f32 %v16620_v15, %v13059_v20  ;;  %v1742_v16 = vmul.f32 %v16621_v4, %v13062_v50  ;;  %v16622_v48 = vld [vmem:[#allocation103_spill] sm:$0xff] }
 0x4d8   :  { %v5547_v0 = vmax.f32 %v5035_v43, 0.0  ;;  %6336 = vadd.xlane.f32.xlu0 %v6335_v34  ;;  %v3656_v38 = vadd.f32 %v3144_v39, %v2280_v28  ;;  %v3657_v59 = vadd.f32 %v3145_v45, %v2281_v30  ;;  %v1743_v40 = vmul.f32 %v16621_v4, %v13069_v19  ;;  %v13904_v45 = vpop.xlane.xlu1 %6168 }
 0x4d9   :  { %v2254_v1 = vadd.f32 %v1742_v16, %v878_v29  ;;  %v3118_v43 = vmul.f32 %v16622_v48, %v13073_v23  ;;  %v3119_v21 = vmul.f32 %v16622_v48, %v13084_v9  ;;  %v4494_v34 = vmul.f32 %v16623_v6, %v13093_v2  ;;  %16624 = vst [vmem:[#allocation68_spill] sm:$0xff] %v13904_v45 }
 0x4da   :  { %v6296_v56 = vadd.f32 %v5547_v0, %v5546_v49  ;;  %v5032_v55 = vadd.f32 %v4520_v46, %v3656_v38  ;;  %v5033_v17 = vadd.f32 %v4521_v26, %v3657_v59  ;;  %v2255_v42 = vadd.f32 %v1743_v40, %v879_v3  ;;  %v13906_v49 = vpop.xlane.xlu0 %6171 }
 0x4db   :  { %v4495_v39 = vmul.f32 %v16623_v6, %v13096_v54  ;;  %v3630_v0 = vadd.f32 %v3118_v43, %v2254_v1  ;;  %v876_v62 = vmul.f32 %v16625_v11, %v13056_v13  ;;  %v877_v38 = vmul.f32 %v16625_v11, %v13059_v20 }
 0x4dc   :  { %6297 = vadd.xlane.f32.xlu1 %v6296_v56  ;;  %v5544_v28 = vmax.f32 %v5032_v55, 0.0  ;;  %v5545_v30 = vmax.f32 %v5033_v17, 0.0  ;;  %v3631_v29 = vadd.f32 %v3119_v21, %v2255_v42  ;;  %v16626_v56 = vld [vmem:[#allocation64_spill] sm:$0xff]  ;;  %v16627_v55 = vld [vmem:[#allocation59_spill] sm:$0xff] }
 0x4dd   :  { %v5006_v16 = vadd.f32 %v4494_v34, %v3630_v0  ;;  %v1740_v46 = vmul.f32 %v16626_v56, %v13062_v50  ;;  %v1741_v59 = vmul.f32 %v16626_v56, %v13069_v19  ;;  %v3116_v42 = vmul.f32 %v16627_v55, %v13073_v23  ;;  %v16628_v34 = vld [vmem:[#allocation131_spill] sm:$0xff]  ;;  %v13922_v0 = vpop.xlane.xlu1 %6174 }
 0x4de   :  { %v6293_v26 = vadd.f32 %v5545_v30, %v5544_v28  ;;  %v5007_v3 = vadd.f32 %v4495_v39, %v3631_v29  ;;  %v3117_v21 = vmul.f32 %v16627_v55, %v13084_v9  ;;  %v4492_v39 = vmul.f32 %v16628_v34, %v13093_v2  ;;  %16629 = vst [vmem:[#allocation109_spill] sm:$0xff] %v13922_v0  ;;  %v13924_v28 = vpop.xlane.xlu0 %6177 }
 0x4df   :  { %v5518_v40 = vmax.f32 %v5006_v16, 0.0  ;;  %v2252_v1 = vadd.f32 %v1740_v46, %v876_v62  ;;  %v2253_v43 = vadd.f32 %v1741_v59, %v877_v38  ;;  %16630 = vst [vmem:[#allocation103_spill] sm:$0xff] %v13924_v28  ;;  %v4493_v62 = vmul.f32 %v16628_v34, %v13096_v54 }
 0x4e0   :  { %6294 = vadd.xlane.f32.xlu0 %v6293_v26  ;;  %v5519_v17 = vmax.f32 %v5007_v3, 0.0  ;;  %v938_v29 = vmul.f32 %v16603_v37, %v13245_v51  ;;  %v939_v16 = vmul.f32 %v16603_v37, %v13248_v31  ;;  %v1802_v3 = vmul.f32 %v16604_v44, %v13254_v32 }
 0x4e1   :  { %v3628_v30 = vadd.f32 %v3116_v42, %v2252_v1  ;;  %v3629_v26 = vadd.f32 %v3117_v21, %v2253_v43  ;;  %v1803_v38 = vmul.f32 %v16604_v44, %v13257_v5  ;;  %v3178_v1 = vmul.f32 %v16605_v58, %v13267_v47  ;;  %v13946_v45 = vpop.xlane.xlu1 %6180 }
 0x4e2   :  { %v6254_v46 = vadd.f32 %v5519_v17, %v5518_v40  ;;  %v3179_v42 = vmul.f32 %v16605_v58, %v13274_v7  ;;  %v4554_v0 = vmul.f32 %v16608_v36, %v13283_v35  ;;  %v2314_v40 = vadd.f32 %v1802_v3, %v938_v29  ;;  %v13948_v58 = vpop.xlane.xlu0 %6183 }
 0x4e3   :  { %v5004_v59 = vadd.f32 %v4492_v39, %v3628_v30  ;;  %v5005_v37 = vadd.f32 %v4493_v62, %v3629_v26  ;;  %v2315_v17 = vadd.f32 %v1803_v38, %v939_v16  ;;  %v4555_v43 = vmul.f32 %v16608_v36, %v13286_v61 }
 0x4e4   :  { %6255 = vadd.xlane.f32.xlu1 %v6254_v46  ;;  %v3690_v44 = vadd.f32 %v3178_v1, %v2314_v40  ;;  %v936_v30 = vmul.f32 %v16609_v27, %v13245_v51  ;;  %v937_v46 = vmul.f32 %v16609_v27, %v13248_v31  ;;  %v1800_v62 = vmul.f32 %v16610_v63, %v13254_v32 }
 0x4e5   :  { %v5516_v21 = vmax.f32 %v5004_v59, 0.0  ;;  %v5517_v28 = vmax.f32 %v5005_v37, 0.0  ;;  %v3691_v39 = vadd.f32 %v3179_v42, %v2315_v17  ;;  %v1801_v36 = vmul.f32 %v16610_v63, %v13257_v5 }
 0x4e6   :  { %v3176_v29 = vmul.f32 %v16611_v57, %v13267_v47  ;;  %v5066_v26 = vadd.f32 %v4554_v0, %v3690_v44  ;;  %v3177_v38 = vmul.f32 %v16611_v57, %v13274_v7  ;;  %v2312_v59 = vadd.f32 %v1800_v62, %v936_v30  ;;  %v13978_v30 = vpop.xlane.xlu1 %6186 }
 0x4e7   :  { %v6251_v16 = vadd.f32 %v5517_v28, %v5516_v21  ;;  %v5067_v3 = vadd.f32 %v4555_v43, %v3691_v39  ;;  %v2313_v1 = vadd.f32 %v1801_v36, %v937_v46  ;;  %v4552_v27 = vmul.f32 %v16612_v25, %v13283_v35  ;;  %v13980_v46 = vpop.xlane.xlu0 %6189 }
 0x4e8   :  { %v4553_v42 = vmul.f32 %v16612_v25, %v13286_v61  ;;  %v5578_v37 = vmax.f32 %v5066_v26, 0.0  ;;  %v910_v40 = vmul.f32 %v16620_v15, %v13134_v52  ;;  %v911_v0 = vmul.f32 %v16620_v15, %v13144_v60 }
 0x4e9   :  { %6252 = vadd.xlane.f32.xlu0 %v6251_v16  ;;  %v5579_v63 = vmax.f32 %v5067_v3, 0.0  ;;  %v3688_v28 = vadd.f32 %v3176_v29, %v2312_v59  ;;  %v3689_v17 = vadd.f32 %v3177_v38, %v2313_v1  ;;  %v1774_v57 = vmul.f32 %v16621_v4, %v13137_v18 }
 0x4ea   :  { %v1775_v43 = vmul.f32 %v16621_v4, %v13140_v8  ;;  %v3150_v25 = vmul.f32 %v16622_v48, %v13154_v22  ;;  %v3151_v44 = vmul.f32 %v16622_v48, %v13161_v24  ;;  %v4526_v39 = vmul.f32 %v16623_v6, %v13170_v41 }
 0x4eb   :  { %v6344_v21 = vadd.f32 %v5579_v63, %v5578_v37  ;;  %v5064_v62 = vadd.f32 %v4552_v27, %v3688_v28  ;;  %v5065_v36 = vadd.f32 %v4553_v42, %v3689_v17  ;;  %v2286_v29 = vadd.f32 %v1774_v57, %v910_v40 }
 0x4ec   :  { %v2287_v16 = vadd.f32 %v1775_v43, %v911_v0  ;;  %v4527_v26 = vmul.f32 %v16623_v6, %v13173_v12  ;;  %v908_v37 = vmul.f32 %v16625_v11, %v13134_v52  ;;  %v909_v63 = vmul.f32 %v16625_v11, %v13144_v60 }
 0x4ed   :  { %6345 = vadd.xlane.f32.xlu1 %v6344_v21  ;;  %v5576_v3 = vmax.f32 %v5064_v62, 0.0  ;;  %v5577_v38 = vmax.f32 %v5065_v36, 0.0  ;;  %v3662_v59 = vadd.f32 %v3150_v25, %v2286_v29  ;;  %v1772_v27 = vmul.f32 %v16626_v56, %v13137_v18  ;;  %v14000_v62 = vpop.xlane.xlu0 %6195 }
 0x4ee   :  { %v3663_v1 = vadd.f32 %v3151_v44, %v2287_v16  ;;  %v1773_v42 = vmul.f32 %v16626_v56, %v13140_v8  ;;  %v3148_v17 = vmul.f32 %v16627_v55, %v13154_v22  ;;  %v3149_v21 = vmul.f32 %v16627_v55, %v13161_v24  ;;  %v13998_v44 = vpop.xlane.xlu1 %6192  ;;  %v16632_v16 = vld [vmem:[#allocation67_spill] sm:$0xff] }
 0x4ef   :  { %v6341_v40 = vadd.f32 %v5577_v38, %v5576_v3  ;;  %v5038_v0 = vadd.f32 %v4526_v39, %v3662_v59  ;;  %v2284_v57 = vadd.f32 %v1772_v27, %v908_v37  ;;  %v4524_v25 = vmul.f32 %v16628_v34, %v13170_v41  ;;  %16631 = vst [vmem:[#allocation135_spill] sm:$0xff] %v13998_v44 }
 0x4f0   :  { %v5039_v28 = vadd.f32 %v4527_v26, %v3663_v1  ;;  %v2285_v43 = vadd.f32 %v1773_v42, %v909_v63  ;;  %v4525_v39 = vmul.f32 %v16628_v34, %v13173_v12  ;;  %v912_v26 = vmul.f32 %v16632_v16, %v13134_v52  ;;  %v16633_v1 = vld [vmem:[#allocation110_spill] sm:$0xff]  ;;  %v16634_v42 = vld [vmem:[#allocation29_spill] sm:$0xff] }
 0x4f1   :  { %6342 = vadd.xlane.f32.xlu0 %v6341_v40  ;;  %v5550_v36 = vmax.f32 %v5038_v0, 0.0  ;;  %v3660_v3 = vadd.f32 %v3148_v17, %v2284_v57  ;;  %v913_v59 = vmul.f32 %v16632_v16, %v13144_v60  ;;  %v1776_v37 = vmul.f32 %v16633_v1, %v13137_v18  ;;  %v16635_v57 = vld [vmem:[#allocation133_spill] sm:$0xff] }
 0x4f2   :  { %v5551_v29 = vmax.f32 %v5039_v28, 0.0  ;;  %v3661_v38 = vadd.f32 %v3149_v21, %v2285_v43  ;;  %v1777_v27 = vmul.f32 %v16633_v1, %v13140_v8  ;;  %v3152_v40 = vmul.f32 %v16634_v42, %v13154_v22  ;;  %v14022_v22 = vpop.xlane.xlu0 %6201 }
 0x4f3   :  { %v3153_v0 = vmul.f32 %v16634_v42, %v13161_v24  ;;  %v5036_v28 = vadd.f32 %v4524_v25, %v3660_v3  ;;  %v2288_v17 = vadd.f32 %v1776_v37, %v912_v26  ;;  %v4528_v43 = vmul.f32 %v16635_v57, %v13170_v41  ;;  %16637 = vst [vmem:[#allocation64_spill] sm:$0xff] %v14022_v22 }
 0x4f4   :  { %v6302_v63 = vadd.f32 %v5551_v29, %v5550_v36  ;;  %v5037_v52 = vadd.f32 %v4525_v39, %v3661_v38  ;;  %v2289_v60 = vadd.f32 %v1777_v27, %v913_v59  ;;  %v4529_v18 = vmul.f32 %v16635_v57, %v13173_v12  ;;  %v14020_v29 = vpop.xlane.xlu1 %6198 }
 0x4f5   :  { %v5548_v21 = vmax.f32 %v5036_v28, 0.0  ;;  %v3664_v8 = vadd.f32 %v3152_v40, %v2288_v17  ;;  %16636 = vst [vmem:[#allocation57_spill] sm:$0xff] %v14020_v29  ;;  %v880_v24 = vmul.f32 %v16632_v16, %v13056_v13  ;;  %v881_v25 = vmul.f32 %v16632_v16, %v13059_v20 }
 0x4f6   :  { %6303 = vadd.xlane.f32.xlu1 %v6302_v63  ;;  %v5549_v36 = vmax.f32 %v5037_v52, 0.0  ;;  %v3665_v44 = vadd.f32 %v3153_v0, %v2289_v60  ;;  %v1744_v26 = vmul.f32 %v16633_v1, %v13062_v50  ;;  %v1745_v12 = vmul.f32 %v16633_v1, %v13069_v19 }
 0x4f7   :  { %v5040_v39 = vadd.f32 %v4528_v43, %v3664_v8  ;;  %v3120_v38 = vmul.f32 %v16634_v42, %v13073_v23  ;;  %v3121_v59 = vmul.f32 %v16634_v42, %v13084_v9  ;;  %v4496_v13 = vmul.f32 %v16635_v57, %v13093_v2 }
 0x4f8   :  { %v6299_v41 = vadd.f32 %v5549_v36, %v5548_v21  ;;  %v5041_v3 = vadd.f32 %v4529_v18, %v3665_v44  ;;  %v2256_v37 = vadd.f32 %v1744_v26, %v880_v24  ;;  %v2257_v63 = vadd.f32 %v1745_v12, %v881_v25  ;;  %v14050_v28 = vpop.xlane.xlu1 %6204 }
 0x4f9   :  { %v5552_v20 = vmax.f32 %v5040_v39, 0.0  ;;  %v4497_v50 = vmul.f32 %v16635_v57, %v13096_v54  ;;  %v944_v19 = vmul.f32 %v16632_v16, %v13245_v51  ;;  %v945_v23 = vmul.f32 %v16632_v16, %v13248_v31  ;;  %16638 = vst [vmem:[#allocation59_spill] sm:$0xff] %v14050_v28  ;;  %v14052_v54 = vpop.xlane.xlu0 %6207 }
 0x4fa   :  { %6300 = vadd.xlane.f32.xlu0 %v6299_v41  ;;  %v5553_v27 = vmax.f32 %v5041_v3, 0.0  ;;  %v1808_v9 = vmul.f32 %v16633_v1, %v13254_v32  ;;  %v3632_v44 = vadd.f32 %v3120_v38, %v2256_v37  ;;  %v3633_v40 = vadd.f32 %v3121_v59, %v2257_v63  ;;  %16639 = vst [vmem:[#allocation131_spill] sm:$0xff] %v14052_v54 }
 0x4fb   :  { %v1809_v2 = vmul.f32 %v16633_v1, %v13257_v5  ;;  %v3184_v0 = vmul.f32 %v16634_v42, %v13267_v47  ;;  %v3185_v16 = vmul.f32 %v16634_v42, %v13274_v7  ;;  %v4560_v43 = vmul.f32 %v16635_v57, %v13283_v35 }
 0x4fc   :  { %v6305_v52 = vadd.f32 %v5553_v27, %v5552_v20  ;;  %v2320_v17 = vadd.f32 %v1808_v9, %v944_v19  ;;  %v5008_v60 = vadd.f32 %v4496_v13, %v3632_v44  ;;  %v5009_v18 = vadd.f32 %v4497_v50, %v3633_v40  ;;  %v14070_v59 = vpop.xlane.xlu1 %6210 }
 0x4fd   :  { %v2321_v21 = vadd.f32 %v1809_v2, %v945_v23  ;;  %v4561_v1 = vmul.f32 %v16635_v57, %v13286_v61  ;;  %v940_v39 = vmul.f32 %v16625_v11, %v13245_v51  ;;  %v941_v42 = vmul.f32 %v16625_v11, %v13248_v31  ;;  %16640 = vst [vmem:[#allocation67_spill] sm:$0xff] %v14070_v59  ;;  %v14072_v13 = vpop.xlane.xlu0 %6213 }
 0x4fe   :  { %6306 = vadd.xlane.f32.xlu1 %v6305_v52  ;;  %v3696_v36 = vadd.f32 %v3184_v0, %v2320_v17  ;;  %v5520_v8 = vmax.f32 %v5008_v60, 0.0  ;;  %v5521_v24 = vmax.f32 %v5009_v18, 0.0  ;;  %v1804_v26 = vmul.f32 %v16626_v56, %v13254_v32 }
 0x4ff   :  { %v3697_v25 = vadd.f32 %v3185_v16, %v2321_v21  ;;  %v1805_v57 = vmul.f32 %v16626_v56, %v13257_v5  ;;  %v3180_v38 = vmul.f32 %v16627_v55, %v13267_v47  ;;  %v3181_v11 = vmul.f32 %v16627_v55, %v13274_v7 }
 0x500   :  { %v5072_v41 = vadd.f32 %v4560_v43, %v3696_v36  ;;  %v6257_v12 = vadd.f32 %v5521_v24, %v5520_v8  ;;  %v2316_v37 = vadd.f32 %v1804_v26, %v940_v39  ;;  %v4556_v63 = vmul.f32 %v16628_v34, %v13283_v35  ;;  %v16642_v8 = vld [vmem:[#allocation6_spill] sm:$0xff] }
 0x501   :  { %v5073_v3 = vadd.f32 %v4561_v1, %v3697_v25  ;;  %v2317_v27 = vadd.f32 %v1805_v57, %v941_v42  ;;  %v4557_v56 = vmul.f32 %v16628_v34, %v13286_v61  ;;  %v16641_v19 = vlaneseq  ;;  %v14099_v18 = vpop.xlane.xlu0 %6219 }
 0x502   :  { %v5584_v20 = vmax.f32 %v5072_v41, 0.0  ;;  %6258 = vadd.xlane.f32.xlu0 %v6257_v12  ;;  %v3692_v9 = vadd.f32 %v3180_v38, %v2316_v37  ;;  %v942_v2 = vmul.f32 %v16620_v15, %v13245_v51  ;;  %v1806_v55 = vmul.f32 %v16621_v4, %v13254_v32  ;;  %v14097_v32 = vpop.xlane.xlu1 %6216 }
 0x503   :  { %v5585_v50 = vmax.f32 %v5073_v3, 0.0  ;;  %v14081_v23 = vand.u32 127, %v16641_v19  ;;  %v3693_v40 = vadd.f32 %v3181_v11, %v2317_v27  ;;  %v943_v52 = vmul.f32 %v16620_v15, %v13248_v31  ;;  %v16643_v3 = vld [vmem:[#allocation100_spill] sm:$0xff]  ;;  %v16645_v11 = vld [vmem:[#allocation93_spill] sm:$0xff] }
 0x504   :  { %v5068_v0 = vadd.f32 %v4556_v63, %v3692_v9  ;;  %v1807_v17 = vmul.f32 %v16621_v4, %v13257_v5  ;;  %v3182_v34 = vmul.f32 %v16622_v48, %v13267_v47  ;;  %v2318_v43 = vadd.f32 %v1806_v55, %v942_v2 }
 0x505   :  { %v6353_v44 = vadd.f32 %v5585_v50, %v5584_v20  ;;  %v5069_v16 = vadd.f32 %v4557_v56, %v3693_v40  ;;  %v3183_v60 = vmul.f32 %v16622_v48, %v13274_v7  ;;  %v4558_v51 = vmul.f32 %v16623_v6, %v13283_v35  ;;  %v6265_v42 = vpop.xlane.xlu0 %6264  ;;  %v16644_v20 = vld [vmem:[#allocation76_spill] sm:$0xff] }
 0x506   :  { %v6618_v31 = vadd.s32 4294967288, %v14081_v23  ;;  %v5580_v15 = vmax.f32 %v5068_v0, 0.0  ;;  %v2319_v5 = vadd.f32 %v1807_v17, %v943_v52  ;;  %v4559_v47 = vmul.f32 %v16623_v6, %v13286_v61  ;;  %v6262_v39 = vpop.xlane.xlu1 %6261  ;;  %v16646_v17 = vld [vmem:[#allocation114_spill] sm:$0xff] }
 0x507   :  { %6354 = vadd.xlane.f32.xlu1 %v6353_v44  ;;  %v6625_v4 = vadd.s32 4294967280, %v14081_v23  ;;  %v5581_v21 = vmax.f32 %v5069_v16, 0.0  ;;  %v3694_v1 = vadd.f32 %v3182_v34, %v2318_v43  ;;  %v14113_v61 = vsub.s32 %v14081_v23, %v16642_v8 }
 0x508   :  { %v3695_v36 = vadd.f32 %v3183_v60, %v2319_v5  ;;  %v14106_v35 = vsub.s32 %v6618_v31, %v16642_v8  ;;  %v6639_v6 = vadd.s32 4294967264, %v14081_v23  ;;  %v6632_v12 = vadd.s32 4294967272, %v14081_v23 }
 0x509   :  { %v6347_v7 = vadd.f32 %v5581_v21, %v5580_v15  ;;  %v5070_v48 = vadd.f32 %v4558_v51, %v3694_v1  ;;  %v14109_v25 = vsub.s32 %v6625_v4, %v16642_v8  ;;  %v6617_v63 = vrot.slane %v16645_v11, %v14113_v61  ;;  %v6268_v44 = vpop.xlane.xlu0 %6267  ;;  %v16647_v51 = vld [vmem:[#allocation113_spill] sm:$0xff] }
 0x50a   :  { %v5071_v24 = vadd.f32 %v4559_v47, %v3695_v36  ;;  %v6622_v57 = vrot.slane %v16643_v3, %v14106_v35  ;;  %v14124_v50 = vsub.s32 %v6639_v6, %v16642_v8  ;;  %v6653_v27 = vadd.s32 4294967248, %v14081_v23  ;;  %v14131_v9 = vpop.xlane.xlu1 %6222  ;;  %v16652_v3 = vld [vmem:[#allocation53_spill] sm:$0xff] }
 0x50b   :  { %6348 = vadd.xlane.f32.xlu0 %v6347_v7  ;;  %v5582_v41 = vmax.f32 %v5070_v48, 0.0  ;;  %v6629_v37 = vrot.slane %v16644_v20, %v14109_v25  ;;  %v14128_v56 = vsub.s32 %v6632_v12, %v16642_v8  ;;  %v6646_v19 = vadd.s32 4294967256, %v14081_v23  ;;  %v16649_v48 = vld [vmem:[#allocation73_spill] sm:$0xff] }
 0x50c   :  { %v5583_v26 = vmax.f32 %v5071_v24, 0.0  ;;  %v6624_v40 = vsel %vm6623_vm0, %v6622_v57, %v6617_v63  ;;  %v6660_v2 = vadd.s32 4294967240, %v14081_v23  ;;  %v7753_v0 = vrot.slane %v6262_v39, %v14113_v61  ;;  %v16650_v39 = vld [vmem:[#allocation112_spill] sm:$0xff]  ;;  %v16654_v63 = vld [vmem:[#allocation123_spill] sm:$0xff] }
 0x50d   :  { %v6631_v55 = vsel %vm6630_vm1, %v6629_v37, %v6624_v40  ;;  %v7757_v52 = vrot.slane %v6265_v42, %v14106_v35  ;;  %v6643_v34 = vrot.slane %v16646_v17, %v14124_v50  ;;  %v14141_v16 = vsub.s32 %v6653_v27, %v16642_v8  ;;  %v16655_v40 = vld [vmem:[#allocation118_spill] sm:$0xff] }
 0x50e   :  { %v6350_v38 = vadd.f32 %v5583_v26, %v5582_v41  ;;  %v6667_v43 = vadd.s32 4294967232, %v14081_v23  ;;  %v7762_v60 = vrot.slane %v6268_v44, %v14109_v25  ;;  %v6636_v31 = vrot.slane %v16647_v51, %v14128_v56  ;;  %v14159_v36 = vpop.xlane.xlu1 %6309  ;;  %v16651_v26 = vld [vmem:[#allocation69_spill] sm:$0xff]  ;;  %v16657_v51 = vld [vmem:[#allocation34_spill] sm:$0xff] }
 0x50f   :  { %v14148_v15 = vsub.s32 %v6646_v19, %v16642_v8  ;;  %v7758_v5 = vsel %vm6623_vm0, %v7757_v52, %v7753_v0  ;;  %v14155_v4 = vsub.s32 %v6660_v2, %v16642_v8  ;;  %v6674_v1 = vadd.s32 4294967224, %v14081_v23  ;;  %16648 = vst [vmem:[#allocation110_spill] sm:$0xff] %v14159_v36 }
 0x510   :  { %6351 = vadd.xlane.f32.xlu0 %v6350_v38  ;;  %v14152_v47 = vsel %vm6630_vm1, %v7762_v60, %v7758_v5  ;;  %v6638_v21 = vsel %vm6637_vm2, %v6636_v31, %v6631_v55  ;;  %v6657_v24 = vrot.slane %v16649_v48, %v14141_v16  ;;  %v14165_v41 = vsub.s32 %v6667_v43, %v16642_v8  ;;  %v16653_v38 = vld [vmem:[#allocation101_spill] sm:$0xff]  ;;  %v16656_v43 = vld [vmem:[#allocation107_spill] sm:$0xff] }
 0x511   :  { %v6645_v7 = vsel %vm6644_vm3, %v6643_v34, %v6638_v21  ;;  %v6650_v42 = vrot.slane %v16650_v39, %v14148_v15  ;;  %v6681_v6 = vadd.s32 4294967216, %v14081_v23  ;;  %v6726_v12 = vrot.slane %v16651_v26, %v14113_v61  ;;  %v16659_v48 = vld [vmem:[#allocation27_spill] sm:$0xff]  ;;  %v16661_v26 = vld [vmem:[#allocation46_spill] sm:$0xff] }
 0x512   :  { %v6735_v57 = vrot.slane %v16652_v3, %v14109_v25  ;;  %v6664_v20 = vrot.slane %v16653_v38, %v14155_v4  ;;  %v6688_v11 = vadd.s32 4294967208, %v14081_v23  ;;  %v6730_v27 = vrot.slane %v16654_v63, %v14106_v35  ;;  %v14191_v17 = vpop.xlane.xlu1 %6225  ;;  %v16660_v39 = vld [vmem:[#allocation115_spill] sm:$0xff]  ;;  %v16662_v3 = vld [vmem:[#allocation60_spill] sm:$0xff]  ;;  %v16664_v63 = vld [vmem:[#allocation82_spill] sm:$0xff] }
 0x513   :  { %v6652_v37 = vsel %vm6651_vm4, %v6650_v42, %v6645_v7  ;;  %v14181_v19 = vsub.s32 %v6674_v1, %v16642_v8  ;;  %v6671_v2 = vrot.slane %v16655_v40, %v14165_v41  ;;  %v14187_v55 = vsub.s32 %v6681_v6, %v16642_v8  ;;  %v16658_v1 = vld [vmem:[#allocation77_spill] sm:$0xff]  ;;  %v16665_v40 = vld [vmem:[#allocation74_spill] sm:$0xff] }
 0x514   :  { %v6659_v44 = vsel %vm6658_vm5, %v6657_v24, %v6652_v37  ;;  %v6695_v0 = vadd.s32 4294967200, %v14081_v23  ;;  %v6731_v52 = vsel %vm6623_vm0, %v6730_v27, %v6726_v12  ;;  %v6745_v60 = vrot.slane %v16656_v43, %v14124_v50  ;;  %v14217_v37 = vpop.xlane.xlu0 %6312 }
 0x515   :  { %v6736_v34 = vsel %vm6630_vm1, %v6735_v57, %v6731_v52  ;;  %v6805_v31 = vrot.slane %v16657_v51, %v14113_v61  ;;  %v14199_v5 = vsub.s32 %v6688_v11, %v16642_v8  ;;  %v6666_v21 = vsel %vm15648_vm6, %v6664_v20, %v6659_v44  ;;  %16663 = vst [vmem:[#allocation29_spill] sm:$0xff] %v14217_v37  ;;  %v16666_v52 = vld [vmem:[#allocation106_spill] sm:$0xff] }
 0x516   :  { %v6740_v7 = vrot.slane %v16658_v1, %v14128_v56  ;;  %v6814_v24 = vrot.slane %v16659_v48, %v14109_v25  ;;  %v6678_v42 = vrot.slane %v16660_v39, %v14181_v19  ;;  %v6673_v6 = vsel %vm15649_vm7, %v6671_v2, %v6666_v21  ;;  %v14230_v21 = vpop.xlane.xlu1 %6315 }
 0x517   :  { %v6809_v12 = vrot.slane %v16661_v26, %v14106_v35  ;;  %v6685_v57 = vrot.slane %v16662_v3, %v14187_v55  ;;  %v14214_v38 = vsub.s32 %v6695_v0, %v16642_v8  ;;  %v6755_v27 = vrot.slane %v16664_v63, %v14141_v16  ;;  %16668 = vst [vmem:[#allocation133_spill] sm:$0xff] %v14230_v21  ;;  %v16670_v26 = vld [vmem:[#allocation122_spill] sm:$0xff] }
 0x518   :  { %v6741_v20 = vsel %vm6637_vm2, %v6740_v7, %v6736_v34  ;;  %v6692_v2 = vrot.slane %v16665_v40, %v14199_v5  ;;  %v6750_v43 = vrot.slane %v16666_v52, %v14148_v15  ;;  %v16667_v34 = vld [vmem:[#allocation28_spill] sm:$0xff]  ;;  %v6680_v1 = vsel %vm15650_vm8, %v6678_v42, %v6673_v6  ;;  %v16672_v6 = vld [vmem:[#allocation54_spill] sm:$0xff] }
 0x519   :  { %v6746_v11 = vsel %vm6644_vm3, %v6745_v60, %v6741_v20  ;;  %v6810_v44 = vsel %vm6623_vm0, %v6809_v12, %v6805_v31  ;;  %v6824_v51 = vrot.slane %v16667_v34, %v14124_v50  ;;  %v6702_v60 = vadd.s32 4294967192, %v14081_v23  ;;  %v16669_v31 = vld [vmem:[#allocation33_spill] sm:$0xff]  ;;  %v16671_v20 = vld [vmem:[#allocation127_spill] sm:$0xff]  ;;  %v14250_v34 = vpop.xlane.xlu0 %6270 }
 0x51a   :  { %v6815_v0 = vsel %vm6630_vm1, %v6814_v24, %v6810_v44  ;;  %v6716_v7 = vadd.s32 4294967176, %v14081_v23  ;;  %v6819_v48 = vrot.slane %v16669_v31, %v14128_v56  ;;  %v6687_v39 = vsel %vm6686_vm9, %v6685_v57, %v6680_v1  ;;  %v16673_v57 = vld [vmem:[#allocation38_spill] sm:$0xff] }
 0x51b   :  { %v6699_v24 = vrot.slane %v16670_v26, %v14214_v38  ;;  %v6751_v12 = vsel %vm6651_vm4, %v6750_v43, %v6746_v11  ;;  %v6765_v63 = vrot.slane %v16671_v20, %v14165_v41  ;;  %v6760_v44 = vrot.slane %v16672_v6, %v14155_v4  ;;  %v14264_v26 = vpop.xlane.xlu1 %6273 }
 0x51c   :  { %v6756_v3 = vsel %vm6658_vm5, %v6755_v27, %v6751_v12  ;;  %v6820_v42 = vsel %vm6637_vm2, %v6819_v48, %v6815_v0  ;;  %v6834_v52 = vrot.slane %v16673_v57, %v14141_v16  ;;  %v14253_v11 = vsub.s32 %v6702_v60, %v16642_v8  ;;  %v16674_v0 = vld [vmem:[#allocation30_spill] sm:$0xff]  ;;  %v16675_v12 = vld [vmem:[#allocation83_spill] sm:$0xff] }
 0x51d   :  { %v6825_v40 = vsel %vm6644_vm3, %v6824_v51, %v6820_v42  ;;  %v14256_v27 = vsub.s32 %v6716_v7, %v16642_v8  ;;  %v6694_v43 = vsel %vm6693_vm10, %v6692_v2, %v6687_v39  ;;  %v6829_v1 = vrot.slane %v16674_v0, %v14148_v15  ;;  %v16676_v2 = vld [vmem:[#allocation87_spill] sm:$0xff]  ;;  %v16681_v0 = vld [vmem:[#allocation86_spill] sm:$0xff] }
 0x51e   :  { %v6701_v31 = vsel %vm6700_vm11, %v6699_v24, %v6694_v43  ;;  %v6709_v51 = vadd.s32 4294967184, %v14081_v23  ;;  %v6761_v48 = vsel %vm15648_vm6, %v6760_v44, %v6756_v3  ;;  %v6775_v7 = vrot.slane %v16675_v12, %v14187_v55  ;;  %v16677_v24 = vld [vmem:[#allocation49_spill] sm:$0xff]  ;;  %v16678_v3 = vld [vmem:[#allocation52_spill] sm:$0xff]  ;;  %v16679_v44 = vld [vmem:[#allocation119_spill] sm:$0xff] }
 0x51f   :  { %v6766_v60 = vsel %vm15649_vm7, %v6765_v63, %v6761_v48  ;;  %v6830_v20 = vsel %vm6651_vm4, %v6829_v1, %v6825_v40  ;;  %v6770_v39 = vrot.slane %v16676_v2, %v14181_v19  ;;  %v6844_v23 = vrot.slane %v16677_v24, %v14165_v41  ;;  %v16680_v63 = vld [vmem:[#allocation65_spill] sm:$0xff]  ;;  %v16682_v1 = vld [vmem:[#allocation71_spill] sm:$0xff]  ;;  %v14291_v24 = vpop.xlane.xlu0 %6228  ;;  %v14304_v21 = vpop.xlane.xlu1 %6231 }
 0x520   :  { %v6835_v42 = vsel %vm6658_vm5, %v6834_v52, %v6830_v20  ;;  %v6884_v6 = vrot.slane %v16678_v3, %v14113_v61  ;;  %v6706_v57 = vrot.slane %v16679_v44, %v14253_v11  ;;  %v6720_v43 = vrot.slane %v16680_v63, %v14256_v27  ;;  %v16683_v20 = vld [vmem:[#allocation55_spill] sm:$0xff]  ;;  %v16684_v63 = vld [vmem:[#allocation84_spill] sm:$0xff] }
 0x521   :  { %v6839_v40 = vrot.slane %v16681_v0, %v14155_v4  ;;  %v6893_v48 = vrot.slane %v16682_v1, %v14109_v25  ;;  %v14286_v52 = vsub.s32 %v6709_v51, %v16642_v8  ;;  %v6771_v12 = vsel %vm15650_vm8, %v6770_v39, %v6766_v60  ;;  %v16685_v8 = vld [vmem:[#allocation66_spill] sm:$0xff]  ;;  %v16686_v39 = vld [vmem:[#allocation91_spill] sm:$0xff] }
 0x522   :  { %v6888_v2 = vrot.slane %v16683_v20, %v14106_v35  ;;  %v6708_v3 = vsel %vm6707_vm12, %v6706_v57, %v6701_v31  ;;  %v6776_v44 = vsel %vm6686_vm9, %v6775_v7, %v6771_v12  ;;  %v6785_v0 = vrot.slane %v16684_v63, %v14214_v38  ;;  %v16687_v31 = vld [vmem:[#allocation37_spill] sm:$0xff]  ;;  %v16689_v12 = vld [vmem:[#allocation7_spill] sm:$0xff] }
 0x523   :  { %v6840_v1 = vsel %vm15648_vm6, %v6839_v40, %v6835_v42  ;;  %v6780_v51 = vrot.slane %v16685_v8, %v14199_v5  ;;  %v6854_v20 = vrot.slane %v16686_v39, %v14187_v55  ;;  %v6849_v7 = vrot.slane %v16687_v31, %v14181_v19  ;;  %v16688_v42 = vld [vmem:[#allocation62_spill] sm:$0xff]  ;;  %v16692_v39 = vld [vmem:[#allocation31_spill] sm:$0xff]  ;;  %v16693_v31 = vld [vmem:[#allocation88_spill] sm:$0xff]  ;;  %v14332_v29 = vpop.xlane.xlu0 %6318 }
 0x524   :  { %v6845_v60 = vsel %vm15649_vm7, %v6844_v23, %v6840_v1  ;;  %v6889_v59 = vsel %vm6623_vm0, %v6888_v2, %v6884_v6  ;;  %v6903_v40 = vrot.slane %v16688_v42, %v14124_v50  ;;  %v6963_v63 = vrot.slane %v16689_v12, %v14113_v61  ;;  %v16690_v23 = vld [vmem:[#allocation126_spill] sm:$0xff]  ;;  %v16691_v6 = vld [vmem:[#allocation51_spill] sm:$0xff]  ;;  %v16694_v12 = vld [vmem:[#allocation81_spill] sm:$0xff]  ;;  %16697 = vst [vmem:[#allocation6_spill] sm:$0xff] %v14332_v29  ;;  %v14346_v29 = vpop.xlane.xlu1 %6321 }
 0x525   :  { %v6894_v57 = vsel %vm6630_vm1, %v6893_v48, %v6889_v59  ;;  %v6713_v1 = vrot.slane %v16690_v23, %v14286_v52  ;;  %v6781_v8 = vsel %vm6693_vm10, %v6780_v51, %v6776_v44  ;;  %v6898_v2 = vrot.slane %v16691_v6, %v14128_v56  ;;  %v16695_v23 = vld [vmem:[#allocation43_spill] sm:$0xff]  ;;  %v16696_v51 = vld [vmem:[#allocation40_spill] sm:$0xff]  ;;  %16702 = vst [vmem:[#allocation100_spill] sm:$0xff] %v14346_v29 }
 0x526   :  { %v6972_v54 = vrot.slane %v16692_v39, %v14109_v25  ;;  %v6790_v59 = vrot.slane %v16693_v31, %v14253_v11  ;;  %v6786_v48 = vsel %vm6700_vm11, %v6785_v0, %v6781_v8  ;;  %v6850_v42 = vsel %vm15650_vm8, %v6849_v7, %v6845_v60  ;;  %v16698_v31 = vld [vmem:[#allocation128_spill] sm:$0xff]  ;;  %v16699_v7 = vld [vmem:[#allocation90_spill] sm:$0xff] }
 0x527   :  { %v6967_v28 = vrot.slane %v16694_v12, %v14106_v35  ;;  %v6795_v36 = vrot.slane %v16695_v23, %v14286_v52  ;;  %v6855_v44 = vsel %vm6686_vm9, %v6854_v20, %v6850_v42  ;;  %v6864_v6 = vrot.slane %v16696_v51, %v14214_v38  ;;  %v16700_v20 = vld [vmem:[#allocation70_spill] sm:$0xff] }
 0x528   :  { %v6899_v39 = vsel %vm6637_vm2, %v6898_v2, %v6894_v57  ;;  %v6859_v0 = vrot.slane %v16698_v31, %v14199_v5  ;;  %v6913_v8 = vrot.slane %v16699_v7, %v14141_v16  ;;  %v6715_v23 = vsel %vm6714_vm13, %v6713_v1, %v6708_v3  ;;  %v16701_v57 = vld [vmem:[#allocation137_spill] sm:$0xff]  ;;  %v16705_v1 = vld [vmem:[#allocation50_spill] sm:$0xff] }
 0x529   :  { %v6904_v60 = vsel %vm6644_vm3, %v6903_v40, %v6899_v39  ;;  %v6968_v12 = vsel %vm6623_vm0, %v6967_v28, %v6963_v63  ;;  %v6908_v42 = vrot.slane %v16700_v20, %v14148_v15  ;;  %v6982_v2 = vrot.slane %v16701_v57, %v14124_v50  ;;  %v16703_v31 = vld [vmem:[#allocation45_spill] sm:$0xff]  ;;  %v16704_v28 = vld [vmem:[#allocation11_spill] sm:$0xff]  ;;  %v16706_v57 = vld [vmem:[#allocation56_spill] sm:$0xff] }
 0x52a   :  { %v6973_v51 = vsel %vm6630_vm1, %v6972_v54, %v6968_v12  ;;  %v6800_v40 = vrot.slane %v16703_v31, %v14256_v27  ;;  %v6791_v39 = vsel %vm6707_vm12, %v6790_v59, %v6786_v48  ;;  %v6860_v7 = vsel %vm6693_vm10, %v6859_v0, %v6855_v44  ;;  %v16707_v59 = vld [vmem:[#allocation80_spill] sm:$0xff]  ;;  %v16708_v0 = vld [vmem:[#allocation61_spill] sm:$0xff] }
 0x52b   :  { %v6977_v3 = vrot.slane %v16704_v28, %v14128_v56  ;;  %v6796_v63 = vsel %vm6714_vm13, %v6795_v36, %v6791_v39  ;;  %v6869_v54 = vrot.slane %v16705_v1, %v14253_v11  ;;  %v6865_v12 = vsel %vm6700_vm11, %v6864_v6, %v6860_v7  ;;  %v16709_v28 = vld [vmem:[#allocation138_spill] sm:$0xff]  ;;  %v14372_v7 = vpop.xlane.xlu0 %6276 }
 0x52c   :  { %v6909_v20 = vsel %vm6651_vm4, %v6908_v42, %v6904_v60  ;;  %v6874_v29 = vrot.slane %v16706_v57, %v14286_v52  ;;  %v6923_v48 = vrot.slane %v16707_v59, %v14165_v41  ;;  %v6918_v36 = vrot.slane %v16708_v0, %v14155_v4  ;;  %v16710_v60 = vld [vmem:[#allocation146_spill] sm:$0xff] }
 0x52d   :  { %v6914_v31 = vsel %vm6658_vm5, %v6913_v8, %v6909_v20  ;;  %v6978_v44 = vsel %vm6637_vm2, %v6977_v3, %v6973_v51  ;;  %v6992_v6 = vrot.slane %v16709_v28, %v14141_v16  ;;  %v7042_v42 = vrot.slane %v16710_v60, %v14113_v61  ;;  %v16711_v1 = vld [vmem:[#allocation78_spill] sm:$0xff]  ;;  %v16712_v51 = vld [vmem:[#allocation148_spill] sm:$0xff]  ;;  %v14384_v28 = vpop.xlane.xlu1 %6279 }
 0x52e   :  { %v6983_v39 = vsel %vm6644_vm3, %v6982_v2, %v6978_v44  ;;  %v6722_v8 = vsel %vm6721_vm14, %v6720_v43, %v6715_v23  ;;  %v6987_v20 = vrot.slane %v16711_v1, %v14148_v15  ;;  %v7051_v3 = vrot.slane %v16712_v51, %v14109_v25  ;;  %v16713_v44 = vld [vmem:[#allocation147_spill] sm:$0xff]  ;;  %v16714_v60 = vld [vmem:[#allocation24_spill] sm:$0xff] }
 0x52f   :  { %v6801_v57 = vsel %vm6721_vm14, %v6800_v40, %v6796_v63  ;;  %v6870_v2 = vsel %vm6707_vm12, %v6869_v54, %v6865_v12  ;;  %v6919_v59 = vsel %vm15648_vm6, %v6918_v36, %v6914_v31  ;;  %v7046_v0 = vrot.slane %v16713_v44, %v14106_v35  ;;  %v16715_v40 = vld [vmem:[#allocation89_spill] sm:$0xff]  ;;  %v16716_v12 = vld [vmem:[#allocation140_spill] sm:$0xff]  ;;  %v16717_v44 = vld [vmem:[#allocation39_spill] sm:$0xff] }
 0x530   :  { %v6875_v43 = vsel %vm6714_vm13, %v6874_v29, %v6870_v2  ;;  %v6924_v23 = vsel %vm15649_vm7, %v6923_v48, %v6919_v59  ;;  %v6933_v1 = vrot.slane %v16714_v60, %v14187_v55  ;;  %v6988_v51 = vsel %vm6651_vm4, %v6987_v20, %v6983_v39  ;;  %v16718_v48 = vld [vmem:[#allocation136_spill] sm:$0xff]  ;;  %v16719_v39 = vld [vmem:[#allocation150_spill] sm:$0xff] }
 0x531   :  { %v6928_v63 = vrot.slane %v16715_v40, %v14181_v19  ;;  %v6993_v54 = vsel %vm6658_vm5, %v6992_v6, %v6988_v51  ;;  %v7002_v31 = vrot.slane %v16716_v12, %v14165_v41  ;;  %v7047_v36 = vsel %vm6623_vm0, %v7046_v0, %v7042_v42  ;;  %v16721_v51 = vld [vmem:[#allocation149_spill] sm:$0xff]  ;;  %v14410_v42 = vpop.xlane.xlu0 %6234 }
 0x532   :  { %v6879_v29 = vrot.slane %v16717_v44, %v14256_v27  ;;  %v6997_v2 = vrot.slane %v16718_v48, %v14155_v4  ;;  %v7052_v59 = vsel %vm6630_vm1, %v7051_v3, %v7047_v36  ;;  %v7061_v20 = vrot.slane %v16719_v39, %v14124_v50  ;;  %v16723_v3 = vld [vmem:[#allocation16_spill] sm:$0xff] }
 0x533   :  { %v14405_v60 = vsel %vm7908_vm15, %v6801_v57, %v6722_v8  ;;  %v6929_v6 = vsel %vm15650_vm8, %v6928_v63, %v6924_v23  ;;  %v7056_v40 = vrot.slane %v16721_v51, %v14128_v56  ;;  %v6943_v36 = vrot.slane %v16723_v3, %v14214_v38  ;;  %v16724_v8 = vld [vmem:[#allocation79_spill] sm:$0xff]  ;;  %v16725_v63 = vld [vmem:[#allocation142_spill] sm:$0xff]  ;;  %v14425_v51 = vpop.xlane.xlu1 %6237 }
 0x534   :  { %16720 = vst [vmem:[#allocation76_spill] sm:$0xff] %v14405_v60  ;;  %v14413_v0 = vsel %vm6721_vm14, %v6879_v29, %v6875_v43  ;;  %v6934_v12 = vsel %vm6686_vm9, %v6933_v1, %v6929_v6  ;;  %v6998_v44 = vsel %vm15648_vm6, %v6997_v2, %v6993_v54  ;;  %v6938_v57 = vrot.slane %v16724_v8, %v14199_v5  ;;  %v16727_v43 = vld [vmem:[#allocation139_spill] sm:$0xff]  ;;  %v16729_v2 = vld [vmem:[#allocation160_spill] sm:$0xff] }
 0x535   :  { %16722 = vst [vmem:[#allocation93_spill] sm:$0xff] %v14413_v0  ;;  %v7003_v23 = vsel %vm15649_vm7, %v7002_v31, %v6998_v44  ;;  %v7012_v48 = vrot.slane %v16725_v63, %v14187_v55  ;;  %v7057_v39 = vsel %vm6637_vm2, %v7056_v40, %v7052_v59  ;;  %16726 = vst [vmem:[#allocation114_spill] sm:$0xff] %v14425_v51  ;;  %v16728_v6 = vld [vmem:[#allocation151_spill] sm:$0xff]  ;;  %v16731_v59 = vld [vmem:[#allocation44_spill] sm:$0xff]  ;;  %v14453_v22 = vpop.xlane.xlu0 %6324 }
 0x536   :  { %v7007_v1 = vrot.slane %v16727_v43, %v14181_v19  ;;  %v7062_v29 = vsel %vm6644_vm3, %v7061_v20, %v7057_v39  ;;  %v7071_v54 = vrot.slane %v16728_v6, %v14141_v16  ;;  %v7121_v3 = vrot.slane %v16729_v2, %v14113_v61  ;;  %v16730_v31 = vld [vmem:[#allocation23_spill] sm:$0xff]  ;;  %v16732_v63 = vld [vmem:[#allocation162_spill] sm:$0xff]  ;;  %v16733_v20 = vld [vmem:[#allocation12_spill] sm:$0xff]  ;;  %16737 = vst [vmem:[#allocation113_spill] sm:$0xff] %v14453_v22 }
 0x537   :  { %v6948_v44 = vrot.slane %v16730_v31, %v14253_v11  ;;  %v6939_v8 = vsel %vm6693_vm10, %v6938_v57, %v6934_v12  ;;  %v7066_v40 = vrot.slane %v16731_v59, %v14148_v15  ;;  %v7130_v0 = vrot.slane %v16732_v63, %v14109_v25  ;;  %v16734_v2 = vld [vmem:[#allocation161_spill] sm:$0xff]  ;;  %v16736_v57 = vld [vmem:[#allocation143_spill] sm:$0xff]  ;;  %v14467_v31 = vpop.xlane.xlu1 %6327 }
 0x538   :  { %v6944_v43 = vsel %vm6700_vm11, %v6943_v36, %v6939_v8  ;;  %v6953_v39 = vrot.slane %v16733_v20, %v14286_v52  ;;  %v7008_v6 = vsel %vm15650_vm8, %v7007_v1, %v7003_v23  ;;  %v7125_v60 = vrot.slane %v16734_v2, %v14106_v35  ;;  %v16738_v36 = vld [vmem:[#allocation141_spill] sm:$0xff]  ;;  %v16739_v1 = vld [vmem:[#allocation152_spill] sm:$0xff]  ;;  %16742 = vst [vmem:[#allocation73_spill] sm:$0xff] %v14467_v31  ;;  %v16773_v31 = vld [vmem:[#allocation190_spill] sm:$0xff] }
 0x539   :  { %v7013_v12 = vsel %vm6686_vm9, %v7012_v48, %v7008_v6  ;;  %v7022_v59 = vrot.slane %v16736_v57, %v14214_v38  ;;  %v7067_v63 = vsel %vm6651_vm4, %v7066_v40, %v7062_v29  ;;  %v7017_v8 = vrot.slane %v16738_v36, %v14199_v5  ;;  %v16740_v48 = vld [vmem:[#allocation108_spill] sm:$0xff] }
 0x53a   :  { %v7072_v23 = vsel %vm6658_vm5, %v7071_v54, %v7067_v63  ;;  %v7081_v20 = vrot.slane %v16739_v1, %v14165_v41  ;;  %v7126_v2 = vsel %vm6623_vm0, %v7125_v60, %v7121_v3  ;;  %v6949_v37 = vsel %vm6707_vm12, %v6948_v44, %v6944_v43  ;;  %v16741_v29 = vld [vmem:[#allocation164_spill] sm:$0xff]  ;;  %v16744_v54 = vld [vmem:[#allocation9_spill] sm:$0xff]  ;;  %v16745_v3 = vld [vmem:[#allocation163_spill] sm:$0xff] }
 0x53b   :  { %v7076_v6 = vrot.slane %v16740_v48, %v14155_v4  ;;  %v7131_v57 = vsel %vm6630_vm1, %v7130_v0, %v7126_v2  ;;  %v7140_v40 = vrot.slane %v16741_v29, %v14124_v50  ;;  %v14470_v36 = vsel %vm6714_vm13, %v6953_v39, %v6949_v37  ;;  %v16747_v2 = vld [vmem:[#allocation153_spill] sm:$0xff]  ;;  %v16748_v39 = vld [vmem:[#allocation154_spill] sm:$0xff]  ;;  %v14514_v43 = vpop.xlane.xlu1 %6285 }
 0x53c   :  { %16743 = vst [vmem:[#allocation112_spill] sm:$0xff] %v14470_v36  ;;  %v7027_v63 = vrot.slane %v16744_v54, %v14253_v11  ;;  %v7018_v60 = vsel %vm6693_vm10, %v7017_v8, %v7013_v12  ;;  %v7135_v44 = vrot.slane %v16745_v3, %v14128_v56  ;;  %v7086_v48 = vrot.slane %v16747_v2, %v14181_v19  ;;  %v16749_v8 = vld [vmem:[#allocation189_spill] sm:$0xff]  ;;  %v16750_v1 = vld [vmem:[#allocation166_spill] sm:$0xff] }
 0x53d   :  { %v7023_v0 = vsel %vm6700_vm11, %v7022_v59, %v7018_v60  ;;  %v7077_v29 = vsel %vm15648_vm6, %v7076_v6, %v7072_v23  ;;  %v7091_v54 = vrot.slane %v16748_v39, %v14187_v55  ;;  %v7279_v3 = vrot.slane %v16749_v8, %v14113_v61  ;;  %v16751_v60 = vld [vmem:[#allocation13_spill] sm:$0xff]  ;;  %16758 = vst [vmem:[#allocation53_spill] sm:$0xff] %v14514_v43  ;;  %v16762_v8 = vld [vmem:[#allocation14_spill] sm:$0xff] }
 0x53e   :  { %v7082_v37 = vsel %vm15649_vm7, %v7081_v20, %v7077_v29  ;;  %v7136_v12 = vsel %vm6637_vm2, %v7135_v44, %v7131_v57  ;;  %v7150_v59 = vrot.slane %v16750_v1, %v14141_v16  ;;  %v7288_v2 = vrot.slane %v16751_v60, %v14109_v25  ;;  %v14496_v20 = vpop.xlane.xlu0 %6282  ;;  %v16753_v57 = vld [vmem:[#allocation165_spill] sm:$0xff]  ;;  %v16754_v29 = vld [vmem:[#allocation10_spill] sm:$0xff] }
 0x53f   :  { %v7141_v36 = vsel %vm6644_vm3, %v7140_v40, %v7136_v12  ;;  %v7358_v23 = vrot.slane %v13290_v33, %v14113_v61  ;;  %v14499_v6 = vsel %vm6707_vm12, %v7027_v63, %v7023_v0  ;;  %v7145_v44 = vrot.slane %v16753_v57, %v14148_v15  ;;  %v16757_v63 = vld [vmem:[#allocation200_spill] sm:$0xff]  ;;  %v14557_v51 = vpop.xlane.xlu1 %6243 }
 0x540   :  { %16752 = vst [vmem:[#allocation69_spill] sm:$0xff] %v14499_v6  ;;  %v7283_v40 = vrot.slane %v16754_v29, %v14106_v35  ;;  %v7367_v1 = vrot.slane %v13324_v14, %v14109_v25  ;;  %v7087_v60 = vsel %vm15650_vm8, %v7086_v48, %v7082_v37  ;;  %v7362_v0 = vrot.slane %v16757_v63, %v14106_v35  ;;  %v16761_v48 = vld [vmem:[#allocation18_spill] sm:$0xff]  ;;  %v16763_v6 = vld [vmem:[#allocation111_spill] sm:$0xff] }
 0x541   :  { %v14517_v57 = vsel %vm6686_vm9, %v7091_v54, %v7087_v60  ;;  %v7146_v14 = vsel %vm6651_vm4, %v7145_v44, %v7141_v36  ;;  %v7298_v37 = vrot.slane %v16761_v48, %v14124_v50  ;;  %v7293_v54 = vrot.slane %v16762_v8, %v14128_v56  ;;  %v16764_v36 = vld [vmem:[#allocation19_spill] sm:$0xff]  ;;  %16774 = vst [vmem:[#allocation118_spill] sm:$0xff] %v14557_v51 }
 0x542   :  { %16759 = vst [vmem:[#allocation101_spill] sm:$0xff] %v14517_v57  ;;  %v7284_v12 = vsel %vm6623_vm0, %v7283_v40, %v7279_v3  ;;  %v7151_v39 = vsel %vm6658_vm5, %v7150_v59, %v7146_v14  ;;  %v7363_v63 = vsel %vm6623_vm0, %v7362_v0, %v7358_v23  ;;  %v7377_v29 = vrot.slane %v16763_v6, %v14124_v50  ;;  %v16765_v59 = vld [vmem:[#allocation8_spill] sm:$0xff]  ;;  %v14543_v14 = vpop.xlane.xlu0 %6240  ;;  %v16771_v48 = vld [vmem:[#allocation167_spill] sm:$0xff]  ;;  %v16775_v6 = vld [vmem:[#allocation85_spill] sm:$0xff] }
 0x543   :  { %v7289_v33 = vsel %vm6630_vm1, %v7288_v2, %v7284_v12  ;;  %v7368_v60 = vsel %vm6630_vm1, %v7367_v1, %v7363_v63  ;;  %v7437_v3 = vrot.slane %v16764_v36, %v14113_v61  ;;  %v7155_v44 = vrot.slane %v16765_v59, %v14155_v4  ;;  %v16766_v2 = vld [vmem:[#allocation168_spill] sm:$0xff]  ;;  %v16767_v12 = vld [vmem:[#allocation21_spill] sm:$0xff]  ;;  %16769 = vst [vmem:[#allocation123_spill] sm:$0xff] %v14543_v14  ;;  %v16772_v59 = vld [vmem:[#allocation95_spill] sm:$0xff] }
 0x544   :  { %v7165_v40 = vrot.slane %v16766_v2, %v14181_v19  ;;  %v7372_v23 = vrot.slane %v16767_v12, %v14128_v56  ;;  %v16768_v0 = vld [vmem:[#allocation116_spill] sm:$0xff]  ;;  %v7160_v63 = vrot.slane %v16771_v48, %v14165_v41  ;;  %v7294_v36 = vsel %vm6637_vm2, %v7293_v54, %v7289_v33  ;;  %v16776_v33 = vld [vmem:[#allocation202_spill] sm:$0xff] }
 0x545   :  { %v7446_v8 = vrot.slane %v16768_v0, %v14109_v25  ;;  %v7441_v57 = vrot.slane %v16772_v59, %v14106_v35  ;;  %v7156_v2 = vsel %vm15648_vm6, %v7155_v44, %v7151_v39  ;;  %v7299_v12 = vsel %vm6644_vm3, %v7298_v37, %v7294_v36  ;;  %v16777_v39 = vld [vmem:[#allocation175_spill] sm:$0xff]  ;;  %v16778_v44 = vld [vmem:[#allocation201_spill] sm:$0xff] }
 0x546   :  { %v7308_v0 = vrot.slane %v16773_v31, %v14141_v16  ;;  %v7373_v22 = vsel %vm6637_vm2, %v7372_v23, %v7368_v60  ;;  %v7303_v1 = vrot.slane %v16775_v6, %v14148_v15  ;;  %v7387_v54 = vrot.slane %v16776_v33, %v14141_v16  ;;  %v16779_v23 = vld [vmem:[#allocation205_spill] sm:$0xff] }
 0x547   :  { %v7378_v48 = vsel %vm6644_vm3, %v7377_v29, %v7373_v22  ;;  %v7442_v59 = vsel %vm6623_vm0, %v7441_v57, %v7437_v3  ;;  %v7200_v37 = vrot.slane %v16777_v39, %v14113_v61  ;;  %v7382_v31 = vrot.slane %v16778_v44, %v14148_v15  ;;  %v16780_v22 = vld [vmem:[#allocation177_spill] sm:$0xff]  ;;  %v16781_v57 = vld [vmem:[#allocation32_spill] sm:$0xff]  ;;  %v14584_v14 = vpop.xlane.xlu0 %6330 }
 0x548   :  { %v7447_v60 = vsel %vm6630_vm1, %v7446_v8, %v7442_v59  ;;  %v7456_v36 = vrot.slane %v16779_v23, %v14124_v50  ;;  %v7161_v6 = vsel %vm15649_vm7, %v7160_v63, %v7156_v2  ;;  %v7209_v29 = vrot.slane %v16780_v22, %v14109_v25  ;;  %v16782_v39 = vld [vmem:[#allocation176_spill] sm:$0xff]  ;;  %16784 = vst [vmem:[#allocation107_spill] sm:$0xff] %v14584_v14  ;;  %v16785_v63 = vld [vmem:[#allocation191_spill] sm:$0xff]  ;;  %v14598_v14 = vpop.xlane.xlu1 %6333 }
 0x549   :  { %v7304_v33 = vsel %vm6651_vm4, %v7303_v1, %v7299_v12  ;;  %v7451_v3 = vrot.slane %v16781_v57, %v14128_v56  ;;  %v7204_v51 = vrot.slane %v16782_v39, %v14106_v35  ;;  %v16783_v8 = vld [vmem:[#allocation192_spill] sm:$0xff]  ;;  %v7383_v23 = vsel %vm6651_vm4, %v7382_v31, %v7378_v48  ;;  %v16788_v48 = vld [vmem:[#allocation98_spill] sm:$0xff]  ;;  %16789 = vst [vmem:[#allocation34_spill] sm:$0xff] %v14598_v14  ;;  %v16794_v14 = vld [vmem:[#allocation193_spill] sm:$0xff] }
 0x54a   :  { %v7309_v44 = vsel %vm6658_vm5, %v7308_v0, %v7304_v33  ;;  %v7318_v59 = vrot.slane %v16783_v8, %v14165_v41  ;;  %v7313_v2 = vrot.slane %v16785_v63, %v14155_v4  ;;  %v7388_v1 = vsel %vm6658_vm5, %v7387_v54, %v7383_v23  ;;  %v16786_v12 = vld [vmem:[#allocation204_spill] sm:$0xff]  ;;  %v16787_v0 = vld [vmem:[#allocation203_spill] sm:$0xff] }
 0x54b   :  { %v7397_v22 = vrot.slane %v16786_v12, %v14165_v41  ;;  %v7452_v57 = vsel %vm6637_vm2, %v7451_v3, %v7447_v60  ;;  %v7205_v39 = vsel %vm6623_vm0, %v7204_v51, %v7200_v37  ;;  %v7392_v33 = vrot.slane %v16787_v0, %v14155_v4  ;;  %v16790_v63 = vld [vmem:[#allocation20_spill] sm:$0xff]  ;;  %v16791_v60 = vld [vmem:[#allocation42_spill] sm:$0xff] }
 0x54c   :  { %v7457_v8 = vsel %vm6644_vm3, %v7456_v36, %v7452_v57  ;;  %v7466_v31 = vrot.slane %v16788_v48, %v14141_v16  ;;  %v7214_v54 = vrot.slane %v16790_v63, %v14128_v56  ;;  %v7210_v23 = vsel %vm6630_vm1, %v7209_v29, %v7205_v39  ;;  %v16792_v37 = vld [vmem:[#allocation94_spill] sm:$0xff] }
 0x54d   :  { %v7314_v12 = vsel %vm15648_vm6, %v7313_v2, %v7309_v44  ;;  %v7461_v51 = vrot.slane %v16791_v60, %v14148_v15  ;;  %v7219_v3 = vrot.slane %v16792_v37, %v14124_v50  ;;  %v16793_v57 = vld [vmem:[#allocation194_spill] sm:$0xff]  ;;  %v7393_v48 = vsel %vm15648_vm6, %v7392_v33, %v7388_v1  ;;  %v16795_v44 = vld [vmem:[#allocation92_spill] sm:$0xff]  ;;  %v16796_v37 = vld [vmem:[#allocation17_spill] sm:$0xff] }
 0x54e   :  { %v7319_v36 = vsel %vm15649_vm7, %v7318_v59, %v7314_v12  ;;  %v7328_v0 = vrot.slane %v16793_v57, %v14187_v55  ;;  %v7323_v63 = vrot.slane %v16794_v14, %v14181_v19  ;;  %v7398_v29 = vsel %vm15649_vm7, %v7397_v22, %v7393_v48  ;;  %v16797_v57 = vld [vmem:[#allocation130_spill] sm:$0xff] }
 0x54f   :  { %v7407_v2 = vrot.slane %v16795_v44, %v14187_v55  ;;  %v7462_v39 = vsel %vm6651_vm4, %v7461_v51, %v7457_v8  ;;  %v7166_v60 = vsel %vm15650_vm8, %v7165_v40, %v7161_v6  ;;  %v7402_v59 = vrot.slane %v16796_v37, %v14181_v19  ;;  %v16799_v14 = vld [vmem:[#allocation178_spill] sm:$0xff]  ;;  %v16800_v8 = vld [vmem:[#allocation117_spill] sm:$0xff]  ;;  %v16801_v51 = vld [vmem:[#allocation179_spill] sm:$0xff] }
 0x550   :  { %v7467_v12 = vsel %vm6658_vm5, %v7466_v31, %v7462_v39  ;;  %v7476_v1 = vrot.slane %v16797_v57, %v14165_v41  ;;  %v14624_v33 = vpop.xlane.xlu0 %6288  ;;  %v7224_v22 = vrot.slane %v16799_v14, %v14148_v15  ;;  %v7215_v48 = vsel %vm6637_vm2, %v7214_v54, %v7210_v23  ;;  %v14637_v57 = vpop.xlane.xlu1 %6291  ;;  %v16803_v14 = vld [vmem:[#allocation196_spill] sm:$0xff] }
 0x551   :  { %16798 = vst [vmem:[#allocation77_spill] sm:$0xff] %v14624_v33  ;;  %v7324_v44 = vsel %vm15650_vm8, %v7323_v63, %v7319_v36  ;;  %v7471_v40 = vrot.slane %v16800_v8, %v14155_v4  ;;  %v7220_v6 = vsel %vm6644_vm3, %v7219_v3, %v7215_v48  ;;  %v7229_v31 = vrot.slane %v16801_v51, %v14141_v16  ;;  %v16804_v23 = vld [vmem:[#allocation36_spill] sm:$0xff]  ;;  %v16805_v3 = vld [vmem:[#allocation195_spill] sm:$0xff]  ;;  %v16806_v8 = vld [vmem:[#allocation25_spill] sm:$0xff] }
 0x552   :  { %v7329_v39 = vsel %vm6686_vm9, %v7328_v0, %v7324_v44  ;;  %v7403_v37 = vsel %vm15650_vm8, %v7402_v59, %v7398_v29  ;;  %16802 = vst [vmem:[#allocation27_spill] sm:$0xff] %v14637_v57  ;;  %v7338_v43 = vrot.slane %v16803_v14, %v14214_v38  ;;  %v7417_v36 = vrot.slane %v16804_v23, %v14214_v38  ;;  %v16807_v59 = vld [vmem:[#allocation97_spill] sm:$0xff] }
 0x553   :  { %v7408_v54 = vsel %vm6686_vm9, %v7407_v2, %v7403_v37  ;;  %v7472_v63 = vsel %vm15648_vm6, %v7471_v40, %v7467_v12  ;;  %v7333_v48 = vrot.slane %v16805_v3, %v14199_v5  ;;  %v7412_v0 = vrot.slane %v16806_v8, %v14199_v5  ;;  %v16808_v51 = vld [vmem:[#allocation169_spill] sm:$0xff]  ;;  %v16809_v2 = vld [vmem:[#allocation180_spill] sm:$0xff]  ;;  %v16810_v12 = vld [vmem:[#allocation35_spill] sm:$0xff] }
 0x554   :  { %v7477_v29 = vsel %vm15649_vm7, %v7476_v1, %v7472_v63  ;;  %v7486_v44 = vrot.slane %v16807_v59, %v14187_v55  ;;  %v7170_v14 = vrot.slane %v16808_v51, %v14187_v55  ;;  %v7234_v37 = vrot.slane %v16809_v2, %v14155_v4  ;;  %v16811_v8 = vld [vmem:[#allocation197_spill] sm:$0xff]  ;;  %v16812_v2 = vld [vmem:[#allocation198_spill] sm:$0xff] }
 0x555   :  { %v7225_v23 = vsel %vm6651_vm4, %v7224_v22, %v7220_v6  ;;  %v7481_v40 = vrot.slane %v16810_v12, %v14181_v19  ;;  %v7343_v57 = vrot.slane %v16811_v8, %v14253_v11  ;;  %v7334_v1 = vsel %vm6693_vm10, %v7333_v48, %v7329_v39  ;;  %v16814_v39 = vld [vmem:[#allocation72_spill] sm:$0xff] }
 0x556   :  { %v7230_v3 = vsel %vm6658_vm5, %v7229_v31, %v7225_v23  ;;  %v7413_v63 = vsel %vm6693_vm10, %v7412_v0, %v7408_v54  ;;  %v7339_v51 = vsel %vm6700_vm11, %v7338_v43, %v7334_v1  ;;  %v7348_v33 = vrot.slane %v16812_v2, %v14286_v52  ;;  %v16813_v31 = vld [vmem:[#allocation26_spill] sm:$0xff]  ;;  %v14678_v0 = vpop.xlane.xlu1 %6249  ;;  %v16818_v1 = vld [vmem:[#allocation132_spill] sm:$0xff] }
 0x557   :  { %v7418_v22 = vsel %vm6700_vm11, %v7417_v36, %v7413_v63  ;;  %v7482_v6 = vsel %vm15650_vm8, %v7481_v40, %v7477_v29  ;;  %v7427_v23 = vrot.slane %v16813_v31, %v14286_v52  ;;  %v7496_v48 = vrot.slane %v16814_v39, %v14214_v38  ;;  %v16816_v36 = vld [vmem:[#allocation96_spill] sm:$0xff]  ;;  %v16819_v63 = vld [vmem:[#allocation171_spill] sm:$0xff]  ;;  %v16820_v31 = vld [vmem:[#allocation121_spill] sm:$0xff] }
 0x558   :  { %v14664_v59 = vpop.xlane.xlu0 %6246  ;;  %v7487_v12 = vsel %vm6686_vm9, %v7486_v44, %v7482_v6  ;;  %v7516_v54 = vrot.slane %v13686_v10, %v14113_v61  ;;  %v14681_v43 = vsel %vm6686_vm9, %v7170_v14, %v7166_v60  ;;  %v7422_v8 = vrot.slane %v16816_v36, %v14253_v11  ;;  %v16817_v29 = vld [vmem:[#allocation120_spill] sm:$0xff]  ;;  %v16821_v14 = vld [vmem:[#allocation181_spill] sm:$0xff] }
 0x559   :  { %16815 = vst [vmem:[#allocation115_spill] sm:$0xff] %v14681_v43  ;;  %v7491_v40 = vrot.slane %v16817_v29, %v14199_v5  ;;  %v7525_v44 = vrot.slane %v16818_v1, %v14109_v25  ;;  %v7235_v6 = vsel %vm15648_vm6, %v7234_v37, %v7230_v3  ;;  %v7344_v10 = vsel %vm6707_vm12, %v7343_v57, %v7339_v51  ;;  %v16822_v37 = vld [vmem:[#allocation206_spill] sm:$0xff] }
 0x55a   :  { %v7520_v60 = vrot.slane %v16820_v31, %v14106_v35  ;;  %v7239_v39 = vrot.slane %v16821_v14, %v14165_v41  ;;  %v7349_v36 = vsel %vm6714_vm13, %v7348_v33, %v7344_v10  ;;  %v7423_v29 = vsel %vm6707_vm12, %v7422_v8, %v7418_v22  ;;  %v16823_v31 = vld [vmem:[#allocation48_spill] sm:$0xff]  ;;  %v16824_v22 = vld [vmem:[#allocation99_spill] sm:$0xff] }
 0x55b   :  { %v7492_v43 = vsel %vm6693_vm10, %v7491_v40, %v7487_v12  ;;  %v7428_v1 = vsel %vm6714_vm13, %v7427_v23, %v7423_v29  ;;  %v7506_v3 = vrot.slane %v16822_v37, %v14286_v52  ;;  %v7501_v14 = vrot.slane %v16823_v31, %v14253_v11  ;;  %v16825_v12 = vld [vmem:[#allocation199_spill] sm:$0xff]  ;;  %v16829_v31 = vld [vmem:[#allocation68_spill] sm:$0xff] }
 0x55c   :  { %v7497_v2 = vsel %vm6700_vm11, %v7496_v48, %v7492_v43  ;;  %v7521_v57 = vsel %vm6623_vm0, %v7520_v60, %v7516_v54  ;;  %v7535_v8 = vrot.slane %v16824_v22, %v14124_v50  ;;  %v7595_v23 = vrot.slane %v13878_v53, %v14113_v61  ;;  %v16826_v43 = vld [vmem:[#allocation22_spill] sm:$0xff]  ;;  %v16827_v54 = vld [vmem:[#allocation41_spill] sm:$0xff]  ;;  %v14722_v29 = vpop.xlane.xlu1 %6339  ;;  %v16828_v37 = vld [vmem:[#allocation183_spill] sm:$0xff] }
 0x55d   :  { %v7526_v33 = vsel %vm6630_vm1, %v7525_v44, %v7521_v57  ;;  %v7353_v48 = vrot.slane %v16825_v12, %v14256_v27  ;;  %v7432_v40 = vrot.slane %v16826_v43, %v14256_v27  ;;  %v7530_v10 = vrot.slane %v16827_v54, %v14128_v56 }
 0x55e   :  { %v7604_v60 = vrot.slane %v13906_v49, %v14109_v25  ;;  %v14725_v44 = vsel %vm15649_vm7, %v7239_v39, %v7235_v6  ;;  %v7502_v57 = vsel %vm6707_vm12, %v7501_v14, %v7497_v2  ;;  %v7599_v22 = vrot.slane %v16829_v31, %v14106_v35  ;;  %v16830_v6 = vld [vmem:[#allocation104_spill] sm:$0xff]  ;;  %v16831_v2 = vld [vmem:[#allocation75_spill] sm:$0xff] }
 0x55f   :  { %v14733_v12 = vsel %vm6721_vm14, %v7353_v48, %v7349_v36  ;;  %v14736_v43 = vsel %vm6721_vm14, %v7432_v40, %v7428_v1  ;;  %v7507_v49 = vsel %vm6714_vm13, %v7506_v3, %v7502_v57  ;;  %v7531_v54 = vsel %vm6637_vm2, %v7530_v10, %v7526_v33  ;;  %v16832_v36 = vld [vmem:[#allocation124_spill] sm:$0xff]  ;;  %v16833_v40 = vld [vmem:[#allocation103_spill] sm:$0xff]  ;;  %v16834_v57 = vld [vmem:[#allocation109_spill] sm:$0xff] }
 0x560   :  { %v7511_v39 = vrot.slane %v16830_v6, %v14256_v27  ;;  %v7536_v53 = vsel %vm6644_vm3, %v7535_v8, %v7531_v54  ;;  %v7545_v14 = vrot.slane %v16831_v2, %v14141_v16  ;;  %v7600_v31 = vsel %vm6623_vm0, %v7599_v22, %v7595_v23  ;;  %v16835_v22 = vld [vmem:[#allocation58_spill] sm:$0xff]  ;;  %v16836_v2 = vld [vmem:[#allocation125_spill] sm:$0xff] }
 0x561   :  { %v14705_v51 = vpop.xlane.xlu0 %6336  ;;  %v7540_v48 = vrot.slane %v16832_v36, %v14148_v15  ;;  %v7605_v1 = vsel %vm6630_vm1, %v7604_v60, %v7600_v31  ;;  %v7614_v3 = vrot.slane %v16833_v40, %v14124_v50  ;;  %v7674_v33 = vrot.slane %v14072_v13, %v14113_v61 }
 0x562   :  { %v14756_v8 = vsel %vm6721_vm14, %v7511_v39, %v7507_v49  ;;  %v7609_v54 = vrot.slane %v16834_v57, %v14128_v56  ;;  %v7683_v23 = vrot.slane %v14099_v18, %v14109_v25  ;;  %v7767_v60 = vrot.slane %v14250_v34, %v14128_v56  ;;  %v16837_v18 = vld [vmem:[#allocation47_spill] sm:$0xff] }
 0x563   :  { %v7550_v6 = vrot.slane %v16835_v22, %v14155_v4  ;;  %v7560_v13 = vrot.slane %v16836_v2, %v14181_v19  ;;  %v7541_v31 = vsel %vm6651_vm4, %v7540_v48, %v7536_v53  ;;  %v7678_v49 = vrot.slane %v14097_v32, %v14106_v35  ;;  %v16838_v34 = vld [vmem:[#allocation63_spill] sm:$0xff] }
 0x564   :  { %v7546_v36 = vsel %vm6658_vm5, %v7545_v14, %v7541_v31  ;;  %v7570_v40 = vrot.slane %v16837_v18, %v14199_v5  ;;  %v7555_v57 = vrot.slane %v16838_v34, %v14165_v41  ;;  %v7610_v22 = vsel %vm6637_vm2, %v7609_v54, %v7605_v1 }
 0x565   :  { %v14771_v39 = vpop.xlane.xlu1 %6297  ;;  %v7619_v2 = vrot.slane %v13946_v45, %v14148_v15  ;;  %v7615_v53 = vsel %vm6644_vm3, %v7614_v3, %v7610_v22  ;;  %v7624_v32 = vrot.slane %v13948_v58, %v14141_v16  ;;  %v7679_v48 = vsel %vm6623_vm0, %v7678_v49, %v7674_v33 }
 0x566   :  { %v7684_v14 = vsel %vm6630_vm1, %v7683_v23, %v7679_v48  ;;  %v7693_v31 = vrot.slane %v14191_v17, %v14124_v50  ;;  %v7768_v18 = vsel %vm6637_vm2, %v7767_v60, %v14152_v47  ;;  %v7777_v1 = vrot.slane %v14372_v7, %v14148_v15  ;;  %v16839_v47 = vld [vmem:[#allocation102_spill] sm:$0xff] }
 0x567   :  { %v7551_v45 = vsel %vm15648_vm6, %v7550_v6, %v7546_v36  ;;  %v7688_v3 = vrot.slane %v14131_v9, %v14128_v56  ;;  %v7772_v58 = vrot.slane %v14264_v26, %v14124_v50  ;;  %v7698_v33 = vrot.slane %v14291_v24, %v14148_v15  ;;  %v16840_v7 = vld [vmem:[#allocation134_spill] sm:$0xff] }
 0x568   :  { %v7556_v17 = vsel %vm15649_vm7, %v7555_v57, %v7551_v45  ;;  %v7580_v23 = vrot.slane %v16839_v47, %v14253_v11  ;;  %v7565_v60 = vrot.slane %v16840_v7, %v14187_v55  ;;  %v7620_v6 = vsel %vm6651_vm4, %v7619_v2, %v7615_v53 }
 0x569   :  { %v14753_v10 = vpop.xlane.xlu0 %6294  ;;  %v7625_v9 = vsel %vm6658_vm5, %v7624_v32, %v7620_v6  ;;  %v7634_v26 = vrot.slane %v13980_v46, %v14165_v41  ;;  %v7689_v49 = vsel %vm6637_vm2, %v7688_v3, %v7684_v14  ;;  %v7773_v24 = vsel %vm6644_vm3, %v7772_v58, %v7768_v18  ;;  %v16843_v58 = vld [vmem:[#allocation135_spill] sm:$0xff] }
 0x56a   :  { %v7629_v34 = vrot.slane %v13978_v30, %v14155_v4  ;;  %v7694_v57 = vsel %vm6644_vm3, %v7693_v31, %v7689_v49  ;;  %v7778_v22 = vsel %vm6651_vm4, %v7777_v1, %v7773_v24  ;;  %v7787_v2 = vrot.slane %v14496_v20, %v14155_v4  ;;  %v16841_v30 = vld [vmem:[#allocation105_spill] sm:$0xff]  ;;  %v16846_v49 = vld [vmem:[#allocation123_spill] sm:$0xff] }
 0x56b   :  { %v7561_v53 = vsel %vm15650_vm8, %v7560_v13, %v7556_v17  ;;  %v7699_v46 = vsel %vm6651_vm4, %v7698_v33, %v7694_v57  ;;  %v7782_v32 = vrot.slane %v14384_v28, %v14141_v16  ;;  %v7708_v48 = vrot.slane %v14410_v42, %v14155_v4  ;;  %v16842_v13 = vld [vmem:[#allocation207_spill] sm:$0xff] }
 0x56c   :  { %v7566_v14 = vsel %vm6686_vm9, %v7565_v60, %v7561_v53  ;;  %v7575_v31 = vrot.slane %v16841_v30, %v14214_v38  ;;  %v7630_v18 = vsel %vm15648_vm6, %v7629_v34, %v7625_v9  ;;  %v7703_v20 = vrot.slane %v14304_v21, %v14141_v16  ;;  %v16844_v21 = vld [vmem:[#allocation77_spill] sm:$0xff] }
 0x56d   :  { %v14812_v36 = vpop.xlane.xlu1 %6255  ;;  %v7590_v1 = vrot.slane %v16842_v13, %v14256_v27  ;;  %v7635_v45 = vsel %vm15649_vm7, %v7634_v26, %v7630_v18  ;;  %v7644_v28 = vrot.slane %v14000_v62, %v14187_v55  ;;  %v7783_v42 = vsel %vm6658_vm5, %v7782_v32, %v7778_v22  ;;  %v16845_v62 = vld [vmem:[#allocation53_spill] sm:$0xff] }
 0x56e   :  { %v7639_v33 = vrot.slane %v16843_v58, %v14181_v19  ;;  %v7704_v17 = vsel %vm6658_vm5, %v7703_v20, %v7699_v46  ;;  %v7788_v7 = vsel %vm15648_vm6, %v7787_v2, %v7783_v42  ;;  %v7797_v60 = vrot.slane %v16844_v21, %v14181_v19  ;;  %v16847_v22 = vld [vmem:[#allocation129_spill] sm:$0xff]  ;;  %v16848_v46 = vld [vmem:[#allocation114_spill] sm:$0xff] }
 0x56f   :  { %v7571_v6 = vsel %vm6693_vm10, %v7570_v40, %v7566_v14  ;;  %v7709_v9 = vsel %vm15648_vm6, %v7708_v48, %v7704_v17  ;;  %v7792_v26 = vrot.slane %v16845_v62, %v14165_v41  ;;  %v7718_v24 = vrot.slane %v16846_v49, %v14181_v19  ;;  %v16849_v48 = vld [vmem:[#allocation64_spill] sm:$0xff]  ;;  %v16850_v30 = vld [vmem:[#allocation29_spill] sm:$0xff] }
 0x570   :  { %v7576_v57 = vsel %vm6700_vm11, %v7575_v31, %v7571_v6  ;;  %v7585_v2 = vrot.slane %v16847_v22, %v14286_v52  ;;  %v7640_v53 = vsel %vm15650_vm8, %v7639_v33, %v7635_v45  ;;  %v7713_v40 = vrot.slane %v16848_v46, %v14165_v41  ;;  %v16851_v31 = vld [vmem:[#allocation57_spill] sm:$0xff]  ;;  %v16856_v22 = vld [vmem:[#allocation118_spill] sm:$0xff] }
 0x571   :  { %v7645_v32 = vsel %vm6686_vm9, %v7644_v28, %v7640_v53  ;;  %v7654_v14 = vrot.slane %v16849_v48, %v14214_v38  ;;  %v7836_v18 = vrot.slane %v16850_v30, %v14106_v35  ;;  %v7793_v20 = vsel %vm15649_vm7, %v7792_v26, %v7788_v7  ;;  %v16852_v28 = vld [vmem:[#allocation110_spill] sm:$0xff]  ;;  %v16853_v35 = vld [vmem:[#allocation27_spill] sm:$0xff] }
 0x572   :  { %v14799_v54 = vpop.xlane.xlu0 %6252  ;;  %v7649_v42 = vrot.slane %v16851_v31, %v14199_v5  ;;  %v7714_v58 = vsel %vm15649_vm7, %v7713_v40, %v7709_v9  ;;  %v7798_v45 = vsel %vm15650_vm8, %v7797_v60, %v7793_v20  ;;  %v7807_v33 = vrot.slane %v14753_v10, %v14199_v5  ;;  %v16854_v9 = vld [vmem:[#allocation59_spill] sm:$0xff]  ;;  %v16857_v46 = vld [vmem:[#allocation6_spill] sm:$0xff] }
 0x573   :  { %vm7910_vm6 = vcmask 1042434   ;;  %v7832_v17 = vrot.slane %v16852_v28, %v14113_v61  ;;  %v7719_v21 = vsel %vm15650_vm8, %v7718_v24, %v7714_v58  ;;  %v7802_v6 = vrot.slane %v16853_v35, %v14187_v55  ;;  %v16855_v10 = vld [vmem:[#allocation131_spill] sm:$0xff] }
 0x574   :  { %v7728_v7 = vrot.slane %v14664_v59, %v14199_v5  ;;  %v7659_v26 = vrot.slane %v16854_v9, %v14253_v11  ;;  %v7650_v60 = vsel %vm6693_vm10, %v7649_v42, %v7645_v32  ;;  %v7664_v49 = vrot.slane %v16855_v10, %v14286_v52  ;;  %v16858_v32 = vld [vmem:[#allocation133_spill] sm:$0xff] }
 0x575   :  { %v7723_v61 = vrot.slane %v16856_v22, %v14187_v55  ;;  %vm7912_vm7 = vcmask 1043459   ;;  %v7655_v24 = vsel %vm6700_vm11, %v7654_v14, %v7650_v60  ;;  %v7837_v53 = vsel %vm6623_vm0, %v7836_v18, %v7832_v17 }
 0x576   :  { %v14852_v34 = vpop.xlane.xlu1 %6345  ;;  %v7846_v59 = vrot.slane %v16857_v46, %v14128_v56  ;;  %v7803_v40 = vsel %vm6686_vm9, %v7802_v6, %v7798_v45  ;;  %vm7914_vm8 = vcmask 1044484   ;;  %v7841_v30 = vrot.slane %v16858_v32, %v14109_v25 }
 0x577   :  { %v7724_v20 = vsel %vm6686_vm9, %v7723_v61, %v7719_v21  ;;  %v7808_v31 = vsel %vm6693_vm10, %v7807_v33, %v7803_v40  ;;  %v7581_v14 = vsel %vm6707_vm12, %v7580_v23, %v7576_v57  ;;  %v7812_v18 = vrot.slane %v14771_v39, %v14214_v38  ;;  %v16859_v57 = vld [vmem:[#allocation113_spill] sm:$0xff] }
 0x578   :  { %v7729_v56 = vsel %vm6693_vm10, %v7728_v7, %v7724_v20  ;;  %v7738_v58 = vrot.slane %v14799_v54, %v14253_v11  ;;  %v7586_v25 = vsel %vm6714_vm13, %v7585_v2, %v7581_v14  ;;  %v7660_v45 = vsel %vm6707_vm12, %v7659_v26, %v7655_v24  ;;  %v16860_v54 = vld [vmem:[#allocation67_spill] sm:$0xff]  ;;  %v16861_v2 = vld [vmem:[#allocation100_spill] sm:$0xff] }
 0x579   :  { %v7842_v33 = vsel %vm6630_vm1, %v7841_v30, %v7837_v53  ;;  %v7733_v28 = vrot.slane %v14678_v0, %v14214_v38  ;;  %v7665_v47 = vsel %vm6714_vm13, %v7664_v49, %v7660_v45  ;;  %v7856_v17 = vrot.slane %v16859_v57, %v14148_v15  ;;  %v16874_v57 = vld [vmem:[#allocation101_spill] sm:$0xff] }
 0x57a   :  { %v14838_v3 = vpop.xlane.xlu0 %6342  ;;  %v7847_v23 = vsel %vm6637_vm2, %v7846_v59, %v7842_v33  ;;  %v7813_v39 = vsel %vm6700_vm11, %v7812_v18, %v7808_v31  ;;  %v7669_v21 = vrot.slane %v16860_v54, %v14256_v27  ;;  %v7851_v35 = vrot.slane %v16861_v2, %v14124_v50  ;;  %v16868_v18 = vld [vmem:[#allocation144_spill] sm:$0xff]  ;;  %v16878_v2 = vld [vmem:[#allocation170_spill] sm:$0xff] }
 0x57b   :  { %v7734_v6 = vsel %vm6700_vm11, %v7733_v28, %v7729_v56  ;;  %v7922_v0 = vsel %vm7908_vm15, %v14736_v43, %v14733_v12  ;;  %v7591_v15 = vsel %vm6721_vm14, %v7590_v1, %v7586_v25  ;;  %v7743_v12 = vrot.slane %v14812_v36, %v14286_v52  ;;  %v16862_v1 = vld [vmem:[#allocation107_spill] sm:$0xff]  ;;  %v16864_v36 = vld [vmem:[#allocation182_spill] sm:$0xff]  ;;  %v16867_v56 = vld [vmem:[#allocation69_spill] sm:$0xff] }
 0x57c   :  { %v7923_v50 = vsel %vm7910_vm6, %v14756_v8, %v7922_v0  ;;  %v7670_v60 = vsel %vm6721_vm14, %v7669_v21, %v7665_v47  ;;  %v7852_v10 = vsel %vm6644_vm3, %v7851_v35, %v7847_v23  ;;  %v7866_v49 = vrot.slane %v16862_v1, %v14155_v4  ;;  %v16863_v8 = vld [vmem:[#allocation73_spill] sm:$0xff]  ;;  %v16872_v47 = vld [vmem:[#allocation34_spill] sm:$0xff]  ;;  %v16877_v21 = vld [vmem:[#allocation115_spill] sm:$0xff] }
 0x57d   :  { %v7857_v13 = vsel %vm6651_vm4, %v7856_v17, %v7852_v10  ;;  %v7924_v24 = vsel %vm7912_vm7, %v7591_v15, %v7923_v50  ;;  %v7861_v53 = vrot.slane %v16863_v8, %v14141_v16  ;;  %v7244_v40 = vrot.slane %v16864_v36, %v14181_v19  ;;  %v16875_v17 = vld [vmem:[#allocation155_spill] sm:$0xff]  ;;  %v16881_v0 = vld [vmem:[#allocation156_spill] sm:$0xff]  ;;  %v16886_v10 = vld [vmem:[#allocation173_spill] sm:$0xff] }
 0x57e   :  { %vm7916_vm0 = vcmask 1045509   ;;  %v7925_v4 = vsel %vm7914_vm8, %v7670_v60, %v7924_v24  ;;  %vm7918_vm1 = vcmask 1046534   ;;  %vm16865_vm2 = vcmask 654912  }
 0x57f   :  { %v6304_v48 = vpop.xlane.xlu1 %6303  ;;  %v7862_v32 = vsel %vm6658_vm5, %v7861_v53, %v7857_v13  ;;  %v7245_v16 = vsel %vm16865_vm2, %v7244_v40, %v14725_v44  ;;  %vm16866_vm3 = vcmask 523712   ;;  %v16870_v45 = vrot.slane %v16828_v37, %v14187_v55  ;;  %v16871_v44 = vld [vmem:[#allocation185_spill] sm:$0xff]  ;;  %vm16887_vm5 = vmmov %vm16865_vm2 }
 0x580   :  { %v7822_v9 = vrot.slane %v6304_v48, %v14286_v52  ;;  %v7867_v31 = vsel %vm16866_vm3, %v7866_v49, %v7862_v32  ;;  %v7259_v28 = vrot.slane %v16871_v44, %v14214_v38  ;;  %v7871_v23 = vrot.slane %v16872_v47, %v14165_v41  ;;  %v16888_v49 = vld [vmem:[#allocation172_spill] sm:$0xff]  ;;  %v16895_v32 = vld [vmem:[#allocation186_spill] sm:$0xff] }
 0x581   :  { %v7250_v33 = vsel %vm6686_vm9, %v16870_v45, %v7245_v16  ;;  %v16879_v37 = vrot.slane %v16878_v2, %v14199_v5  ;;  %v16882_v41 = vrot.slane %v16881_v0, %v14214_v38  ;;  %vm16885_vm4 = vcmask 589312   ;;  %v16898_v45 = vld [vmem:[#allocation93_spill] sm:$0xff]  ;;  %v16899_v44 = vld [vmem:[#allocation174_spill] sm:$0xff] }
 0x582   :  { %v7872_v60 = vsel %vm16885_vm4, %v7871_v23, %v7867_v31  ;;  %v7886_v1 = vrot.slane %v14838_v3, %v14199_v5  ;;  %v7881_v8 = vrot.slane %v14722_v29, %v14187_v55  ;;  %v7891_v23 = vrot.slane %v14852_v34, %v14214_v38 }
 0x583   :  { %v6301_v62 = vpop.xlane.xlu0 %6300  ;;  %v7176_v35 = vsel %vm6693_vm10, %v16879_v37, %v16877_v21 }
 0x584   :  { %v7817_v42 = vrot.slane %v6301_v62, %v14253_v11  ;;  %v7739_v62 = vsel %vm6707_vm12, %v7738_v58, %v7734_v6  ;;  %v16869_v58 = vrot.slane %v16868_v18, %v14286_v52  ;;  %v16880_v6 = vld [vmem:[#allocation184_spill] sm:$0xff] }
 0x585   :  { %v7744_v59 = vsel %vm6714_vm13, %v7743_v12, %v7739_v62  ;;  %v16883_v62 = vld [vmem:[#allocation158_spill] sm:$0xff]  ;;  %v7190_v12 = vrot.slane %v16886_v10, %v14286_v52 }
 0x586   :  { %v7818_v7 = vsel %vm6707_vm12, %v7817_v42, %v7813_v39  ;;  %v7876_v42 = vrot.slane %v14705_v51, %v14181_v19  ;;  %v7033_v25 = vsel %vm6714_vm13, %v16869_v58, %v16867_v56  ;;  %v16873_v19 = vld [vmem:[#allocation157_spill] sm:$0xff]  ;;  %v16876_v39 = vrot.slane %v16875_v17, %v14199_v5  ;;  %v16900_v17 = vld [vmem:[#allocation188_spill] sm:$0xff] }
 0x587   :  { %v6307_v26 = vpop.xlane.xlu1 %6306  ;;  %v7823_v22 = vsel %vm6714_vm13, %v7822_v9, %v7818_v7  ;;  %v7106_v51 = vrot.slane %v16873_v19, %v14253_v11  ;;  %v7254_v7 = vrot.slane %v16880_v6, %v14199_v5  ;;  %v7111_v9 = vrot.slane %v16883_v62, %v14286_v52 }
 0x588   :  { %v7827_v46 = vrot.slane %v6307_v26, %v14256_v27  ;;  %v7097_v54 = vsel %vm6693_vm10, %v16876_v39, %v16874_v57  ;;  %v16884_v26 = vrot.slane %v16819_v63, %v14214_v38  ;;  %v7877_v13 = vsel %vm16887_vm5, %v7876_v42, %v7872_v60  ;;  %v16889_v63 = vld [vmem:[#allocation187_spill] sm:$0xff] }
 0x589   :  { %v7102_v15 = vsel %vm6700_vm11, %v16882_v41, %v7097_v54  ;;  %v7269_v24 = vrot.slane %v16889_v63, %v14286_v52  ;;  %v7882_v31 = vsel %vm6686_vm9, %v7881_v8, %v7877_v13 }
 0x58a   :  { %v7828_v30 = vsel %vm6721_vm14, %v7827_v46, %v7823_v22  ;;  %v7181_v50 = vsel %vm6700_vm11, %v16884_v26, %v7176_v35  ;;  %v7185_v22 = vrot.slane %v16888_v49, %v14253_v11  ;;  %v16890_v46 = vld [vmem:[#allocation112_spill] sm:$0xff]  ;;  %v7887_v18 = vsel %vm6693_vm10, %v7886_v1, %v7882_v31 }
 0x58b   :  { %v6259_v43 = vpop.xlane.xlu0 %6258  ;;  %v7892_v2 = vsel %vm6700_vm11, %v7891_v23, %v7887_v18 }
 0x58c   :  { %v7748_v61 = vrot.slane %v6259_v43, %v14256_v27  ;;  %v7255_v43 = vsel %vm6693_vm10, %v7254_v7, %v7250_v33  ;;  %v7186_v16 = vsel %vm6707_vm12, %v7185_v22, %v7181_v50 }
 0x58d   :  { %v7191_v42 = vsel %vm6714_vm13, %v7190_v12, %v7186_v16 }
 0x58e   :  { %v7749_v48 = vsel %vm6721_vm14, %v7748_v61, %v7744_v59  ;;  %v7260_v61 = vsel %vm6700_vm11, %v7259_v28, %v7255_v43  ;;  %v16891_v59 = vld [vmem:[#allocation15_spill] sm:$0xff]  ;;  %v7195_v28 = vrot.slane %v16899_v44, %v14256_v27 }
 0x58f   :  { %v7926_v20 = vsel %vm7916_vm0, %v7749_v48, %v7925_v4  ;;  %v16892_v36 = vrot.slane %v16891_v59, %v14256_v27  ;;  %v16893_v48 = vld [vmem:[#allocation145_spill] sm:$0xff]  ;;  %v7107_v4 = vsel %vm6707_vm12, %v7106_v51, %v7102_v15 }
 0x590   :  { %v7927_v14 = vsel %vm7918_vm1, %v7828_v30, %v7926_v20  ;;  %v16894_v5 = vrot.slane %v16893_v48, %v14256_v27  ;;  %v7264_v30 = vrot.slane %v16895_v32, %v14253_v11  ;;  %v16896_v20 = vld [vmem:[#allocation159_spill] sm:$0xff]  ;;  %v7112_v29 = vsel %vm6714_vm13, %v7111_v9, %v7107_v4  ;;  %v6355_v19 = vpop.xlane.xlu1 %6354 }
 0x591   :  { %v6959_v40 = vsel %vm6721_vm14, %v16892_v36, %v16890_v46  ;;  %v7116_v55 = vrot.slane %v16896_v20, %v14256_v27  ;;  %v7196_v21 = vsel %vm6721_vm14, %v7195_v28, %v7191_v42  ;;  %v7906_v38 = vrot.slane %v6355_v19, %v14256_v27 }
 0x592   :  { %v7038_v3 = vsel %vm6721_vm14, %v16894_v5, %v7033_v25  ;;  %v7265_v56 = vsel %vm6707_vm12, %v7264_v30, %v7260_v61  ;;  %v16897_v25 = vld [vmem:[#allocation76_spill] sm:$0xff] }
 0x593   :  { %v7911_v33 = vsel %vm7910_vm6, %v16898_v45, %v16897_v25  ;;  %v7270_v47 = vsel %vm6714_vm13, %v7269_v24, %v7265_v56  ;;  %v7117_v57 = vsel %vm6721_vm14, %v7116_v55, %v7112_v29  ;;  %vm7920_vm6 = vcmask 1047559  }
 0x594   :  { %v6349_v53 = vpop.xlane.xlu0 %6348  ;;  %v7913_v51 = vsel %vm7912_vm7, %v6959_v40, %v7911_v33 }
 0x595   :  { %v7896_v58 = vrot.slane %v6349_v53, %v14253_v11  ;;  %v7274_v11 = vrot.slane %v16900_v17, %v14256_v27  ;;  %v7915_v54 = vsel %vm7914_vm8, %v7038_v3, %v7913_v51 }
 0x596   :  { %v7917_v7 = vsel %vm7916_vm0, %v7117_v57, %v7915_v54 }
 0x597   :  { %v7275_v35 = vsel %vm6721_vm14, %v7274_v11, %v7270_v47  ;;  %v7897_v34 = vsel %vm6707_vm12, %v7896_v58, %v7892_v2  ;;  %v7919_v41 = vsel %vm7918_vm1, %v7196_v21, %v7917_v7 }
 0x598   :  { %v7921_v15 = vsel %vm7920_vm6, %v7275_v35, %v7919_v41 }
 0x599   :  { %v6352_v39 = vpop.xlane.xlu0 %6351 }
 0x59a   :  { %v7901_v37 = vrot.slane %v6352_v39, %v14286_v52 }
 0x59c   :  { %v7902_v6 = vsel %vm6714_vm13, %v7901_v37, %v7897_v34 }
 0x59d   :  { %v7907_v0 = vsel %vm6721_vm14, %v7906_v38, %v7902_v6 }
 0x59e   :  { %v7928_v62 = vsel %vm7920_vm6, %v7907_v0, %v7927_v14 }
 0x59f   :  { %v7973_v52 = vpack.c.bf16 %v7928_v62, %v7921_v15 }
 0x5a1   :  { %7974 = vst [vmem:[#allocation3] sm:$0xff] %v7973_v52  }
 0x5a2   :  { %8001 = shalt.err (!%p7998_p4)
}
 0x5a3   :  { %s8017_s17 = smov 64   ;;  %s8018_s18 = smov 4  }
 0x5a4   :  { %7961 = dma.vmem_to_hbm [thread:$0]  %s7956_s15, 128, %s15059_s2, [#allocation4], %s8017_s17, %s8017_s17, %s8018_s18  }
 0x5a5   :  { %8010 = dma.done.wait [#allocation4], 128  }
 0x5a6   :  { %8011 = vsyncadd [#allocation4], 4294967168 }
 0x5a7   :  { %7965 = vsyncpa [#allocation4], 1 }

</bundles_post_ra>
